<compile_context>
chip_gen: v7x
topology: tpu7x:2x2x1
jax: 0.10.0
libtpu: 0.0.40
codegen_flags: <defaults>
</compile_context>

<pallas_src>
import functools

import jax
import jax.numpy as jnp
from jax.experimental import pallas as pl
from jax.experimental.pallas import tpu as pltpu


POWERS = (6, 8, 10)          # MixHopConv adjacency powers (module default)
_LN_EPS = 1e-5
_OUT_LANE_PAD = 128          # head output padded to a lane-dense width, sliced in wrapper


def _vmem_capacity_bytes():
    try:
        return int(pltpu.get_tpu_info().vmem_capacity_bytes)
    except Exception:
        return 64 * 1024 * 1024   # conservative (v7x physical VMEM)


_VMEM_CAP = _vmem_capacity_bytes()
# Scoped-VMEM ceiling: ~3/4 of physical, capped at 100 MiB (v5e/v6e), floored at 32 MiB.
_VMEM_LIMIT = max(32 * 1024 * 1024, min(int(0.75 * _VMEM_CAP), 100 * 1024 * 1024))


# ---------------------------------------------------------------------------
# Math helpers (shared by the Pallas kernels AND the plain-JAX reference).
# ---------------------------------------------------------------------------
def _gelu(x):
    # tanh approximation of GELU.
    # TODO(synk): PyTorch F.gelu defaults to the exact erf form; the tanh approximation
    # (used consistently in kernel and reference) differs by ~1e-3.
    return 0.5 * x * (1.0 + jnp.tanh(0.7978845608028654 * (x + 0.044715 * x * x * x)))


def _layer_norm(h, gamma, beta):
    mu = jnp.mean(h, axis=-1, keepdims=True)
    var = jnp.mean(jnp.square(h - mu), axis=-1, keepdims=True)
    return (h - mu) * jax.lax.rsqrt(var + _LN_EPS) * gamma + beta


def _bf16(x):
    return x.astype(jnp.bfloat16)


def _round_up(n, m):
    return ((n + m - 1) // m) * m


# ---------------------------------------------------------------------------
# Kernels
# ---------------------------------------------------------------------------
def fused_kernel(x_ref, a_ref, w1_ref, b1_ref, g1_ref, bt1_ref,
                 wc_ref, bc_ref, g2_ref, bt2_ref, w2_ref, b2_ref, o_ref,
                 *, powers):
    """Whole forward pass with A_hat resident in VMEM (single invocation, no grid)."""
    n_rows = x_ref.shape[0]
    nfeat = wc_ref.shape[2]

    # Stage 0: lin1 -> GELU -> LayerNorm1 (dropout = identity in eval mode).
    h = jnp.dot(x_ref[...], w1_ref[...], preferred_element_type=jnp.float32) + b1_ref[...]
    h = _layer_norm(_gelu(h), g1_ref[...], bt1_ref[...])

    # Stage 1: z_k = A_hat @ z_{k-1}; A_hat stays VMEM-resident (DMA'd once), z carried
    # in bf16.  Captured powers are immediately projected with per-power weights that
    # were pre-placed into their column block of the 3*hid feature axis, so no in-kernel
    # concatenation is needed.
    z = h.astype(jnp.bfloat16)
    c = jnp.zeros((n_rows, nfeat), jnp.float32)
    idx = 0
    for p in range(1, max(powers) + 1):                       # static unroll (10 hops)
        z = jnp.dot(a_ref[...], z, preferred_element_type=jnp.float32).astype(jnp.bfloat16)
        if p in powers:
            c = c + jnp.dot(z, wc_ref[idx], preferred_element_type=jnp.float32)
            idx += 1

    # Stage 2: bias, GELU, LayerNorm2, lane-dense head (dropout identity).
    c = _layer_norm(_gelu(c + bc_ref[...]), g2_ref[...], bt2_ref[...])
    y = jnp.dot(c.astype(jnp.bfloat16), w2_ref[...],
                preferred_element_type=jnp.float32) + b2_ref[...]
    o_ref[...] = y.astype(o_ref.dtype)


def pre_kernel(x_ref, w1_ref, b1_ref, g1_ref, bt1_ref, o_ref):
    """h = LayerNorm1(gelu(X @ W1 + b1)) for one row tile (fallback path)."""
    h = jnp.dot(x_ref[...], w1_ref[...], preferred_element_type=jnp.float32) + b1_ref[...]
    o_ref[...] = _layer_norm(_gelu(h), g1_ref[...], bt1_ref[...]).astype(o_ref.dtype)


def prop_kernel(a_ref, z_ref, o_ref):
    """One hop z_out = A_hat @ z_in; full-K A row slab, z fully resident (fallback)."""
    o_ref[...] = jnp.dot(a_ref[...], z_ref[...],
                         preferred_element_type=jnp.float32).astype(o_ref.dtype)


def post_kernel(zs_ref, wc_ref, bc_ref, g2_ref, bt2_ref, w2_ref, b2_ref, o_ref):
    """MixHop projections + GELU + LayerNorm2 + lane-dense head for one row tile."""
    n_p = wc_ref.shape[0]
    c = jnp.zeros((zs_ref.shape[1], wc_ref.shape[2]), jnp.float32)
    for idx in range(n_p):
        c = c + jnp.dot(zs_ref[idx], wc_ref[idx], preferred_element_type=jnp.float32)
    c = _layer_norm(_gelu(c + bc_ref[...]), g2_ref[...], bt2_ref[...])
    y = jnp.dot(c.astype(jnp.bfloat16), w2_ref[...],
                preferred_element_type=jnp.float32) + b2_ref[...]
    o_ref[...] = y.astype(o_ref.dtype)


# ---------------------------------------------------------------------------
# pallas_call wrappers
# ---------------------------------------------------------------------------
def _full_spec(arr):
    nd = arr.ndim
    return pl.BlockSpec(arr.shape, lambda *_: (0,) * nd)


def _compiler_params(semantics=None):
    return pltpu.CompilerParams(dimension_semantics=semantics,
                                vmem_limit_bytes=_VMEM_LIMIT)


def _fused_call(x_bf, a_bf, prepped, powers):
    n, cin = x_bf.shape
    hid = prepped["w1"].shape[1]
    nfeat = prepped["wc"].shape[2]
    opad = prepped["w2"].shape[1]
    max_p = max(powers)
    flops = (2 * n * cin * hid + max_p * 2 * n * n * hid
             + len(powers) * 2 * n * hid * nfeat + 2 * n * nfeat * opad)
    return pl.pallas_call(
        functools.partial(fused_kernel, powers=powers),
        out_shape=jax.ShapeDtypeStruct((n, opad), jnp.float32),
        # No grid / no BlockSpecs: every operand is placed whole in VMEM, so A_hat is
        # DMA'd from HBM exactly once for all max(powers) hops.
        compiler_params=_compiler_params(),
        cost_estimate=pl.CostEstimate(
            flops=flops,
            transcendentals=n * (hid + nfeat),
            bytes_accessed=2 * n * n + 2 * n * cin + 4 * n * opad),
    )(x_bf, a_bf, prepped["w1"], prepped["b1"], prepped["ln1_g"], prepped["ln1_b"],
      prepped["wc"], prepped["bc"], prepped["ln2_g"], prepped["ln2_b"],
      prepped["w2"], prepped["b2"])


def _pick_row_tile(n_pad, budget_bytes):
    # Largest row tile whose double-buffered full-K bf16 A slab fits the budget.
    for t in (2048, 1024, 512, 256, 128, 64, 32, 16, 8):
        if n_pad % t == 0 and 2 * (t * n_pad * 2) <= budget_bytes:
            return t
    return 8


def _pre_call(x_bf, prepped, tm):
    n, cin = x_bf.shape
    hid = prepped["w1"].shape[1]
    return pl.pallas_call(
        pre_kernel,
        out_shape=jax.ShapeDtypeStruct((n, hid), jnp.bfloat16),
        grid=(n // tm,),
        in_specs=[pl.BlockSpec((tm, cin), lambda i: (i, 0)),
                  _full_spec(prepped["w1"]), _full_spec(prepped["b1"]),
                  _full_spec(prepped["ln1_g"]), _full_spec(prepped["ln1_b"])],
        out_specs=pl.BlockSpec((tm, hid), lambda i: (i, 0)),
        compiler_params=_compiler_params(("parallel",)),
        cost_estimate=pl.CostEstimate(
            flops=2 * n * cin * hid, transcendentals=n * hid,
            bytes_accessed=2 * n * cin + 2 * cin * hid + 2 * n * hid),
    )(x_bf, prepped["w1"], prepped["b1"], prepped["ln1_g"], prepped["ln1_b"])


def _prop_call(a_bf, z_bf, tm):
    n = a_bf.shape[0]
    hid = z_bf.shape[1]
    return pl.pallas_call(
        prop_kernel,
        out_shape=jax.ShapeDtypeStruct((n, hid), jnp.bfloat16),
        grid=(n // tm,),
        in_specs=[pl.BlockSpec((tm, n), lambda i: (i, 0)),     # full-K A_hat row slab
                  pl.BlockSpec((n, hid), lambda i: (0, 0))],   # z fully resident (1 DMA)
        out_specs=pl.BlockSpec((tm, hid), lambda i: (i, 0)),
        compiler_params=_compiler_params(("parallel",)),
        cost_estimate=pl.CostEstimate(
            flops=2 * n * n * hid, transcendentals=0,
            bytes_accessed=2 * n * n + 4 * n * hid),
    )(a_bf, z_bf)


def _post_call(zs_bf, prepped, tm):
    n_p, n, hid = zs_bf.shape
    nfeat = prepped["wc"].shape[2]
    opad = prepped["w2"].shape[1]
    return pl.pallas_call(
        post_kernel,
        out_shape=jax.ShapeDtypeStruct((n, opad), jnp.float32),
        grid=(n // tm,),
        in_specs=[pl.BlockSpec((n_p, tm, hid), lambda i: (0, i, 0)),
                  _full_spec(prepped["wc"]), _full_spec(prepped["bc"]),
                  _full_spec(prepped["ln2_g"]), _full_spec(prepped["ln2_b"]),
                  _full_spec(prepped["w2"]), _full_spec(prepped["b2"])],
        out_specs=pl.BlockSpec((tm, opad), lambda i: (i, 0)),
        compiler_params=_compiler_params(("parallel",)),
        cost_estimate=pl.CostEstimate(
            flops=2 * n * hid * nfeat * n_p + 2 * n * nfeat * opad,
            transcendentals=n * nfeat,
            bytes_accessed=2 * n * hid * n_p + 4 * n * opad),
    )(zs_bf, prepped["wc"], prepped["bc"], prepped["ln2_g"], prepped["ln2_b"],
      prepped["w2"], prepped["b2"])


# ---------------------------------------------------------------------------
# One-time parameter prep + forward
# ---------------------------------------------------------------------------
def prepare_params(params, powers=POWERS):
    """Hoisted out of the forward pass: bf16 weight casts, per-power projection weights
    pre-placed into their column block of the 3*hid axis, lane-dense padded head."""
    hid = params["w1"].shape[1]
    n_p = len(powers)
    nfeat = n_p * hid
    out_channels = params["w2"].shape[1]
    opad = _round_up(out_channels, _OUT_LANE_PAD)

    wc = jnp.zeros((n_p, hid, nfeat), jnp.float32)
    bc = jnp.zeros((1, nfeat), jnp.float32)
    for idx, p in enumerate(powers):
        wc = wc.at[idx, :, idx * hid:(idx + 1) * hid].set(params[f"wc{p}"])
        bc = bc.at[:, idx * hid:(idx + 1) * hid].set(params[f"bc{p}"])

    w2p = jnp.zeros((nfeat, opad), jnp.float32).at[:, :out_channels].set(params["w2"])
    b2p = jnp.zeros((1, opad), jnp.float32).at[:, :out_channels].set(params["b2"])

    return {
        "w1": _bf16(params["w1"]), "b1": params["b1"],
        "ln1_g": params["ln1_g"], "ln1_b": params["ln1_b"],
        "wc": _bf16(wc), "bc": bc,
        "ln2_g": params["ln2_g"], "ln2_b": params["ln2_b"],
        "w2": _bf16(w2p), "b2": b2p,
    }


def mixhop_lr_forward(a_hat, x, prepped, *, out_channels, powers=POWERS,
                      force_tiled=False):
    """Full MixHop_lr forward (eval mode). Dropout is identity in eval mode."""
    n, cin = x.shape
    hid = prepped["w1"].shape[1]
    nfeat = prepped["wc"].shape[2]
    opad = prepped["w2"].shape[1]

    x_bf = _bf16(x)
    a_bf = _bf16(a_hat)

    # "A_hat resident in VMEM" feasibility: A + activations + generous temporary slack.
    fused_bytes = 2 * n * n + n * (2 * cin + 24 * hid + 16 * nfeat + 8 * opad)
    use_fused = (not force_tiled) and fused_bytes <= int(0.6 * _VMEM_LIMIT)

    if use_fused:
        y = _fused_call(x_bf, a_bf, prepped, powers)
        return y[:, :out_channels]

    # Tiled fallback: pad N so row tiles divide evenly.  Padded rows/cols are zeros, so
    # the propagation results for the first n rows are unchanged.
    n_pad = _round_up(n, 128)
    if n_pad != n:
        x_bf = jnp.pad(x_bf, ((0, n_pad - n), (0, 0)))
        a_bf = jnp.pad(a_bf, ((0, n_pad - n), (0, n_pad - n)))
    tm = _pick_row_tile(n_pad, int(0.5 * _VMEM_LIMIT))

    h = _pre_call(x_bf, prepped, tm)                 # [n_pad, hid] bf16
    z = h
    captured = []
    for p in range(1, max(powers) + 1):
        z = _prop_call(a_bf, z, tm)                  # one hop per call, z stays bf16
        if p in powers:
            captured.append(z)
    zs = jnp.stack(captured, axis=0)                 # [P, n_pad, hid] (plain-JAX glue)
    y = _post_call(zs, prepped, tm)
    return y[:n, :out_channels]


# ---------------------------------------------------------------------------
# Graph construction + plain-JAX reference (mirrors the PyTorch module, eval mode)
# ---------------------------------------------------------------------------
def build_gcn_norm_dense(edge_index, num_nodes, edge_weight=None):
    """Dense GCN-normalized adjacency with self-loops: D^{-1/2} (A + I) D^{-1/2}."""
    row, col = edge_index[0], edge_index[1]
    if edge_weight is None:
        edge_weight = jnp.ones(row.shape[0], dtype=jnp.float32)
    loop = jnp.arange(num_nodes)
    row = jnp.concatenate([row, loop])
    col = jnp.concatenate([col, loop])
    ew = jnp.concatenate([edge_weight, jnp.ones(num_nodes, dtype=jnp.float32)])
    deg = jnp.zeros(num_nodes, dtype=jnp.float32).at[col].add(ew)
    dinv = jnp.where(deg > 0, 1.0 / jnp.sqrt(deg), 0.0)
    norm = dinv[row] * ew * dinv[col]
    # message passing: out[i] = sum_{(j -> i)} norm * x[j]  =>  A_hat[i, j] = norm
    return jnp.zeros((num_nodes, num_nodes), dtype=jnp.float32).at[col, row].add(norm)


def reference_forward(a_hat, x, params, powers=POWERS):
    def bdot(a, b):
        return jnp.dot(_bf16(a), _bf16(b), preferred_element_type=jnp.float32)

    h = _layer_norm(_gelu(bdot(x, params["w1"]) + params["b1"]),
                    params["ln1_g"], params["ln1_b"])
    z = h
    outs = []
    for p in range(1, max(powers) + 1):
        z = bdot(a_hat, z)
        if p in powers:
            outs.append(z)
    c = jnp.concatenate(
        [bdot(zp, params[f"wc{p}"]) + params[f"bc{p}"]
         for zp, p in zip(outs, powers)], axis=-1)
    c = _layer_norm(_gelu(c), params["ln2_g"], params["ln2_b"])
    return bdot(c, params["w2"]) + params["b2"]


if __name__ == "__main__":
    # Small shapes consistent with the module defaults (num_hid=16, powers=[6,8,10]);
    # N=384 exercises the fused resident-A path AND (forced) the tiled fallback path.
    N = 384
    in_channels = 32
    num_hid = 16
    out_channels = 8

    key = jax.random.PRNGKey(0)
    keys = jax.random.split(key, 15)
    x = jax.random.normal(keys[0], (N, in_channels), dtype=jnp.float32)

    # Deterministic ring graph (both directions).
    src = jnp.arange(N)
    dst = (src + 1) % N
    edge_index = jnp.stack([jnp.concatenate([src, dst]),
                            jnp.concatenate([dst, src])])
    a_hat = build_gcn_norm_dense(edge_index, N)
    a_hat_bf16 = a_hat.astype(jnp.bfloat16)   # A_hat dominates HBM bytes -> bf16
    # TODO(synk): per-generation A_hat quantization (int8 on v5e/v6e, fp8 on v7x) would
    # further halve adjacency bytes; left in bf16 here to keep reference parity.

    s = 0.3
    params = {
        "w1": s * jax.random.normal(keys[1], (in_channels, num_hid), jnp.float32),
        "b1": s * jax.random.normal(keys[2], (1, num_hid), jnp.float32),
        "ln1_g": 1.0 + 0.1 * jax.random.normal(keys[3], (1, num_hid), jnp.float32),
        "ln1_b": 0.1 * jax.random.normal(keys[4], (1, num_hid), jnp.float32),
        "wc6": s * jax.random.normal(keys[5], (num_hid, num_hid), jnp.float32),
        "bc6": s * jax.random.normal(keys[6], (1, num_hid), jnp.float32),
        "wc8": s * jax.random.normal(keys[7], (num_hid, num_hid), jnp.float32),
        "bc8": s * jax.random.normal(keys[8], (1, num_hid), jnp.float32),
        "wc10": s * jax.random.normal(keys[9], (num_hid, num_hid), jnp.float32),
        "bc10": s * jax.random.normal(keys[10], (1, num_hid), jnp.float32),
        "ln2_g": 1.0 + 0.1 * jax.random.normal(keys[11], (1, 3 * num_hid), jnp.float32),
        "ln2_b": 0.1 * jax.random.normal(keys[12], (1, 3 * num_hid), jnp.float32),
        "w2": s * jax.random.normal(keys[13], (3 * num_hid, out_channels), jnp.float32),
        "b2": s * jax.random.normal(keys[14], (1, out_channels), jnp.float32),
    }
    # TODO(synk): dropout is identity (eval mode); training-mode dropout would need
    # pltpu.prng_random_bits inside the kernels.

    prepped = prepare_params(params, POWERS)
    fwd = jax.jit(mixhop_lr_forward,
                  static_argnames=("out_channels", "powers", "force_tiled"))

    out_fused = jax.block_until_ready(
        fwd(a_hat_bf16, x, prepped, out_channels=out_channels))
    out_tiled = jax.block_until_ready(
        fwd(a_hat_bf16, x, prepped, out_channels=out_channels, force_tiled=True))

    ref = reference_forward(a_hat_bf16, x, params)
    assert out_fused.shape == (N, out_channels)
    assert out_tiled.shape == (N, out_channels)
    # bf16 MXU inputs with f32 accumulation on both sides; tolerance absorbs
    # accumulation-order / transcendental-implementation differences.
    assert jnp.allclose(out_fused, ref, atol=5e-3, rtol=5e-3), "fused path mismatch vs reference"
    assert jnp.allclose(out_tiled, ref, atol=5e-3, rtol=5e-3), "tiled path mismatch vs reference"

    print("KERNEL_OK")
</pallas_src>

<mosaic_0001>
module attributes {stable_mosaic.version = 11 : i64} {
  func.func @fused_kernel(%arg0: memref<384x32xbf16, #tpu.memory_space<vmem>>, %arg1: memref<384x384xbf16, #tpu.memory_space<vmem>>, %arg2: memref<32x16xbf16, #tpu.memory_space<vmem>>, %arg3: memref<1x16xf32, #tpu.memory_space<vmem>>, %arg4: memref<1x16xf32, #tpu.memory_space<vmem>>, %arg5: memref<1x16xf32, #tpu.memory_space<vmem>>, %arg6: memref<3x16x48xbf16, #tpu.memory_space<vmem>>, %arg7: memref<1x48xf32, #tpu.memory_space<vmem>>, %arg8: memref<1x48xf32, #tpu.memory_space<vmem>>, %arg9: memref<1x48xf32, #tpu.memory_space<vmem>>, %arg10: memref<48x128xbf16, #tpu.memory_space<vmem>>, %arg11: memref<1x128xf32, #tpu.memory_space<vmem>>, %arg12: memref<384x128xf32, #tpu.memory_space<vmem>>) attributes {dimension_semantics = [], scalar_prefetch = 0 : i64, scratch_operands = 0 : i64, tpu.core_type = #tpu.core_type<tc>} {
    %c0 = arith.constant 0 : index
    %c0_0 = arith.constant 0 : index
    %0 = vector.load %arg0[%c0, %c0_0] : memref<384x32xbf16, #tpu.memory_space<vmem>>, vector<384x32xbf16>
    %c0_1 = arith.constant 0 : index
    %c0_2 = arith.constant 0 : index
    %1 = vector.load %arg2[%c0_1, %c0_2] : memref<32x16xbf16, #tpu.memory_space<vmem>>, vector<32x16xbf16>
    %cst = arith.constant dense<0.000000e+00> : vector<384x16xf32>
    %2 = tpu.matmul %0, %1, %cst {dimension_numbers = #tpu.dot_dimension_numbers<[1], [0], [0], [1], [0, 0, 1, 1], [], []>} : vector<384x32xbf16>, vector<32x16xbf16>, vector<384x16xf32> -> vector<384x16xf32>
    %c0_3 = arith.constant 0 : index
    %c0_4 = arith.constant 0 : index
    %3 = vector.load %arg3[%c0_3, %c0_4] : memref<1x16xf32, #tpu.memory_space<vmem>>, vector<1x16xf32>
    %4 = vector.broadcast %3 : vector<1x16xf32> to vector<384x16xf32>
    %5 = arith.addf %2, %4 : vector<384x16xf32>
    %cst_5 = arith.constant 5.000000e-01 : f32
    %6 = vector.broadcast %cst_5 : f32 to vector<384x16xf32>
    %7 = arith.mulf %6, %5 : vector<384x16xf32>
    %cst_6 = arith.constant 4.471500e-02 : f32
    %8 = vector.broadcast %cst_6 : f32 to vector<384x16xf32>
    %9 = arith.mulf %8, %5 : vector<384x16xf32>
    %10 = arith.mulf %9, %5 : vector<384x16xf32>
    %11 = arith.mulf %10, %5 : vector<384x16xf32>
    %12 = arith.addf %5, %11 : vector<384x16xf32>
    %cst_7 = arith.constant 0.797884583 : f32
    %13 = vector.broadcast %cst_7 : f32 to vector<384x16xf32>
    %14 = arith.mulf %13, %12 : vector<384x16xf32>
    %15 = math.tanh %14 : vector<384x16xf32>
    %cst_8 = arith.constant 1.000000e+00 : f32
    %16 = vector.broadcast %cst_8 : f32 to vector<384x16xf32>
    %17 = arith.addf %16, %15 : vector<384x16xf32>
    %18 = arith.mulf %7, %17 : vector<384x16xf32>
    %c0_9 = arith.constant 0 : index
    %c0_10 = arith.constant 0 : index
    %19 = vector.load %arg4[%c0_9, %c0_10] : memref<1x16xf32, #tpu.memory_space<vmem>>, vector<1x16xf32>
    %c0_11 = arith.constant 0 : index
    %c0_12 = arith.constant 0 : index
    %20 = vector.load %arg5[%c0_11, %c0_12] : memref<1x16xf32, #tpu.memory_space<vmem>>, vector<1x16xf32>
    %cst_13 = arith.constant dense<0.000000e+00> : vector<384xf32>
    %21 = vector.multi_reduction <add>, %18, %cst_13 [1] : vector<384x16xf32> to vector<384xf32>
    %22 = vector.shape_cast %21 : vector<384xf32> to vector<384x1xf32>
    %cst_14 = arith.constant 1.600000e+01 : f32
    %23 = vector.broadcast %cst_14 : f32 to vector<384x1xf32>
    %24 = arith.divf %22, %23 : vector<384x1xf32>
    %25 = vector.broadcast %24 : vector<384x1xf32> to vector<384x16xf32>
    %26 = arith.subf %18, %25 : vector<384x16xf32>
    %27 = arith.mulf %26, %26 : vector<384x16xf32>
    %cst_15 = arith.constant dense<0.000000e+00> : vector<384xf32>
    %28 = vector.multi_reduction <add>, %27, %cst_15 [1] : vector<384x16xf32> to vector<384xf32>
    %29 = vector.shape_cast %28 : vector<384xf32> to vector<384x1xf32>
    %cst_16 = arith.constant 1.600000e+01 : f32
    %30 = vector.broadcast %cst_16 : f32 to vector<384x1xf32>
    %31 = arith.divf %29, %30 : vector<384x1xf32>
    %32 = vector.broadcast %24 : vector<384x1xf32> to vector<384x16xf32>
    %33 = arith.subf %18, %32 : vector<384x16xf32>
    %cst_17 = arith.constant 9.99999974E-6 : f32
    %34 = vector.broadcast %cst_17 : f32 to vector<384x1xf32>
    %35 = arith.addf %31, %34 : vector<384x1xf32>
    %36 = math.rsqrt %35 : vector<384x1xf32>
    %37 = vector.broadcast %36 : vector<384x1xf32> to vector<384x16xf32>
    %38 = arith.mulf %33, %37 : vector<384x16xf32>
    %39 = vector.broadcast %19 : vector<1x16xf32> to vector<384x16xf32>
    %40 = arith.mulf %38, %39 : vector<384x16xf32>
    %41 = vector.broadcast %20 : vector<1x16xf32> to vector<384x16xf32>
    %42 = arith.addf %40, %41 : vector<384x16xf32>
    %43 = arith.truncf %42 : vector<384x16xf32> to vector<384x16xbf16>
    %cst_18 = arith.constant 0.000000e+00 : f32
    %44 = vector.broadcast %cst_18 : f32 to vector<384x48xf32>
    %c0_19 = arith.constant 0 : index
    %c0_20 = arith.constant 0 : index
    %45 = vector.load %arg1[%c0_19, %c0_20] : memref<384x384xbf16, #tpu.memory_space<vmem>>, vector<384x384xbf16>
    %cst_21 = arith.constant dense<0.000000e+00> : vector<384x16xf32>
    %46 = tpu.matmul %45, %43, %cst_21 {dimension_numbers = #tpu.dot_dimension_numbers<[1], [0], [0], [1], [0, 0, 1, 1], [], []>} : vector<384x384xbf16>, vector<384x16xbf16>, vector<384x16xf32> -> vector<384x16xf32>
    %47 = arith.truncf %46 : vector<384x16xf32> to vector<384x16xbf16>
    %c0_22 = arith.constant 0 : index
    %c0_23 = arith.constant 0 : index
    %48 = vector.load %arg1[%c0_22, %c0_23] : memref<384x384xbf16, #tpu.memory_space<vmem>>, vector<384x384xbf16>
    %cst_24 = arith.constant dense<0.000000e+00> : vector<384x16xf32>
    %49 = tpu.matmul %48, %47, %cst_24 {dimension_numbers = #tpu.dot_dimension_numbers<[1], [0], [0], [1], [0, 0, 1, 1], [], []>} : vector<384x384xbf16>, vector<384x16xbf16>, vector<384x16xf32> -> vector<384x16xf32>
    %50 = arith.truncf %49 : vector<384x16xf32> to vector<384x16xbf16>
    %c0_25 = arith.constant 0 : index
    %c0_26 = arith.constant 0 : index
    %51 = vector.load %arg1[%c0_25, %c0_26] : memref<384x384xbf16, #tpu.memory_space<vmem>>, vector<384x384xbf16>
    %cst_27 = arith.constant dense<0.000000e+00> : vector<384x16xf32>
    %52 = tpu.matmul %51, %50, %cst_27 {dimension_numbers = #tpu.dot_dimension_numbers<[1], [0], [0], [1], [0, 0, 1, 1], [], []>} : vector<384x384xbf16>, vector<384x16xbf16>, vector<384x16xf32> -> vector<384x16xf32>
    %53 = arith.truncf %52 : vector<384x16xf32> to vector<384x16xbf16>
    %c0_28 = arith.constant 0 : index
    %c0_29 = arith.constant 0 : index
    %54 = vector.load %arg1[%c0_28, %c0_29] : memref<384x384xbf16, #tpu.memory_space<vmem>>, vector<384x384xbf16>
    %cst_30 = arith.constant dense<0.000000e+00> : vector<384x16xf32>
    %55 = tpu.matmul %54, %53, %cst_30 {dimension_numbers = #tpu.dot_dimension_numbers<[1], [0], [0], [1], [0, 0, 1, 1], [], []>} : vector<384x384xbf16>, vector<384x16xbf16>, vector<384x16xf32> -> vector<384x16xf32>
    %56 = arith.truncf %55 : vector<384x16xf32> to vector<384x16xbf16>
    %c0_31 = arith.constant 0 : index
    %c0_32 = arith.constant 0 : index
    %57 = vector.load %arg1[%c0_31, %c0_32] : memref<384x384xbf16, #tpu.memory_space<vmem>>, vector<384x384xbf16>
    %cst_33 = arith.constant dense<0.000000e+00> : vector<384x16xf32>
    %58 = tpu.matmul %57, %56, %cst_33 {dimension_numbers = #tpu.dot_dimension_numbers<[1], [0], [0], [1], [0, 0, 1, 1], [], []>} : vector<384x384xbf16>, vector<384x16xbf16>, vector<384x16xf32> -> vector<384x16xf32>
    %59 = arith.truncf %58 : vector<384x16xf32> to vector<384x16xbf16>
    %c0_34 = arith.constant 0 : index
    %c0_35 = arith.constant 0 : index
    %60 = vector.load %arg1[%c0_34, %c0_35] : memref<384x384xbf16, #tpu.memory_space<vmem>>, vector<384x384xbf16>
    %cst_36 = arith.constant dense<0.000000e+00> : vector<384x16xf32>
    %61 = tpu.matmul %60, %59, %cst_36 {dimension_numbers = #tpu.dot_dimension_numbers<[1], [0], [0], [1], [0, 0, 1, 1], [], []>} : vector<384x384xbf16>, vector<384x16xbf16>, vector<384x16xf32> -> vector<384x16xf32>
    %62 = arith.truncf %61 : vector<384x16xf32> to vector<384x16xbf16>
    %c0_37 = arith.constant 0 : index
    %c0_38 = arith.constant 0 : index
    %c0_39 = arith.constant 0 : index
    %63 = vector.load %arg6[%c0_37, %c0_38, %c0_39] : memref<3x16x48xbf16, #tpu.memory_space<vmem>>, vector<1x16x48xbf16>
    %64 = vector.shape_cast %63 : vector<1x16x48xbf16> to vector<16x48xbf16>
    %cst_40 = arith.constant dense<0.000000e+00> : vector<384x48xf32>
    %65 = tpu.matmul %62, %64, %cst_40 {dimension_numbers = #tpu.dot_dimension_numbers<[1], [0], [0], [1], [0, 0, 1, 1], [], []>} : vector<384x16xbf16>, vector<16x48xbf16>, vector<384x48xf32> -> vector<384x48xf32>
    %66 = arith.addf %44, %65 : vector<384x48xf32>
    %c0_41 = arith.constant 0 : index
    %c0_42 = arith.constant 0 : index
    %67 = vector.load %arg1[%c0_41, %c0_42] : memref<384x384xbf16, #tpu.memory_space<vmem>>, vector<384x384xbf16>
    %cst_43 = arith.constant dense<0.000000e+00> : vector<384x16xf32>
    %68 = tpu.matmul %67, %62, %cst_43 {dimension_numbers = #tpu.dot_dimension_numbers<[1], [0], [0], [1], [0, 0, 1, 1], [], []>} : vector<384x384xbf16>, vector<384x16xbf16>, vector<384x16xf32> -> vector<384x16xf32>
    %69 = arith.truncf %68 : vector<384x16xf32> to vector<384x16xbf16>
    %c0_44 = arith.constant 0 : index
    %c0_45 = arith.constant 0 : index
    %70 = vector.load %arg1[%c0_44, %c0_45] : memref<384x384xbf16, #tpu.memory_space<vmem>>, vector<384x384xbf16>
    %cst_46 = arith.constant dense<0.000000e+00> : vector<384x16xf32>
    %71 = tpu.matmul %70, %69, %cst_46 {dimension_numbers = #tpu.dot_dimension_numbers<[1], [0], [0], [1], [0, 0, 1, 1], [], []>} : vector<384x384xbf16>, vector<384x16xbf16>, vector<384x16xf32> -> vector<384x16xf32>
    %72 = arith.truncf %71 : vector<384x16xf32> to vector<384x16xbf16>
    %c1 = arith.constant 1 : index
    %c0_47 = arith.constant 0 : index
    %c0_48 = arith.constant 0 : index
    %73 = vector.load %arg6[%c1, %c0_47, %c0_48] : memref<3x16x48xbf16, #tpu.memory_space<vmem>>, vector<1x16x48xbf16>
    %74 = vector.shape_cast %73 : vector<1x16x48xbf16> to vector<16x48xbf16>
    %cst_49 = arith.constant dense<0.000000e+00> : vector<384x48xf32>
    %75 = tpu.matmul %72, %74, %cst_49 {dimension_numbers = #tpu.dot_dimension_numbers<[1], [0], [0], [1], [0, 0, 1, 1], [], []>} : vector<384x16xbf16>, vector<16x48xbf16>, vector<384x48xf32> -> vector<384x48xf32>
    %76 = arith.addf %66, %75 : vector<384x48xf32>
    %c0_50 = arith.constant 0 : index
    %c0_51 = arith.constant 0 : index
    %77 = vector.load %arg1[%c0_50, %c0_51] : memref<384x384xbf16, #tpu.memory_space<vmem>>, vector<384x384xbf16>
    %cst_52 = arith.constant dense<0.000000e+00> : vector<384x16xf32>
    %78 = tpu.matmul %77, %72, %cst_52 {dimension_numbers = #tpu.dot_dimension_numbers<[1], [0], [0], [1], [0, 0, 1, 1], [], []>} : vector<384x384xbf16>, vector<384x16xbf16>, vector<384x16xf32> -> vector<384x16xf32>
    %79 = arith.truncf %78 : vector<384x16xf32> to vector<384x16xbf16>
    %c0_53 = arith.constant 0 : index
    %c0_54 = arith.constant 0 : index
    %80 = vector.load %arg1[%c0_53, %c0_54] : memref<384x384xbf16, #tpu.memory_space<vmem>>, vector<384x384xbf16>
    %cst_55 = arith.constant dense<0.000000e+00> : vector<384x16xf32>
    %81 = tpu.matmul %80, %79, %cst_55 {dimension_numbers = #tpu.dot_dimension_numbers<[1], [0], [0], [1], [0, 0, 1, 1], [], []>} : vector<384x384xbf16>, vector<384x16xbf16>, vector<384x16xf32> -> vector<384x16xf32>
    %82 = arith.truncf %81 : vector<384x16xf32> to vector<384x16xbf16>
    %c2 = arith.constant 2 : index
    %c0_56 = arith.constant 0 : index
    %c0_57 = arith.constant 0 : index
    %83 = vector.load %arg6[%c2, %c0_56, %c0_57] : memref<3x16x48xbf16, #tpu.memory_space<vmem>>, vector<1x16x48xbf16>
    %84 = vector.shape_cast %83 : vector<1x16x48xbf16> to vector<16x48xbf16>
    %cst_58 = arith.constant dense<0.000000e+00> : vector<384x48xf32>
    %85 = tpu.matmul %82, %84, %cst_58 {dimension_numbers = #tpu.dot_dimension_numbers<[1], [0], [0], [1], [0, 0, 1, 1], [], []>} : vector<384x16xbf16>, vector<16x48xbf16>, vector<384x48xf32> -> vector<384x48xf32>
    %86 = arith.addf %76, %85 : vector<384x48xf32>
    %c0_59 = arith.constant 0 : index
    %c0_60 = arith.constant 0 : index
    %87 = vector.load %arg7[%c0_59, %c0_60] : memref<1x48xf32, #tpu.memory_space<vmem>>, vector<1x48xf32>
    %88 = vector.broadcast %87 : vector<1x48xf32> to vector<384x48xf32>
    %89 = arith.addf %86, %88 : vector<384x48xf32>
    %cst_61 = arith.constant 5.000000e-01 : f32
    %90 = vector.broadcast %cst_61 : f32 to vector<384x48xf32>
    %91 = arith.mulf %90, %89 : vector<384x48xf32>
    %cst_62 = arith.constant 4.471500e-02 : f32
    %92 = vector.broadcast %cst_62 : f32 to vector<384x48xf32>
    %93 = arith.mulf %92, %89 : vector<384x48xf32>
    %94 = arith.mulf %93, %89 : vector<384x48xf32>
    %95 = arith.mulf %94, %89 : vector<384x48xf32>
    %96 = arith.addf %89, %95 : vector<384x48xf32>
    %cst_63 = arith.constant 0.797884583 : f32
    %97 = vector.broadcast %cst_63 : f32 to vector<384x48xf32>
    %98 = arith.mulf %97, %96 : vector<384x48xf32>
    %99 = math.tanh %98 : vector<384x48xf32>
    %cst_64 = arith.constant 1.000000e+00 : f32
    %100 = vector.broadcast %cst_64 : f32 to vector<384x48xf32>
    %101 = arith.addf %100, %99 : vector<384x48xf32>
    %102 = arith.mulf %91, %101 : vector<384x48xf32>
    %c0_65 = arith.constant 0 : index
    %c0_66 = arith.constant 0 : index
    %103 = vector.load %arg8[%c0_65, %c0_66] : memref<1x48xf32, #tpu.memory_space<vmem>>, vector<1x48xf32>
    %c0_67 = arith.constant 0 : index
    %c0_68 = arith.constant 0 : index
    %104 = vector.load %arg9[%c0_67, %c0_68] : memref<1x48xf32, #tpu.memory_space<vmem>>, vector<1x48xf32>
    %cst_69 = arith.constant dense<0.000000e+00> : vector<384xf32>
    %105 = vector.multi_reduction <add>, %102, %cst_69 [1] : vector<384x48xf32> to vector<384xf32>
    %106 = vector.shape_cast %105 : vector<384xf32> to vector<384x1xf32>
    %cst_70 = arith.constant 4.800000e+01 : f32
    %107 = vector.broadcast %cst_70 : f32 to vector<384x1xf32>
    %108 = arith.divf %106, %107 : vector<384x1xf32>
    %109 = vector.broadcast %108 : vector<384x1xf32> to vector<384x48xf32>
    %110 = arith.subf %102, %109 : vector<384x48xf32>
    %111 = arith.mulf %110, %110 : vector<384x48xf32>
    %cst_71 = arith.constant dense<0.000000e+00> : vector<384xf32>
    %112 = vector.multi_reduction <add>, %111, %cst_71 [1] : vector<384x48xf32> to vector<384xf32>
    %113 = vector.shape_cast %112 : vector<384xf32> to vector<384x1xf32>
    %cst_72 = arith.constant 4.800000e+01 : f32
    %114 = vector.broadcast %cst_72 : f32 to vector<384x1xf32>
    %115 = arith.divf %113, %114 : vector<384x1xf32>
    %116 = vector.broadcast %108 : vector<384x1xf32> to vector<384x48xf32>
    %117 = arith.subf %102, %116 : vector<384x48xf32>
    %cst_73 = arith.constant 9.99999974E-6 : f32
    %118 = vector.broadcast %cst_73 : f32 to vector<384x1xf32>
    %119 = arith.addf %115, %118 : vector<384x1xf32>
    %120 = math.rsqrt %119 : vector<384x1xf32>
    %121 = vector.broadcast %120 : vector<384x1xf32> to vector<384x48xf32>
    %122 = arith.mulf %117, %121 : vector<384x48xf32>
    %123 = vector.broadcast %103 : vector<1x48xf32> to vector<384x48xf32>
    %124 = arith.mulf %122, %123 : vector<384x48xf32>
    %125 = vector.broadcast %104 : vector<1x48xf32> to vector<384x48xf32>
    %126 = arith.addf %124, %125 : vector<384x48xf32>
    %127 = arith.truncf %126 : vector<384x48xf32> to vector<384x48xbf16>
    %c0_74 = arith.constant 0 : index
    %c0_75 = arith.constant 0 : index
    %128 = vector.load %arg10[%c0_74, %c0_75] : memref<48x128xbf16, #tpu.memory_space<vmem>>, vector<48x128xbf16>
    %cst_76 = arith.constant dense<0.000000e+00> : vector<384x128xf32>
    %129 = tpu.matmul %127, %128, %cst_76 {dimension_numbers = #tpu.dot_dimension_numbers<[1], [0], [0], [1], [0, 0, 1, 1], [], []>} : vector<384x48xbf16>, vector<48x128xbf16>, vector<384x128xf32> -> vector<384x128xf32>
    %c0_77 = arith.constant 0 : index
    %c0_78 = arith.constant 0 : index
    %130 = vector.load %arg11[%c0_77, %c0_78] : memref<1x128xf32, #tpu.memory_space<vmem>>, vector<1x128xf32>
    %131 = vector.broadcast %130 : vector<1x128xf32> to vector<384x128xf32>
    %132 = arith.addf %129, %131 : vector<384x128xf32>
    %c0_79 = arith.constant 0 : index
    %c0_80 = arith.constant 0 : index
    %133 = vector.load %arg12[%c0_79, %c0_80] : memref<384x128xf32, #tpu.memory_space<vmem>>, vector<384x128xf32>
    tpu.vector_store %arg12[%c0_79, %c0_80], %132 {strides = array<i32>} : memref<384x128xf32, #tpu.memory_space<vmem>>, vector<384x128xf32>,
    return
  }
}

</mosaic_0001>

<bundles_post_ra>
// kernel: mixhop_lr_forward.1
= control target key start
LH: loop header
LB: loop body
LE: loop exit
PB: predicated region body
PF: predicated region fallthrough
CT: control target
= control target key end

     0   :  { %17 = vsyncpa [#allocation3], 0  ;;  %s12076_s21 = smov [#allocation2]   ;;  %s17113_s0 = inlined_call_operand.vmem [shape: bf16[384,32], index: 0, kind: input, shape index: {}]   ;;  %s17114_s1 = inlined_call_operand.hbm [shape: bf16[384,384], index: 1, kind: input, shape index: {}]   ;;  %s17115_s2 = inlined_call_operand.vmem [shape: bf16[32,16], index: 2, kind: input, shape index: {}]   ;;  %s17116_s3 = inlined_call_operand.vmem [shape: f32[1,16], index: 3, kind: input, shape index: {}]   ;;  %s17117_s4 = inlined_call_operand.vmem [shape: f32[1,16], index: 4, kind: input, shape index: {}]   ;;  %s17118_s5 = inlined_call_operand.vmem [shape: f32[1,16], index: 5, kind: input, shape index: {}]   ;;  %s17119_s6 = inlined_call_operand.vmem [shape: bf16[3,16,48], index: 6, kind: input, shape index: {}]   ;;  %s17120_s7 = inlined_call_operand.vmem [shape: f32[1,48], index: 7, kind: input, shape index: {}]   ;;  %s17121_s8 = inlined_call_operand.vmem [shape: f32[1,48], index: 8, kind: input, shape index: {}]   ;;  %s17122_s9 = inlined_call_operand.vmem [shape: f32[1,48], index: 9, kind: input, shape index: {}]   ;;  %s17123_s10 = inlined_call_operand.vmem [shape: bf16[48,128], index: 10, kind: input, shape index: {}]   ;;  %s17124_s11 = inlined_call_operand.vmem [shape: f32[1,128], index: 11, kind: input, shape index: {}]   ;;  %s17125_s12 = inlined_call_operand.vmem [shape: f32[384,128], index: 12, kind: output, shape index: {}]  }
   0x1   :  { %s25_s22 = sshll.u32 %s12076_s21, 4  ;;  %s12052_s25 = scalar_lea.hbm %s17114_s1, 9216  ;;  %s26_s22 = int_to_ptr.vmem [resolvable:$true] %s25_s22 }
   0x2   :  { %p12053_p0 = scmp.ne.s32.totalorder %s17114_s1, %s12052_s25  ;;  %p12056_p1 = scmp.lt.u32.totalorder %s12052_s25, %s17114_s1 }
   0x4   :  { %p12058_p2 = pnand %p12056_p1, %p12053_p0 }
   0x6   :  { %12061 = shalt.err (!%p12058_p2)
}
   0x7   :  { %s12062_s30 = scalar_lea.vmem %s26_s22, 9216  ;;  %p12067_p4 = scmp.lt.s32.totalorder %s26_s22, %s26_s22 }
   0x8   :  { %p12063_p3 = scmp.ne.s32.totalorder %s26_s22, %s12062_s30  ;;  %p12068_p5 = scmp.lt.s32.totalorder %s12062_s30, %s12062_s30 }
   0xa   :  { %p12069_p6 = por %p12068_p5, %p12067_p4 }
   0xc   :  { %p12070_p7 = pnand %p12069_p6, %p12063_p3 }
   0xe   :  { %12073 = shalt.err (!%p12070_p7)
}
   0xf   :  { %s12077_s13 = smov 192   ;;  %s12078_s14 = smov 12  }
  0x10   :  { %31 = dma.hbm_to_vmem [thread:$0]  %s17114_s1, 9216, %s26_s22, [#allocation3], %s12077_s13, %s12077_s13, %s12078_s14  }
  0x11   :  { %12074 = dma.done.wait [#allocation3], 9216  }
  0x12   :  { %12075 = vsyncadd [#allocation3], 4294958080  ;;  %v11249_v0 = vld [vmem:[%s17115_s2] sm:$0xff]   ;;  %v11250_v1 = vld [vmem:[%s17115_s2 + $0x8] sm:$0xff]   ;;  %vm247_vm0 = vcmask 261120   ;;  %vm979_vm1 = vcmask 130048  }
  0x13   :  { %10233 = vmatprep.subr.bf16.mxu0 %v11249_v0  ;;  %11129 = vmatprep.subr.bf16.mxu1 %v11249_v0  ;;  %v11251_v2 = vld [vmem:[%s17113_s0] sm:$0xff]   ;;  %v11253_v4 = vld [vmem:[%s17113_s0 + $0x8] sm:$0xff]   ;;  %v11255_v6 = vld [vmem:[%s17113_s0 + $0x10] sm:$0xff]   ;;  %vm8411_vm2 = vcmask 392192  }
  0x14   :  { %10234 = vmatpush3.bf16.msra.mxu0 %v11249_v0  ;;  %11131 = vmatpush3.bf16.msra.mxu1 %v11249_v0  ;;  %v11252_v3 = vld [vmem:[%s17113_s0 + $0x40] sm:$0xff]   ;;  %v11254_v5 = vld [vmem:[%s17113_s0 + $0x48] sm:$0xff]   ;;  %v11256_v7 = vld [vmem:[%s17113_s0 + $0x50] sm:$0xff]  }
  0x15   :  { %10235 = vmatprep.subr.bf16.mxu0 %v11250_v1  ;;  %11130 = vmatprep.subr.bf16.mxu1 %v11250_v1  ;;  %v11257_v8 = vld [vmem:[%s17113_s0 + $0x18] sm:$0xff]   ;;  %v11259_v10 = vld [vmem:[%s17113_s0 + $0x20] sm:$0xff]   ;;  %v11260_v12 = vld [vmem:[%s17113_s0 + $0x28] sm:$0xff]  }
  0x16   :  { %10237 = vmatprep.mubr.msk.bf16.mxu0 %vm247_vm0, %v11251_v2  ;;  %10253 = vmatprep.mubr.msk.bf16.mxu1 %vm247_vm0, %v11252_v3  ;;  %v11258_v9 = vld [vmem:[%s17113_s0 + $0x58] sm:$0xff]   ;;  %v11263_v11 = vld [vmem:[%s17113_s0 + $0x60] sm:$0xff]   ;;  %v11261_v13 = vld [vmem:[%s17113_s0 + $0x30] sm:$0xff]  }
  0x17   :  { %v11264_v14 = vld [vmem:[%s17113_s0 + $0x68] sm:$0xff]   ;;  %v11265_v15 = vld [vmem:[%s17113_s0 + $0x70] sm:$0xff]   ;;  %v11262_v16 = vld [vmem:[%s17113_s0 + $0x38] sm:$0xff]  }
  0x18   :  { %10236 = vmatpush3.bf16.msra.mxu0 %v11250_v1  ;;  %11132 = vmatpush3.bf16.msra.mxu1 %v11250_v1  ;;  %v11266_v17 = vld [vmem:[%s17113_s0 + $0x78] sm:$0xff]   ;;  %v11267_v18 = vld [vmem:[%s17113_s0 + $0x80] sm:$0xff]   ;;  %v11268_v19 = vld [vmem:[%s17113_s0 + $0x88] sm:$0xff]  }
  0x19   :  { %v11269_v20 = vld [vmem:[%s17113_s0 + $0x90] sm:$0xff]   ;;  %v11270_v21 = vld [vmem:[%s17113_s0 + $0x98] sm:$0xff]   ;;  %v11271_v22 = vld [vmem:[%s17113_s0 + $0xa0] sm:$0xff]  }
  0x1a   :  { %v11272_v23 = vld [vmem:[%s17113_s0 + $0xa8] sm:$0xff]   ;;  %v11273_v24 = vld [vmem:[%s17113_s0 + $0xb0] sm:$0xff]   ;;  %v11274_v25 = vld [vmem:[%s17113_s0 + $0xb8] sm:$0xff]  }
  0x1b   :  { %10238 = vmatmul.mubr.msk.bf16.vlgmr.msra.gmra.mrb[0].mxu0 %vm247_vm0, %v11253_v4  ;;  %10254 = vmatmul.mubr.msk.bf16.vlgmr.msra.gmra.mrb[0].mxu1 %vm247_vm0, %v11254_v5  ;;  %v12262_v26 = vld [vmem:[%s17116_s3] ss:$0 sm:$0xff] }
  0x1c   :  { %10241 = vmatprep.mubr.msk.bf16.mxu0 %vm247_vm0, %v11255_v6  ;;  %10257 = vmatprep.mubr.msk.bf16.mxu1 %vm247_vm0, %v11256_v7 }
  0x23   :  { %10242 = vmatmul.mubr.msk.bf16.gmra.mrb[4].mxu0 %vm247_vm0, %v11257_v8  ;;  %10258 = vmatmul.mubr.msk.bf16.gmra.mrb[4].mxu1 %vm247_vm0, %v11258_v9 }
  0x24   :  { %10245 = vmatprep.mubr.msk.bf16.mxu0 %vm247_vm0, %v11259_v10  ;;  %10261 = vmatprep.mubr.msk.bf16.mxu1 %vm247_vm0, %v11263_v11 }
  0x2b   :  { %10246 = vmatmul.mubr.msk.bf16.gmra.mrb[8].mxu0 %vm247_vm0, %v11260_v12  ;;  %10262 = vmatmul.mubr.msk.bf16.gmra.mrb[8].mxu1 %vm247_vm0, %v11264_v14 }
  0x2c   :  { %10249 = vmatprep.mubr.msk.bf16.mxu0 %vm247_vm0, %v11261_v13  ;;  %10265 = vmatprep.mubr.msk.bf16.mxu1 %vm247_vm0, %v11265_v15 }
  0x33   :  { %10250 = vmatmul.mubr.msk.bf16.gmra.mrb[12].mxu0 %vm247_vm0, %v11262_v16  ;;  %10266 = vmatmul.mubr.msk.bf16.gmra.mrb[12].mxu1 %vm247_vm0, %v11266_v17 }
  0x34   :  { %10269 = vmatprep.mubr.msk.bf16.mxu1 %vm247_vm0, %v11267_v18 }
  0x3b   :  { %10270 = vmatmul.mubr.msk.bf16.gmra.mrb[16].mxu1 %vm247_vm0, %v11268_v19 }
  0x3c   :  { %10273 = vmatprep.mubr.msk.bf16.mxu1 %vm247_vm0, %v11269_v20 }
  0x43   :  { %10274 = vmatmul.mubr.msk.bf16.gmra.mrb[20].mxu1 %vm247_vm0, %v11270_v21 }
  0x44   :  { %10277 = vmatprep.mubr.msk.bf16.mxu1 %vm247_vm0, %v11271_v22 }
  0x4b   :  { %10278 = vmatmul.mubr.msk.bf16.gmra.mrb[24].mxu1 %vm247_vm0, %v11272_v23 }
  0x4c   :  { %10281 = vmatprep.mubr.msk.bf16.mxu1 %vm247_vm0, %v11273_v24 }
  0x53   :  { %10282 = vmatmul.mubr.msk.bf16.gmra.mrb[28].mxu1 %vm247_vm0, %v11274_v25 }
  0xee   :  { %v10239_v27 = vpop.f32.mrb[0].mxu0  ;;  %v10255_v28 = vpop.f32.mrb[0].mxu1 }
  0xef   :  { %v363_v29 = vadd.f32 %v10239_v27, %v12262_v26  ;;  %v427_v30 = vadd.f32 %v10255_v28, %v12262_v26  ;;  %v354_v31 = vpop.f32.mrb[1].mxu0  ;;  %v418_v32 = vpop.f32.mrb[1].mxu1 }
  0xf0   :  { %v355_v33 = vadd.f32 %v12262_v26, %v354_v31  ;;  %v10240_v34 = vpop.f32.mrb[2].mxu0  ;;  %v10256_v35 = vpop.f32.mrb[2].mxu1  ;;  %v419_v42 = vadd.f32 %v12262_v26, %v418_v32 }
  0xf1   :  { %v366_v36 = vadd.f32 %v10240_v34, %v12262_v26  ;;  %v430_v37 = vadd.f32 %v10256_v35, %v12262_v26  ;;  %v357_v38 = vpop.f32.mrb[3].mxu0  ;;  %v421_v39 = vpop.f32.mrb[3].mxu1  ;;  %v611_v40 = vmul.f32 0.044715, %v427_v30  ;;  %v595_v41 = vmul.f32 0.044715, %v363_v29 }
  0xf2   :  { %v12270_v45 = vmul.f32 0.5, %v427_v30  ;;  %v593_v47 = vmul.f32 0.044715, %v355_v33  ;;  %v12273_v49 = vadd.f32 %v12262_v26, %v357_v38  ;;  %v12276_v50 = vadd.f32 %v12262_v26, %v421_v39 }
  0xf3   :  { %v659_v43 = vmul.f32 %v611_v40, %v427_v30  ;;  %v596_v44 = vmul.f32 0.044715, %v366_v36  ;;  %v643_v46 = vmul.f32 %v595_v41, %v363_v29  ;;  %v612_v48 = vmul.f32 0.044715, %v430_v37 }
  0xf4   :  { %v12278_v55 = vmul.f32 0.5, %v363_v29  ;;  %v12280_v57 = vmul.f32 0.5, %v366_v36  ;;  %v641_v58 = vmul.f32 %v593_v47, %v355_v33  ;;  %v609_v0 = vmul.f32 0.044715, %v419_v42 }
  0xf5   :  { %v707_v51 = vmul.f32 %v659_v43, %v427_v30  ;;  %v644_v52 = vmul.f32 %v596_v44, %v366_v36  ;;  %v691_v56 = vmul.f32 %v643_v46, %v363_v29  ;;  %v660_v63 = vmul.f32 %v612_v48, %v430_v37 }
  0xf6   :  { %v10243_v53 = vpop.f32.mrb[4].mxu0  ;;  %v10259_v54 = vpop.f32.mrb[4].mxu1  ;;  %v12282_v4 = vmul.f32 0.5, %v355_v33  ;;  %v689_v5 = vmul.f32 %v641_v58, %v355_v33  ;;  %v12284_v6 = vmul.f32 0.5, %v430_v37  ;;  %v12286_v11 = vmul.f32 0.5, %v419_v42 }
  0xf7   :  { %v370_v59 = vpop.f32.mrb[5].mxu0  ;;  %v434_v60 = vpop.f32.mrb[5].mxu1  ;;  %v755_v61 = vadd.f32 %v707_v51, %v427_v30  ;;  %v692_v62 = vmul.f32 %v644_v52, %v366_v36  ;;  %v739_v3 = vadd.f32 %v691_v56, %v363_v29  ;;  %v12289_v12 = vmul.f32 0.5, %v12276_v50 }
  0xf8   :  { %v10244_v1 = vpop.f32.mrb[6].mxu0  ;;  %v10260_v2 = vpop.f32.mrb[6].mxu1  ;;  %v12292_v13 = vadd.f32 %v10243_v53, %v12262_v26  ;;  %v737_v16 = vadd.f32 %v689_v5, %v355_v33  ;;  %v708_v18 = vmul.f32 %v660_v63, %v430_v37  ;;  %v657_v19 = vmul.f32 %v609_v0, %v419_v42 }
  0xf9   :  { %v373_v7 = vpop.f32.mrb[7].mxu0  ;;  %v437_v8 = vpop.f32.mrb[7].mxu1  ;;  %v803_v9 = vmul.f32 0.7978846, %v755_v61  ;;  %v740_v10 = vadd.f32 %v692_v62, %v366_v36  ;;  %v382_v14 = vadd.f32 %v10244_v1, %v12262_v26  ;;  %v787_v15 = vmul.f32 0.7978846, %v739_v3 }
  0xfa   :  { %v12296_v20 = vadd.f32 %v10259_v54, %v12262_v26  ;;  %v785_v21 = vmul.f32 0.7978846, %v737_v16  ;;  %v610_v22 = vmul.f32 0.044715, %v12276_v50  ;;  %v756_v23 = vadd.f32 %v708_v18, %v430_v37 }
  0xfb   :  { %11377 = vtanh.f32 %v803_v9  ;;  %v788_v17 = vmul.f32 0.7978846, %v740_v10  ;;  %v705_v24 = vmul.f32 %v657_v19, %v419_v42  ;;  %v594_v25 = vmul.f32 0.044715, %v12273_v49 }
  0xfc   :  { %11379 = vtanh.f32 %v787_v15  ;;  %v12301_v27 = vadd.f32 %v12262_v26, %v370_v59  ;;  %v658_v29 = vmul.f32 %v610_v22, %v12276_v50  ;;  %v600_v31 = vmul.f32 0.044715, %v382_v14 }
  0xfd   :  { %11381 = vtanh.f32 %v788_v17  ;;  %v12305_v32 = vadd.f32 %v12262_v26, %v434_v60  ;;  %v804_v34 = vmul.f32 0.7978846, %v756_v23  ;;  %v753_v35 = vadd.f32 %v705_v24, %v419_v42 }
  0xfe   :  { %v10247_v28 = vpop.f32.mrb[8].mxu0  ;;  %11383 = vtanh.f32 %v785_v21  ;;  %v10263_v30 = vpop.f32.mrb[8].mxu1  ;;  %v642_v36 = vmul.f32 %v594_v25, %v12273_v49  ;;  %v12309_v38 = vadd.f32 %v10260_v2, %v12262_v26  ;;  %v12312_v39 = vadd.f32 %v12262_v26, %v373_v7 }
  0xff   :  { %v386_v33 = vpop.f32.mrb[9].mxu0  ;;  %v450_v37 = vpop.f32.mrb[9].mxu1  ;;  %v706_v41 = vmul.f32 %v658_v29, %v12276_v50  ;;  %v648_v43 = vmul.f32 %v600_v31, %v382_v14  ;;  %v12316_v46 = vadd.f32 %v12262_v26, %v437_v8  ;;  %11385 = vtanh.f32 %v804_v34 }
 0x100   :  { %v10248_v40 = vpop.f32.mrb[10].mxu0  ;;  %v10264_v44 = vpop.f32.mrb[10].mxu1  ;;  %v801_v42 = vmul.f32 0.7978846, %v753_v35  ;;  %v690_v48 = vmul.f32 %v642_v36, %v12273_v49  ;;  %v12321_v53 = vmul.f32 0.5, %v12273_v49  ;;  %v12323_v54 = vmul.f32 0.5, %v382_v14 }
 0x101   :  { %v389_v47 = vpop.f32.mrb[11].mxu0  ;;  %v453_v51 = vpop.f32.mrb[11].mxu1  ;;  %v754_v52 = vadd.f32 %v706_v41, %v12276_v50  ;;  %v696_v56 = vmul.f32 %v648_v43, %v382_v14  ;;  %v12326_v58 = vadd.f32 %v10247_v28, %v12262_v26  ;;  %v599_v60 = vmul.f32 0.044715, %v12292_v13 }
 0x102   :  { %11387 = vtanh.f32 %v801_v42  ;;  %v738_v59 = vadd.f32 %v690_v48, %v12273_v49  ;;  %v12331_v61 = vadd.f32 %v12262_v26, %v386_v33  ;;  %v12334_v50 = vadd.f32 %v10263_v30, %v12262_v26 }
 0x103   :  { %v802_v62 = vmul.f32 0.7978846, %v754_v52  ;;  %v744_v63 = vadd.f32 %v696_v56, %v382_v14  ;;  %v12337_v1 = vadd.f32 %v10248_v40, %v12262_v26  ;;  %v647_v3 = vmul.f32 %v599_v60, %v12292_v13 }
 0x104   :  { %v786_v2 = vmul.f32 0.7978846, %v738_v59  ;;  %v598_v5 = vmul.f32 0.044715, %v12312_v39  ;;  %v12342_v7 = vadd.f32 %v12262_v26, %v389_v47  ;;  %v12347_v18 = vmul.f32 0.5, %v12292_v13 }
 0x105   :  { %v11378_v0 = vpop.eup %11377  ;;  %11389 = vtanh.f32 %v802_v62  ;;  %v792_v10 = vmul.f32 0.7978846, %v744_v63  ;;  %v695_v19 = vmul.f32 %v647_v3, %v12292_v13  ;;  %v12356_v28 = vadd.f32 %v12262_v26, %v450_v37 }
 0x106   :  { %v11380_v49 = vpop.eup %11379  ;;  %v10251_v8 = vpop.f32.mrb[12].mxu0  ;;  %v899_v9 = vadd.f32 1.0, %v11378_v0  ;;  %11391 = vtanh.f32 %v786_v2  ;;  %v12365_v35 = vadd.f32 %v10264_v44, %v12262_v26  ;;  %v12375_v40 = vadd.f32 %v12262_v26, %v453_v51 }
 0x107   :  { %v12344_v15 = vpop.f32.mrb[12].mxu1  ;;  %v11382_v14 = vpop.eup %11381  ;;  %v883_v17 = vadd.f32 1.0, %v11380_v49  ;;  %11393 = vtanh.f32 %v792_v10  ;;  %v743_v34 = vadd.f32 %v695_v19, %v12292_v13  ;;  %v597_v47 = vmul.f32 0.044715, %v12301_v27 }
 0x108   :  { %v402_v16 = vpop.f32.mrb[13].mxu0  ;;  %v12350_v21 = vpop.f32.mrb[13].mxu1  ;;  %v12353_v24 = vmul.f32 %v899_v9, %v12270_v45  ;;  %v884_v25 = vadd.f32 1.0, %v11382_v14  ;;  %v12389_v51 = vmul.f32 0.5, %v12301_v27  ;;  %v12392_v56 = vadd.f32 %v10251_v8, %v12262_v26 }
 0x109   :  { %v11384_v22 = vpop.eup %11383  ;;  %v10252_v23 = vpop.f32.mrb[14].mxu0  ;;  %v12361_v31 = vmul.f32 %v883_v17, %v12278_v55  ;;  %v646_v55 = vmul.f32 %v598_v5, %v12312_v39  ;;  %v791_v44 = vmul.f32 0.7978846, %v743_v34  ;;  %v614_v59 = vmul.f32 0.044715, %v12316_v46 }
 0x10a   :  { %17428 = vst [vmem:[#allocation5_spill] sm:$0xff] %v12353_v24  ;;  %v12358_v29 = vpop.f32.mrb[14].mxu1  ;;  %v405_v30 = vpop.f32.mrb[15].mxu0  ;;  %v881_v33 = vadd.f32 1.0, %v11384_v22  ;;  %v1034_v45 = vsel %vm979_vm1, %v12353_v24, 0.0  ;;  %v12372_v37 = vmul.f32 %v884_v25, %v12280_v57  ;;  %v12385_v57 = vmul.f32 0.5, %v12312_v39 }
 0x10b   :  { %v12367_v36 = vpop.f32.mrb[15].mxu1  ;;  %v11386_v41 = vpop.eup %11385  ;;  %1035 = vadd.xlane.f32.xlu0 %v1034_v45  ;;  %v986_v13 = vsel %vm979_vm1, %v12361_v31, 0.0  ;;  %v694_v48 = vmul.f32 %v646_v55, %v12312_v39  ;;  %11395 = vtanh.f32 %v791_v44  ;;  %v662_v49 = vmul.f32 %v614_v59, %v12316_v46 }
 0x10c   :  { %v12381_v43 = vmul.f32 %v881_v33, %v12282_v4  ;;  %987 = vadd.xlane.f32.xlu1 %v986_v13  ;;  %v900_v42 = vadd.f32 1.0, %v11386_v41  ;;  %v11388_v52 = vpop.eup %11387  ;;  %v645_v4 = vmul.f32 %v597_v47, %v12301_v27  ;;  %v989_v3 = vsel %vm979_vm1, %v12372_v37, 0.0 }
 0x10d   :  { %v897_v63 = vadd.f32 1.0, %v11388_v52  ;;  %v742_v0 = vadd.f32 %v694_v48, %v12312_v39  ;;  %v613_v8 = vmul.f32 0.044715, %v12305_v32  ;;  %v12415_v39 = vadd.f32 %v10252_v23, %v12262_v26 }
 0x10e   :  { %v980_v60 = vsel %vm979_vm1, %v12381_v43, 0.0  ;;  %v12399_v62 = vmul.f32 %v900_v42, %v12284_v6  ;;  %v12402_v2 = vpop.f32.mrb[16].mxu1  ;;  %v693_v5 = vmul.f32 %v645_v4, %v12301_v27  ;;  %v12412_v6 = vadd.f32 %v12262_v26, %v402_v16 }
 0x10f   :  { %981 = vadd.xlane.f32.xlu0 %v980_v60  ;;  %v12409_v9 = vpop.f32.mrb[17].mxu1  ;;  %v11390_v10 = vpop.eup %11389  ;;  %v12418_v14 = vmul.f32 %v897_v63, %v12286_v11  ;;  %v790_v17 = vmul.f32 0.7978846, %v742_v0  ;;  %v710_v34 = vmul.f32 %v662_v49, %v12316_v46  ;;  %v661_v45 = vmul.f32 %v613_v8, %v12305_v32 }
 0x110   :  { %990 = vadd.xlane.f32.xlu1 %v989_v3  ;;  %v12420_v19 = vpop.f32.mrb[18].mxu1  ;;  %v11392_v22 = vpop.eup %11391  ;;  %v898_v25 = vadd.f32 1.0, %v11390_v10  ;;  %v741_v33 = vadd.f32 %v693_v5, %v12301_v27  ;;  %v1037_v23 = vsel %vm979_vm1, %v12399_v62, 0.0  ;;  %v12436_v42 = vadd.f32 %v12262_v26, %v405_v30 }
 0x111   :  { %v12425_v16 = vpop.f32.mrb[19].mxu1  ;;  %v11394_v55 = vpop.eup %11393  ;;  %v1028_v11 = vsel %vm979_vm1, %v12418_v14, 0.0  ;;  %v882_v41 = vadd.f32 1.0, %v11392_v22  ;;  %11397 = vtanh.f32 %v790_v17  ;;  %v758_v47 = vadd.f32 %v710_v34, %v12316_v46 }
 0x112   :  { %v12432_v13 = vmul.f32 %v898_v25, %v12289_v12  ;;  %v888_v27 = vadd.f32 1.0, %v11394_v55  ;;  %v789_v44 = vmul.f32 0.7978846, %v741_v33  ;;  %v709_v52 = vmul.f32 %v661_v45, %v12305_v32 }
 0x113   :  { %1029 = vadd.xlane.f32.xlu0 %v1028_v11  ;;  %v12439_v48 = vmul.f32 %v882_v41, %v12321_v53  ;;  %v604_v4 = vmul.f32 0.044715, %v12337_v1  ;;  %v12444_v59 = vmul.f32 0.5, %v12316_v46  ;;  %v806_v12 = vmul.f32 0.7978846, %v758_v47 }
 0x114   :  { %1038 = vadd.xlane.f32.xlu1 %v1037_v23  ;;  %11399 = vtanh.f32 %v789_v44  ;;  %v12447_v60 = vmul.f32 0.5, %v12305_v32  ;;  %v757_v63 = vadd.f32 %v709_v52, %v12305_v32  ;;  %v12454_v53 = vadd.f32 %v12344_v15, %v12262_v26 }
 0x115   :  { %v983_v30 = vsel %vm979_vm1, %v12439_v48, 0.0  ;;  %v652_v0 = vmul.f32 %v604_v4, %v12337_v1  ;;  %v11396_v5 = vpop.eup %11395  ;;  %v1031_v46 = vsel %vm979_vm1, %v12432_v13, 0.0  ;;  %v12462_v49 = vmul.f32 %v888_v27, %v12323_v54 }
 0x116   :  { %v12457_v3 = vpop.f32.mrb[20].mxu1  ;;  %11401 = vtanh.f32 %v806_v12  ;;  %v603_v8 = vmul.f32 0.044715, %v12326_v58  ;;  %v887_v15 = vadd.f32 1.0, %v11396_v5  ;;  %v805_v10 = vmul.f32 0.7978846, %v757_v63 }
 0x117   :  { %984 = vadd.xlane.f32.xlu0 %v983_v30  ;;  %v12465_v32 = vpop.f32.mrb[21].mxu1  ;;  %v12469_v17 = vadd.f32 %v12262_v26, %v12350_v21  ;;  %v700_v22 = vmul.f32 %v652_v0, %v12337_v1  ;;  %v12476_v54 = vadd.f32 %v12358_v29, %v12262_v26  ;;  %v602_v34 = vmul.f32 0.044715, %v12342_v7 }
 0x118   :  { %1032 = vadd.xlane.f32.xlu1 %v1031_v46  ;;  %v12472_v25 = vpop.f32.mrb[22].mxu1  ;;  %v651_v33 = vmul.f32 %v603_v8, %v12326_v58  ;;  %v601_v45 = vmul.f32 0.044715, %v12331_v61  ;;  %v12484_v23 = vmul.f32 %v887_v15, %v12347_v18  ;;  %11403 = vtanh.f32 %v805_v10 }
 0x119   :  { %v12481_v55 = vpop.f32.mrb[23].mxu1  ;;  %v12487_v21 = vmul.f32 0.5, %v12337_v1  ;;  %v748_v11 = vadd.f32 %v700_v22, %v12337_v1  ;;  %v1001_v29 = vsel %vm979_vm1, %v12462_v49, 0.0  ;;  %v650_v27 = vmul.f32 %v602_v34, %v12342_v7 }
 0x11a   :  { %v699_v41 = vmul.f32 %v651_v33, %v12326_v58  ;;  %v649_v44 = vmul.f32 %v601_v45, %v12331_v61  ;;  %v998_v18 = vsel %vm979_vm1, %v12484_v23, 0.0  ;;  %v12498_v4 = vmul.f32 0.5, %v12326_v58 }
 0x11b   :  { %v11398_v47 = vpop.eup %11397  ;;  %v796_v52 = vmul.f32 0.7978846, %v748_v11  ;;  %v12502_v1 = vadd.f32 %v12262_v26, %v12367_v36  ;;  %999 = vadd.xlane.f32.xlu0 %v998_v18  ;;  %v698_v63 = vmul.f32 %v650_v27, %v12342_v7  ;;  %v12508_v5 = vmul.f32 0.5, %v12342_v7 }
 0x11c   :  { %1002 = vadd.xlane.f32.xlu1 %v1001_v29  ;;  %v886_v12 = vadd.f32 1.0, %v11398_v47  ;;  %v747_v30 = vadd.f32 %v699_v41, %v12326_v58  ;;  %v697_v0 = vmul.f32 %v649_v44, %v12331_v61  ;;  %v608_v46 = vmul.f32 0.044715, %v12415_v39 }
 0x11d   :  { %11405 = vtanh.f32 %v796_v52  ;;  %v607_v8 = vmul.f32 0.044715, %v12392_v56  ;;  %v746_v58 = vadd.f32 %v698_v63, %v12342_v7  ;;  %v12522_v11 = vmul.f32 0.5, %v12331_v61 }
 0x11e   :  { %v12512_v15 = vpop.f32.mrb[24].mxu1  ;;  %v11400_v36 = vpop.eup %11399  ;;  %v12515_v10 = vmul.f32 %v886_v12, %v12385_v57  ;;  %v795_v22 = vmul.f32 0.7978846, %v747_v30  ;;  %v745_v33 = vadd.f32 %v697_v0, %v12331_v61  ;;  %v656_v29 = vmul.f32 %v608_v46, %v12415_v39 }
 0x11f   :  { %v12519_v34 = vpop.f32.mrb[25].mxu1  ;;  %v885_v45 = vadd.f32 1.0, %v11400_v36  ;;  %v655_v41 = vmul.f32 %v607_v8, %v12392_v56  ;;  %v794_v7 = vmul.f32 0.7978846, %v746_v58  ;;  %v12539_v63 = vadd.f32 %v12402_v2, %v12262_v26 }
 0x120   :  { %v12526_v27 = vpop.f32.mrb[26].mxu1  ;;  %v11402_v44 = vpop.eup %11401  ;;  %v995_v57 = vsel %vm979_vm1, %v12515_v10, 0.0  ;;  %11407 = vtanh.f32 %v795_v22  ;;  %v793_v47 = vmul.f32 0.7978846, %v745_v33  ;;  %v704_v12 = vmul.f32 %v656_v29, %v12415_v39 }
 0x121   :  { %v12530_v18 = vpop.f32.mrb[27].mxu1  ;;  %996 = vadd.xlane.f32.xlu1 %v995_v57  ;;  %v12533_v52 = vmul.f32 %v885_v45, %v12389_v51  ;;  %v902_v61 = vadd.f32 1.0, %v11402_v44  ;;  %v703_v30 = vmul.f32 %v655_v41, %v12392_v56  ;;  %11409 = vtanh.f32 %v794_v7 }
 0x122   :  { %v12543_v0 = vadd.f32 %v12262_v26, %v12409_v9  ;;  %v606_v46 = vmul.f32 0.044715, %v12436_v42  ;;  %v11404_v8 = vpop.eup %11403  ;;  %11411 = vtanh.f32 %v793_v47  ;;  %v752_v22 = vadd.f32 %v704_v12, %v12415_v39 }
 0x123   :  { %v992_v51 = vsel %vm979_vm1, %v12533_v52, 0.0  ;;  %v12549_v36 = vmul.f32 %v902_v61, %v12444_v59  ;;  %v901_v58 = vadd.f32 1.0, %v11404_v8  ;;  %v751_v2 = vadd.f32 %v703_v30, %v12392_v56 }
 0x124   :  { %993 = vadd.xlane.f32.xlu0 %v992_v51  ;;  %v654_v33 = vmul.f32 %v606_v46, %v12436_v42  ;;  %v605_v9 = vmul.f32 0.044715, %v12412_v6  ;;  %v12559_v29 = vadd.f32 %v12420_v19, %v12262_v26  ;;  %v12562_v59 = vmul.f32 0.5, %v12415_v39 }
 0x125   :  { %17429 = vst [vmem:[#allocation6_spill] sm:$0xff] %v12549_v36  ;;  %v1043_v45 = vsel %vm979_vm1, %v12549_v36, 0.0  ;;  %v800_v41 = vmul.f32 0.7978846, %v752_v22  ;;  %v12567_v57 = vmul.f32 %v901_v58, %v12447_v60  ;;  %v799_v7 = vmul.f32 0.7978846, %v751_v2 }
 0x126   :  { %v12564_v44 = vpop.f32.mrb[28].mxu1  ;;  %1044 = vadd.xlane.f32.xlu1 %v1043_v45  ;;  %v702_v47 = vmul.f32 %v654_v33, %v12436_v42  ;;  %v653_v61 = vmul.f32 %v605_v9, %v12412_v6  ;;  %v12574_v19 = vmul.f32 0.5, %v12392_v56  ;;  %v12578_v39 = vadd.f32 %v12262_v26, %v12425_v16 }
 0x127   :  { %17430 = vst [vmem:[#allocation7_spill] sm:$0xff] %v12567_v57  ;;  %v12571_v12 = vpop.f32.mrb[29].mxu1  ;;  %v11406_v30 = vpop.eup %11405  ;;  %11413 = vtanh.f32 %v800_v41  ;;  %v616_v46 = vmul.f32 0.044715, %v12309_v38  ;;  %v1040_v8 = vsel %vm979_vm1, %v12567_v57, 0.0  ;;  %v12589_v56 = vmul.f32 0.5, %v12436_v42 }
 0x128   :  { %v12581_v60 = vpop.f32.mrb[30].mxu1  ;;  %v892_v51 = vadd.f32 1.0, %v11406_v30  ;;  %11415 = vtanh.f32 %v799_v7  ;;  %v750_v22 = vadd.f32 %v702_v47, %v12436_v42  ;;  %1041 = vadd.xlane.f32.xlu0 %v1040_v8  ;;  %v701_v16 = vmul.f32 %v653_v61, %v12412_v6 }
 0x129   :  { %v12586_v58 = vpop.f32.mrb[31].mxu1  ;;  %v664_v2 = vmul.f32 %v616_v46, %v12309_v38  ;;  %v615_v33 = vmul.f32 0.044715, %v12296_v20  ;;  %v12598_v7 = vmul.f32 0.5, %v12412_v6  ;;  %v12602_v47 = vadd.f32 %v12457_v3, %v12262_v26 }
 0x12a   :  { %v11408_v9 = vpop.eup %11407  ;;  %v12595_v45 = vmul.f32 %v892_v51, %v12487_v21  ;;  %v798_v41 = vmul.f32 0.7978846, %v750_v22  ;;  %v749_v30 = vadd.f32 %v701_v16, %v12412_v6  ;;  %v12611_v51 = vadd.f32 %v12262_v26, %v12465_v32 }
 0x12b   :  { %v891_v42 = vadd.f32 1.0, %v11408_v9  ;;  %v712_v61 = vmul.f32 %v664_v2, %v12309_v38  ;;  %v663_v46 = vmul.f32 %v615_v33, %v12296_v20  ;;  %v11410_v8 = vpop.eup %11409  ;;  %v618_v22 = vmul.f32 0.044715, %v12375_v40 }
 0x12c   :  { %v1013_v21 = vsel %vm979_vm1, %v12595_v45, 0.0  ;;  %11417 = vtanh.f32 %v798_v41  ;;  %v11412_v3 = vpop.eup %11411  ;;  %v890_v6 = vadd.f32 1.0, %v11410_v8  ;;  %v797_v16 = vmul.f32 0.7978846, %v749_v30 }
 0x12d   :  { %1014 = vadd.xlane.f32.xlu1 %v1013_v21  ;;  %v12615_v9 = vmul.f32 %v891_v42, %v12498_v4  ;;  %v760_v2 = vadd.f32 %v712_v61, %v12309_v38  ;;  %v889_v33 = vadd.f32 1.0, %v11412_v3  ;;  %v711_v57 = vmul.f32 %v663_v46, %v12296_v20 }
 0x12e   :  { %v666_v41 = vmul.f32 %v618_v22, %v12375_v40  ;;  %v617_v36 = vmul.f32 0.044715, %v12356_v28  ;;  %v12624_v24 = vmul.f32 %v890_v6, %v12508_v5  ;;  %11419 = vtanh.f32 %v797_v16 }
 0x12f   :  { %v1010_v32 = vsel %vm979_vm1, %v12615_v9, 0.0  ;;  %v808_v4 = vmul.f32 0.7978846, %v760_v2  ;;  %v12627_v42 = vmul.f32 %v889_v33, %v12522_v11  ;;  %v759_v30 = vadd.f32 %v711_v57, %v12296_v20 }
 0x130   :  { %1011 = vadd.xlane.f32.xlu0 %v1010_v32  ;;  %v714_v61 = vmul.f32 %v666_v41, %v12375_v40  ;;  %v665_v46 = vmul.f32 %v617_v36, %v12356_v28  ;;  %v1007_v21 = vsel %vm979_vm1, %v12624_v24, 0.0  ;;  %v12636_v5 = vadd.f32 %v12472_v25, %v12262_v26 }
 0x131   :  { %v11414_v8 = vpop.eup %11413  ;;  %v568_v22 = vmul.f32 0.5, %v12309_v38  ;;  %11421 = vtanh.f32 %v808_v4  ;;  %1008 = vadd.xlane.f32.xlu1 %v1007_v21  ;;  %v12640_v57 = vmul.f32 0.5, %v12296_v20  ;;  %v807_v6 = vmul.f32 0.7978846, %v759_v30 }
 0x132   :  { %v11416_v3 = vpop.eup %11415  ;;  %v896_v11 = vadd.f32 1.0, %v11414_v8  ;;  %v762_v36 = vadd.f32 %v714_v61, %v12375_v40  ;;  %v1004_v16 = vsel %vm979_vm1, %v12627_v42, 0.0  ;;  %v12647_v25 = vadd.f32 %v12262_v26, %v12481_v55 }
 0x133   :  { %v895_v2 = vadd.f32 1.0, %v11416_v3  ;;  %v713_v38 = vmul.f32 %v665_v46, %v12356_v28  ;;  %11423 = vtanh.f32 %v807_v6  ;;  %v620_v41 = vmul.f32 0.044715, %v12365_v35 }
 0x134   :  { %1005 = vadd.xlane.f32.xlu0 %v1004_v16  ;;  %v12651_v33 = vmul.f32 %v896_v11, %v12562_v59  ;;  %v810_v20 = vmul.f32 0.7978846, %v762_v36  ;;  %v12658_v4 = vmul.f32 0.5, %v12375_v40  ;;  %v619_v55 = vmul.f32 0.044715, %v12334_v50 }
 0x135   :  { %v12655_v32 = vmul.f32 %v895_v2, %v12574_v19  ;;  %v761_v30 = vadd.f32 %v713_v38, %v12356_v28  ;;  %v12665_v59 = vmul.f32 0.5, %v12356_v28  ;;  %v668_v8 = vmul.f32 %v620_v41, %v12365_v35 }
 0x136   :  { %v11418_v61 = vpop.eup %11417  ;;  %v1025_v46 = vsel %vm979_vm1, %v12651_v33, 0.0  ;;  %11425 = vtanh.f32 %v810_v20  ;;  %v667_v3 = vmul.f32 %v619_v55, %v12334_v50  ;;  %v12673_v11 = vadd.f32 %v12512_v15, %v12262_v26 }
 0x137   :  { %1026 = vadd.xlane.f32.xlu1 %v1025_v46  ;;  %v1022_v19 = vsel %vm979_vm1, %v12655_v32, 0.0  ;;  %v894_v40 = vadd.f32 1.0, %v11418_v61  ;;  %v809_v21 = vmul.f32 0.7978846, %v761_v30  ;;  %v12677_v6 = vadd.f32 %v12262_v26, %v12519_v34 }
 0x138   :  { %1023 = vadd.xlane.f32.xlu0 %v1022_v19  ;;  %v716_v28 = vmul.f32 %v668_v8, %v12365_v35  ;;  %v624_v36 = vmul.f32 0.044715, %v12476_v54  ;;  %v11420_v16 = vpop.eup %11419  ;;  %v715_v38 = vmul.f32 %v667_v3, %v12334_v50  ;;  %v621_v20 = vmul.f32 0.044715, %v12469_v17 }
 0x139   :  { %v12682_v2 = vmul.f32 %v894_v40, %v12589_v56  ;;  %11427 = vtanh.f32 %v809_v21  ;;  %v893_v41 = vadd.f32 1.0, %v11420_v16  ;;  %v12688_v15 = vadd.f32 %v12526_v27, %v12262_v26 }
 0x13a   :  { %v764_v34 = vadd.f32 %v716_v28, %v12365_v35  ;;  %v672_v30 = vmul.f32 %v624_v36, %v12476_v54  ;;  %v763_v56 = vadd.f32 %v715_v38, %v12334_v50  ;;  %v669_v46 = vmul.f32 %v621_v20, %v12469_v17 }
 0x13b   :  { %v11422_v55 = vpop.eup %11421  ;;  %v1019_v61 = vsel %vm979_vm1, %v12682_v2, 0.0  ;;  %v622_v8 = vmul.f32 0.044715, %v12502_v1  ;;  %v12698_v19 = vmul.f32 %v893_v41, %v12598_v7  ;;  %v12702_v3 = vmul.f32 0.5, %v12365_v35 }
 0x13c   :  { %1020 = vadd.xlane.f32.xlu1 %v1019_v61  ;;  %v904_v27 = vadd.f32 1.0, %v11422_v55  ;;  %v812_v40 = vmul.f32 0.7978846, %v764_v34  ;;  %v720_v21 = vmul.f32 %v672_v30, %v12476_v54  ;;  %v811_v28 = vmul.f32 0.7978846, %v763_v56 }
 0x13d   :  { %v717_v36 = vmul.f32 %v669_v46, %v12469_v17  ;;  %v670_v16 = vmul.f32 %v622_v8, %v12502_v1  ;;  %v11424_v38 = vpop.eup %11423  ;;  %v1016_v20 = vsel %vm979_vm1, %v12698_v19, 0.0  ;;  %v571_v56 = vmul.f32 0.5, %v12334_v50 }
 0x13e   :  { %v12708_v61 = vmul.f32 %v904_v27, %v568_v22  ;;  %11429 = vtanh.f32 %v812_v40  ;;  %v768_v7 = vadd.f32 %v720_v21, %v12476_v54  ;;  %1017 = vadd.xlane.f32.xlu0 %v1016_v20  ;;  %v903_v41 = vadd.f32 1.0, %v11424_v38 }
 0x13f   :  { %11431 = vtanh.f32 %v811_v28  ;;  %v765_v35 = vadd.f32 %v717_v36, %v12469_v17  ;;  %v718_v34 = vmul.f32 %v670_v16, %v12502_v1  ;;  %v623_v22 = vmul.f32 0.044715, %v12454_v53 }
 0x140   :  { %v11426_v30 = vpop.eup %11425  ;;  %v1049_v55 = vsel %vm979_vm1, %v12708_v61, 0.0  ;;  %v816_v46 = vmul.f32 0.7978846, %v768_v7  ;;  %v12718_v8 = vmul.f32 %v903_v41, %v12640_v57  ;;  %v12723_v28 = vadd.f32 %v12262_v26, %v12530_v18 }
 0x141   :  { %1050 = vadd.xlane.f32.xlu1 %v1049_v55  ;;  %v906_v27 = vadd.f32 1.0, %v11426_v30  ;;  %v813_v40 = vmul.f32 0.7978846, %v765_v35  ;;  %v766_v21 = vadd.f32 %v718_v34, %v12502_v1  ;;  %v671_v36 = vmul.f32 %v623_v22, %v12454_v53 }
 0x142   :  { %11433 = vtanh.f32 %v816_v46  ;;  %v628_v50 = vmul.f32 0.044715, %v12559_v29  ;;  %v1046_v38 = vsel %vm979_vm1, %v12718_v8, 0.0  ;;  %v627_v18 = vmul.f32 0.044715, %v12539_v63 }
 0x143   :  { %v11428_v16 = vpop.eup %11427  ;;  %v12730_v57 = vmul.f32 %v906_v27, %v12658_v4  ;;  %11435 = vtanh.f32 %v813_v40  ;;  %v814_v20 = vmul.f32 0.7978846, %v766_v21  ;;  %1047 = vadd.xlane.f32.xlu0 %v1046_v38  ;;  %v719_v41 = vmul.f32 %v671_v36, %v12454_v53 }
 0x144   :  { %v905_v7 = vadd.f32 1.0, %v11428_v16  ;;  %v676_v26 = vmul.f32 %v628_v50, %v12559_v29  ;;  %v576_v34 = vmul.f32 0.5, %v12476_v54  ;;  %v626_v30 = vmul.f32 0.044715, %v12578_v39 }
 0x145   :  { %v1055_v35 = vsel %vm979_vm1, %v12730_v57, 0.0  ;;  %11437 = vtanh.f32 %v814_v20  ;;  %v767_v55 = vadd.f32 %v719_v41, %v12454_v53  ;;  %v675_v22 = vmul.f32 %v627_v18, %v12539_v63 }
 0x146   :  { %1056 = vadd.xlane.f32.xlu1 %v1055_v35  ;;  %v12740_v4 = vmul.f32 %v905_v7, %v12665_v59  ;;  %v724_v46 = vmul.f32 %v676_v26, %v12559_v29  ;;  %v573_v27 = vmul.f32 0.5, %v12469_v17  ;;  %v574_v40 = vmul.f32 0.5, %v12502_v1 }
 0x147   :  { %v674_v21 = vmul.f32 %v626_v30, %v12578_v39  ;;  %v625_v54 = vmul.f32 0.044715, %v12543_v0  ;;  %v815_v59 = vmul.f32 0.7978846, %v767_v55  ;;  %v723_v38 = vmul.f32 %v675_v22, %v12539_v63 }
 0x148   :  { %v11430_v36 = vpop.eup %11429  ;;  %v1052_v50 = vsel %vm979_vm1, %v12740_v4, 0.0  ;;  %v772_v16 = vadd.f32 %v724_v46, %v12559_v29  ;;  %v632_v41 = vmul.f32 0.044715, %v12636_v5 }
 0x149   :  { %v11432_v20 = vpop.eup %11431  ;;  %1053 = vadd.xlane.f32.xlu0 %v1052_v50  ;;  %v908_v7 = vadd.f32 1.0, %v11430_v36  ;;  %v722_v17 = vmul.f32 %v674_v21, %v12578_v39  ;;  %v673_v1 = vmul.f32 %v625_v54, %v12543_v0  ;;  %11439 = vtanh.f32 %v815_v59 }
 0x14a   :  { %v907_v26 = vadd.f32 1.0, %v11432_v20  ;;  %v820_v18 = vmul.f32 0.7978846, %v772_v16  ;;  %v771_v35 = vadd.f32 %v723_v38, %v12539_v63  ;;  %v680_v22 = vmul.f32 %v632_v41, %v12636_v5 }
 0x14b   :  { %v12758_v30 = vmul.f32 %v908_v7, %v12702_v3  ;;  %v770_v55 = vadd.f32 %v722_v17, %v12578_v39  ;;  %v721_v46 = vmul.f32 %v673_v1, %v12543_v0  ;;  %v575_v54 = vmul.f32 0.5, %v12454_v53 }
 0x14c   :  { %v11434_v36 = vpop.eup %11433  ;;  %v12763_v21 = vmul.f32 %v907_v26, %v571_v56  ;;  %11441 = vtanh.f32 %v820_v18  ;;  %v819_v50 = vmul.f32 0.7978846, %v771_v35  ;;  %v728_v56 = vmul.f32 %v680_v22, %v12636_v5 }
 0x14d   :  { %v11436_v59 = vpop.eup %11435  ;;  %v1061_v16 = vsel %vm979_vm1, %v12758_v30, 0.0  ;;  %v912_v38 = vadd.f32 1.0, %v11434_v36  ;;  %v818_v3 = vmul.f32 0.7978846, %v770_v55  ;;  %v769_v20 = vadd.f32 %v721_v46, %v12543_v0 }
 0x14e   :  { %1062 = vadd.xlane.f32.xlu1 %v1061_v16  ;;  %v1058_v7 = vsel %vm979_vm1, %v12763_v21, 0.0  ;;  %v909_v17 = vadd.f32 1.0, %v11436_v59  ;;  %11443 = vtanh.f32 %v819_v50  ;;  %v631_v26 = vmul.f32 0.044715, %v12602_v47 }
 0x14f   :  { %v11438_v1 = vpop.eup %11437  ;;  %1059 = vadd.xlane.f32.xlu0 %v1058_v7  ;;  %v12772_v53 = vmul.f32 %v912_v38, %v576_v34  ;;  %11445 = vtanh.f32 %v818_v3  ;;  %v817_v41 = vmul.f32 0.7978846, %v769_v20  ;;  %v580_v55 = vmul.f32 0.5, %v12559_v29 }
 0x150   :  { %v12775_v18 = vmul.f32 %v909_v17, %v573_v27  ;;  %v910_v35 = vadd.f32 1.0, %v11438_v1  ;;  %v776_v46 = vadd.f32 %v728_v56, %v12636_v5  ;;  %v679_v22 = vmul.f32 %v631_v26, %v12602_v47 }
 0x151   :  { %v1073_v36 = vsel %vm979_vm1, %v12772_v53, 0.0  ;;  %11447 = vtanh.f32 %v817_v41  ;;  %v630_v34 = vmul.f32 0.044715, %v12647_v25  ;;  %v579_v27 = vmul.f32 0.5, %v12539_v63 }
 0x152   :  { %17431 = vst [vmem:[#allocation8_spill] sm:$0xff] %v12775_v18  ;;  %1074 = vadd.xlane.f32.xlu1 %v1073_v36  ;;  %v1064_v50 = vsel %vm979_vm1, %v12775_v18, 0.0  ;;  %v12785_v59 = vmul.f32 %v910_v35, %v574_v40  ;;  %v824_v16 = vmul.f32 0.7978846, %v776_v46  ;;  %v578_v29 = vmul.f32 0.5, %v12578_v39 }
 0x153   :  { %1065 = vadd.xlane.f32.xlu0 %v1064_v50  ;;  %v727_v38 = vmul.f32 %v679_v22, %v12602_v47  ;;  %v678_v3 = vmul.f32 %v630_v34, %v12647_v25  ;;  %v629_v20 = vmul.f32 0.044715, %v12611_v51  ;;  %v11440_v7 = vpop.eup %11439  ;;  %v577_v56 = vmul.f32 0.5, %v12543_v0 }
 0x154   :  { %v1067_v17 = vsel %vm979_vm1, %v12785_v59, 0.0  ;;  %11449 = vtanh.f32 %v824_v16  ;;  %v636_v40 = vmul.f32 0.044715, %v12688_v15  ;;  %v911_v63 = vadd.f32 1.0, %v11440_v7 }
 0x155   :  { %v775_v1 = vadd.f32 %v727_v38, %v12602_v47  ;;  %v726_v39 = vmul.f32 %v678_v3, %v12647_v25  ;;  %v677_v41 = vmul.f32 %v629_v20, %v12611_v51  ;;  %v584_v35 = vmul.f32 0.5, %v12636_v5 }
 0x156   :  { %v11442_v26 = vpop.eup %11441  ;;  %1068 = vadd.xlane.f32.xlu1 %v1067_v17  ;;  %v684_v46 = vmul.f32 %v636_v40, %v12688_v15  ;;  %v635_v36 = vmul.f32 0.044715, %v12673_v11  ;;  %v634_v0 = vmul.f32 0.044715, %v12723_v28  ;;  %v12803_v22 = vmul.f32 %v911_v63, %v575_v54 }
 0x157   :  { %v916_v34 = vadd.f32 1.0, %v11442_v26  ;;  %v823_v50 = vmul.f32 0.7978846, %v775_v1  ;;  %v774_v16 = vadd.f32 %v726_v39, %v12647_v25  ;;  %v725_v3 = vmul.f32 %v677_v41, %v12611_v51 }
 0x158   :  { %v11444_v38 = vpop.eup %11443  ;;  %v732_v20 = vmul.f32 %v684_v46, %v12688_v15  ;;  %v683_v7 = vmul.f32 %v635_v36, %v12673_v11  ;;  %v682_v5 = vmul.f32 %v634_v0, %v12723_v28  ;;  %v1070_v40 = vsel %vm979_vm1, %v12803_v22, 0.0 }
 0x159   :  { %v11446_v17 = vpop.eup %11445  ;;  %v12812_v18 = vmul.f32 %v916_v34, %v580_v55  ;;  %v915_v54 = vadd.f32 1.0, %v11444_v38  ;;  %11451 = vtanh.f32 %v823_v50  ;;  %1071 = vadd.xlane.f32.xlu0 %v1070_v40  ;;  %v822_v1 = vmul.f32 0.7978846, %v774_v16 }
 0x15a   :  { %v914_v63 = vadd.f32 1.0, %v11446_v17  ;;  %v773_v39 = vadd.f32 %v725_v3, %v12611_v51  ;;  %v780_v41 = vadd.f32 %v732_v20, %v12688_v15  ;;  %v731_v0 = vmul.f32 %v683_v7, %v12673_v11 }
 0x15b   :  { %v11448_v26 = vpop.eup %11447  ;;  %v1085_v46 = vsel %vm979_vm1, %v12812_v18, 0.0  ;;  %v12818_v36 = vmul.f32 %v915_v54, %v579_v27  ;;  %v730_v55 = vmul.f32 %v682_v5, %v12723_v28  ;;  %11453 = vtanh.f32 %v822_v1 }
 0x15c   :  { %1086 = vadd.xlane.f32.xlu1 %v1085_v46  ;;  %v12822_v34 = vmul.f32 %v914_v63, %v578_v29  ;;  %v913_v50 = vadd.f32 1.0, %v11448_v26  ;;  %v821_v16 = vmul.f32 0.7978846, %v773_v39  ;;  %v828_v3 = vmul.f32 0.7978846, %v780_v41 }
 0x15d   :  { %v1082_v38 = vsel %vm979_vm1, %v12818_v36, 0.0  ;;  %v779_v20 = vadd.f32 %v731_v0, %v12673_v11  ;;  %v778_v17 = vadd.f32 %v730_v55, %v12723_v28  ;;  %v633_v1 = vmul.f32 0.044715, %v12677_v6 }
 0x15e   :  { %v11450_v27 = vpop.eup %11449  ;;  %1083 = vadd.xlane.f32.xlu0 %v1082_v38  ;;  %v1079_v7 = vsel %vm979_vm1, %v12822_v34, 0.0  ;;  %v12830_v5 = vmul.f32 %v913_v50, %v577_v56  ;;  %11455 = vtanh.f32 %v821_v16  ;;  %v583_v41 = vmul.f32 0.5, %v12602_v47 }
 0x15f   :  { %v920_v29 = vadd.f32 1.0, %v11450_v27  ;;  %11457 = vtanh.f32 %v828_v3  ;;  %v827_v40 = vmul.f32 0.7978846, %v779_v20  ;;  %v826_v54 = vmul.f32 0.7978846, %v778_v17 }
 0x160   :  { %1080 = vadd.xlane.f32.xlu1 %v1079_v7  ;;  %v1076_v63 = vsel %vm979_vm1, %v12830_v5, 0.0  ;;  %v681_v56 = vmul.f32 %v633_v1, %v12677_v6  ;;  %v582_v50 = vmul.f32 0.5, %v12647_v25  ;;  %v581_v47 = vmul.f32 0.5, %v12611_v51 }
 0x161   :  { %v12835_v39 = vmul.f32 %v920_v29, %v584_v35  ;;  %11459 = vtanh.f32 %v827_v40  ;;  %v588_v27 = vmul.f32 0.5, %v12688_v15 }
 0x162   :  { %1077 = vadd.xlane.f32.xlu0 %v1076_v63  ;;  %11461 = vtanh.f32 %v826_v54  ;;  %v729_v55 = vmul.f32 %v681_v56, %v12677_v6  ;;  %v587_v63 = vmul.f32 0.5, %v12673_v11  ;;  %v586_v56 = vmul.f32 0.5, %v12723_v28 }
 0x163   :  { %v11452_v26 = vpop.eup %11451  ;;  %v1097_v46 = vsel %vm979_vm1, %v12835_v39, 0.0 }
 0x164   :  { %1098 = vadd.xlane.f32.xlu1 %v1097_v46  ;;  %v919_v0 = vadd.f32 1.0, %v11452_v26  ;;  %v777_v38 = vadd.f32 %v729_v55, %v12677_v6 }
 0x165   :  { %v11454_v16 = vpop.eup %11453 }
 0x166   :  { %v12843_v35 = vmul.f32 %v919_v0, %v583_v41  ;;  %v918_v3 = vadd.f32 1.0, %v11454_v16  ;;  %v825_v7 = vmul.f32 0.7978846, %v777_v38 }
 0x168   :  { %v11456_v20 = vpop.eup %11455  ;;  %v1094_v17 = vsel %vm979_vm1, %v12843_v35, 0.0  ;;  %v12850_v40 = vmul.f32 %v918_v3, %v582_v50  ;;  %11463 = vtanh.f32 %v825_v7  ;;  %v585_v3 = vmul.f32 0.5, %v12677_v6 }
 0x169   :  { %v11458_v29 = vpop.eup %11457  ;;  %1095 = vadd.xlane.f32.xlu0 %v1094_v17  ;;  %v917_v25 = vadd.f32 1.0, %v11456_v20 }
 0x16a   :  { %v924_v54 = vadd.f32 1.0, %v11458_v29  ;;  %v1091_v51 = vsel %vm979_vm1, %v12850_v40, 0.0 }
 0x16b   :  { %v11460_v1 = vpop.eup %11459  ;;  %v12855_v41 = vmul.f32 %v917_v25, %v581_v47  ;;  %1092 = vadd.xlane.f32.xlu1 %v1091_v51 }
 0x16c   :  { %v11462_v26 = vpop.eup %11461  ;;  %v12858_v15 = vmul.f32 %v924_v54, %v588_v27  ;;  %v923_v46 = vadd.f32 1.0, %v11460_v1 }
 0x16d   :  { %v1088_v0 = vsel %vm979_vm1, %v12855_v41, 0.0  ;;  %v922_v55 = vadd.f32 1.0, %v11462_v26 }
 0x16e   :  { %1089 = vadd.xlane.f32.xlu0 %v1088_v0  ;;  %v1109_v11 = vsel %vm979_vm1, %v12858_v15, 0.0  ;;  %v12864_v50 = vmul.f32 %v923_v46, %v587_v63 }
 0x16f   :  { %v12866_v16 = vmul.f32 %v922_v55, %v586_v56  ;;  %1110 = vadd.xlane.f32.xlu1 %v1109_v11 }
 0x170   :  { %v1106_v28 = vsel %vm979_vm1, %v12864_v50, 0.0 }
 0x171   :  { %v1103_v38 = vsel %vm979_vm1, %v12866_v16, 0.0 }
 0x172   :  { %1107 = vadd.xlane.f32.xlu0 %v1106_v28  ;;  %v11464_v47 = vpop.eup %11463 }
 0x173   :  { %1104 = vadd.xlane.f32.xlu1 %v1103_v38  ;;  %v921_v20 = vadd.f32 1.0, %v11464_v47 }
 0x175   :  { %v12873_v17 = vmul.f32 %v921_v20, %v585_v3 }
 0x177   :  { %v1100_v27 = vsel %vm979_vm1, %v12873_v17, 0.0 }
 0x178   :  { %1101 = vadd.xlane.f32.xlu0 %v1100_v27 }
 0x198   :  { %v12877_v7 = vpop.xlane.xlu0 %1035 }
 0x199   :  { %v988_v29 = vpop.xlane.xlu1 %987 }
 0x19a   :  { %v1127_v25 = vmul.f32 0.0625, %v988_v29 }
 0x19c   :  { %v12880_v54 = vsub.f32 %v12361_v31, %v1127_v25  ;;  %v982_v63 = vpop.xlane.xlu0 %981 }
 0x19d   :  { %v991_v1 = vpop.xlane.xlu1 %990  ;;  %v1125_v51 = vmul.f32 0.0625, %v982_v63 }
 0x19e   :  { %v1128_v6 = vmul.f32 0.0625, %v991_v1  ;;  %v1223_v56 = vmul.f32 %v12880_v54, %v12880_v54 }
 0x19f   :  { %v12885_v26 = vsub.f32 %v12381_v43, %v1125_v51 }
 0x1a0   :  { %v12888_v46 = vsub.f32 %v12372_v37, %v1128_v6  ;;  %v1275_v0 = vsel %vm979_vm1, %v1223_v56, 0.0  ;;  %v1030_v55 = vpop.xlane.xlu0 %1029 }
 0x1a1   :  { %v12891_v11 = vpop.xlane.xlu1 %1038  ;;  %1276 = vadd.xlane.f32.xlu0 %v1275_v0  ;;  %v1141_v31 = vmul.f32 0.0625, %v1030_v55  ;;  %v1221_v28 = vmul.f32 %v12885_v26, %v12885_v26 }
 0x1a2   :  { %v1224_v38 = vmul.f32 %v12888_v46, %v12888_v46 }
 0x1a3   :  { %v12898_v3 = vsub.f32 %v12418_v14, %v1141_v31  ;;  %v1269_v43 = vsel %vm979_vm1, %v1221_v28, 0.0  ;;  %v11761_v14 = vld [vmem:[%s17116_s3] ss:$0 sm:$0xff] }
 0x1a4   :  { %v1278_v37 = vsel %vm979_vm1, %v1224_v38, 0.0  ;;  %v985_v47 = vpop.xlane.xlu0 %984  ;;  %v12912_v51 = vadd.f32 %v11761_v14, %v12586_v58  ;;  %v12920_v31 = vadd.f32 %v11761_v14, %v12571_v12 }
 0x1a5   :  { %17432 = vst [vmem:[#allocation9_spill] sm:$0xff] %v12898_v3  ;;  %v1033_v20 = vpop.xlane.xlu1 %1032  ;;  %1279 = vadd.xlane.f32.xlu1 %v1278_v37  ;;  %1270 = vadd.xlane.f32.xlu0 %v1269_v43  ;;  %v1126_v27 = vmul.f32 0.0625, %v985_v47  ;;  %v1237_v29 = vmul.f32 %v12898_v3, %v12898_v3 }
 0x1a6   :  { %v1142_v25 = vmul.f32 0.0625, %v1033_v20 }
 0x1a7   :  { %v12905_v63 = vsub.f32 %v12439_v48, %v1126_v27  ;;  %v1317_v1 = vsel %vm979_vm1, %v1237_v29, 0.0  ;;  %v637_v29 = vmul.f32 0.044715, %v12920_v31 }
 0x1a8   :  { %v12915_v6 = vsub.f32 %v12432_v13, %v1142_v25  ;;  %v1000_v48 = vpop.xlane.xlu0 %999  ;;  %v638_v13 = vmul.f32 0.044715, %v12912_v51 }
 0x1a9   :  { %v1003_v56 = vpop.xlane.xlu1 %1002  ;;  %1318 = vadd.xlane.f32.xlu0 %v1317_v1  ;;  %v1222_v0 = vmul.f32 %v12905_v63, %v12905_v63  ;;  %v1131_v28 = vmul.f32 0.0625, %v1000_v48 }
 0x1aa   :  { %17433 = vst [vmem:[#allocation10_spill] sm:$0xff] %v12915_v6  ;;  %v1132_v55 = vmul.f32 0.0625, %v1003_v56  ;;  %v1238_v58 = vmul.f32 %v12915_v6, %v12915_v6  ;;  %v686_v1 = vmul.f32 %v638_v13, %v12912_v51  ;;  %v12944_v56 = vadd.f32 %v11761_v14, %v12564_v44 }
 0x1ab   :  { %v1272_v38 = vsel %vm979_vm1, %v1222_v0, 0.0  ;;  %v12930_v37 = vsub.f32 %v12484_v23, %v1131_v28 }
 0x1ac   :  { %v12926_v43 = vsub.f32 %v12462_v49, %v1132_v55  ;;  %1273 = vadd.xlane.f32.xlu1 %v1272_v38  ;;  %v1320_v20 = vsel %vm979_vm1, %v1238_v58, 0.0  ;;  %v12939_v49 = vadd.f32 %v11761_v14, %v12581_v60  ;;  %v685_v60 = vmul.f32 %v637_v29, %v12920_v31 }
 0x1ad   :  { %v1227_v12 = vmul.f32 %v12930_v37, %v12930_v37  ;;  %v734_v58 = vmul.f32 %v686_v1, %v12912_v51  ;;  %v639_v14 = vmul.f32 0.044715, %v12944_v56 }
 0x1ae   :  { %v997_v47 = vpop.xlane.xlu1 %996  ;;  %v1228_v27 = vmul.f32 %v12926_v43, %v12926_v43  ;;  %v640_v13 = vmul.f32 0.044715, %v12939_v49 }
 0x1af   :  { %v1130_v25 = vmul.f32 0.0625, %v997_v47  ;;  %v1287_v23 = vsel %vm979_vm1, %v1227_v12, 0.0  ;;  %v733_v12 = vmul.f32 %v685_v60, %v12920_v31  ;;  %v782_v29 = vadd.f32 %v734_v58, %v12912_v51 }
 0x1b0   :  { %1321 = vadd.xlane.f32.xlu1 %v1320_v20  ;;  %1288 = vadd.xlane.f32.xlu0 %v1287_v23  ;;  %v1290_v28 = vsel %vm979_vm1, %v1228_v27, 0.0  ;;  %v687_v1 = vmul.f32 %v639_v14, %v12944_v56 }
 0x1b1   :  { %v12947_v0 = vsub.f32 %v12515_v10, %v1130_v25  ;;  %v994_v55 = vpop.xlane.xlu0 %993  ;;  %v688_v25 = vmul.f32 %v640_v13, %v12939_v49 }
 0x1b2   :  { %v1129_v48 = vmul.f32 0.0625, %v994_v55  ;;  %v781_v55 = vadd.f32 %v733_v12, %v12920_v31  ;;  %v735_v58 = vmul.f32 %v687_v1, %v12944_v56 }
 0x1b3   :  { %v1226_v38 = vmul.f32 %v12947_v0, %v12947_v0  ;;  %v12958_v10 = vpop.xlane.xlu1 %1044 }
 0x1b4   :  { %1291 = vadd.xlane.f32.xlu1 %v1290_v28  ;;  %v12956_v44 = vsub.f32 %v12533_v52, %v1129_v48  ;;  %v830_v28 = vmul.f32 0.7978846, %v782_v29  ;;  %v829_v13 = vmul.f32 0.7978846, %v781_v55 }
 0x1b5   :  { %v1284_v20 = vsel %vm979_vm1, %v1226_v38, 0.0  ;;  %v12965_v27 = vpop.xlane.xlu0 %1041  ;;  %v736_v38 = vmul.f32 %v688_v25, %v12939_v49 }
 0x1b6   :  { %v1225_v47 = vmul.f32 %v12956_v44, %v12956_v44  ;;  %11465 = vtanh.f32 %v830_v28 }
 0x1b7   :  { %v784_v14 = vadd.f32 %v736_v38, %v12939_v49  ;;  %11467 = vtanh.f32 %v829_v13 }
 0x1b8   :  { %1285 = vadd.xlane.f32.xlu1 %v1284_v20  ;;  %v1281_v52 = vsel %vm979_vm1, %v1225_v47, 0.0 }
 0x1b9   :  { %1282 = vadd.xlane.f32.xlu0 %v1281_v52  ;;  %v783_v52 = vadd.f32 %v735_v58, %v12944_v56 }
 0x1ba   :  { %v1015_v23 = vpop.xlane.xlu1 %1014 }
 0x1bb   :  { %v1136_v48 = vmul.f32 0.0625, %v1015_v23 }
 0x1bd   :  { %v12974_v60 = vsub.f32 %v12595_v45, %v1136_v48  ;;  %v1012_v20 = vpop.xlane.xlu0 %1011  ;;  %v832_v48 = vmul.f32 0.7978846, %v784_v14 }
 0x1be   :  { %v1135_v3 = vmul.f32 0.0625, %v1012_v20  ;;  %v1009_v6 = vpop.xlane.xlu1 %1008  ;;  %v831_v20 = vmul.f32 0.7978846, %v783_v52 }
 0x1bf   :  { %v1232_v47 = vmul.f32 %v12974_v60, %v12974_v60  ;;  %v1134_v29 = vmul.f32 0.0625, %v1009_v6  ;;  %11469 = vtanh.f32 %v832_v48  ;;  %v590_v48 = vmul.f32 0.5, %v12912_v51 }
 0x1c0   :  { %v12981_v12 = vsub.f32 %v12615_v9, %v1135_v3  ;;  %11471 = vtanh.f32 %v831_v20 }
 0x1c1   :  { %v1006_v25 = vpop.xlane.xlu0 %1005  ;;  %v1302_v45 = vsel %vm979_vm1, %v1232_v47, 0.0  ;;  %v12986_v1 = vsub.f32 %v12624_v24, %v1134_v29 }
 0x1c2   :  { %v1133_v23 = vmul.f32 0.0625, %v1006_v25  ;;  %1303 = vadd.xlane.f32.xlu1 %v1302_v45  ;;  %v1231_v55 = vmul.f32 %v12981_v12, %v12981_v12  ;;  %v11466_v25 = vpop.eup %11465 }
 0x1c3   :  { %v1230_v6 = vmul.f32 %v12986_v1, %v12986_v1 }
 0x1c4   :  { %v12991_v28 = vsub.f32 %v12627_v42, %v1133_v23  ;;  %v1027_v9 = vpop.xlane.xlu1 %1026  ;;  %v1299_v3 = vsel %vm979_vm1, %v1231_v55, 0.0 }
 0x1c5   :  { %v1140_v38 = vmul.f32 0.0625, %v1027_v9  ;;  %1300 = vadd.xlane.f32.xlu0 %v1299_v3  ;;  %v1024_v24 = vpop.xlane.xlu0 %1023  ;;  %v1296_v47 = vsel %vm979_vm1, %v1230_v6, 0.0  ;;  %v11468_v9 = vpop.eup %11467 }
 0x1c6   :  { %v1139_v58 = vmul.f32 0.0625, %v1024_v24  ;;  %v1229_v13 = vmul.f32 %v12991_v28, %v12991_v28  ;;  %1297 = vadd.xlane.f32.xlu1 %v1296_v47  ;;  %v926_v24 = vadd.f32 1.0, %v11466_v25  ;;  %v1143_v47 = vmul.f32 0.0625, %v12877_v7 }
 0x1c7   :  { %v13000_v14 = vsub.f32 %v12651_v33, %v1140_v38 }
 0x1c8   :  { %v13003_v42 = vsub.f32 %v12655_v32, %v1139_v58  ;;  %v1293_v29 = vsel %vm979_vm1, %v1229_v13, 0.0  ;;  %v1144_v32 = vmul.f32 0.0625, %v12891_v11  ;;  %v589_v11 = vmul.f32 0.5, %v12920_v31 }
 0x1c9   :  { %v1021_v45 = vpop.xlane.xlu1 %1020  ;;  %1294 = vadd.xlane.f32.xlu0 %v1293_v29  ;;  %v1236_v52 = vmul.f32 %v13000_v14, %v13000_v14  ;;  %v13028_v25 = vmul.f32 %v926_v24, %v590_v48 }
 0x1ca   :  { %v1138_v23 = vmul.f32 0.0625, %v1021_v45  ;;  %v1235_v55 = vmul.f32 %v13003_v42, %v13003_v42  ;;  %v13025_v29 = vsub.f32 %v12399_v62, %v1144_v32  ;;  %v592_v62 = vmul.f32 0.5, %v12939_v49 }
 0x1cb   :  { %v1314_v33 = vsel %vm979_vm1, %v1236_v52, 0.0  ;;  %v1018_v6 = vpop.xlane.xlu0 %1017  ;;  %v11470_v52 = vpop.eup %11469  ;;  %v1146_v32 = vmul.f32 0.0625, %v12958_v10  ;;  %v1115_v48 = vsel %vm979_vm1, %v13028_v25, 0.0 }
 0x1cc   :  { %v13014_v3 = vsub.f32 %v12682_v2, %v1138_v23  ;;  %1315 = vadd.xlane.f32.xlu1 %v1314_v33  ;;  %v1311_v38 = vsel %vm979_vm1, %v1235_v55, 0.0  ;;  %v1137_v20 = vmul.f32 0.0625, %v1018_v6  ;;  %v925_v2 = vadd.f32 1.0, %v11468_v9  ;;  %17434 = vst [vmem:[#allocation11_spill] sm:$0xff] %v13025_v29  ;;  %v11472_v55 = vpop.eup %11471 }
 0x1cd   :  { %1312 = vadd.xlane.f32.xlu0 %v1311_v38  ;;  %v1240_v6 = vmul.f32 %v13025_v29, %v13025_v29  ;;  %v928_v38 = vadd.f32 1.0, %v11470_v52 }
 0x1ce   :  { %v1234_v58 = vmul.f32 %v13014_v3, %v13014_v3  ;;  %v13021_v51 = vsub.f32 %v12698_v19, %v1137_v20  ;;  %v1051_v13 = vpop.xlane.xlu1 %1050  ;;  %v17435_v19 = vld [vmem:[#allocation5_spill] sm:$0xff]  ;;  %v13036_v9 = vmul.f32 %v925_v2, %v589_v11  ;;  %v1145_v11 = vmul.f32 0.0625, %v12965_v27  ;;  %v17437_v2 = vld [vmem:[#allocation6_spill] sm:$0xff] }
 0x1cf   :  { %v13033_v33 = vsub.f32 %v17435_v19, %v1143_v47  ;;  %v927_v47 = vadd.f32 1.0, %v11472_v55  ;;  %v1326_v52 = vsel %vm979_vm1, %v1240_v6, 0.0  ;;  %v13054_v19 = vmul.f32 %v928_v38, %v592_v62  ;;  %v17438_v55 = vld [vmem:[#allocation7_spill] sm:$0xff] }
 0x1d0   :  { %v1308_v45 = vsel %vm979_vm1, %v1234_v58, 0.0  ;;  %v1048_v23 = vpop.xlane.xlu0 %1047  ;;  %v1233_v7 = vmul.f32 %v13021_v51, %v13021_v51  ;;  %v591_v58 = vmul.f32 0.5, %v12944_v56  ;;  %v1112_v49 = vsel %vm979_vm1, %v13036_v9, 0.0 }
 0x1d1   :  { %1309 = vadd.xlane.f32.xlu1 %v1308_v45  ;;  %17436 = vst [vmem:[#allocation5_spill] sm:$0xff] %v13033_v33  ;;  %v1239_v10 = vmul.f32 %v13033_v33, %v13033_v33  ;;  %v13051_v45 = vsub.f32 %v17437_v2, %v1146_v32  ;;  %v13059_v27 = vsub.f32 %v17438_v55, %v1145_v11  ;;  %v1121_v62 = vsel %vm979_vm1, %v13054_v19, 0.0 }
 0x1d2   :  { %v1305_v31 = vsel %vm979_vm1, %v1233_v7, 0.0  ;;  %v1148_v7 = vmul.f32 0.0625, %v1051_v13  ;;  %v13056_v56 = vmul.f32 %v927_v47, %v591_v58  ;;  %v17134_v38 = vmov 0  }
 0x1d3   :  { %1306 = vadd.xlane.f32.xlu0 %v1305_v31  ;;  %v1057_v24 = vpop.xlane.xlu1 %1056  ;;  %v1147_v31 = vmul.f32 0.0625, %v1048_v23  ;;  %v1323_v29 = vsel %vm979_vm1, %v1239_v10, 0.0  ;;  %v1242_v6 = vmul.f32 %v13051_v45, %v13051_v45  ;;  %2217 = vmatprep.subr.bf16.mxu1 %v17134_v38 }
 0x1d4   :  { %v13063_v33 = vsub.f32 %v12708_v61, %v1148_v7  ;;  %v1150_v32 = vmul.f32 0.0625, %v1057_v24  ;;  %v1118_v61 = vsel %vm979_vm1, %v13056_v56, 0.0 }
 0x1d5   :  { %1116 = vadd.xlane.f32.xlu1 %v1115_v48  ;;  %v13071_v58 = vsub.f32 %v12718_v8, %v1147_v31 }
 0x1d6   :  { %v1054_v20 = vpop.xlane.xlu0 %1053  ;;  %v13078_v24 = vsub.f32 %v12730_v57, %v1150_v32 }
 0x1d7   :  { %1113 = vadd.xlane.f32.xlu0 %v1112_v49  ;;  %v1149_v23 = vmul.f32 0.0625, %v1054_v20  ;;  %v1332_v49 = vsel %vm979_vm1, %v1242_v6, 0.0  ;;  %v1244_v20 = vmul.f32 %v13063_v33, %v13063_v33  ;;  %v1243_v57 = vmul.f32 %v13071_v58, %v13071_v58 }
 0x1d8   :  { %v1246_v32 = vmul.f32 %v13078_v24, %v13078_v24 }
 0x1d9   :  { %1327 = vadd.xlane.f32.xlu1 %v1326_v52  ;;  %v13084_v8 = vsub.f32 %v12740_v4, %v1149_v23 }
 0x1db   :  { %v1063_v48 = vpop.xlane.xlu1 %1062  ;;  %1324 = vadd.xlane.f32.xlu0 %v1323_v29  ;;  %v1241_v29 = vmul.f32 %v13059_v27, %v13059_v27  ;;  %v1245_v4 = vmul.f32 %v13084_v8, %v13084_v8 }
 0x1dc   :  { %v1060_v13 = vpop.xlane.xlu0 %1059  ;;  %v1152_v11 = vmul.f32 0.0625, %v1063_v48  ;;  %v1338_v48 = vsel %vm979_vm1, %v1244_v20, 0.0 }
 0x1dd   :  { %1122 = vadd.xlane.f32.xlu1 %v1121_v62  ;;  %v1151_v2 = vmul.f32 0.0625, %v1060_v13  ;;  %v1329_v52 = vsel %vm979_vm1, %v1241_v29, 0.0  ;;  %v1344_v29 = vsel %vm979_vm1, %v1246_v32, 0.0  ;;  %v1341_v20 = vsel %vm979_vm1, %v1245_v4, 0.0 }
 0x1de   :  { %v13090_v55 = vsub.f32 %v12758_v30, %v1152_v11  ;;  %v1335_v30 = vsel %vm979_vm1, %v1243_v57, 0.0 }
 0x1df   :  { %v1075_v47 = vpop.xlane.xlu1 %1074  ;;  %1119 = vadd.xlane.f32.xlu0 %v1118_v61  ;;  %v13098_v13 = vsub.f32 %v12763_v21, %v1151_v2 }
 0x1e0   :  { %v1066_v10 = vpop.xlane.xlu0 %1065  ;;  %v1156_v62 = vmul.f32 0.0625, %v1075_v47  ;;  %v1248_v11 = vmul.f32 %v13090_v55, %v13090_v55  ;;  %v17439_v47 = vld [vmem:[#allocation8_spill] sm:$0xff] }
 0x1e1   :  { %1333 = vadd.xlane.f32.xlu1 %v1332_v49  ;;  %v1153_v6 = vmul.f32 0.0625, %v1066_v10 }
 0x1e2   :  { %v13109_v21 = vsub.f32 %v12772_v53, %v1156_v62 }
 0x1e3   :  { %v1069_v7 = vpop.xlane.xlu1 %1068  ;;  %1330 = vadd.xlane.f32.xlu0 %v1329_v52  ;;  %v13112_v10 = vsub.f32 %v17439_v47, %v1153_v6  ;;  %v1350_v52 = vsel %vm979_vm1, %v1248_v11, 0.0 }
 0x1e4   :  { %v1154_v31 = vmul.f32 0.0625, %v1069_v7  ;;  %v1252_v6 = vmul.f32 %v13109_v21, %v13109_v21 }
 0x1e5   :  { %1339 = vadd.xlane.f32.xlu1 %v1338_v48  ;;  %v1249_v62 = vmul.f32 %v13112_v10, %v13112_v10 }
 0x1e6   :  { %v1072_v23 = vpop.xlane.xlu0 %1071  ;;  %v13102_v61 = vsub.f32 %v12785_v59, %v1154_v31  ;;  %v1247_v59 = vmul.f32 %v13098_v13, %v13098_v13 }
 0x1e7   :  { %1336 = vadd.xlane.f32.xlu0 %v1335_v30  ;;  %v1155_v2 = vmul.f32 0.0625, %v1072_v23 }
 0x1e8   :  { %v1250_v57 = vmul.f32 %v13102_v61, %v13102_v61  ;;  %v1347_v4 = vsel %vm979_vm1, %v1247_v59, 0.0 }
 0x1e9   :  { %v1087_v49 = vpop.xlane.xlu1 %1086  ;;  %1345 = vadd.xlane.f32.xlu1 %v1344_v29  ;;  %v13120_v53 = vsub.f32 %v12803_v22, %v1155_v2  ;;  %v1353_v2 = vsel %vm979_vm1, %v1249_v62, 0.0 }
 0x1ea   :  { %v1160_v23 = vmul.f32 0.0625, %v1087_v49  ;;  %v1356_v11 = vsel %vm979_vm1, %v1250_v57, 0.0 }
 0x1eb   :  { %v1084_v7 = vpop.xlane.xlu0 %1083  ;;  %1342 = vadd.xlane.f32.xlu0 %v1341_v20  ;;  %v1251_v59 = vmul.f32 %v13120_v53, %v13120_v53 }
 0x1ec   :  { %v1159_v22 = vmul.f32 0.0625, %v1084_v7  ;;  %v13138_v49 = vsub.f32 %v12812_v18, %v1160_v23 }
 0x1ed   :  { %v1081_v31 = vpop.xlane.xlu1 %1080  ;;  %1351 = vadd.xlane.f32.xlu1 %v1350_v52  ;;  %v1359_v57 = vsel %vm979_vm1, %v1251_v59, 0.0 }
 0x1ee   :  { %v1158_v48 = vmul.f32 0.0625, %v1081_v31 }
 0x1ef   :  { %v1078_v32 = vpop.xlane.xlu0 %1077  ;;  %1348 = vadd.xlane.f32.xlu0 %v1347_v4 }
 0x1f0   :  { %v13128_v30 = vsub.f32 %v12822_v34, %v1158_v48  ;;  %v1157_v29 = vmul.f32 0.0625, %v1078_v32  ;;  %v1362_v34 = vsel %vm979_vm1, %v1252_v6, 0.0  ;;  %v1256_v32 = vmul.f32 %v13138_v49, %v13138_v49 }
 0x1f1   :  { %1357 = vadd.xlane.f32.xlu1 %v1356_v11  ;;  %v1099_v47 = vpop.xlane.xlu1 %1098 }
 0x1f2   :  { %v13132_v20 = vsub.f32 %v12830_v5, %v1157_v29  ;;  %v1254_v52 = vmul.f32 %v13128_v30, %v13128_v30  ;;  %v13144_v5 = vsub.f32 %v12818_v36, %v1159_v22  ;;  %v1164_v48 = vmul.f32 0.0625, %v1099_v47 }
 0x1f3   :  { %1354 = vadd.xlane.f32.xlu0 %v1353_v2  ;;  %v1374_v2 = vsel %vm979_vm1, %v1256_v32, 0.0 }
 0x1f4   :  { %v1253_v31 = vmul.f32 %v13132_v20, %v13132_v20  ;;  %v1368_v18 = vsel %vm979_vm1, %v1254_v52, 0.0  ;;  %v1255_v29 = vmul.f32 %v13144_v5, %v13144_v5  ;;  %v13156_v11 = vsub.f32 %v12835_v39, %v1164_v48 }
 0x1f5   :  { %1363 = vadd.xlane.f32.xlu1 %v1362_v34 }
 0x1f6   :  { %v1096_v7 = vpop.xlane.xlu0 %1095  ;;  %v1365_v36 = vsel %vm979_vm1, %v1253_v31, 0.0  ;;  %v1371_v39 = vsel %vm979_vm1, %v1255_v29, 0.0  ;;  %v1260_v48 = vmul.f32 %v13156_v11, %v13156_v11 }
 0x1f7   :  { %1360 = vadd.xlane.f32.xlu0 %v1359_v57  ;;  %v1163_v6 = vmul.f32 0.0625, %v1096_v7 }
 0x1f8   :  { %v1093_v4 = vpop.xlane.xlu1 %1092 }
 0x1f9   :  { %1369 = vadd.xlane.f32.xlu1 %v1368_v18  ;;  %v1162_v62 = vmul.f32 0.0625, %v1093_v4  ;;  %v13168_v7 = vsub.f32 %v12843_v35, %v1163_v6 }
 0x1fb   :  { %v1090_v23 = vpop.xlane.xlu0 %1089  ;;  %v13159_v22 = vsub.f32 %v12850_v40, %v1162_v62  ;;  %1366 = vadd.xlane.f32.xlu0 %v1365_v36  ;;  %v1259_v35 = vmul.f32 %v13168_v7, %v13168_v7 }
 0x1fc   :  { %v1161_v47 = vmul.f32 0.0625, %v1090_v23  ;;  %v1111_v59 = vpop.xlane.xlu1 %1110  ;;  %v1386_v23 = vsel %vm979_vm1, %v1260_v48, 0.0 }
 0x1fd   :  { %1375 = vadd.xlane.f32.xlu1 %v1374_v2  ;;  %v1258_v52 = vmul.f32 %v13159_v22, %v13159_v22  ;;  %v1168_v57 = vmul.f32 0.0625, %v1111_v59  ;;  %v1383_v2 = vsel %vm979_vm1, %v1259_v35, 0.0 }
 0x1fe   :  { %v13163_v34 = vsub.f32 %v12855_v41, %v1161_v47 }
 0x1ff   :  { %1372 = vadd.xlane.f32.xlu0 %v1371_v39  ;;  %v1380_v40 = vsel %vm979_vm1, %v1258_v52, 0.0  ;;  %v1108_v41 = vpop.xlane.xlu0 %1107  ;;  %v13180_v62 = vsub.f32 %v12858_v15, %v1168_v57 }
 0x200   :  { %v1257_v31 = vmul.f32 %v13163_v34, %v13163_v34  ;;  %v1105_v18 = vpop.xlane.xlu1 %1104  ;;  %v1167_v36 = vmul.f32 0.0625, %v1108_v41 }
 0x201   :  { %1381 = vadd.xlane.f32.xlu1 %v1380_v40  ;;  %v1166_v32 = vmul.f32 0.0625, %v1105_v18  ;;  %v1264_v15 = vmul.f32 %v13180_v62, %v13180_v62 }
 0x202   :  { %v1377_v4 = vsel %vm979_vm1, %v1257_v31, 0.0 }
 0x203   :  { %v13183_v6 = vsub.f32 %v12866_v16, %v1166_v32  ;;  %1378 = vadd.xlane.f32.xlu0 %v1377_v4  ;;  %v13193_v16 = vsub.f32 %v12864_v50, %v1167_v36  ;;  %v1398_v40 = vsel %vm979_vm1, %v1264_v15, 0.0 }
 0x205   :  { %1387 = vadd.xlane.f32.xlu1 %v1386_v23  ;;  %v1262_v29 = vmul.f32 %v13183_v6, %v13183_v6  ;;  %v1102_v47 = vpop.xlane.xlu0 %1101  ;;  %v1263_v48 = vmul.f32 %v13193_v16, %v13193_v16 }
 0x206   :  { %v1165_v59 = vmul.f32 0.0625, %v1102_v47 }
 0x207   :  { %1384 = vadd.xlane.f32.xlu0 %v1383_v2  ;;  %v1392_v52 = vsel %vm979_vm1, %v1262_v29, 0.0  ;;  %v1395_v41 = vsel %vm979_vm1, %v1263_v48, 0.0 }
 0x208   :  { %v13196_v39 = vsub.f32 %v12873_v17, %v1165_v59  ;;  %v11275_v59 = vld [vmem:[#allocation2 + $0x4] ss:$12 sps:$4 sm:$0xff]  }
 0x209   :  { %1393 = vadd.xlane.f32.xlu1 %v1392_v52  ;;  %2249 = vmatprep.mubr.bf16.mxu1 %v11275_v59 }
 0x20a   :  { %v1261_v57 = vmul.f32 %v13196_v39, %v13196_v39 }
 0x20c   :  { %v1389_v31 = vsel %vm979_vm1, %v1261_v57, 0.0 }
 0x20d   :  { %1399 = vadd.xlane.f32.xlu1 %v1398_v40  ;;  %1390 = vadd.xlane.f32.xlu0 %v1389_v31 }
 0x211   :  { %1396 = vadd.xlane.f32.xlu0 %v1395_v41 }
 0x22e   :  { %v1277_v50 = vpop.xlane.xlu0 %1276 }
 0x22f   :  { %v1415_v35 = vmul.f32 0.0625, %v1277_v50 }
 0x231   :  { %v1463_v29 = vadd.f32 1e-05, %v1415_v35 }
 0x232   :  { %v1280_v18 = vpop.xlane.xlu1 %1279  ;;  %v1271_v32 = vpop.xlane.xlu0 %1270 }
 0x233   :  { %v1416_v17 = vmul.f32 0.0625, %v1280_v18  ;;  %v1413_v4 = vmul.f32 0.0625, %v1271_v32 }
 0x235   :  { %v1461_v23 = vadd.f32 1e-05, %v1413_v4  ;;  %v1464_v36 = vadd.f32 1e-05, %v1416_v17 }
 0x236   :  { %v13205_v52 = vpop.xlane.xlu0 %1318 }
 0x237   :  { %11473 = vrsqrt.f32 %v1461_v23 }
 0x238   :  { %11475 = vrsqrt.f32 %v1464_v36 }
 0x239   :  { %v1274_v47 = vpop.xlane.xlu1 %1273  ;;  %11477 = vrsqrt.f32 %v1463_v29 }
 0x23a   :  { %v1414_v2 = vmul.f32 0.0625, %v1274_v47 }
 0x23c   :  { %v1462_v15 = vadd.f32 1e-05, %v1414_v2 }
 0x23d   :  { %v13207_v57 = vpop.xlane.xlu1 %1321  ;;  %v1289_v40 = vpop.xlane.xlu0 %1288 }
 0x23e   :  { %11479 = vrsqrt.f32 %v1462_v15  ;;  %v1419_v31 = vmul.f32 0.0625, %v1289_v40  ;;  %v13214_v40 = vld [vmem:[%s17117_s4] ss:$0 sm:$0xff] }
 0x240   :  { %v1467_v17 = vadd.f32 1e-05, %v1419_v31 }
 0x241   :  { %v1292_v48 = vpop.xlane.xlu1 %1291  ;;  %v11474_v41 = vpop.eup %11473 }
 0x242   :  { %v1420_v50 = vmul.f32 0.0625, %v1292_v48  ;;  %v11476_v18 = vpop.eup %11475  ;;  %v1557_v35 = vmul.f32 %v11474_v41, %v12885_v26 }
 0x243   :  { %v11478_v23 = vpop.eup %11477  ;;  %v1560_v29 = vmul.f32 %v11476_v18, %v12888_v46  ;;  %v13224_v18 = vld [vmem:[%s17118_s5] ss:$0 sm:$0xff] }
 0x244   :  { %v1468_v32 = vadd.f32 1e-05, %v1420_v50  ;;  %v1611_v48 = vmul.f32 %v13214_v40, %v1557_v35  ;;  %v1559_v26 = vmul.f32 %v11478_v23, %v12880_v54 }
 0x245   :  { %v1286_v4 = vpop.xlane.xlu1 %1285  ;;  %v1614_v50 = vmul.f32 %v13214_v40, %v1560_v29 }
 0x246   :  { %v1418_v36 = vmul.f32 0.0625, %v1286_v4  ;;  %v1283_v47 = vpop.xlane.xlu0 %1282  ;;  %11481 = vrsqrt.f32 %v1468_v32  ;;  %v1665_v32 = vadd.f32 %v13224_v18, %v1611_v48 }
 0x247   :  { %v1417_v59 = vmul.f32 0.0625, %v1283_v47  ;;  %11483 = vrsqrt.f32 %v1467_v17  ;;  %v1613_v17 = vmul.f32 %v13214_v40, %v1559_v26  ;;  %v1668_v54 = vadd.f32 %v13224_v18, %v1614_v50 }
 0x248   :  { %v11480_v2 = vpop.eup %11479  ;;  %v1466_v15 = vadd.f32 1e-05, %v1418_v36 }
 0x249   :  { %v1558_v31 = vmul.f32 %v11480_v2, %v12905_v63  ;;  %v1465_v41 = vadd.f32 1e-05, %v1417_v59  ;;  %v1667_v36 = vadd.f32 %v13224_v18, %v1613_v17 }
 0x24a   :  { %11485 = vrsqrt.f32 %v1466_v15 }
 0x24b   :  { %v1612_v46 = vmul.f32 %v13214_v40, %v1558_v31  ;;  %11487 = vrsqrt.f32 %v1465_v41  ;;  %v1714_v15 = vpack.c.bf16 %v1668_v54, %v1667_v36 }
 0x24d   :  { %v1666_v63 = vadd.f32 %v13224_v18, %v1612_v46 }
 0x24f   :  { %v1713_v4 = vpack.c.bf16 %v1666_v63, %v1665_v32  ;;  %v1304_v35 = vpop.xlane.xlu1 %1303 }
 0x250   :  { %v1424_v23 = vmul.f32 0.0625, %v1304_v35  ;;  %v11482_v47 = vpop.eup %11481 }
 0x251   :  { %2218 = vmatpush1.bf16.msra.mxu1 %v1713_v4  ;;  %v11484_v29 = vpop.eup %11483  ;;  %v1564_v46 = vmul.f32 %v11482_v47, %v12926_v43 }
 0x252   :  { %2219 = vmatprep.subr.bf16.mxu1 %v17134_v38  ;;  %v1472_v2 = vadd.f32 1e-05, %v1424_v23  ;;  %v1301_v59 = vpop.xlane.xlu0 %1300  ;;  %v1563_v54 = vmul.f32 %v11484_v29, %v12930_v37  ;;  %v1430_v29 = vmul.f32 0.0625, %v13207_v57 }
 0x253   :  { %v1423_v48 = vmul.f32 0.0625, %v1301_v59  ;;  %v1298_v41 = vpop.xlane.xlu1 %1297  ;;  %v1618_v47 = vmul.f32 %v13214_v40, %v1564_v46 }
 0x254   :  { %v11486_v31 = vpop.eup %11485  ;;  %v1422_v63 = vmul.f32 0.0625, %v1298_v41  ;;  %11489 = vrsqrt.f32 %v1472_v2 }
 0x255   :  { %2220 = vmatpush1.bf16.msra.mxu1 %v1714_v15  ;;  %v1562_v26 = vmul.f32 %v11486_v31, %v12947_v0  ;;  %v11488_v50 = vpop.eup %11487  ;;  %v1471_v32 = vadd.f32 1e-05, %v1423_v48  ;;  %v1617_v48 = vmul.f32 %v13214_v40, %v1563_v54  ;;  %v1478_v54 = vadd.f32 1e-05, %v1430_v29 }
 0x256   :  { %2221 = vmatprep.subr.bf16.mxu1 %v17134_v38  ;;  %v1295_v17 = vpop.xlane.xlu0 %1294  ;;  %v1561_v4 = vmul.f32 %v11488_v50, %v12956_v44  ;;  %v1470_v23 = vadd.f32 1e-05, %v1422_v63  ;;  %v1672_v50 = vadd.f32 %v13224_v18, %v1618_v47 }
 0x257   :  { %v1616_v35 = vmul.f32 %v13214_v40, %v1562_v26  ;;  %11491 = vrsqrt.f32 %v1471_v32  ;;  %v1421_v36 = vmul.f32 0.0625, %v1295_v17  ;;  %v1671_v46 = vadd.f32 %v13224_v18, %v1617_v48 }
 0x258   :  { %v1615_v0 = vmul.f32 %v13214_v40, %v1561_v4  ;;  %11493 = vrsqrt.f32 %v1470_v23  ;;  %v1429_v17 = vmul.f32 0.0625, %v13205_v52 }
 0x259   :  { %v1670_v43 = vadd.f32 %v13224_v18, %v1616_v35  ;;  %v1469_v59 = vadd.f32 1e-05, %v1421_v36  ;;  %v1316_v15 = vpop.xlane.xlu1 %1315  ;;  %v1716_v23 = vpack.c.bf16 %v1672_v50, %v1671_v46 }
 0x25a   :  { %v1428_v2 = vmul.f32 0.0625, %v1316_v15  ;;  %v1313_v31 = vpop.xlane.xlu0 %1312  ;;  %v1669_v44 = vadd.f32 %v13224_v18, %v1615_v0  ;;  %v1477_v15 = vadd.f32 1e-05, %v1429_v17 }
 0x25b   :  { %11495 = vrsqrt.f32 %v1469_v59  ;;  %v1427_v37 = vmul.f32 0.0625, %v1313_v31 }
 0x25c   :  { %v1476_v41 = vadd.f32 1e-05, %v1428_v2  ;;  %v1715_v26 = vpack.c.bf16 %v1670_v43, %v1669_v44 }
 0x25d   :  { %v1475_v32 = vadd.f32 1e-05, %v1427_v37 }
 0x25e   :  { %v1310_v63 = vpop.xlane.xlu1 %1309  ;;  %2222 = vmatpush1.bf16.msra.mxu1 %v1715_v26  ;;  %v11490_v35 = vpop.eup %11489  ;;  %11497 = vrsqrt.f32 %v1476_v41 }
 0x25f   :  { %v1426_v4 = vmul.f32 0.0625, %v1310_v63  ;;  %2223 = vmatprep.subr.bf16.mxu1 %v17134_v38  ;;  %11499 = vrsqrt.f32 %v1475_v32  ;;  %v1568_v52 = vmul.f32 %v11490_v35, %v12974_v60 }
 0x260   :  { %v1307_v0 = vpop.xlane.xlu0 %1306 }
 0x261   :  { %v11492_v36 = vpop.eup %11491  ;;  %v1474_v57 = vadd.f32 1e-05, %v1426_v4  ;;  %v1425_v43 = vmul.f32 0.0625, %v1307_v0 }
 0x262   :  { %v1117_v47 = vpop.xlane.xlu1 %1116  ;;  %2224 = vmatpush1.bf16.msra.mxu1 %v1716_v23  ;;  %v11494_v59 = vpop.eup %11493  ;;  %v1567_v48 = vmul.f32 %v11492_v36, %v12981_v12 }
 0x263   :  { %11501 = vrsqrt.f32 %v1474_v57  ;;  %v1170_v2 = vmul.f32 0.0625, %v1117_v47  ;;  %2225 = vmatprep.subr.bf16.mxu1 %v17134_v38  ;;  %v1473_v31 = vadd.f32 1e-05, %v1425_v43  ;;  %v1566_v44 = vmul.f32 %v11494_v59, %v12986_v1 }
 0x264   :  { %11503 = vrsqrt.f32 %v1478_v54  ;;  %v1114_v41 = vpop.xlane.xlu0 %1113  ;;  %v1622_v1 = vmul.f32 %v13214_v40, %v1568_v52  ;;  %v1621_v4 = vmul.f32 %v13214_v40, %v1567_v48 }
 0x265   :  { %v11496_v37 = vpop.eup %11495  ;;  %v13253_v29 = vsub.f32 %v13028_v25, %v1170_v2  ;;  %11505 = vrsqrt.f32 %v1473_v31  ;;  %v1169_v26 = vmul.f32 0.0625, %v1114_v41  ;;  %v1620_v63 = vmul.f32 %v13214_v40, %v1566_v44 }
 0x266   :  { %v1328_v50 = vpop.xlane.xlu1 %1327  ;;  %v1565_v32 = vmul.f32 %v11496_v37, %v12991_v28  ;;  %11507 = vrsqrt.f32 %v1477_v15  ;;  %v1676_v59 = vadd.f32 %v13224_v18, %v1622_v1  ;;  %v1675_v31 = vadd.f32 %v13224_v18, %v1621_v4 }
 0x267   :  { %v1432_v60 = vmul.f32 0.0625, %v1328_v50  ;;  %v1266_v46 = vmul.f32 %v13253_v29, %v13253_v29  ;;  %v13261_v12 = vsub.f32 %v13036_v9, %v1169_v26  ;;  %v1674_v17 = vadd.f32 %v13224_v18, %v1620_v63 }
 0x268   :  { %v1619_v25 = vmul.f32 %v13214_v40, %v1565_v32  ;;  %v1325_v28 = vpop.xlane.xlu0 %1324  ;;  %v11498_v23 = vpop.eup %11497 }
 0x269   :  { %v1480_v35 = vadd.f32 1e-05, %v1432_v60  ;;  %v1404_v54 = vsel %vm979_vm1, %v1266_v46, 0.0  ;;  %v1431_v36 = vmul.f32 0.0625, %v1325_v28  ;;  %v1265_v0 = vmul.f32 %v13261_v12, %v13261_v12  ;;  %v11500_v43 = vpop.eup %11499 }
 0x26a   :  { %1405 = vadd.xlane.f32.xlu1 %v1404_v54  ;;  %v1123_v57 = vpop.xlane.xlu1 %1122  ;;  %v1673_v9 = vadd.f32 %v13224_v18, %v1619_v25  ;;  %v1572_v41 = vmul.f32 %v11498_v23, %v13000_v14  ;;  %v1571_v60 = vmul.f32 %v11500_v43, %v13003_v42  ;;  %v1718_v14 = vpack.c.bf16 %v1676_v59, %v1675_v31  ;;  %v17440_v54 = vld [vmem:[#allocation10_spill] sm:$0xff] }
 0x26b   :  { %11509 = vrsqrt.f32 %v1480_v35  ;;  %v1172_v47 = vmul.f32 0.0625, %v1123_v57  ;;  %v1479_v15 = vadd.f32 1e-05, %v1431_v36  ;;  %v1401_v2 = vsel %vm979_vm1, %v1265_v0, 0.0 }
 0x26c   :  { %v1717_v52 = vpack.c.bf16 %v1674_v17, %v1673_v9  ;;  %1402 = vadd.xlane.f32.xlu0 %v1401_v2  ;;  %v1120_v37 = vpop.xlane.xlu0 %1119  ;;  %v1625_v0 = vmul.f32 %v13214_v40, %v1571_v60  ;;  %v1626_v9 = vmul.f32 %v13214_v40, %v1572_v41  ;;  %v17442_v60 = vld [vmem:[#allocation11_spill] sm:$0xff] }
 0x26d   :  { %v11502_v44 = vpop.eup %11501  ;;  %v13274_v48 = vsub.f32 %v13054_v19, %v1172_v47  ;;  %11511 = vrsqrt.f32 %v1479_v15  ;;  %v1171_v50 = vmul.f32 0.0625, %v1120_v37  ;;  %v17441_v37 = vld [vmem:[#allocation9_spill] sm:$0xff] }
 0x26e   :  { %v11504_v26 = vpop.eup %11503  ;;  %v1334_v32 = vpop.xlane.xlu1 %1333  ;;  %2226 = vmatpush1.bf16.msra.mxu1 %v1717_v52  ;;  %v1570_v63 = vmul.f32 %v11502_v44, %v13014_v3 }
 0x26f   :  { %v1434_v46 = vmul.f32 0.0625, %v1334_v32  ;;  %2227 = vmatprep.subr.bf16.mxu1 %v17134_v38  ;;  %v1268_v19 = vmul.f32 %v13274_v48, %v13274_v48  ;;  %v11506_v1 = vpop.eup %11505  ;;  %v13283_v25 = vsub.f32 %v13056_v56, %v1171_v50  ;;  %v1574_v23 = vmul.f32 %v11504_v26, %v17440_v54 }
 0x270   :  { %v1624_v17 = vmul.f32 %v13214_v40, %v1570_v63  ;;  %v11508_v4 = vpop.eup %11507  ;;  %v1331_v28 = vpop.xlane.xlu0 %1330  ;;  %v1569_v42 = vmul.f32 %v11506_v1, %v13021_v51  ;;  %v1680_v63 = vadd.f32 %v13224_v18, %v1626_v9 }
 0x271   :  { %v1482_v35 = vadd.f32 1e-05, %v1434_v46  ;;  %v1410_v3 = vsel %vm979_vm1, %v1268_v19, 0.0  ;;  %v1433_v36 = vmul.f32 0.0625, %v1331_v28  ;;  %v1267_v56 = vmul.f32 %v13283_v25, %v13283_v25 }
 0x272   :  { %1411 = vadd.xlane.f32.xlu1 %v1410_v3  ;;  %v1340_v57 = vpop.xlane.xlu1 %1339  ;;  %2228 = vmatpush1.bf16.msra.mxu1 %v1718_v14  ;;  %v1623_v47 = vmul.f32 %v13214_v40, %v1569_v42  ;;  %v1678_v51 = vadd.f32 %v13224_v18, %v1624_v17  ;;  %v1573_v26 = vmul.f32 %v11508_v4, %v17441_v37  ;;  %v17443_v42 = vld [vmem:[#allocation5_spill] sm:$0xff] }
 0x273   :  { %11513 = vrsqrt.f32 %v1482_v35  ;;  %v1436_v43 = vmul.f32 0.0625, %v1340_v57  ;;  %2229 = vmatprep.subr.bf16.mxu1 %v17134_v38  ;;  %v1481_v59 = vadd.f32 1e-05, %v1433_v36  ;;  %v1407_v15 = vsel %vm979_vm1, %v1267_v56, 0.0 }
 0x274   :  { %1408 = vadd.xlane.f32.xlu0 %v1407_v15  ;;  %v1337_v31 = vpop.xlane.xlu0 %1336  ;;  %v1677_v44 = vadd.f32 %v13224_v18, %v1623_v47  ;;  %v1628_v41 = vmul.f32 %v13214_v40, %v1574_v23  ;;  %v1679_v14 = vadd.f32 %v13224_v18, %v1625_v0  ;;  %v1627_v4 = vmul.f32 %v13214_v40, %v1573_v26 }
 0x275   :  { %v11510_v2 = vpop.eup %11509  ;;  %v1484_v52 = vadd.f32 1e-05, %v1436_v43  ;;  %11515 = vrsqrt.f32 %v1481_v59  ;;  %v1435_v50 = vmul.f32 0.0625, %v1337_v31 }
 0x276   :  { %v1346_v32 = vpop.xlane.xlu1 %1345  ;;  %v1576_v46 = vmul.f32 %v11510_v2, %v17442_v60  ;;  %v1719_v1 = vpack.c.bf16 %v1678_v51, %v1677_v44  ;;  %v1682_v56 = vadd.f32 %v13224_v18, %v1628_v41  ;;  %v1720_v9 = vpack.c.bf16 %v1680_v63, %v1679_v14 }
 0x277   :  { %11517 = vrsqrt.f32 %v1484_v52  ;;  %v1438_v19 = vmul.f32 0.0625, %v1346_v32  ;;  %v11512_v17 = vpop.eup %11511  ;;  %v1483_v35 = vadd.f32 1e-05, %v1435_v50  ;;  %v1681_v2 = vadd.f32 %v13224_v18, %v1627_v4 }
 0x278   :  { %2230 = vmatpush1.bf16.msra.mxu1 %v1719_v1  ;;  %v1343_v3 = vpop.xlane.xlu0 %1342  ;;  %v1575_v54 = vmul.f32 %v11512_v17, %v17443_v42  ;;  %v1630_v23 = vmul.f32 %v13214_v40, %v1576_v46 }
 0x279   :  { %v1486_v28 = vadd.f32 1e-05, %v1438_v19  ;;  %11519 = vrsqrt.f32 %v1483_v35  ;;  %v1437_v36 = vmul.f32 0.0625, %v1343_v3  ;;  %2231 = vmatprep.subr.bf16.mxu1 %v17134_v38  ;;  %v1721_v50 = vpack.c.bf16 %v1682_v56, %v1681_v2 }
 0x27a   :  { %v1352_v57 = vpop.xlane.xlu1 %1351  ;;  %v1629_v43 = vmul.f32 %v13214_v40, %v1575_v54  ;;  %v1684_v52 = vadd.f32 %v13224_v18, %v1630_v23 }
 0x27b   :  { %11521 = vrsqrt.f32 %v1486_v28  ;;  %v1440_v0 = vmul.f32 0.0625, %v1352_v57  ;;  %v1485_v47 = vadd.f32 1e-05, %v1437_v36 }
 0x27c   :  { %2232 = vmatpush1.bf16.msra.mxu1 %v1720_v9  ;;  %v1349_v15 = vpop.xlane.xlu0 %1348  ;;  %v1683_v37 = vadd.f32 %v13224_v18, %v1629_v43 }
 0x27d   :  { %v11514_v51 = vpop.eup %11513  ;;  %v1488_v59 = vadd.f32 1e-05, %v1440_v0  ;;  %11523 = vrsqrt.f32 %v1485_v47  ;;  %v1439_v31 = vmul.f32 0.0625, %v1349_v15  ;;  %2233 = vmatprep.subr.bf16.mxu1 %v17134_v38 }
 0x27e   :  { %v1358_v44 = vpop.xlane.xlu1 %1357  ;;  %v1578_v26 = vmul.f32 %v11514_v51, %v13051_v45  ;;  %v1722_v28 = vpack.c.bf16 %v1684_v52, %v1683_v37 }
 0x27f   :  { %11525 = vrsqrt.f32 %v1488_v59  ;;  %v1442_v41 = vmul.f32 0.0625, %v1358_v44  ;;  %v11516_v32 = vpop.eup %11515  ;;  %v1487_v63 = vadd.f32 1e-05, %v1439_v31 }
 0x280   :  { %v1632_v60 = vmul.f32 %v13214_v40, %v1578_v26  ;;  %2234 = vmatpush1.bf16.msra.mxu1 %v1721_v50  ;;  %v1355_v1 = vpop.xlane.xlu0 %1354  ;;  %v1577_v14 = vmul.f32 %v11516_v32, %v13059_v27 }
 0x281   :  { %v11518_v46 = vpop.eup %11517  ;;  %v1490_v19 = vadd.f32 1e-05, %v1442_v41  ;;  %11527 = vrsqrt.f32 %v1487_v63  ;;  %v1441_v17 = vmul.f32 0.0625, %v1355_v1  ;;  %2235 = vmatprep.subr.bf16.mxu1 %v17134_v38 }
 0x282   :  { %v1364_v35 = vpop.xlane.xlu1 %1363  ;;  %v1580_v45 = vmul.f32 %v11518_v46, %v13063_v33  ;;  %v1631_v4 = vmul.f32 %v13214_v40, %v1577_v14  ;;  %v1686_v42 = vadd.f32 %v13224_v18, %v1632_v60 }
 0x283   :  { %11529 = vrsqrt.f32 %v1490_v19  ;;  %v1444_v3 = vmul.f32 0.0625, %v1364_v35  ;;  %v11520_v54 = vpop.eup %11519  ;;  %v1489_v23 = vadd.f32 1e-05, %v1441_v17 }
 0x284   :  { %v1634_v36 = vmul.f32 %v13214_v40, %v1580_v45  ;;  %2236 = vmatpush1.bf16.msra.mxu1 %v1722_v28  ;;  %v1361_v56 = vpop.xlane.xlu0 %1360  ;;  %v1685_v0 = vadd.f32 %v13224_v18, %v1631_v4  ;;  %v1579_v9 = vmul.f32 %v11520_v54, %v13071_v58 }
 0x285   :  { %v11522_v57 = vpop.eup %11521  ;;  %v1492_v27 = vadd.f32 1e-05, %v1444_v3  ;;  %11531 = vrsqrt.f32 %v1489_v23  ;;  %v1443_v33 = vmul.f32 0.0625, %v1361_v56  ;;  %2237 = vmatprep.subr.bf16.mxu1 %v17134_v38 }
 0x286   :  { %v1370_v43 = vpop.xlane.xlu1 %1369  ;;  %v1688_v47 = vadd.f32 %v13224_v18, %v1634_v36  ;;  %v1582_v51 = vmul.f32 %v11522_v57, %v13078_v24  ;;  %v1723_v15 = vpack.c.bf16 %v1686_v42, %v1685_v0  ;;  %v1633_v2 = vmul.f32 %v13214_v40, %v1579_v9 }
 0x287   :  { %11533 = vrsqrt.f32 %v1492_v27  ;;  %v1446_v59 = vmul.f32 0.0625, %v1370_v43  ;;  %v11524_v52 = vpop.eup %11523  ;;  %v1491_v31 = vadd.f32 1e-05, %v1443_v33 }
 0x288   :  { %v1636_v44 = vmul.f32 %v13214_v40, %v1582_v51  ;;  %2238 = vmatpush1.bf16.msra.mxu1 %v1723_v15  ;;  %v1367_v26 = vpop.xlane.xlu0 %1366  ;;  %v1687_v41 = vadd.f32 %v13224_v18, %v1633_v2  ;;  %v1581_v50 = vmul.f32 %v11524_v52, %v13084_v8 }
 0x289   :  { %v11526_v37 = vpop.eup %11525  ;;  %v1494_v58 = vadd.f32 1e-05, %v1446_v59  ;;  %11535 = vrsqrt.f32 %v1491_v31  ;;  %v1445_v32 = vmul.f32 0.0625, %v1367_v26  ;;  %2239 = vmatprep.subr.bf16.mxu1 %v17134_v38 }
 0x28a   :  { %v1376_v24 = vpop.xlane.xlu1 %1375  ;;  %v1690_v63 = vadd.f32 %v13224_v18, %v1636_v44  ;;  %v1584_v60 = vmul.f32 %v11526_v37, %v13090_v55  ;;  %v1724_v19 = vpack.c.bf16 %v1688_v47, %v1687_v41  ;;  %v1635_v1 = vmul.f32 %v13214_v40, %v1581_v50 }
 0x28b   :  { %11537 = vrsqrt.f32 %v1494_v58  ;;  %v1448_v46 = vmul.f32 0.0625, %v1376_v24  ;;  %v11528_v14 = vpop.eup %11527  ;;  %v1493_v17 = vadd.f32 1e-05, %v1445_v32 }
 0x28c   :  { %v1638_v35 = vmul.f32 %v13214_v40, %v1584_v60  ;;  %2240 = vmatpush1.bf16.msra.mxu1 %v1724_v19  ;;  %v1373_v45 = vpop.xlane.xlu0 %1372  ;;  %v1689_v3 = vadd.f32 %v13224_v18, %v1635_v1  ;;  %v1583_v4 = vmul.f32 %v11528_v14, %v13098_v13 }
 0x28d   :  { %v11530_v28 = vpop.eup %11529  ;;  %v1496_v8 = vadd.f32 1e-05, %v1448_v46  ;;  %11539 = vrsqrt.f32 %v1493_v17  ;;  %v1447_v42 = vmul.f32 0.0625, %v1373_v45  ;;  %2241 = vmatprep.subr.bf16.mxu1 %v17134_v38 }
 0x28e   :  { %v1382_v55 = vpop.xlane.xlu1 %1381  ;;  %v1692_v54 = vadd.f32 %v13224_v18, %v1638_v35  ;;  %v1586_v23 = vmul.f32 %v11530_v28, %v13102_v61  ;;  %v1725_v57 = vpack.c.bf16 %v1690_v63, %v1689_v3  ;;  %v1637_v27 = vmul.f32 %v13214_v40, %v1583_v4 }
 0x28f   :  { %11541 = vrsqrt.f32 %v1496_v8  ;;  %v1450_v36 = vmul.f32 0.0625, %v1382_v55  ;;  %v11532_v56 = vpop.eup %11531  ;;  %v1495_v0 = vadd.f32 1e-05, %v1447_v42 }
 0x290   :  { %v1640_v9 = vmul.f32 %v13214_v40, %v1586_v23  ;;  %2242 = vmatpush1.bf16.msra.mxu1 %v1725_v57  ;;  %v1379_v43 = vpop.xlane.xlu0 %1378  ;;  %v1691_v47 = vadd.f32 %v13224_v18, %v1637_v27  ;;  %v1585_v51 = vmul.f32 %v11532_v56, %v13112_v10 }
 0x291   :  { %v11534_v33 = vpop.eup %11533  ;;  %v1498_v13 = vadd.f32 1e-05, %v1450_v36  ;;  %11543 = vrsqrt.f32 %v1495_v0  ;;  %v1449_v59 = vmul.f32 0.0625, %v1379_v43  ;;  %2243 = vmatprep.subr.bf16.mxu1 %v17134_v38  ;;  %v13362_v36 = vld [vmem:[#allocation2 + $0x8] ss:$12 sps:$4 sm:$0xff]  }
 0x292   :  { %v1388_v61 = vpop.xlane.xlu1 %1387  ;;  %v1694_v15 = vadd.f32 %v13224_v18, %v1640_v9  ;;  %v1588_v2 = vmul.f32 %v11534_v33, %v13109_v21  ;;  %v1726_v31 = vpack.c.bf16 %v1692_v54, %v1691_v47  ;;  %v1639_v44 = vmul.f32 %v13214_v40, %v1585_v51  ;;  %v13369_v43 = vld [vmem:[#allocation2 + $0x1c] ss:$12 sps:$4 sm:$0xff]   ;;  %10301 = vmatprep.mubr.bf16.mxu0 %v13362_v36 }
 0x293   :  { %11545 = vrsqrt.f32 %v1498_v13  ;;  %v1452_v52 = vmul.f32 0.0625, %v1388_v61  ;;  %v11536_v37 = vpop.eup %11535  ;;  %v1497_v58 = vadd.f32 1e-05, %v1449_v59 }
 0x294   :  { %v1642_v26 = vmul.f32 %v13214_v40, %v1588_v2  ;;  %2244 = vmatpush1.bf16.msra.mxu1 %v1726_v31  ;;  %v1385_v50 = vpop.xlane.xlu0 %1384  ;;  %v1693_v32 = vadd.f32 %v13224_v18, %v1639_v44  ;;  %v1587_v24 = vmul.f32 %v11536_v37, %v13120_v53 }
 0x295   :  { %v11538_v41 = vpop.eup %11537  ;;  %v1500_v10 = vadd.f32 1e-05, %v1452_v52  ;;  %11547 = vrsqrt.f32 %v1497_v58  ;;  %v1451_v63 = vmul.f32 0.0625, %v1385_v50  ;;  %2245 = vmatprep.subr.bf16.mxu1 %v17134_v38 }
 0x296   :  { %v1394_v21 = vpop.xlane.xlu1 %1393  ;;  %v1696_v60 = vadd.f32 %v13224_v18, %v1642_v26  ;;  %v1590_v46 = vmul.f32 %v11538_v41, %v13128_v30  ;;  %v1727_v1 = vpack.c.bf16 %v1694_v15, %v1693_v32  ;;  %v1641_v14 = vmul.f32 %v13214_v40, %v1587_v24 }
 0x297   :  { %11549 = vrsqrt.f32 %v1500_v10  ;;  %v1454_v19 = vmul.f32 0.0625, %v1394_v21  ;;  %v11540_v17 = vpop.eup %11539  ;;  %v1499_v35 = vadd.f32 1e-05, %v1451_v63  ;;  %v13384_v63 = vld [vmem:[#allocation2 + $0x18] ss:$12 sps:$4 sm:$0xff]  }
 0x298   :  { %v1644_v28 = vmul.f32 %v13214_v40, %v1590_v46  ;;  %2246 = vmatpush1.bf16.msra.mxu1 %v1727_v1  ;;  %v1695_v45 = vadd.f32 %v13224_v18, %v1641_v14  ;;  %v1589_v3 = vmul.f32 %v11540_v17, %v13132_v20  ;;  %v13365_v20 = vld [vmem:[#allocation2] ss:$12 sps:$4 sm:$0xff]  }
 0x299   :  { %v11542_v8 = vpop.eup %11541  ;;  %v1502_v53 = vadd.f32 1e-05, %v1454_v19  ;;  %11551 = vrsqrt.f32 %v1499_v35  ;;  %2247 = vmatprep.subr.bf16.mxu1 %v17134_v38  ;;  %v13388_v46 = vld [vmem:[#allocation2 + $0x34] ss:$12 sps:$4 sm:$0xff]  }
 0x29a   :  { %v1400_v30 = vpop.xlane.xlu1 %1399  ;;  %v1698_v4 = vadd.f32 %v13224_v18, %v1644_v28  ;;  %v1592_v42 = vmul.f32 %v11542_v8, %v13138_v49  ;;  %v1728_v54 = vpack.c.bf16 %v1696_v60, %v1695_v45  ;;  %v1643_v23 = vmul.f32 %v13214_v40, %v1589_v3  ;;  %v1391_v27 = vpop.xlane.xlu0 %1390  ;;  %v13399_v45 = vld [vmem:[#allocation2 + $0x30] ss:$12 sps:$4 sm:$0xff]   ;;  %v13401_v3 = vld [vmem:[#allocation2 + $0x4c] ss:$12 sps:$4 sm:$0xff]  }
 0x29b   :  { %11553 = vrsqrt.f32 %v1502_v53  ;;  %v1456_v55 = vmul.f32 0.0625, %v1400_v30  ;;  %v11544_v57 = vpop.eup %11543  ;;  %v1453_v9 = vmul.f32 0.0625, %v1391_v27 }
 0x29c   :  { %v1646_v56 = vmul.f32 %v13214_v40, %v1592_v42  ;;  %2248 = vmatpush1.bf16.msra.mxu1 %v1728_v54  ;;  %v1697_v13 = vadd.f32 %v13224_v18, %v1643_v23  ;;  %v1591_v49 = vmul.f32 %v11544_v57, %v13144_v5 }
 0x29d   :  { %v11546_v0 = vpop.eup %11545  ;;  %v1504_v33 = vadd.f32 1e-05, %v1456_v55  ;;  %v1501_v59 = vadd.f32 1e-05, %v1453_v9 }
 0x29e   :  { %v1700_v47 = vadd.f32 %v13224_v18, %v1646_v56  ;;  %v1594_v51 = vmul.f32 %v11546_v0, %v13159_v22  ;;  %v1729_v61 = vpack.c.bf16 %v1698_v4, %v1697_v13  ;;  %v1645_v15 = vmul.f32 %v13214_v40, %v1591_v49  ;;  %v1397_v52 = vpop.xlane.xlu0 %1396  ;;  %v13413_v56 = vld [vmem:[#allocation2 + $0x48] ss:$12 sps:$4 sm:$0xff]   ;;  %v13415_v0 = vld [vmem:[#allocation2 + $0x64] ss:$12 sps:$4 sm:$0xff]  }
 0x29f   :  { %11555 = vrsqrt.f32 %v1504_v33  ;;  %v11548_v2 = vpop.eup %11547  ;;  %2250 = vmatmul.mubr.bf16.vlgmr.msra.gmra.mrb[32].mxu1 %v13365_v20  ;;  %v1455_v44 = vmul.f32 0.0625, %v1397_v52  ;;  %v13421_v33 = vld [vmem:[#allocation2 + $0x7c] ss:$12 sps:$4 sm:$0xff]   ;;  %v13425_v13 = vld [vmem:[#allocation2 + $0x78] ss:$12 sps:$4 sm:$0xff]  }
 0x2a0   :  { %v1648_v31 = vmul.f32 %v13214_v40, %v1594_v51  ;;  %11557 = vrsqrt.f32 %v1501_v59  ;;  %10285 = vmatprep.subr.bf16.mxu0 %v1729_v61  ;;  %v1699_v37 = vadd.f32 %v13224_v18, %v1645_v15  ;;  %v1593_v58 = vmul.f32 %v11548_v2, %v13163_v34  ;;  %2257 = vmatprep.mubr.bf16.mxu1 %v13369_v43  ;;  %v13427_v49 = vld [vmem:[#allocation2 + $0x94] ss:$12 sps:$4 sm:$0xff]   ;;  %v13433_v51 = vld [vmem:[#allocation2 + $0xac] ss:$12 sps:$4 sm:$0xff]   ;;  %v13445_v2 = vld [vmem:[#allocation2 + $0xdc] ss:$12 sps:$4 sm:$0xff]  }
 0x2a1   :  { %v11550_v5 = vpop.eup %11549  ;;  %10286 = vmatpush3.bf16.msra.mxu0 %v1729_v61  ;;  %v1503_v26 = vadd.f32 1e-05, %v1455_v44  ;;  %17445 = vst [vmem:[#allocation7_spill] sm:$0xff] %v13433_v51  ;;  %v13437_v59 = vld [vmem:[#allocation2 + $0xa8] ss:$12 sps:$4 sm:$0xff]   ;;  %17449 = vst [vmem:[#allocation11_spill] sm:$0xff] %v13445_v2 }
 0x2a2   :  { %v1596_v22 = vmul.f32 %v11550_v5, %v13156_v11  ;;  %v1730_v41 = vpack.c.bf16 %v1700_v47, %v1699_v37  ;;  %v1647_v10 = vmul.f32 %v13214_v40, %v1593_v58  ;;  %v1702_v50 = vadd.f32 %v13224_v18, %v1648_v31  ;;  %v13431_v47 = vld [vmem:[#allocation2 + $0x90] ss:$12 sps:$4 sm:$0xff]   ;;  %17446 = vst [vmem:[#allocation8_spill] sm:$0xff] %v13437_v59  ;;  %v13443_v15 = vld [vmem:[#allocation2 + $0xc0] ss:$12 sps:$4 sm:$0xff]  }
 0x2a3   :  { %v11552_v32 = vpop.eup %11551  ;;  %11559 = vrsqrt.f32 %v1503_v26  ;;  %17444 = vst [vmem:[#allocation6_spill] sm:$0xff] %v13431_v47  ;;  %v13439_v61 = vld [vmem:[#allocation2 + $0xc4] ss:$12 sps:$4 sm:$0xff]   ;;  %17448 = vst [vmem:[#allocation9_spill] sm:$0xff] %v13443_v15  ;;  %v13451_v31 = vld [vmem:[#allocation2 + $0xf4] ss:$12 sps:$4 sm:$0xff]  }
 0x2a4   :  { %v1650_v24 = vmul.f32 %v13214_v40, %v1596_v22  ;;  %10287 = vmatprep.subr.bf16.mxu0 %v1730_v41  ;;  %v1701_v34 = vadd.f32 %v13224_v18, %v1647_v10  ;;  %v1595_v60 = vmul.f32 %v11552_v32, %v13168_v7  ;;  %17447 = vst [vmem:[#allocation10_spill] sm:$0xff] %v13439_v61  ;;  %v13449_v52 = vld [vmem:[#allocation2 + $0xd8] ss:$12 sps:$4 sm:$0xff]   ;;  %17451 = vst [vmem:[#allocation12_spill] sm:$0xff] %v13451_v31  ;;  %v13455_v5 = vld [vmem:[#allocation2 + $0xf0] ss:$12 sps:$4 sm:$0xff]  }
 0x2a5   :  { %v11554_v21 = vpop.eup %11553  ;;  %10288 = vmatpush3.bf16.msra.mxu0 %v1730_v41  ;;  %17450 = vst [vmem:[#allocation5_spill] sm:$0xff] %v13449_v52  ;;  %17452 = vst [vmem:[#allocation13_spill] sm:$0xff] %v13455_v5  ;;  %v13457_v44 = vld [vmem:[#allocation2 + $0x10c] ss:$12 sps:$4 sm:$0xff]   ;;  %v13461_v37 = vld [vmem:[#allocation2 + $0x108] ss:$12 sps:$4 sm:$0xff]  }
 0x2a6   :  { %v1598_v11 = vmul.f32 %v11554_v21, %v13183_v6  ;;  %v1731_v19 = vpack.c.bf16 %v1702_v50, %v1701_v34  ;;  %v1649_v1 = vmul.f32 %v13214_v40, %v1595_v60  ;;  %v1704_v14 = vadd.f32 %v13224_v18, %v1650_v24  ;;  %17453 = vst [vmem:[#allocation14_spill] sm:$0xff] %v13457_v44  ;;  %v13463_v58 = vld [vmem:[#allocation2 + $0x124] ss:$12 sps:$4 sm:$0xff]   ;;  %v13467_v32 = vld [vmem:[#allocation2 + $0x120] ss:$12 sps:$4 sm:$0xff]  }
 0x2a7   :  { %2258 = vmatmul.mubr.bf16.gmra.mrb[36].mxu1 %v13384_v63  ;;  %17454 = vst [vmem:[#allocation15_spill] sm:$0xff] %v13461_v37  ;;  %17455 = vst [vmem:[#allocation16_spill] sm:$0xff] %v13463_v58  ;;  %v13469_v21 = vld [vmem:[#allocation2 + $0x13c] ss:$12 sps:$4 sm:$0xff]  }
 0x2a8   :  { %10289 = vmatprep.subr.bf16.mxu0 %v1731_v19  ;;  %v1703_v35 = vadd.f32 %v13224_v18, %v1649_v1  ;;  %2265 = vmatprep.mubr.bf16.mxu1 %v13388_v46  ;;  %v1652_v7 = vmul.f32 %v13214_v40, %v1598_v11  ;;  %17456 = vst [vmem:[#allocation17_spill] sm:$0xff] %v13467_v32  ;;  %17457 = vst [vmem:[#allocation18_spill] sm:$0xff] %v13469_v21 }
 0x2a9   :  { %v11556_v17 = vpop.eup %11555  ;;  %10290 = vmatpush3.bf16.msra.mxu0 %v1731_v19 }
 0x2aa   :  { %v1600_v28 = vmul.f32 %v11556_v17, %v13180_v62  ;;  %v11558_v8 = vpop.eup %11557  ;;  %v1732_v6 = vpack.c.bf16 %v1704_v14, %v1703_v35  ;;  %v1706_v4 = vadd.f32 %v13224_v18, %v1652_v7  ;;  %v13473_v14 = vld [vmem:[#allocation2 + $0x138] ss:$12 sps:$4 sm:$0xff]   ;;  %v13475_v35 = vld [vmem:[#allocation2 + $0x154] ss:$12 sps:$4 sm:$0xff]  }
 0x2ab   :  { %v1597_v53 = vmul.f32 %v11558_v8, %v13196_v39  ;;  %17458 = vst [vmem:[#allocation19_spill] sm:$0xff] %v13473_v14  ;;  %17459 = vst [vmem:[#allocation20_spill] sm:$0xff] %v13475_v35 }
 0x2ac   :  { %10291 = vmatprep.subr.bf16.mxu0 %v1732_v6  ;;  %v1654_v42 = vmul.f32 %v13214_v40, %v1600_v28 }
 0x2ad   :  { %10292 = vmatpush3.bf16.msra.mxu0 %v1732_v6  ;;  %v1651_v30 = vmul.f32 %v13214_v40, %v1597_v53  ;;  %v11560_v55 = vpop.eup %11559 }
 0x2ae   :  { %v1599_v62 = vmul.f32 %v11560_v55, %v13193_v16  ;;  %v1708_v57 = vadd.f32 %v13224_v18, %v1654_v42  ;;  %v13419_v16 = vld [vmem:[#allocation2 + $0x60] ss:$12 sps:$4 sm:$0xff]   ;;  %v13484_v42 = vld [vmem:[#allocation2 + $0x150] ss:$12 sps:$4 sm:$0xff]  }
 0x2af   :  { %v1705_v54 = vadd.f32 %v13224_v18, %v1651_v30  ;;  %2266 = vmatmul.mubr.bf16.gmra.mrb[40].mxu1 %v13399_v45  ;;  %17460 = vst [vmem:[#allocation21_spill] sm:$0xff] %v13484_v42  ;;  %v13486_v55 = vld [vmem:[#allocation2 + $0x16c] ss:$12 sps:$4 sm:$0xff]  }
 0x2b0   :  { %2273 = vmatprep.mubr.bf16.mxu1 %v13401_v3  ;;  %v1653_v23 = vmul.f32 %v13214_v40, %v1599_v62  ;;  %17461 = vst [vmem:[#allocation22_spill] sm:$0xff] %v13486_v55 }
 0x2b1   :  { %v1733_v39 = vpack.c.bf16 %v1706_v4, %v1705_v54 }
 0x2b2   :  { %v1707_v27 = vadd.f32 %v13224_v18, %v1653_v23 }
 0x2b3   :  { %10293 = vmatprep.subr.bf16.mxu0 %v1733_v39 }
 0x2b4   :  { %10294 = vmatpush3.bf16.msra.mxu0 %v1733_v39  ;;  %v1734_v9 = vpack.c.bf16 %v1708_v57, %v1707_v27 }
 0x2b6   :  { %10295 = vmatprep.subr.bf16.mxu0 %v1734_v9 }
 0x2b7   :  { %2274 = vmatmul.mubr.bf16.gmra.mrb[44].mxu1 %v13413_v56 }
 0x2b8   :  { %10296 = vmatpush3.bf16.msra.mxu0 %v1734_v9  ;;  %2281 = vmatprep.mubr.bf16.mxu1 %v13415_v0 }
 0x2bf   :  { %2282 = vmatmul.mubr.bf16.gmra.mrb[48].mxu1 %v13419_v16 }
 0x2c0   :  { %2289 = vmatprep.mubr.bf16.mxu1 %v13421_v33 }
 0x2c7   :  { %2290 = vmatmul.mubr.bf16.gmra.mrb[52].mxu1 %v13425_v13 }
 0x2c8   :  { %2297 = vmatprep.mubr.bf16.mxu1 %v13427_v49 }
 0x2cf   :  { %2298 = vmatmul.mubr.bf16.gmra.mrb[56].mxu1 %v13431_v47 }
 0x2d0   :  { %2305 = vmatprep.mubr.bf16.mxu1 %v13433_v51 }
 0x2d7   :  { %2306 = vmatmul.mubr.bf16.gmra.mrb[60].mxu1 %v13437_v59 }
 0x2d8   :  { %2313 = vmatprep.mubr.bf16.mxu1 %v13439_v61 }
 0x2df   :  { %2314 = vmatmul.mubr.bf16.gmra.mrb[64].mxu1 %v13443_v15 }
 0x2e0   :  { %2321 = vmatprep.mubr.bf16.mxu1 %v13445_v2 }
 0x2e7   :  { %2322 = vmatmul.mubr.bf16.gmra.mrb[68].mxu1 %v13449_v52 }
 0x2e8   :  { %2329 = vmatprep.mubr.bf16.mxu1 %v13451_v31 }
 0x2ef   :  { %2330 = vmatmul.mubr.bf16.gmra.mrb[72].mxu1 %v13455_v5 }
 0x2f0   :  { %2337 = vmatprep.mubr.bf16.mxu1 %v13457_v44 }
 0x2f7   :  { %v1406_v22 = vpop.xlane.xlu1 %1405  ;;  %2338 = vmatmul.mubr.bf16.gmra.mrb[76].mxu1 %v13461_v37 }
 0x2f8   :  { %v1458_v26 = vmul.f32 0.0625, %v1406_v22  ;;  %2345 = vmatprep.mubr.bf16.mxu1 %v13463_v58  ;;  %v13496_v22 = vld [vmem:[#allocation2 + $0x168] ss:$12 sps:$4 sm:$0xff]  }
 0x2f9   :  { %v1403_v10 = vpop.xlane.xlu0 %1402  ;;  %17462 = vst [vmem:[#allocation23_spill] sm:$0xff] %v13496_v22 }
 0x2fa   :  { %v1506_v41 = vadd.f32 1e-05, %v1458_v26  ;;  %v1457_v50 = vmul.f32 0.0625, %v1403_v10  ;;  %v13498_v26 = vld [vmem:[#allocation2 + $0x184] ss:$12 sps:$4 sm:$0xff]  }
 0x2fb   :  { %17463 = vst [vmem:[#allocation24_spill] sm:$0xff] %v13498_v26  ;;  %v13503_v10 = vld [vmem:[#allocation2 + $0x20] ss:$12 sps:$4 sm:$0xff]  }
 0x2fc   :  { %11561 = vrsqrt.f32 %v1506_v41  ;;  %v1505_v24 = vadd.f32 1e-05, %v1457_v50  ;;  %v13510_v50 = vld [vmem:[#allocation2 + $0x19c] ss:$12 sps:$4 sm:$0xff]  }
 0x2fd   :  { %17465 = vst [vmem:[#allocation26_spill] sm:$0xff] %v13510_v50 }
 0x2fe   :  { %11563 = vrsqrt.f32 %v1505_v24  ;;  %v13518_v24 = vld [vmem:[#allocation2 + $0x68] ss:$12 sps:$4 sm:$0xff]  }
 0x2ff   :  { %v1412_v34 = vpop.xlane.xlu1 %1411  ;;  %2346 = vmatmul.mubr.bf16.gmra.mrb[80].mxu1 %v13467_v32 }
 0x300   :  { %v1460_v60 = vmul.f32 0.0625, %v1412_v34  ;;  %2353 = vmatprep.mubr.bf16.mxu1 %v13469_v21  ;;  %v13520_v34 = vld [vmem:[#allocation2 + $0x198] ss:$12 sps:$4 sm:$0xff]  }
 0x301   :  { %v1409_v19 = vpop.xlane.xlu0 %1408  ;;  %17466 = vst [vmem:[#allocation27_spill] sm:$0xff] %v13520_v34 }
 0x302   :  { %v1508_v11 = vadd.f32 1e-05, %v1460_v60  ;;  %v1459_v1 = vmul.f32 0.0625, %v1409_v19  ;;  %v13522_v60 = vld [vmem:[#allocation2 + $0x1b4] ss:$12 sps:$4 sm:$0xff]  }
 0x303   :  { %17467 = vst [vmem:[#allocation28_spill] sm:$0xff] %v13522_v60  ;;  %v13530_v19 = vld [vmem:[#allocation2 + $0x98] ss:$12 sps:$4 sm:$0xff]  }
 0x304   :  { %11565 = vrsqrt.f32 %v1508_v11  ;;  %v1507_v17 = vadd.f32 1e-05, %v1459_v1  ;;  %v13528_v11 = vld [vmem:[#allocation2 + $0x80] ss:$12 sps:$4 sm:$0xff]   ;;  %17469 = vst [vmem:[#allocation30_spill] sm:$0xff] %v13530_v19 }
 0x305   :  { %17468 = vst [vmem:[#allocation29_spill] sm:$0xff] %v13528_v11  ;;  %v13532_v1 = vld [vmem:[#allocation2 + $0x1b0] ss:$12 sps:$4 sm:$0xff]  }
 0x306   :  { %v11562_v7 = vpop.eup %11561  ;;  %11567 = vrsqrt.f32 %v1507_v17  ;;  %17470 = vst [vmem:[#allocation31_spill] sm:$0xff] %v13532_v1  ;;  %v13534_v17 = vld [vmem:[#allocation2 + $0x1cc] ss:$12 sps:$4 sm:$0xff]  }
 0x307   :  { %v1602_v28 = vmul.f32 %v11562_v7, %v13253_v29  ;;  %2354 = vmatmul.mubr.bf16.gmra.mrb[84].mxu1 %v13473_v14  ;;  %17471 = vst [vmem:[#allocation32_spill] sm:$0xff] %v13534_v17  ;;  %v13540_v7 = vld [vmem:[#allocation2 + $0xb0] ss:$12 sps:$4 sm:$0xff]  }
 0x308   :  { %v11564_v8 = vpop.eup %11563  ;;  %2361 = vmatprep.mubr.bf16.mxu1 %v13475_v35  ;;  %17472 = vst [vmem:[#allocation33_spill] sm:$0xff] %v13540_v7 }
 0x309   :  { %v1656_v6 = vmul.f32 %v13214_v40, %v1602_v28  ;;  %v1601_v53 = vmul.f32 %v11564_v8, %v13261_v12  ;;  %v13542_v28 = vld [vmem:[#allocation2 + $0xc8] ss:$12 sps:$4 sm:$0xff]  }
 0x30a   :  { %17473 = vst [vmem:[#allocation34_spill] sm:$0xff] %v13542_v28  ;;  %v13544_v8 = vld [vmem:[#allocation2 + $0x1c8] ss:$12 sps:$4 sm:$0xff]  }
 0x30b   :  { %v1655_v30 = vmul.f32 %v13214_v40, %v1601_v53  ;;  %v1710_v4 = vadd.f32 %v13224_v18, %v1656_v6  ;;  %17474 = vst [vmem:[#allocation35_spill] sm:$0xff] %v13544_v8  ;;  %v13546_v6 = vld [vmem:[#allocation2 + $0x1e4] ss:$12 sps:$4 sm:$0xff]   ;;  %v13552_v53 = vld [vmem:[#allocation2 + $0xe0] ss:$12 sps:$4 sm:$0xff]  }
 0x30c   :  { %17475 = vst [vmem:[#allocation36_spill] sm:$0xff] %v13546_v6  ;;  %17476 = vst [vmem:[#allocation37_spill] sm:$0xff] %v13552_v53 }
 0x30d   :  { %v1709_v29 = vadd.f32 %v13224_v18, %v1655_v30  ;;  %v13554_v30 = vld [vmem:[#allocation2 + $0xf8] ss:$12 sps:$4 sm:$0xff]  }
 0x30e   :  { %v11566_v54 = vpop.eup %11565  ;;  %17477 = vst [vmem:[#allocation38_spill] sm:$0xff] %v13554_v30 }
 0x30f   :  { %v1604_v62 = vmul.f32 %v11566_v54, %v13274_v48  ;;  %v1735_v39 = vpack.c.bf16 %v1710_v4, %v1709_v29  ;;  %2362 = vmatmul.mubr.bf16.gmra.mrb[88].mxu1 %v13484_v42  ;;  %v13556_v4 = vld [vmem:[#allocation2 + $0x1e0] ss:$12 sps:$4 sm:$0xff]   ;;  %v13558_v54 = vld [vmem:[#allocation2 + $0x1fc] ss:$12 sps:$4 sm:$0xff]  }
 0x310   :  { %v11568_v23 = vpop.eup %11567  ;;  %2369 = vmatprep.mubr.bf16.mxu1 %v13486_v55  ;;  %17478 = vst [vmem:[#allocation39_spill] sm:$0xff] %v13556_v4  ;;  %17479 = vst [vmem:[#allocation40_spill] sm:$0xff] %v13558_v54  ;;  %v13564_v29 = vld [vmem:[#allocation2 + $0x110] ss:$12 sps:$4 sm:$0xff]  }
 0x311   :  { %v1658_v57 = vmul.f32 %v13214_v40, %v1604_v62  ;;  %10297 = vmatprep.subr.bf16.mxu0 %v1735_v39  ;;  %v1603_v12 = vmul.f32 %v11568_v23, %v13283_v25  ;;  %v13505_v25 = vld [vmem:[#allocation2 + $0x38] ss:$12 sps:$4 sm:$0xff]   ;;  %17480 = vst [vmem:[#allocation41_spill] sm:$0xff] %v13564_v29  ;;  %v13566_v62 = vld [vmem:[#allocation2 + $0x128] ss:$12 sps:$4 sm:$0xff]  }
 0x312   :  { %10298 = vmatpush3.bf16.msra.mxu0 %v1735_v39  ;;  %17481 = vst [vmem:[#allocation42_spill] sm:$0xff] %v13566_v62  ;;  %v13568_v39 = vld [vmem:[#allocation2 + $0x1f8] ss:$12 sps:$4 sm:$0xff]   ;;  %v13570_v23 = vld [vmem:[#allocation2 + $0x214] ss:$12 sps:$4 sm:$0xff]  }
 0x313   :  { %v1657_v27 = vmul.f32 %v13214_v40, %v1603_v12  ;;  %v1712_v9 = vadd.f32 %v13224_v18, %v1658_v57  ;;  %v13507_v40 = vld [vmem:[#allocation2 + $0x180] ss:$12 sps:$4 sm:$0xff]   ;;  %17482 = vst [vmem:[#allocation43_spill] sm:$0xff] %v13568_v39  ;;  %17483 = vst [vmem:[#allocation44_spill] sm:$0xff] %v13570_v23  ;;  %v13578_v12 = vld [vmem:[#allocation2 + $0x158] ss:$12 sps:$4 sm:$0xff]  }
 0x314   :  { %17464 = vst [vmem:[#allocation25_spill] sm:$0xff] %v13507_v40  ;;  %v13576_v57 = vld [vmem:[#allocation2 + $0x140] ss:$12 sps:$4 sm:$0xff]   ;;  %17485 = vst [vmem:[#allocation46_spill] sm:$0xff] %v13578_v12 }
 0x315   :  { %v1711_v48 = vadd.f32 %v13224_v18, %v1657_v27  ;;  %v13516_v18 = vld [vmem:[#allocation2 + $0x50] ss:$12 sps:$4 sm:$0xff]   ;;  %17484 = vst [vmem:[#allocation45_spill] sm:$0xff] %v13576_v57 }
 0x316   :  { %v13580_v27 = vld [vmem:[#allocation2 + $0x210] ss:$12 sps:$4 sm:$0xff]  }
 0x317   :  { %v1736_v41 = vpack.c.bf16 %v1712_v9, %v1711_v48  ;;  %2370 = vmatmul.mubr.bf16.gmra.mrb[92].mxu1 %v13496_v22  ;;  %17486 = vst [vmem:[#allocation47_spill] sm:$0xff] %v13580_v27  ;;  %v13582_v9 = vld [vmem:[#allocation2 + $0x22c] ss:$12 sps:$4 sm:$0xff]   ;;  %v13588_v48 = vld [vmem:[#allocation2 + $0x170] ss:$12 sps:$4 sm:$0xff]  }
 0x318   :  { %2377 = vmatprep.mubr.bf16.mxu1 %v13498_v26  ;;  %17487 = vst [vmem:[#allocation48_spill] sm:$0xff] %v13582_v9  ;;  %17488 = vst [vmem:[#allocation49_spill] sm:$0xff] %v13588_v48 }
 0x319   :  { %10299 = vmatprep.subr.bf16.mxu0 %v1736_v41 }
 0x31a   :  { %10300 = vmatpush3.bf16.msra.mxu0 %v1736_v41  ;;  %v13590_v41 = vld [vmem:[#allocation2 + $0x188] ss:$12 sps:$4 sm:$0xff]  }
 0x31b   :  { %2691 = vmatprep.subr.bf16.mxu0 %v17134_v38  ;;  %17489 = vst [vmem:[#allocation50_spill] sm:$0xff] %v13590_v41  ;;  %v13592_v38 = vld [vmem:[#allocation2 + $0x228] ss:$12 sps:$4 sm:$0xff]  }
 0x31c   :  { %17490 = vst [vmem:[#allocation51_spill] sm:$0xff] %v13592_v38 }
 0x31d   :  { %10302 = vmatmul.mubr.bf16.vlgmr.msra.gmra.mrb[16].mxu0 %v13503_v10 }
 0x31e   :  { %10305 = vmatprep.mubr.bf16.mxu0 %v13505_v25 }
 0x31f   :  { %2378 = vmatmul.mubr.bf16.gmra.mrb[96].mxu1 %v13507_v40 }
 0x320   :  { %2385 = vmatprep.mubr.bf16.mxu1 %v13510_v50 }
 0x325   :  { %10306 = vmatmul.mubr.bf16.gmra.mrb[20].mxu0 %v13516_v18 }
 0x326   :  { %10309 = vmatprep.mubr.bf16.mxu0 %v13518_v24 }
 0x327   :  { %2386 = vmatmul.mubr.bf16.gmra.mrb[100].mxu1 %v13520_v34 }
 0x328   :  { %2393 = vmatprep.mubr.bf16.mxu1 %v13522_v60 }
 0x32d   :  { %10310 = vmatmul.mubr.bf16.gmra.mrb[24].mxu0 %v13528_v11 }
 0x32e   :  { %10313 = vmatprep.mubr.bf16.mxu0 %v13530_v19 }
 0x32f   :  { %2394 = vmatmul.mubr.bf16.gmra.mrb[104].mxu1 %v13532_v1  ;;  %v13623_v1 = vld [vmem:[#allocation2 + $0x4] ss:$12 sps:$4 sm:$0xff]  }
 0x330   :  { %2401 = vmatprep.mubr.bf16.mxu1 %v13534_v17  ;;  %17498 = vst [vmem:[#allocation59_spill] sm:$0xff] %v13623_v1 }
 0x335   :  { %10314 = vmatmul.mubr.bf16.gmra.mrb[28].mxu0 %v13540_v7 }
 0x336   :  { %10317 = vmatprep.mubr.bf16.mxu0 %v13542_v28 }
 0x337   :  { %2402 = vmatmul.mubr.bf16.gmra.mrb[108].mxu1 %v13544_v8 }
 0x338   :  { %2409 = vmatprep.mubr.bf16.mxu1 %v13546_v6 }
 0x33d   :  { %10318 = vmatmul.mubr.bf16.gmra.mrb[32].mxu0 %v13552_v53 }
 0x33e   :  { %10321 = vmatprep.mubr.bf16.mxu0 %v13554_v30 }
 0x33f   :  { %2410 = vmatmul.mubr.bf16.gmra.mrb[112].mxu1 %v13556_v4 }
 0x340   :  { %2417 = vmatprep.mubr.bf16.mxu1 %v13558_v54  ;;  %v13610_v54 = vld [vmem:[#allocation2 + $0x200] ss:$12 sps:$4 sm:$0xff]  }
 0x341   :  { %17495 = vst [vmem:[#allocation56_spill] sm:$0xff] %v13610_v54 }
 0x345   :  { %10322 = vmatmul.mubr.bf16.gmra.mrb[36].mxu0 %v13564_v29 }
 0x346   :  { %10325 = vmatprep.mubr.bf16.mxu0 %v13566_v62 }
 0x347   :  { %2418 = vmatmul.mubr.bf16.gmra.mrb[116].mxu1 %v13568_v39  ;;  %v13600_v39 = vld [vmem:[#allocation2 + $0x1b8] ss:$12 sps:$4 sm:$0xff]  }
 0x348   :  { %2425 = vmatprep.mubr.bf16.mxu1 %v13570_v23  ;;  %v13598_v23 = vld [vmem:[#allocation2 + $0x1a0] ss:$12 sps:$4 sm:$0xff]   ;;  %17492 = vst [vmem:[#allocation53_spill] sm:$0xff] %v13600_v39 }
 0x349   :  { %17491 = vst [vmem:[#allocation52_spill] sm:$0xff] %v13598_v23 }
 0x34d   :  { %10326 = vmatmul.mubr.bf16.gmra.mrb[40].mxu0 %v13576_v57 }
 0x34e   :  { %10329 = vmatprep.mubr.bf16.mxu0 %v13578_v12 }
 0x34f   :  { %2426 = vmatmul.mubr.bf16.gmra.mrb[120].mxu1 %v13580_v27  ;;  %v13606_v27 = vld [vmem:[#allocation2 + $0x1e8] ss:$12 sps:$4 sm:$0xff]  }
 0x350   :  { %2433 = vmatprep.mubr.bf16.mxu1 %v13582_v9  ;;  %v13604_v9 = vld [vmem:[#allocation2 + $0x1d0] ss:$12 sps:$4 sm:$0xff]   ;;  %17494 = vst [vmem:[#allocation55_spill] sm:$0xff] %v13606_v27 }
 0x351   :  { %17493 = vst [vmem:[#allocation54_spill] sm:$0xff] %v13604_v9 }
 0x355   :  { %10330 = vmatmul.mubr.bf16.gmra.mrb[44].mxu0 %v13588_v48 }
 0x356   :  { %10333 = vmatprep.mubr.bf16.mxu0 %v13590_v41 }
 0x357   :  { %2434 = vmatmul.mubr.bf16.gmra.mrb[124].mxu1 %v13592_v38  ;;  %v13612_v38 = vld [vmem:[#allocation2 + $0x218] ss:$12 sps:$4 sm:$0xff]  }
 0x358   :  { %10365 = vmatprep.mubr.bf16.mxu1 %v13362_v36  ;;  %17496 = vst [vmem:[#allocation57_spill] sm:$0xff] %v13612_v38  ;;  %v13616_v36 = vld [vmem:[#allocation2 + $0x230] ss:$12 sps:$4 sm:$0xff]  }
 0x359   :  { %17497 = vst [vmem:[#allocation58_spill] sm:$0xff] %v13616_v36 }
 0x35d   :  { %10334 = vmatmul.mubr.bf16.gmra.mrb[48].mxu0 %v13598_v23 }
 0x35e   :  { %10337 = vmatprep.mubr.bf16.mxu0 %v13600_v39 }
 0x365   :  { %10338 = vmatmul.mubr.bf16.gmra.mrb[52].mxu0 %v13604_v9 }
 0x366   :  { %10341 = vmatprep.mubr.bf16.mxu0 %v13606_v27 }
 0x36d   :  { %10342 = vmatmul.mubr.bf16.gmra.mrb[56].mxu0 %v13610_v54 }
 0x36e   :  { %10345 = vmatprep.mubr.bf16.mxu0 %v13612_v38 }
 0x372   :  { %v13618_v4 = vpop.f32.mrb[32].mxu1 }
 0x373   :  { %v2253_v6 = vpop.f32.mrb[33].mxu1 }
 0x374   :  { %v13620_v8 = vpop.f32.mrb[34].mxu1 }
 0x375   :  { %10346 = vmatmul.mubr.bf16.gmra.mrb[60].mxu0 %v13616_v36  ;;  %v2256_v17 = vpop.f32.mrb[35].mxu1 }
 0x376   :  { %2723 = vmatprep.mubr.bf16.mxu0 %v13623_v1 }
 0x37a   :  { %v2259_v60 = vpop.f32.mrb[36].mxu1 }
 0x37b   :  { %v2261_v34 = vpop.f32.mrb[37].mxu1 }
 0x37c   :  { %v13626_v50 = vpop.f32.mrb[38].mxu1 }
 0x37d   :  { %v2264_v40 = vpop.f32.mrb[39].mxu1 }
 0x382   :  { %v13628_v26 = vpop.f32.mrb[40].mxu1 }
 0x383   :  { %v2269_v22 = vpop.f32.mrb[41].mxu1 }
 0x384   :  { %v13630_v38 = vpop.f32.mrb[42].mxu1 }
 0x385   :  { %v2272_v6 = vpop.f32.mrb[43].mxu1 }
 0x38a   :  { %v13632_v54 = vpop.f32.mrb[44].mxu1 }
 0x38b   :  { %v2277_v55 = vpop.f32.mrb[45].mxu1 }
 0x38c   :  { %v13634_v36 = vpop.f32.mrb[46].mxu1 }
 0x38d   :  { %v2280_v17 = vpop.f32.mrb[47].mxu1 }
 0x392   :  { %v13636_v42 = vpop.f32.mrb[48].mxu1 }
 0x393   :  { %v2285_v1 = vpop.f32.mrb[49].mxu1 }
 0x394   :  { %v13638_v27 = vpop.f32.mrb[50].mxu1 }
 0x395   :  { %v2288_v34 = vpop.f32.mrb[51].mxu1 }
 0x39a   :  { %v13640_v9 = vpop.f32.mrb[52].mxu1 }
 0x39b   :  { %v2293_v40 = vpop.f32.mrb[53].mxu1 }
 0x39c   :  { %v13642_v35 = vpop.f32.mrb[54].mxu1 }
 0x39d   :  { %v2296_v22 = vpop.f32.mrb[55].mxu1 }
 0x3a2   :  { %v13644_v14 = vpop.f32.mrb[56].mxu1 }
 0x3a3   :  { %v2301_v6 = vpop.f32.mrb[57].mxu1 }
 0x3a4   :  { %v13646_v39 = vpop.f32.mrb[58].mxu1 }
 0x3a5   :  { %v2304_v55 = vpop.f32.mrb[59].mxu1 }
 0x3aa   :  { %v13648_v23 = vpop.f32.mrb[60].mxu1 }
 0x3ab   :  { %v2309_v17 = vpop.f32.mrb[61].mxu1 }
 0x3ac   :  { %v13650_v21 = vpop.f32.mrb[62].mxu1 }
 0x3ad   :  { %v2312_v1 = vpop.f32.mrb[63].mxu1 }
 0x3b2   :  { %v13652_v32 = vpop.f32.mrb[64].mxu1 }
 0x3b3   :  { %v2317_v34 = vpop.f32.mrb[65].mxu1 }
 0x3b4   :  { %v13654_v41 = vpop.f32.mrb[66].mxu1 }
 0x3b5   :  { %v2320_v40 = vpop.f32.mrb[67].mxu1 }
 0x3ba   :  { %v13656_v48 = vpop.f32.mrb[68].mxu1 }
 0x3bb   :  { %v2325_v22 = vpop.f32.mrb[69].mxu1 }
 0x3bc   :  { %v13658_v58 = vpop.f32.mrb[70].mxu1 }
 0x3bd   :  { %v2328_v6 = vpop.f32.mrb[71].mxu1 }
 0x3c2   :  { %v13660_v37 = vpop.f32.mrb[72].mxu1 }
 0x3c3   :  { %v2333_v55 = vpop.f32.mrb[73].mxu1 }
 0x3c4   :  { %v13662_v12 = vpop.f32.mrb[74].mxu1 }
 0x3c5   :  { %v2336_v17 = vpop.f32.mrb[75].mxu1 }
 0x3ca   :  { %v13664_v57 = vpop.f32.mrb[76].mxu1 }
 0x3cb   :  { %v2341_v1 = vpop.f32.mrb[77].mxu1 }
 0x3cc   :  { %v13666_v44 = vpop.f32.mrb[78].mxu1 }
 0x3cd   :  { %v2344_v34 = vpop.f32.mrb[79].mxu1 }
 0x3d2   :  { %v13668_v5 = vpop.f32.mrb[80].mxu1 }
 0x3d3   :  { %v2349_v40 = vpop.f32.mrb[81].mxu1 }
 0x3d4   :  { %v13670_v62 = vpop.f32.mrb[82].mxu1 }
 0x3d5   :  { %v2352_v22 = vpop.f32.mrb[83].mxu1 }
 0x3da   :  { %v13672_v29 = vpop.f32.mrb[84].mxu1 }
 0x3db   :  { %v2357_v6 = vpop.f32.mrb[85].mxu1 }
 0x3dc   :  { %v13674_v31 = vpop.f32.mrb[86].mxu1 }
 0x3dd   :  { %v2360_v55 = vpop.f32.mrb[87].mxu1 }
 0x3e2   :  { %v13676_v52 = vpop.f32.mrb[88].mxu1 }
 0x3e3   :  { %v2365_v17 = vpop.f32.mrb[89].mxu1 }
 0x3e4   :  { %v13678_v30 = vpop.f32.mrb[90].mxu1 }
 0x3e5   :  { %v2368_v1 = vpop.f32.mrb[91].mxu1 }
 0x3ea   :  { %v13680_v2 = vpop.f32.mrb[92].mxu1 }
 0x3eb   :  { %v2373_v34 = vpop.f32.mrb[93].mxu1 }
 0x3ec   :  { %v13682_v53 = vpop.f32.mrb[94].mxu1 }
 0x3ed   :  { %v2376_v40 = vpop.f32.mrb[95].mxu1 }
 0x3f0   :  { %v10303_v15 = vpop.f32.mrb[16].mxu0 }
 0x3f1   :  { %v2485_v22 = vadd.f32 %v10303_v15, %v2259_v60  ;;  %v2476_v28 = vpop.f32.mrb[17].mxu0 }
 0x3f2   :  { %v2477_v6 = vadd.f32 %v2476_v28, %v13618_v4  ;;  %v10304_v61 = vpop.f32.mrb[18].mxu0  ;;  %v13685_v7 = vpop.f32.mrb[96].mxu1  ;;  %v17499_v28 = vmov 0  }
 0x3f3   :  { %v2488_v55 = vadd.f32 %v10304_v61, %v13626_v50  ;;  %v2479_v17 = vpop.f32.mrb[19].mxu0  ;;  %v2381_v59 = vpop.f32.mrb[97].mxu1 }
 0x3f4   :  { %v2480_v1 = vadd.f32 %v2479_v17, %v13620_v8  ;;  %v13689_v19 = vpop.f32.mrb[98].mxu1 }
 0x3f5   :  { %v2668_v34 = vpack.c.bf16 %v2488_v55, %v2485_v22  ;;  %v2384_v51 = vpop.f32.mrb[99].mxu1 }
 0x3f6   :  { %v2667_v11 = vpack.c.bf16 %v2480_v1, %v2477_v6 }
 0x3f8   :  { %v10307_v40 = vpop.f32.mrb[20].mxu0  ;;  %2692 = vmatpush1.bf16.msra.mxu0 %v2667_v11 }
 0x3f9   :  { %v2501_v15 = vadd.f32 %v10307_v40, %v13632_v54  ;;  %v2492_v60 = vpop.f32.mrb[21].mxu0  ;;  %2693 = vmatprep.subr.bf16.mxu0 %v17499_v28 }
 0x3fa   :  { %v2493_v4 = vadd.f32 %v2492_v60, %v13628_v26  ;;  %v10308_v47 = vpop.f32.mrb[22].mxu0  ;;  %v13694_v61 = vpop.f32.mrb[100].mxu1 }
 0x3fb   :  { %v2504_v59 = vadd.f32 %v10308_v47, %v13634_v36  ;;  %v2495_v50 = vpop.f32.mrb[23].mxu0  ;;  %v2389_v8 = vpop.f32.mrb[101].mxu1 }
 0x3fc   :  { %v2496_v22 = vadd.f32 %v2495_v50, %v13630_v38  ;;  %2694 = vmatpush1.bf16.msra.mxu0 %v2668_v34  ;;  %v13698_v51 = vpop.f32.mrb[102].mxu1 }
 0x3fd   :  { %v2670_v11 = vpack.c.bf16 %v2504_v59, %v2501_v15  ;;  %2695 = vmatprep.subr.bf16.mxu0 %v17499_v28  ;;  %v2392_v54 = vpop.f32.mrb[103].mxu1 }
 0x3fe   :  { %v2669_v6 = vpack.c.bf16 %v2496_v22, %v2493_v4 }
 0x400   :  { %v10311_v55 = vpop.f32.mrb[24].mxu0  ;;  %2696 = vmatpush1.bf16.msra.mxu0 %v2669_v6 }
 0x401   :  { %v2517_v26 = vadd.f32 %v10311_v55, %v13640_v9  ;;  %v2508_v17 = vpop.f32.mrb[25].mxu0  ;;  %2697 = vmatprep.subr.bf16.mxu0 %v17499_v28 }
 0x402   :  { %v2509_v47 = vadd.f32 %v2508_v17, %v13636_v42  ;;  %v10312_v36 = vpop.f32.mrb[26].mxu0  ;;  %v13704_v1 = vpop.f32.mrb[104].mxu1 }
 0x403   :  { %v2520_v38 = vadd.f32 %v10312_v36, %v13642_v35  ;;  %v2511_v34 = vpop.f32.mrb[27].mxu0  ;;  %v2397_v40 = vpop.f32.mrb[105].mxu1 }
 0x404   :  { %v2512_v15 = vadd.f32 %v2511_v34, %v13638_v27  ;;  %2698 = vmatpush1.bf16.msra.mxu0 %v2670_v11  ;;  %v13708_v60 = vpop.f32.mrb[106].mxu1 }
 0x405   :  { %v2672_v4 = vpack.c.bf16 %v2520_v38, %v2517_v26  ;;  %2699 = vmatprep.subr.bf16.mxu0 %v17499_v28  ;;  %v2400_v9 = vpop.f32.mrb[107].mxu1 }
 0x406   :  { %v2671_v59 = vpack.c.bf16 %v2512_v15, %v2509_v47 }
 0x408   :  { %v10315_v50 = vpop.f32.mrb[28].mxu0  ;;  %2700 = vmatpush1.bf16.msra.mxu0 %v2671_v59 }
 0x409   :  { %v2533_v42 = vadd.f32 %v10315_v50, %v13648_v23  ;;  %v2524_v8 = vpop.f32.mrb[29].mxu0  ;;  %2701 = vmatprep.subr.bf16.mxu0 %v17499_v28 }
 0x40a   :  { %v2525_v35 = vadd.f32 %v2524_v8, %v13644_v14  ;;  %v10316_v22 = vpop.f32.mrb[30].mxu0  ;;  %v13714_v54 = vpop.f32.mrb[108].mxu1 }
 0x40b   :  { %v2536_v27 = vadd.f32 %v10316_v22, %v13650_v21  ;;  %v2527_v11 = vpop.f32.mrb[31].mxu0  ;;  %v2405_v6 = vpop.f32.mrb[109].mxu1 }
 0x40c   :  { %v2528_v55 = vadd.f32 %v2527_v11, %v13646_v39  ;;  %2702 = vmatpush1.bf16.msra.mxu0 %v2672_v4  ;;  %v13718_v26 = vpop.f32.mrb[110].mxu1 }
 0x40d   :  { %v2674_v17 = vpack.c.bf16 %v2536_v27, %v2533_v42  ;;  %2703 = vmatprep.subr.bf16.mxu0 %v17499_v28  ;;  %v2408_v23 = vpop.f32.mrb[111].mxu1 }
 0x40e   :  { %v2673_v47 = vpack.c.bf16 %v2528_v55, %v2525_v35 }
 0x410   :  { %v10319_v36 = vpop.f32.mrb[32].mxu0  ;;  %2704 = vmatpush1.bf16.msra.mxu0 %v2673_v47 }
 0x411   :  { %v2549_v14 = vadd.f32 %v10319_v36, %v13656_v48  ;;  %v2540_v38 = vpop.f32.mrb[33].mxu0  ;;  %2705 = vmatprep.subr.bf16.mxu0 %v17499_v28 }
 0x412   :  { %v2541_v21 = vadd.f32 %v2540_v38, %v13652_v32  ;;  %v10320_v34 = vpop.f32.mrb[34].mxu0  ;;  %v13724_v40 = vpop.f32.mrb[112].mxu1 }
 0x413   :  { %v2552_v39 = vadd.f32 %v10320_v34, %v13658_v58  ;;  %v2543_v15 = vpop.f32.mrb[35].mxu0  ;;  %v2413_v4 = vpop.f32.mrb[113].mxu1 }
 0x414   :  { %v2544_v9 = vadd.f32 %v2543_v15, %v13654_v41  ;;  %2706 = vmatpush1.bf16.msra.mxu0 %v2674_v17  ;;  %v13728_v59 = vpop.f32.mrb[114].mxu1 }
 0x415   :  { %v2676_v50 = vpack.c.bf16 %v2552_v39, %v2549_v14  ;;  %2707 = vmatprep.subr.bf16.mxu0 %v17499_v28  ;;  %v2416_v48 = vpop.f32.mrb[115].mxu1 }
 0x416   :  { %v2675_v42 = vpack.c.bf16 %v2544_v9, %v2541_v21 }
 0x418   :  { %v10323_v8 = vpop.f32.mrb[36].mxu0  ;;  %2708 = vmatpush1.bf16.msra.mxu0 %v2675_v42 }
 0x419   :  { %v2565_v32 = vadd.f32 %v10323_v8, %v13664_v57  ;;  %v2556_v35 = vpop.f32.mrb[37].mxu0  ;;  %2709 = vmatprep.subr.bf16.mxu0 %v17499_v28 }
 0x41a   :  { %v2557_v58 = vadd.f32 %v2556_v35, %v13660_v37  ;;  %v10324_v22 = vpop.f32.mrb[38].mxu0  ;;  %v13734_v27 = vpop.f32.mrb[116].mxu1 }
 0x41b   :  { %v2568_v41 = vadd.f32 %v10324_v22, %v13666_v44  ;;  %v2559_v11 = vpop.f32.mrb[39].mxu0  ;;  %v2421_v6 = vpop.f32.mrb[117].mxu1 }
 0x41c   :  { %v2560_v55 = vadd.f32 %v2559_v11, %v13662_v12  ;;  %2710 = vmatpush1.bf16.msra.mxu0 %v2676_v50  ;;  %v13738_v17 = vpop.f32.mrb[118].mxu1 }
 0x41d   :  { %v2678_v23 = vpack.c.bf16 %v2568_v41, %v2565_v32  ;;  %2711 = vmatprep.subr.bf16.mxu0 %v17499_v28  ;;  %v2424_v57 = vpop.f32.mrb[119].mxu1 }
 0x41e   :  { %v2677_v47 = vpack.c.bf16 %v2560_v55, %v2557_v58 }
 0x420   :  { %v10327_v36 = vpop.f32.mrb[40].mxu0  ;;  %2712 = vmatpush1.bf16.msra.mxu0 %v2677_v47 }
 0x421   :  { %v2581_v37 = vadd.f32 %v10327_v36, %v13672_v29  ;;  %v2572_v14 = vpop.f32.mrb[41].mxu0  ;;  %2713 = vmatprep.subr.bf16.mxu0 %v17499_v28 }
 0x422   :  { %v2573_v44 = vadd.f32 %v2572_v14, %v13668_v5  ;;  %v10328_v38 = vpop.f32.mrb[42].mxu0  ;;  %v13744_v21 = vpop.f32.mrb[120].mxu1 }
 0x423   :  { %v2584_v12 = vadd.f32 %v10328_v38, %v13674_v31  ;;  %v2575_v34 = vpop.f32.mrb[43].mxu0  ;;  %v2429_v39 = vpop.f32.mrb[121].mxu1 }
 0x424   :  { %v2576_v15 = vadd.f32 %v2575_v34, %v13670_v62  ;;  %2714 = vmatpush1.bf16.msra.mxu0 %v2678_v23  ;;  %v13748_v4 = vpop.f32.mrb[122].mxu1 }
 0x425   :  { %v2680_v9 = vpack.c.bf16 %v2584_v12, %v2581_v37  ;;  %2715 = vmatprep.subr.bf16.mxu0 %v17499_v28  ;;  %v2432_v29 = vpop.f32.mrb[123].mxu1 }
 0x426   :  { %v2679_v50 = vpack.c.bf16 %v2576_v15, %v2573_v44 }
 0x428   :  { %v10331_v48 = vpop.f32.mrb[44].mxu0  ;;  %2716 = vmatpush1.bf16.msra.mxu0 %v2679_v50 }
 0x429   :  { %v2597_v5 = vadd.f32 %v10331_v48, %v13680_v2  ;;  %v2588_v42 = vpop.f32.mrb[45].mxu0  ;;  %2717 = vmatprep.subr.bf16.mxu0 %v17499_v28 }
 0x42a   :  { %v2589_v31 = vadd.f32 %v2588_v42, %v13676_v52  ;;  %v10332_v8 = vpop.f32.mrb[46].mxu0  ;;  %v2435_v32 = vpop.f32.mrb[124].mxu1 }
 0x42b   :  { %v2600_v62 = vadd.f32 %v10332_v8, %v13682_v53  ;;  %v2591_v35 = vpop.f32.mrb[47].mxu0  ;;  %v2437_v58 = vpop.f32.mrb[125].mxu1 }
 0x42c   :  { %v2592_v22 = vadd.f32 %v2591_v35, %v13678_v30  ;;  %2718 = vmatpush1.bf16.msra.mxu0 %v2680_v9  ;;  %v2438_v41 = vpop.f32.mrb[126].mxu1  ;;  %v17516_v35 = vld [vmem:[#allocation13_spill] sm:$0xff]  ;;  %v17517_v58 = vld [vmem:[#allocation14_spill] sm:$0xff] }
 0x42d   :  { %v2682_v11 = vpack.c.bf16 %v2600_v62, %v2597_v5  ;;  %2719 = vmatprep.subr.bf16.mxu0 %v17499_v28  ;;  %v2440_v6 = vpop.f32.mrb[127].mxu1  ;;  %v17515_v62 = vld [vmem:[#allocation42_spill] sm:$0xff] }
 0x42e   :  { %v2681_v2 = vpack.c.bf16 %v2592_v22, %v2589_v31  ;;  %v17518_v22 = vld [vmem:[#allocation45_spill] sm:$0xff]  ;;  %v17521_v6 = vld [vmem:[#allocation16_spill] sm:$0xff] }
 0x430   :  { %v10335_v55 = vpop.f32.mrb[48].mxu0  ;;  %2720 = vmatpush1.bf16.msra.mxu0 %v2681_v2  ;;  %v17522_v2 = vld [vmem:[#allocation49_spill] sm:$0xff] }
 0x431   :  { %v2604_v23 = vpop.f32.mrb[49].mxu0  ;;  %v2613_v52 = vadd.f32 %v10335_v55, %v13694_v61  ;;  %2721 = vmatprep.subr.bf16.mxu0 %v17499_v28  ;;  %v17523_v55 = vld [vmem:[#allocation50_spill] sm:$0xff] }
 0x432   :  { %v2605_v53 = vadd.f32 %v2604_v23, %v13685_v7  ;;  %v10336_v57 = vpop.f32.mrb[50].mxu0  ;;  %v17524_v23 = vld [vmem:[#allocation17_spill] sm:$0xff] }
 0x433   :  { %v2607_v47 = vpop.f32.mrb[51].mxu0  ;;  %v2616_v30 = vadd.f32 %v10336_v57, %v13698_v51  ;;  %v17527_v57 = vld [vmem:[#allocation53_spill] sm:$0xff] }
 0x434   :  { %v2608_v36 = vadd.f32 %v2607_v47, %v13689_v19  ;;  %2722 = vmatpush1.bf16.msra.mxu0 %v2682_v11  ;;  %v17520_v11 = vld [vmem:[#allocation15_spill] sm:$0xff] }
 0x435   :  { %v2684_v37 = vpack.c.bf16 %v2616_v30, %v2613_v52  ;;  %v17525_v52 = vld [vmem:[#allocation18_spill] sm:$0xff]  ;;  %v17528_v47 = vld [vmem:[#allocation19_spill] sm:$0xff]  ;;  %v17529_v30 = vld [vmem:[#allocation20_spill] sm:$0xff] }
 0x436   :  { %v2683_v14 = vpack.c.bf16 %v2608_v36, %v2605_v53  ;;  %v17526_v53 = vld [vmem:[#allocation52_spill] sm:$0xff]  ;;  %v17530_v36 = vld [vmem:[#allocation54_spill] sm:$0xff] }
 0x437   :  { %2724 = vmatmul.mubr.bf16.vlgmr.msra.gmra.mrb[64].mxu0 %v13365_v20 }
 0x438   :  { %v10339_v44 = vpop.f32.mrb[52].mxu0  ;;  %10349 = vmatprep.subr.bf16.mxu1 %v2683_v14  ;;  %2731 = vmatprep.mubr.bf16.mxu0 %v13369_v43 }
 0x439   :  { %v2620_v61 = vpop.f32.mrb[53].mxu0  ;;  %10350 = vmatpush3.bf16.msra.mxu1 %v2683_v14  ;;  %v2629_v38 = vadd.f32 %v10339_v44, %v13714_v54  ;;  %v17532_v14 = vld [vmem:[#allocation21_spill] sm:$0xff]  ;;  %v17533_v44 = vld [vmem:[#allocation22_spill] sm:$0xff] }
 0x43a   :  { %v2621_v7 = vadd.f32 %v2620_v61, %v13704_v1  ;;  %v10340_v12 = vpop.f32.mrb[54].mxu0  ;;  %10351 = vmatprep.subr.bf16.mxu1 %v2684_v37  ;;  %v17534_v61 = vld [vmem:[#allocation56_spill] sm:$0xff] }
 0x43b   :  { %v2623_v51 = vpop.f32.mrb[55].mxu0  ;;  %v2632_v19 = vadd.f32 %v10340_v12, %v13718_v26  ;;  %v17537_v12 = vld [vmem:[#allocation24_spill] sm:$0xff] }
 0x43c   :  { %v2624_v34 = vadd.f32 %v2623_v51, %v13708_v60  ;;  %v17538_v51 = vld [vmem:[#allocation58_spill] sm:$0xff] }
 0x43d   :  { %10352 = vmatpush3.bf16.msra.mxu1 %v2684_v37  ;;  %v2686_v39 = vpack.c.bf16 %v2632_v19, %v2629_v38  ;;  %v17531_v37 = vld [vmem:[#allocation55_spill] sm:$0xff]  ;;  %v17535_v38 = vld [vmem:[#allocation57_spill] sm:$0xff] }
 0x43e   :  { %v2685_v20 = vpack.c.bf16 %v2624_v34, %v2621_v7  ;;  %v17536_v7 = vld [vmem:[#allocation23_spill] sm:$0xff]  ;;  %v17540_v34 = vld [vmem:[#allocation25_spill] sm:$0xff] }
 0x43f   :  { %2732 = vmatmul.mubr.bf16.gmra.mrb[68].mxu0 %v13384_v63  ;;  %v17539_v19 = vld [vmem:[#allocation59_spill] sm:$0xff] }
 0x440   :  { %v10343_v15 = vpop.f32.mrb[56].mxu0  ;;  %10353 = vmatprep.subr.bf16.mxu1 %v2685_v20  ;;  %2739 = vmatprep.mubr.bf16.mxu0 %v13388_v46 }
 0x441   :  { %v2636_v43 = vpop.f32.mrb[57].mxu0  ;;  %10354 = vmatpush3.bf16.msra.mxu1 %v2685_v20  ;;  %v2645_v1 = vadd.f32 %v10343_v15, %v13734_v27  ;;  %v17542_v20 = vld [vmem:[#allocation27_spill] sm:$0xff]  ;;  %v17543_v15 = vld [vmem:[#allocation28_spill] sm:$0xff] }
 0x442   :  { %v2637_v54 = vadd.f32 %v2636_v43, %v13724_v40  ;;  %v10344_v9 = vpop.f32.mrb[58].mxu0  ;;  %10355 = vmatprep.subr.bf16.mxu1 %v2686_v39  ;;  %v17544_v43 = vld [vmem:[#allocation31_spill] sm:$0xff] }
 0x443   :  { %v2639_v26 = vpop.f32.mrb[59].mxu0  ;;  %v2648_v60 = vadd.f32 %v10344_v9, %v13738_v17  ;;  %v17547_v9 = vld [vmem:[#allocation36_spill] sm:$0xff] }
 0x444   :  { %v2640_v29 = vadd.f32 %v2639_v26, %v13728_v59  ;;  %v17548_v26 = vld [vmem:[#allocation39_spill] sm:$0xff] }
 0x445   :  { %10356 = vmatpush3.bf16.msra.mxu1 %v2686_v39  ;;  %v2688_v50 = vpack.c.bf16 %v2648_v60, %v2645_v1  ;;  %v17541_v39 = vld [vmem:[#allocation26_spill] sm:$0xff]  ;;  %v17545_v1 = vld [vmem:[#allocation32_spill] sm:$0xff] }
 0x446   :  { %v2687_v63 = vpack.c.bf16 %v2640_v29, %v2637_v54  ;;  %v17546_v54 = vld [vmem:[#allocation35_spill] sm:$0xff]  ;;  %v17549_v60 = vld [vmem:[#allocation40_spill] sm:$0xff] }
 0x447   :  { %2740 = vmatmul.mubr.bf16.gmra.mrb[72].mxu0 %v13399_v45  ;;  %v17500_v45 = vld [vmem:[#allocation6_spill] sm:$0xff]  ;;  %v17550_v29 = vld [vmem:[#allocation43_spill] sm:$0xff] }
 0x448   :  { %v10347_v48 = vpop.f32.mrb[60].mxu0  ;;  %10357 = vmatprep.subr.bf16.mxu1 %v2687_v63  ;;  %2747 = vmatprep.mubr.bf16.mxu0 %v13401_v3  ;;  %v17501_v3 = vld [vmem:[#allocation29_spill] sm:$0xff] }
 0x449   :  { %v2652_v46 = vpop.f32.mrb[61].mxu0  ;;  %10358 = vmatpush3.bf16.msra.mxu1 %v2687_v63  ;;  %v2661_v27 = vadd.f32 %v10347_v48, %v2435_v32  ;;  %v17514_v32 = vld [vmem:[#allocation41_spill] sm:$0xff]  ;;  %v17552_v63 = vld [vmem:[#allocation47_spill] sm:$0xff]  ;;  %v17553_v48 = vld [vmem:[#allocation48_spill] sm:$0xff] }
 0x44a   :  { %v2653_v40 = vadd.f32 %v2652_v46, %v13744_v21  ;;  %v10348_v5 = vpop.f32.mrb[62].mxu0  ;;  %10359 = vmatprep.subr.bf16.mxu1 %v2688_v50  ;;  %v17512_v21 = vld [vmem:[#allocation5_spill] sm:$0xff]  ;;  %v17554_v46 = vld [vmem:[#allocation51_spill] sm:$0xff] }
 0x44b   :  { %v2655_v42 = vpop.f32.mrb[63].mxu0  ;;  %v2664_v17 = vadd.f32 %v10348_v5, %v2438_v41  ;;  %v17519_v41 = vld [vmem:[#allocation46_spill] sm:$0xff] }
 0x44c   :  { %v2656_v59 = vadd.f32 %v2655_v42, %v13748_v4  ;;  %v17513_v4 = vld [vmem:[#allocation12_spill] sm:$0xff] }
 0x44d   :  { %10360 = vmatpush3.bf16.msra.mxu1 %v2688_v50  ;;  %v2690_v31 = vpack.c.bf16 %v2664_v17, %v2661_v27  ;;  %v17551_v50 = vld [vmem:[#allocation44_spill] sm:$0xff]  ;;  %v13844_v27 = vld [vmem:[#allocation2 + $0x8] ss:$12 sps:$4 sm:$0xff]  }
 0x44e   :  { %v2689_v8 = vpack.c.bf16 %v2656_v59, %v2653_v40 }
 0x44f   :  { %2748 = vmatmul.mubr.bf16.gmra.mrb[76].mxu0 %v13413_v56  ;;  %v17502_v56 = vld [vmem:[#allocation7_spill] sm:$0xff] }
 0x450   :  { %10361 = vmatprep.subr.bf16.mxu1 %v2689_v8  ;;  %2755 = vmatprep.mubr.bf16.mxu0 %v13415_v0  ;;  %v17503_v0 = vld [vmem:[#allocation30_spill] sm:$0xff] }
 0x451   :  { %10362 = vmatpush3.bf16.msra.mxu1 %v2689_v8 }
 0x452   :  { %10363 = vmatprep.subr.bf16.mxu1 %v2690_v31 }
 0x455   :  { %10364 = vmatpush3.bf16.msra.mxu1 %v2690_v31 }
 0x456   :  { %3165 = vmatprep.subr.bf16.mxu1 %v17499_v28 }
 0x457   :  { %2756 = vmatmul.mubr.bf16.gmra.mrb[80].mxu0 %v13419_v16  ;;  %v17504_v16 = vld [vmem:[#allocation8_spill] sm:$0xff] }
 0x458   :  { %10366 = vmatmul.mubr.bf16.vlgmr.msra.gmra.mrb[128].mxu1 %v13503_v10  ;;  %2763 = vmatprep.mubr.bf16.mxu0 %v13421_v33  ;;  %v17505_v33 = vld [vmem:[#allocation33_spill] sm:$0xff]  ;;  %v17506_v10 = vld [vmem:[#allocation10_spill] sm:$0xff] }
 0x459   :  { %10369 = vmatprep.mubr.bf16.mxu1 %v13505_v25  ;;  %v17508_v25 = vld [vmem:[#allocation9_spill] sm:$0xff] }
 0x45f   :  { %2764 = vmatmul.mubr.bf16.gmra.mrb[84].mxu0 %v13425_v13  ;;  %v17507_v13 = vld [vmem:[#allocation34_spill] sm:$0xff] }
 0x460   :  { %10370 = vmatmul.mubr.bf16.gmra.mrb[132].mxu1 %v13516_v18  ;;  %2771 = vmatprep.mubr.bf16.mxu0 %v13427_v49  ;;  %v17509_v49 = vld [vmem:[#allocation37_spill] sm:$0xff]  ;;  %v17510_v18 = vld [vmem:[#allocation11_spill] sm:$0xff] }
 0x461   :  { %10373 = vmatprep.mubr.bf16.mxu1 %v13518_v24  ;;  %v17511_v24 = vld [vmem:[#allocation38_spill] sm:$0xff] }
 0x467   :  { %2772 = vmatmul.mubr.bf16.gmra.mrb[88].mxu0 %v17500_v45 }
 0x468   :  { %10374 = vmatmul.mubr.bf16.gmra.mrb[136].mxu1 %v17501_v3  ;;  %2779 = vmatprep.mubr.bf16.mxu0 %v17502_v56 }
 0x469   :  { %10377 = vmatprep.mubr.bf16.mxu1 %v17503_v0 }
 0x46f   :  { %2780 = vmatmul.mubr.bf16.gmra.mrb[92].mxu0 %v17504_v16 }
 0x470   :  { %10378 = vmatmul.mubr.bf16.gmra.mrb[140].mxu1 %v17505_v33  ;;  %2787 = vmatprep.mubr.bf16.mxu0 %v17506_v10 }
 0x471   :  { %10381 = vmatprep.mubr.bf16.mxu1 %v17507_v13 }
 0x477   :  { %2788 = vmatmul.mubr.bf16.gmra.mrb[96].mxu0 %v17508_v25 }
 0x478   :  { %10382 = vmatmul.mubr.bf16.gmra.mrb[144].mxu1 %v17509_v49  ;;  %2795 = vmatprep.mubr.bf16.mxu0 %v17510_v18 }
 0x479   :  { %10385 = vmatprep.mubr.bf16.mxu1 %v17511_v24 }
 0x47f   :  { %2796 = vmatmul.mubr.bf16.gmra.mrb[100].mxu0 %v17512_v21 }
 0x480   :  { %2803 = vmatprep.mubr.bf16.mxu0 %v17513_v4  ;;  %10386 = vmatmul.mubr.bf16.gmra.mrb[148].mxu1 %v17514_v32 }
 0x481   :  { %10389 = vmatprep.mubr.bf16.mxu1 %v17515_v62 }
 0x487   :  { %2804 = vmatmul.mubr.bf16.gmra.mrb[104].mxu0 %v17516_v35 }
 0x488   :  { %2811 = vmatprep.mubr.bf16.mxu0 %v17517_v58  ;;  %10390 = vmatmul.mubr.bf16.gmra.mrb[152].mxu1 %v17518_v22 }
 0x489   :  { %10393 = vmatprep.mubr.bf16.mxu1 %v17519_v41 }
 0x48f   :  { %2812 = vmatmul.mubr.bf16.gmra.mrb[108].mxu0 %v17520_v11 }
 0x490   :  { %2819 = vmatprep.mubr.bf16.mxu0 %v17521_v6  ;;  %10394 = vmatmul.mubr.bf16.gmra.mrb[156].mxu1 %v17522_v2 }
 0x491   :  { %10397 = vmatprep.mubr.bf16.mxu1 %v17523_v55 }
 0x497   :  { %2820 = vmatmul.mubr.bf16.gmra.mrb[112].mxu0 %v17524_v23 }
 0x498   :  { %2827 = vmatprep.mubr.bf16.mxu0 %v17525_v52  ;;  %10398 = vmatmul.mubr.bf16.gmra.mrb[160].mxu1 %v17526_v53 }
 0x499   :  { %10401 = vmatprep.mubr.bf16.mxu1 %v17527_v57 }
 0x49f   :  { %2828 = vmatmul.mubr.bf16.gmra.mrb[116].mxu0 %v17528_v47 }
 0x4a0   :  { %2835 = vmatprep.mubr.bf16.mxu0 %v17529_v30  ;;  %10402 = vmatmul.mubr.bf16.gmra.mrb[164].mxu1 %v17530_v36 }
 0x4a1   :  { %10405 = vmatprep.mubr.bf16.mxu1 %v17531_v37 }
 0x4a7   :  { %2836 = vmatmul.mubr.bf16.gmra.mrb[120].mxu0 %v17532_v14 }
 0x4a8   :  { %2843 = vmatprep.mubr.bf16.mxu0 %v17533_v44  ;;  %10406 = vmatmul.mubr.bf16.gmra.mrb[168].mxu1 %v17534_v61 }
 0x4a9   :  { %10409 = vmatprep.mubr.bf16.mxu1 %v17535_v38 }
 0x4af   :  { %2844 = vmatmul.mubr.bf16.gmra.mrb[124].mxu0 %v17536_v7 }
 0x4b0   :  { %2851 = vmatprep.mubr.bf16.mxu0 %v17537_v12  ;;  %10410 = vmatmul.mubr.bf16.gmra.mrb[172].mxu1 %v17538_v51 }
 0x4b1   :  { %3197 = vmatprep.mubr.bf16.mxu1 %v17539_v19 }
 0x4b7   :  { %2852 = vmatmul.mubr.bf16.gmra.mrb[128].mxu0 %v17540_v34 }
 0x4b8   :  { %2859 = vmatprep.mubr.bf16.mxu0 %v17541_v39 }
 0x4bf   :  { %2860 = vmatmul.mubr.bf16.gmra.mrb[132].mxu0 %v17542_v20 }
 0x4c0   :  { %2867 = vmatprep.mubr.bf16.mxu0 %v17543_v15 }
 0x4c7   :  { %2868 = vmatmul.mubr.bf16.gmra.mrb[136].mxu0 %v17544_v43 }
 0x4c8   :  { %2875 = vmatprep.mubr.bf16.mxu0 %v17545_v1 }
 0x4cf   :  { %2876 = vmatmul.mubr.bf16.gmra.mrb[140].mxu0 %v17546_v54 }
 0x4d0   :  { %2883 = vmatprep.mubr.bf16.mxu0 %v17547_v9 }
 0x4d7   :  { %2884 = vmatmul.mubr.bf16.gmra.mrb[144].mxu0 %v17548_v26 }
 0x4d8   :  { %2891 = vmatprep.mubr.bf16.mxu0 %v17549_v60 }
 0x4df   :  { %2892 = vmatmul.mubr.bf16.gmra.mrb[148].mxu0 %v17550_v29 }
 0x4e0   :  { %2899 = vmatprep.mubr.bf16.mxu0 %v17551_v50 }
 0x4e7   :  { %2900 = vmatmul.mubr.bf16.gmra.mrb[152].mxu0 %v17552_v63 }
 0x4e8   :  { %2907 = vmatprep.mubr.bf16.mxu0 %v17553_v48 }
 0x4ef   :  { %2908 = vmatmul.mubr.bf16.gmra.mrb[156].mxu0 %v17554_v46 }
 0x4f0   :  { %10429 = vmatprep.mubr.bf16.mxu0 %v13844_v27 }
 0x50a   :  { %v2725_v40 = vpop.f32.mrb[64].mxu0 }
 0x50b   :  { %v2727_v5 = vpop.f32.mrb[65].mxu0 }
 0x50c   :  { %v2728_v42 = vpop.f32.mrb[66].mxu0 }
 0x50d   :  { %v2730_v17 = vpop.f32.mrb[67].mxu0 }
 0x512   :  { %v2733_v59 = vpop.f32.mrb[68].mxu0 }
 0x513   :  { %v2735_v31 = vpop.f32.mrb[69].mxu0 }
 0x514   :  { %v2736_v8 = vpop.f32.mrb[70].mxu0 }
 0x515   :  { %v2738_v45 = vpop.f32.mrb[71].mxu0 }
 0x51a   :  { %v2741_v3 = vpop.f32.mrb[72].mxu0 }
 0x51b   :  { %v2743_v56 = vpop.f32.mrb[73].mxu0 }
 0x51c   :  { %v2744_v0 = vpop.f32.mrb[74].mxu0 }
 0x51d   :  { %v2746_v16 = vpop.f32.mrb[75].mxu0 }
 0x522   :  { %v2749_v33 = vpop.f32.mrb[76].mxu0 }
 0x523   :  { %v2751_v10 = vpop.f32.mrb[77].mxu0 }
 0x524   :  { %v2752_v13 = vpop.f32.mrb[78].mxu0 }
 0x525   :  { %v2754_v25 = vpop.f32.mrb[79].mxu0 }
 0x52a   :  { %v2757_v49 = vpop.f32.mrb[80].mxu0 }
 0x52b   :  { %v2759_v18 = vpop.f32.mrb[81].mxu0  ;;  %v10367_v24 = vpop.f32.mrb[128].mxu1 }
 0x52c   :  { %v2959_v21 = vadd.f32 %v10367_v24, %v2733_v59  ;;  %v2760_v4 = vpop.f32.mrb[82].mxu0  ;;  %v2950_v32 = vpop.f32.mrb[129].mxu1 }
 0x52d   :  { %v2951_v62 = vadd.f32 %v2950_v32, %v2725_v40  ;;  %v2762_v35 = vpop.f32.mrb[83].mxu0  ;;  %v10368_v58 = vpop.f32.mrb[130].mxu1 }
 0x52e   :  { %v2962_v22 = vadd.f32 %v10368_v58, %v2736_v8  ;;  %v2953_v41 = vpop.f32.mrb[131].mxu1 }
 0x52f   :  { %v2954_v11 = vadd.f32 %v2953_v41, %v2728_v42 }
 0x530   :  { %v3142_v6 = vpack.c.bf16 %v2962_v22, %v2959_v21 }
 0x531   :  { %v3141_v2 = vpack.c.bf16 %v2954_v11, %v2951_v62 }
 0x532   :  { %v2765_v55 = vpop.f32.mrb[84].mxu0 }
 0x533   :  { %v2767_v23 = vpop.f32.mrb[85].mxu0  ;;  %v10371_v52 = vpop.f32.mrb[132].mxu1  ;;  %3166 = vmatpush1.bf16.msra.mxu1 %v3141_v2 }
 0x534   :  { %v2975_v53 = vadd.f32 %v10371_v52, %v2749_v33  ;;  %v2768_v57 = vpop.f32.mrb[86].mxu0  ;;  %v2966_v47 = vpop.f32.mrb[133].mxu1  ;;  %3167 = vmatprep.subr.bf16.mxu1 %v17499_v28 }
 0x535   :  { %v2967_v30 = vadd.f32 %v2966_v47, %v2741_v3  ;;  %v2770_v36 = vpop.f32.mrb[87].mxu0  ;;  %v10372_v37 = vpop.f32.mrb[134].mxu1 }
 0x536   :  { %v2978_v14 = vadd.f32 %v10372_v37, %v2752_v13  ;;  %v2969_v44 = vpop.f32.mrb[135].mxu1 }
 0x537   :  { %v2970_v61 = vadd.f32 %v2969_v44, %v2744_v0  ;;  %3168 = vmatpush1.bf16.msra.mxu1 %v3142_v6 }
 0x538   :  { %v3144_v38 = vpack.c.bf16 %v2978_v14, %v2975_v53  ;;  %3169 = vmatprep.subr.bf16.mxu1 %v17499_v28 }
 0x539   :  { %v3143_v7 = vpack.c.bf16 %v2970_v61, %v2967_v30 }
 0x53a   :  { %v2773_v12 = vpop.f32.mrb[88].mxu0 }
 0x53b   :  { %v2775_v51 = vpop.f32.mrb[89].mxu0  ;;  %v10375_v19 = vpop.f32.mrb[136].mxu1  ;;  %3170 = vmatpush1.bf16.msra.mxu1 %v3143_v7 }
 0x53c   :  { %v2991_v34 = vadd.f32 %v10375_v19, %v2765_v55  ;;  %v2776_v39 = vpop.f32.mrb[90].mxu0  ;;  %v2982_v20 = vpop.f32.mrb[137].mxu1  ;;  %3171 = vmatprep.subr.bf16.mxu1 %v17499_v28 }
 0x53d   :  { %v2983_v15 = vadd.f32 %v2982_v20, %v2757_v49  ;;  %v2778_v43 = vpop.f32.mrb[91].mxu0  ;;  %v10376_v1 = vpop.f32.mrb[138].mxu1 }
 0x53e   :  { %v2994_v54 = vadd.f32 %v10376_v1, %v2768_v57  ;;  %v2985_v9 = vpop.f32.mrb[139].mxu1 }
 0x53f   :  { %v2986_v26 = vadd.f32 %v2985_v9, %v2760_v4  ;;  %3172 = vmatpush1.bf16.msra.mxu1 %v3144_v38 }
 0x540   :  { %v3146_v60 = vpack.c.bf16 %v2994_v54, %v2991_v34  ;;  %3173 = vmatprep.subr.bf16.mxu1 %v17499_v28 }
 0x541   :  { %v3145_v29 = vpack.c.bf16 %v2986_v26, %v2983_v15 }
 0x542   :  { %v2781_v50 = vpop.f32.mrb[92].mxu0 }
 0x543   :  { %v2783_v63 = vpop.f32.mrb[93].mxu0  ;;  %v10379_v48 = vpop.f32.mrb[140].mxu1  ;;  %3174 = vmatpush1.bf16.msra.mxu1 %v3145_v29 }
 0x544   :  { %v3007_v46 = vadd.f32 %v10379_v48, %v2781_v50  ;;  %v2784_v40 = vpop.f32.mrb[94].mxu0  ;;  %v2998_v5 = vpop.f32.mrb[141].mxu1  ;;  %3175 = vmatprep.subr.bf16.mxu1 %v17499_v28 }
 0x545   :  { %v2999_v42 = vadd.f32 %v2998_v5, %v2773_v12  ;;  %v2786_v17 = vpop.f32.mrb[95].mxu0  ;;  %v10380_v59 = vpop.f32.mrb[142].mxu1 }
 0x546   :  { %v3010_v31 = vadd.f32 %v10380_v59, %v2784_v40  ;;  %v3001_v8 = vpop.f32.mrb[143].mxu1 }
 0x547   :  { %v3002_v45 = vadd.f32 %v3001_v8, %v2776_v39  ;;  %3176 = vmatpush1.bf16.msra.mxu1 %v3146_v60 }
 0x548   :  { %v3148_v3 = vpack.c.bf16 %v3010_v31, %v3007_v46  ;;  %3177 = vmatprep.subr.bf16.mxu1 %v17499_v28 }
 0x549   :  { %v3147_v56 = vpack.c.bf16 %v3002_v45, %v2999_v42 }
 0x54a   :  { %v2789_v0 = vpop.f32.mrb[96].mxu0 }
 0x54b   :  { %v2791_v16 = vpop.f32.mrb[97].mxu0  ;;  %v10383_v33 = vpop.f32.mrb[144].mxu1  ;;  %3178 = vmatpush1.bf16.msra.mxu1 %v3147_v56 }
 0x54c   :  { %v2792_v10 = vpop.f32.mrb[98].mxu0  ;;  %v3014_v13 = vpop.f32.mrb[145].mxu1  ;;  %3179 = vmatprep.subr.bf16.mxu1 %v17499_v28 }
 0x54d   :  { %v3015_v25 = vadd.f32 %v3014_v13, %v2789_v0  ;;  %v2794_v49 = vpop.f32.mrb[99].mxu0  ;;  %v10384_v18 = vpop.f32.mrb[146].mxu1 }
 0x54e   :  { %v3017_v24 = vpop.f32.mrb[147].mxu1 }
 0x54f   :  { %v3018_v21 = vadd.f32 %v3017_v24, %v2792_v10  ;;  %3180 = vmatpush1.bf16.msra.mxu1 %v3148_v3 }
 0x550   :  { %3181 = vmatprep.subr.bf16.mxu1 %v17499_v28 }
 0x551   :  { %v3149_v4 = vpack.c.bf16 %v3018_v21, %v3015_v25 }
 0x552   :  { %v2797_v32 = vpop.f32.mrb[100].mxu0 }
 0x553   :  { %v3023_v62 = vadd.f32 %v10383_v33, %v2797_v32  ;;  %v2799_v35 = vpop.f32.mrb[101].mxu0  ;;  %3182 = vmatpush1.bf16.msra.mxu1 %v3149_v4  ;;  %v10387_v58 = vpop.f32.mrb[148].mxu1 }
 0x554   :  { %v2800_v22 = vpop.f32.mrb[102].mxu0  ;;  %3183 = vmatprep.subr.bf16.mxu1 %v17499_v28  ;;  %v3030_v41 = vpop.f32.mrb[149].mxu1 }
 0x555   :  { %v3026_v11 = vadd.f32 %v10384_v18, %v2800_v22  ;;  %v2802_v6 = vpop.f32.mrb[103].mxu0  ;;  %v10388_v2 = vpop.f32.mrb[150].mxu1 }
 0x556   :  { %v3033_v55 = vpop.f32.mrb[151].mxu1 }
 0x557   :  { %v3150_v23 = vpack.c.bf16 %v3026_v11, %v3023_v62 }
 0x559   :  { %3184 = vmatpush1.bf16.msra.mxu1 %v3150_v23 }
 0x55a   :  { %v2805_v52 = vpop.f32.mrb[104].mxu0  ;;  %3185 = vmatprep.subr.bf16.mxu1 %v17499_v28 }
 0x55b   :  { %v3031_v53 = vadd.f32 %v3030_v41, %v2805_v52  ;;  %v2807_v57 = vpop.f32.mrb[105].mxu0  ;;  %v10391_v47 = vpop.f32.mrb[152].mxu1 }
 0x55c   :  { %v2808_v30 = vpop.f32.mrb[106].mxu0  ;;  %v3046_v36 = vpop.f32.mrb[153].mxu1 }
 0x55d   :  { %v3034_v37 = vadd.f32 %v3033_v55, %v2808_v30  ;;  %v2810_v14 = vpop.f32.mrb[107].mxu0  ;;  %v10392_v44 = vpop.f32.mrb[154].mxu1 }
 0x55e   :  { %v3049_v61 = vpop.f32.mrb[155].mxu1 }
 0x55f   :  { %v3151_v38 = vpack.c.bf16 %v3034_v37, %v3031_v53 }
 0x561   :  { %3186 = vmatpush1.bf16.msra.mxu1 %v3151_v38 }
 0x562   :  { %v2813_v7 = vpop.f32.mrb[108].mxu0  ;;  %3187 = vmatprep.subr.bf16.mxu1 %v17499_v28 }
 0x563   :  { %v3039_v12 = vadd.f32 %v10387_v58, %v2813_v7  ;;  %v2815_v51 = vpop.f32.mrb[109].mxu0  ;;  %v10395_v19 = vpop.f32.mrb[156].mxu1  ;;  %v13885_v7 = vld [vmem:[#allocation2 + $0x1c] ss:$12 sps:$4 sm:$0xff]  }
 0x564   :  { %v2816_v34 = vpop.f32.mrb[110].mxu0  ;;  %v3062_v39 = vpop.f32.mrb[157].mxu1 }
 0x565   :  { %v3042_v20 = vadd.f32 %v10388_v2, %v2816_v34  ;;  %v2818_v15 = vpop.f32.mrb[111].mxu0  ;;  %v10396_v43 = vpop.f32.mrb[158].mxu1 }
 0x566   :  { %v3065_v1 = vpop.f32.mrb[159].mxu1 }
 0x567   :  { %v3152_v54 = vpack.c.bf16 %v3042_v20, %v3039_v12  ;;  %v13888_v20 = vld [vmem:[#allocation2 + $0x18] ss:$12 sps:$4 sm:$0xff]  }
 0x569   :  { %3188 = vmatpush1.bf16.msra.mxu1 %v3152_v54 }
 0x56a   :  { %v2821_v9 = vpop.f32.mrb[112].mxu0  ;;  %3189 = vmatprep.subr.bf16.mxu1 %v17499_v28 }
 0x56b   :  { %v3047_v26 = vadd.f32 %v3046_v36, %v2821_v9  ;;  %v2823_v60 = vpop.f32.mrb[113].mxu0  ;;  %v10399_v29 = vpop.f32.mrb[160].mxu1 }
 0x56c   :  { %v2824_v50 = vpop.f32.mrb[114].mxu0  ;;  %v3078_v63 = vpop.f32.mrb[161].mxu1 }
 0x56d   :  { %v3050_v48 = vadd.f32 %v3049_v61, %v2824_v50  ;;  %v2826_v46 = vpop.f32.mrb[115].mxu0  ;;  %v10400_v40 = vpop.f32.mrb[162].mxu1 }
 0x56e   :  { %v3081_v5 = vpop.f32.mrb[163].mxu1  ;;  %v13897_v46 = vld [vmem:[#allocation2 + $0x4c] ss:$12 sps:$4 sm:$0xff]  }
 0x56f   :  { %v3153_v42 = vpack.c.bf16 %v3050_v48, %v3047_v26 }
 0x571   :  { %3190 = vmatpush1.bf16.msra.mxu1 %v3153_v42 }
 0x572   :  { %v2829_v17 = vpop.f32.mrb[116].mxu0  ;;  %3191 = vmatprep.subr.bf16.mxu1 %v17499_v28 }
 0x573   :  { %v3055_v59 = vadd.f32 %v10391_v47, %v2829_v17  ;;  %v2831_v31 = vpop.f32.mrb[117].mxu0  ;;  %v13860_v8 = vpop.f32.mrb[164].mxu1 }
 0x574   :  { %v2832_v45 = vpop.f32.mrb[118].mxu0  ;;  %v3094_v3 = vpop.f32.mrb[165].mxu1  ;;  %v13901_v31 = vld [vmem:[#allocation2 + $0x48] ss:$12 sps:$4 sm:$0xff]  }
 0x575   :  { %v3058_v56 = vadd.f32 %v10392_v44, %v2832_v45  ;;  %v2834_v0 = vpop.f32.mrb[119].mxu0  ;;  %v13862_v16 = vpop.f32.mrb[166].mxu1  ;;  %v13882_v44 = vld [vmem:[#allocation2] ss:$12 sps:$4 sm:$0xff]  }
 0x576   :  { %v3097_v33 = vpop.f32.mrb[167].mxu1 }
 0x577   :  { %v3154_v10 = vpack.c.bf16 %v3058_v56, %v3055_v59  ;;  %v13905_v56 = vld [vmem:[#allocation2 + $0x64] ss:$12 sps:$4 sm:$0xff]  }
 0x579   :  { %3192 = vmatpush1.bf16.msra.mxu1 %v3154_v10 }
 0x57a   :  { %v2837_v13 = vpop.f32.mrb[120].mxu0  ;;  %3193 = vmatprep.subr.bf16.mxu1 %v17499_v28 }
 0x57b   :  { %v3063_v25 = vadd.f32 %v3062_v39, %v2837_v13  ;;  %v2839_v49 = vpop.f32.mrb[121].mxu0  ;;  %v13865_v18 = vpop.f32.mrb[168].mxu1 }
 0x57c   :  { %v2840_v24 = vpop.f32.mrb[122].mxu0  ;;  %v13867_v21 = vpop.f32.mrb[169].mxu1 }
 0x57d   :  { %v3066_v4 = vadd.f32 %v3065_v1, %v2840_v24  ;;  %v2842_v32 = vpop.f32.mrb[123].mxu0  ;;  %v13869_v62 = vpop.f32.mrb[170].mxu1  ;;  %v13891_v1 = vld [vmem:[#allocation2 + $0x34] ss:$12 sps:$4 sm:$0xff]   ;;  %v13913_v24 = vld [vmem:[#allocation2 + $0x7c] ss:$12 sps:$4 sm:$0xff]  }
 0x57e   :  { %v13871_v35 = vpop.f32.mrb[171].mxu1 }
 0x57f   :  { %v3155_v58 = vpack.c.bf16 %v3066_v4, %v3063_v25  ;;  %v13909_v25 = vld [vmem:[#allocation2 + $0x60] ss:$12 sps:$4 sm:$0xff]  }
 0x581   :  { %3194 = vmatpush1.bf16.msra.mxu1 %v3155_v58 }
 0x582   :  { %v2845_v22 = vpop.f32.mrb[124].mxu0  ;;  %3195 = vmatprep.subr.bf16.mxu1 %v17499_v28 }
 0x583   :  { %v3071_v41 = vadd.f32 %v10395_v19, %v2845_v22  ;;  %v2847_v11 = vpop.f32.mrb[125].mxu0  ;;  %v13874_v6 = vpop.f32.mrb[172].mxu1 }
 0x584   :  { %v2848_v2 = vpop.f32.mrb[126].mxu0  ;;  %v13876_v55 = vpop.f32.mrb[173].mxu1 }
 0x585   :  { %v3074_v23 = vadd.f32 %v10396_v43, %v2848_v2  ;;  %v2850_v52 = vpop.f32.mrb[127].mxu0  ;;  %v13878_v53 = vpop.f32.mrb[174].mxu1  ;;  %v13921_v2 = vld [vmem:[#allocation2 + $0x94] ss:$12 sps:$4 sm:$0xff]  }
 0x586   :  { %v13880_v57 = vpop.f32.mrb[175].mxu1 }
 0x587   :  { %v3156_v47 = vpack.c.bf16 %v3074_v23, %v3071_v41  ;;  %v13917_v41 = vld [vmem:[#allocation2 + $0x78] ss:$12 sps:$4 sm:$0xff]  }
 0x589   :  { %3196 = vmatpush1.bf16.msra.mxu1 %v3156_v47 }
 0x58a   :  { %v2853_v30 = vpop.f32.mrb[128].mxu0 }
 0x58b   :  { %v3079_v36 = vadd.f32 %v3078_v63, %v2853_v30  ;;  %v2855_v37 = vpop.f32.mrb[129].mxu0 }
 0x58c   :  { %v2856_v14 = vpop.f32.mrb[130].mxu0  ;;  %3198 = vmatmul.mubr.bf16.vlgmr.msra.gmra.mrb[176].mxu1 %v13882_v44 }
 0x58d   :  { %v3082_v61 = vadd.f32 %v3081_v5, %v2856_v14  ;;  %v2858_v38 = vpop.f32.mrb[131].mxu0  ;;  %3205 = vmatprep.mubr.bf16.mxu1 %v13885_v7  ;;  %v13929_v14 = vld [vmem:[#allocation2 + $0xac] ss:$12 sps:$4 sm:$0xff]  }
 0x58f   :  { %v3157_v12 = vpack.c.bf16 %v3082_v61, %v3079_v36  ;;  %v13925_v36 = vld [vmem:[#allocation2 + $0x90] ss:$12 sps:$4 sm:$0xff]  }
 0x591   :  { %10413 = vmatprep.subr.bf16.mxu0 %v3157_v12 }
 0x592   :  { %v2861_v51 = vpop.f32.mrb[132].mxu0  ;;  %10414 = vmatpush3.bf16.msra.mxu0 %v3157_v12 }
 0x593   :  { %v3087_v19 = vadd.f32 %v10399_v29, %v2861_v51  ;;  %v2863_v34 = vpop.f32.mrb[133].mxu0  ;;  %v13894_v29 = vld [vmem:[#allocation2 + $0x30] ss:$12 sps:$4 sm:$0xff]  }
 0x594   :  { %v2864_v39 = vpop.f32.mrb[134].mxu0  ;;  %3206 = vmatmul.mubr.bf16.gmra.mrb[180].mxu1 %v13888_v20 }
 0x595   :  { %v3090_v15 = vadd.f32 %v10400_v40, %v2864_v39  ;;  %v2866_v43 = vpop.f32.mrb[135].mxu0  ;;  %3213 = vmatprep.mubr.bf16.mxu1 %v13891_v1  ;;  %v13937_v39 = vld [vmem:[#allocation2 + $0xc4] ss:$12 sps:$4 sm:$0xff]  }
 0x596   :  { %v13941_v43 = vld [vmem:[#allocation2 + $0xc0] ss:$12 sps:$4 sm:$0xff]  }
 0x597   :  { %v3158_v54 = vpack.c.bf16 %v3090_v15, %v3087_v19  ;;  %v13933_v19 = vld [vmem:[#allocation2 + $0xa8] ss:$12 sps:$4 sm:$0xff]  }
 0x599   :  { %10415 = vmatprep.subr.bf16.mxu0 %v3158_v54 }
 0x59a   :  { %v2869_v9 = vpop.f32.mrb[136].mxu0  ;;  %10416 = vmatpush3.bf16.msra.mxu0 %v3158_v54  ;;  %v13947_v54 = vld [vmem:[#allocation2 + $0xdc] ss:$12 sps:$4 sm:$0xff]  }
 0x59b   :  { %v3095_v26 = vadd.f32 %v3094_v3, %v2869_v9  ;;  %v2871_v60 = vpop.f32.mrb[137].mxu0  ;;  %v13953_v9 = vld [vmem:[#allocation2 + $0xd8] ss:$12 sps:$4 sm:$0xff]  }
 0x59c   :  { %v2872_v50 = vpop.f32.mrb[138].mxu0  ;;  %3214 = vmatmul.mubr.bf16.gmra.mrb[184].mxu1 %v13894_v29  ;;  %v13959_v60 = vld [vmem:[#allocation2 + $0xf4] ss:$12 sps:$4 sm:$0xff]  }
 0x59d   :  { %v3098_v63 = vadd.f32 %v3097_v33, %v2872_v50  ;;  %v2874_v48 = vpop.f32.mrb[139].mxu0  ;;  %3221 = vmatprep.mubr.bf16.mxu1 %v13897_v46  ;;  %v13962_v50 = vld [vmem:[#allocation2 + $0x68] ss:$12 sps:$4 sm:$0xff]  }
 0x59e   :  { %v13968_v48 = vld [vmem:[#allocation2 + $0x80] ss:$12 sps:$4 sm:$0xff]  }
 0x59f   :  { %v3159_v40 = vpack.c.bf16 %v3098_v63, %v3095_v26  ;;  %v13956_v26 = vld [vmem:[#allocation2 + $0x50] ss:$12 sps:$4 sm:$0xff]  }
 0x5a0   :  { %v13965_v63 = vld [vmem:[#allocation2 + $0xf0] ss:$12 sps:$4 sm:$0xff]  }
 0x5a1   :  { %10417 = vmatprep.subr.bf16.mxu0 %v3159_v40 }
 0x5a2   :  { %v2877_v5 = vpop.f32.mrb[140].mxu0  ;;  %10418 = vmatpush3.bf16.msra.mxu0 %v3159_v40  ;;  %v13971_v40 = vld [vmem:[#allocation2 + $0x10c] ss:$12 sps:$4 sm:$0xff]  }
 0x5a3   :  { %v3103_v42 = vadd.f32 %v13860_v8, %v2877_v5  ;;  %v2879_v17 = vpop.f32.mrb[141].mxu0  ;;  %17555 = vst [vmem:[#allocation6_spill] sm:$0xff] %v13971_v40  ;;  %v13974_v5 = vld [vmem:[#allocation2 + $0x98] ss:$12 sps:$4 sm:$0xff]  }
 0x5a4   :  { %v2880_v59 = vpop.f32.mrb[142].mxu0  ;;  %3222 = vmatmul.mubr.bf16.gmra.mrb[188].mxu1 %v13901_v31  ;;  %v13980_v17 = vld [vmem:[#allocation2 + $0xb0] ss:$12 sps:$4 sm:$0xff]  }
 0x5a5   :  { %v3106_v45 = vadd.f32 %v13862_v16, %v2880_v59  ;;  %v2882_v3 = vpop.f32.mrb[143].mxu0  ;;  %3229 = vmatprep.mubr.bf16.mxu1 %v13905_v56  ;;  %17557 = vst [vmem:[#allocation7_spill] sm:$0xff] %v13980_v17  ;;  %v13983_v59 = vld [vmem:[#allocation2 + $0x124] ss:$12 sps:$4 sm:$0xff]  }
 0x5a6   :  { %17558 = vst [vmem:[#allocation30_spill] sm:$0xff] %v13983_v59  ;;  %v13989_v3 = vld [vmem:[#allocation2 + $0x120] ss:$12 sps:$4 sm:$0xff]  }
 0x5a7   :  { %v3160_v0 = vpack.c.bf16 %v3106_v45, %v3103_v42  ;;  %v13977_v42 = vld [vmem:[#allocation2 + $0x108] ss:$12 sps:$4 sm:$0xff]   ;;  %17560 = vst [vmem:[#allocation33_spill] sm:$0xff] %v13989_v3 }
 0x5a8   :  { %17556 = vst [vmem:[#allocation29_spill] sm:$0xff] %v13977_v42  ;;  %v13986_v45 = vld [vmem:[#allocation2 + $0xc8] ss:$12 sps:$4 sm:$0xff]  }
 0x5a9   :  { %10419 = vmatprep.subr.bf16.mxu0 %v3160_v0  ;;  %17559 = vst [vmem:[#allocation8_spill] sm:$0xff] %v13986_v45 }
 0x5aa   :  { %v2885_v33 = vpop.f32.mrb[144].mxu0  ;;  %10420 = vmatpush3.bf16.msra.mxu0 %v3160_v0  ;;  %v13992_v0 = vld [vmem:[#allocation2 + $0xe0] ss:$12 sps:$4 sm:$0xff]  }
 0x5ab   :  { %v3111_v10 = vadd.f32 %v13867_v21, %v2885_v33  ;;  %v2887_v8 = vpop.f32.mrb[145].mxu0  ;;  %17561 = vst [vmem:[#allocation10_spill] sm:$0xff] %v13992_v0  ;;  %v13995_v33 = vld [vmem:[#allocation2 + $0x13c] ss:$12 sps:$4 sm:$0xff]  }
 0x5ac   :  { %v2888_v13 = vpop.f32.mrb[146].mxu0  ;;  %3230 = vmatmul.mubr.bf16.gmra.mrb[192].mxu1 %v13909_v25  ;;  %17562 = vst [vmem:[#allocation34_spill] sm:$0xff] %v13995_v33  ;;  %v14001_v8 = vld [vmem:[#allocation2 + $0x138] ss:$12 sps:$4 sm:$0xff]  }
 0x5ad   :  { %v3114_v49 = vadd.f32 %v13871_v35, %v2888_v13  ;;  %v2890_v16 = vpop.f32.mrb[147].mxu0  ;;  %3237 = vmatprep.mubr.bf16.mxu1 %v13913_v24  ;;  %17564 = vst [vmem:[#allocation37_spill] sm:$0xff] %v14001_v8  ;;  %v14004_v13 = vld [vmem:[#allocation2 + $0x110] ss:$12 sps:$4 sm:$0xff]  }
 0x5ae   :  { %17565 = vst [vmem:[#allocation11_spill] sm:$0xff] %v14004_v13  ;;  %v14010_v16 = vld [vmem:[#allocation2 + $0x128] ss:$12 sps:$4 sm:$0xff]  }
 0x5af   :  { %v3161_v4 = vpack.c.bf16 %v3114_v49, %v3111_v10  ;;  %v13998_v10 = vld [vmem:[#allocation2 + $0xf8] ss:$12 sps:$4 sm:$0xff]   ;;  %v14007_v49 = vld [vmem:[#allocation2 + $0x154] ss:$12 sps:$4 sm:$0xff]   ;;  %17567 = vst [vmem:[#allocation5_spill] sm:$0xff] %v14010_v16 }
 0x5b0   :  { %17563 = vst [vmem:[#allocation9_spill] sm:$0xff] %v13998_v10  ;;  %17566 = vst [vmem:[#allocation38_spill] sm:$0xff] %v14007_v49 }
 0x5b1   :  { %10421 = vmatprep.subr.bf16.mxu0 %v3161_v4 }
 0x5b2   :  { %v2893_v32 = vpop.f32.mrb[148].mxu0  ;;  %10422 = vmatpush3.bf16.msra.mxu0 %v3161_v4  ;;  %v14013_v4 = vld [vmem:[#allocation2 + $0x150] ss:$12 sps:$4 sm:$0xff]  }
 0x5b3   :  { %v3119_v58 = vadd.f32 %v13865_v18, %v2893_v32  ;;  %v2895_v21 = vpop.f32.mrb[149].mxu0  ;;  %17568 = vst [vmem:[#allocation12_spill] sm:$0xff] %v14013_v4  ;;  %v14016_v32 = vld [vmem:[#allocation2 + $0x140] ss:$12 sps:$4 sm:$0xff]  }
 0x5b4   :  { %v2896_v22 = vpop.f32.mrb[150].mxu0  ;;  %3238 = vmatmul.mubr.bf16.gmra.mrb[196].mxu1 %v13917_v41  ;;  %17569 = vst [vmem:[#allocation41_spill] sm:$0xff] %v14016_v32  ;;  %v14022_v21 = vld [vmem:[#allocation2 + $0x158] ss:$12 sps:$4 sm:$0xff]  }
 0x5b5   :  { %v3122_v11 = vadd.f32 %v13869_v62, %v2896_v22  ;;  %v2898_v35 = vpop.f32.mrb[151].mxu0  ;;  %3245 = vmatprep.mubr.bf16.mxu1 %v13921_v2  ;;  %17571 = vst [vmem:[#allocation13_spill] sm:$0xff] %v14022_v21  ;;  %v14025_v22 = vld [vmem:[#allocation2 + $0x168] ss:$12 sps:$4 sm:$0xff]  }
 0x5b6   :  { %17572 = vst [vmem:[#allocation14_spill] sm:$0xff] %v14025_v22  ;;  %v14031_v35 = vld [vmem:[#allocation2 + $0x184] ss:$12 sps:$4 sm:$0xff]  }
 0x5b7   :  { %v3162_v23 = vpack.c.bf16 %v3122_v11, %v3119_v58  ;;  %v14019_v58 = vld [vmem:[#allocation2 + $0x16c] ss:$12 sps:$4 sm:$0xff]   ;;  %v14028_v11 = vld [vmem:[#allocation2 + $0x170] ss:$12 sps:$4 sm:$0xff]   ;;  %17574 = vst [vmem:[#allocation46_spill] sm:$0xff] %v14031_v35 }
 0x5b8   :  { %17570 = vst [vmem:[#allocation42_spill] sm:$0xff] %v14019_v58  ;;  %17573 = vst [vmem:[#allocation45_spill] sm:$0xff] %v14028_v11 }
 0x5b9   :  { %10423 = vmatprep.subr.bf16.mxu0 %v3162_v23 }
 0x5ba   :  { %v2901_v52 = vpop.f32.mrb[152].mxu0  ;;  %10424 = vmatpush3.bf16.msra.mxu0 %v3162_v23  ;;  %v14034_v23 = vld [vmem:[#allocation2 + $0x188] ss:$12 sps:$4 sm:$0xff]  }
 0x5bb   :  { %v3127_v47 = vadd.f32 %v13876_v55, %v2901_v52  ;;  %v2903_v18 = vpop.f32.mrb[153].mxu0  ;;  %17575 = vst [vmem:[#allocation15_spill] sm:$0xff] %v14034_v23  ;;  %v14037_v52 = vld [vmem:[#allocation2 + $0x180] ss:$12 sps:$4 sm:$0xff]  }
 0x5bc   :  { %v2904_v30 = vpop.f32.mrb[154].mxu0  ;;  %3246 = vmatmul.mubr.bf16.gmra.mrb[200].mxu1 %v13925_v36  ;;  %17576 = vst [vmem:[#allocation16_spill] sm:$0xff] %v14037_v52  ;;  %v14043_v18 = vld [vmem:[#allocation2 + $0x19c] ss:$12 sps:$4 sm:$0xff]  }
 0x5bd   :  { %v3130_v37 = vadd.f32 %v13880_v57, %v2904_v30  ;;  %v2906_v62 = vpop.f32.mrb[155].mxu0  ;;  %3253 = vmatprep.mubr.bf16.mxu1 %v13929_v14  ;;  %17578 = vst [vmem:[#allocation50_spill] sm:$0xff] %v14043_v18  ;;  %v14046_v30 = vld [vmem:[#allocation2 + $0x1b8] ss:$12 sps:$4 sm:$0xff]  }
 0x5be   :  { %17579 = vst [vmem:[#allocation17_spill] sm:$0xff] %v14046_v30  ;;  %v14052_v62 = vld [vmem:[#allocation2 + $0x1b4] ss:$12 sps:$4 sm:$0xff]  }
 0x5bf   :  { %v3163_v61 = vpack.c.bf16 %v3130_v37, %v3127_v47  ;;  %v14040_v47 = vld [vmem:[#allocation2 + $0x1a0] ss:$12 sps:$4 sm:$0xff]   ;;  %v14049_v37 = vld [vmem:[#allocation2 + $0x198] ss:$12 sps:$4 sm:$0xff]   ;;  %17581 = vst [vmem:[#allocation52_spill] sm:$0xff] %v14052_v62 }
 0x5c0   :  { %17577 = vst [vmem:[#allocation49_spill] sm:$0xff] %v14040_v47  ;;  %17580 = vst [vmem:[#allocation18_spill] sm:$0xff] %v14049_v37 }
 0x5c1   :  { %10425 = vmatprep.subr.bf16.mxu0 %v3163_v61 }
 0x5c2   :  { %v2909_v38 = vpop.f32.mrb[156].mxu0  ;;  %10426 = vmatpush3.bf16.msra.mxu0 %v3163_v61  ;;  %v14055_v61 = vld [vmem:[#allocation2 + $0x1d0] ss:$12 sps:$4 sm:$0xff]  }
 0x5c3   :  { %v3135_v12 = vadd.f32 %v13874_v6, %v2909_v38  ;;  %v2911_v55 = vpop.f32.mrb[157].mxu0  ;;  %v13944_v6 = vld [vmem:[#allocation2 + $0x20] ss:$12 sps:$4 sm:$0xff]   ;;  %17582 = vst [vmem:[#allocation53_spill] sm:$0xff] %v14055_v61  ;;  %v14058_v38 = vld [vmem:[#allocation2 + $0x1e8] ss:$12 sps:$4 sm:$0xff]  }
 0x5c4   :  { %v2912_v51 = vpop.f32.mrb[158].mxu0  ;;  %3254 = vmatmul.mubr.bf16.gmra.mrb[204].mxu1 %v13933_v19  ;;  %17583 = vst [vmem:[#allocation19_spill] sm:$0xff] %v14058_v38  ;;  %v14064_v55 = vld [vmem:[#allocation2 + $0x1cc] ss:$12 sps:$4 sm:$0xff]  }
 0x5c5   :  { %v3138_v34 = vadd.f32 %v13878_v53, %v2912_v51  ;;  %v2914_v57 = vpop.f32.mrb[159].mxu0  ;;  %3261 = vmatprep.mubr.bf16.mxu1 %v13937_v39  ;;  %v13950_v53 = vld [vmem:[#allocation2 + $0x38] ss:$12 sps:$4 sm:$0xff]   ;;  %17585 = vst [vmem:[#allocation54_spill] sm:$0xff] %v14064_v55  ;;  %v14067_v51 = vld [vmem:[#allocation2 + $0x200] ss:$12 sps:$4 sm:$0xff]  }
 0x5c6   :  { %17586 = vst [vmem:[#allocation55_spill] sm:$0xff] %v14067_v51  ;;  %v14073_v57 = vld [vmem:[#allocation2 + $0x1c8] ss:$12 sps:$4 sm:$0xff]  }
 0x5c7   :  { %v3164_v15 = vpack.c.bf16 %v3138_v34, %v3135_v12  ;;  %v14061_v12 = vld [vmem:[#allocation2 + $0x1b0] ss:$12 sps:$4 sm:$0xff]   ;;  %v14070_v34 = vld [vmem:[#allocation2 + $0x218] ss:$12 sps:$4 sm:$0xff]   ;;  %17588 = vst [vmem:[#allocation22_spill] sm:$0xff] %v14073_v57 }
 0x5c8   :  { %17584 = vst [vmem:[#allocation20_spill] sm:$0xff] %v14061_v12  ;;  %17587 = vst [vmem:[#allocation21_spill] sm:$0xff] %v14070_v34 }
 0x5c9   :  { %10427 = vmatprep.subr.bf16.mxu0 %v3164_v15 }
 0x5ca   :  { %10428 = vmatpush3.bf16.msra.mxu0 %v3164_v15  ;;  %v14076_v15 = vld [vmem:[#allocation2 + $0x1e4] ss:$12 sps:$4 sm:$0xff]  }
 0x5cb   :  { %3639 = vmatprep.subr.bf16.mxu0 %v17499_v28  ;;  %17589 = vst [vmem:[#allocation56_spill] sm:$0xff] %v14076_v15 }
 0x5cc   :  { %3262 = vmatmul.mubr.bf16.gmra.mrb[208].mxu1 %v13941_v43 }
 0x5cd   :  { %10430 = vmatmul.mubr.bf16.vlgmr.msra.gmra.mrb[160].mxu0 %v13944_v6  ;;  %3269 = vmatprep.mubr.bf16.mxu1 %v13947_v54 }
 0x5ce   :  { %10433 = vmatprep.mubr.bf16.mxu0 %v13950_v53 }
 0x5d4   :  { %3270 = vmatmul.mubr.bf16.gmra.mrb[212].mxu1 %v13953_v9 }
 0x5d5   :  { %10434 = vmatmul.mubr.bf16.gmra.mrb[164].mxu0 %v13956_v26  ;;  %3277 = vmatprep.mubr.bf16.mxu1 %v13959_v60 }
 0x5d6   :  { %10437 = vmatprep.mubr.bf16.mxu0 %v13962_v50 }
 0x5dc   :  { %3278 = vmatmul.mubr.bf16.gmra.mrb[216].mxu1 %v13965_v63 }
 0x5dd   :  { %10438 = vmatmul.mubr.bf16.gmra.mrb[168].mxu0 %v13968_v48  ;;  %3285 = vmatprep.mubr.bf16.mxu1 %v13971_v40 }
 0x5de   :  { %10441 = vmatprep.mubr.bf16.mxu0 %v13974_v5 }
 0x5e4   :  { %3286 = vmatmul.mubr.bf16.gmra.mrb[220].mxu1 %v13977_v42 }
 0x5e5   :  { %10442 = vmatmul.mubr.bf16.gmra.mrb[172].mxu0 %v13980_v17  ;;  %3293 = vmatprep.mubr.bf16.mxu1 %v13983_v59 }
 0x5e6   :  { %10445 = vmatprep.mubr.bf16.mxu0 %v13986_v45 }
 0x5ec   :  { %3294 = vmatmul.mubr.bf16.gmra.mrb[224].mxu1 %v13989_v3 }
 0x5ed   :  { %10446 = vmatmul.mubr.bf16.gmra.mrb[176].mxu0 %v13992_v0  ;;  %3301 = vmatprep.mubr.bf16.mxu1 %v13995_v33 }
 0x5ee   :  { %10449 = vmatprep.mubr.bf16.mxu0 %v13998_v10 }
 0x5f4   :  { %3302 = vmatmul.mubr.bf16.gmra.mrb[228].mxu1 %v14001_v8 }
 0x5f5   :  { %10450 = vmatmul.mubr.bf16.gmra.mrb[180].mxu0 %v14004_v13  ;;  %3309 = vmatprep.mubr.bf16.mxu1 %v14007_v49 }
 0x5f6   :  { %10453 = vmatprep.mubr.bf16.mxu0 %v14010_v16 }
 0x5fc   :  { %3310 = vmatmul.mubr.bf16.gmra.mrb[232].mxu1 %v14013_v4 }
 0x5fd   :  { %10454 = vmatmul.mubr.bf16.gmra.mrb[184].mxu0 %v14016_v32  ;;  %3317 = vmatprep.mubr.bf16.mxu1 %v14019_v58 }
 0x5fe   :  { %10457 = vmatprep.mubr.bf16.mxu0 %v14022_v21 }
 0x604   :  { %3318 = vmatmul.mubr.bf16.gmra.mrb[236].mxu1 %v14025_v22 }
 0x605   :  { %10458 = vmatmul.mubr.bf16.gmra.mrb[188].mxu0 %v14028_v11  ;;  %3325 = vmatprep.mubr.bf16.mxu1 %v14031_v35 }
 0x606   :  { %10461 = vmatprep.mubr.bf16.mxu0 %v14034_v23 }
 0x60c   :  { %3326 = vmatmul.mubr.bf16.gmra.mrb[240].mxu1 %v14037_v52 }
 0x60d   :  { %10462 = vmatmul.mubr.bf16.gmra.mrb[192].mxu0 %v14040_v47  ;;  %3333 = vmatprep.mubr.bf16.mxu1 %v14043_v18 }
 0x60e   :  { %10465 = vmatprep.mubr.bf16.mxu0 %v14046_v30 }
 0x614   :  { %3334 = vmatmul.mubr.bf16.gmra.mrb[244].mxu1 %v14049_v37 }
 0x615   :  { %3341 = vmatprep.mubr.bf16.mxu1 %v14052_v62  ;;  %10466 = vmatmul.mubr.bf16.gmra.mrb[196].mxu0 %v14055_v61 }
 0x616   :  { %10469 = vmatprep.mubr.bf16.mxu0 %v14058_v38 }
 0x61c   :  { %3342 = vmatmul.mubr.bf16.gmra.mrb[248].mxu1 %v14061_v12  ;;  %v14079_v12 = vld [vmem:[#allocation2 + $0x230] ss:$12 sps:$4 sm:$0xff]  }
 0x61d   :  { %3349 = vmatprep.mubr.bf16.mxu1 %v14064_v55  ;;  %10470 = vmatmul.mubr.bf16.gmra.mrb[200].mxu0 %v14067_v51  ;;  %17590 = vst [vmem:[#allocation57_spill] sm:$0xff] %v14079_v12  ;;  %v14082_v55 = vld [vmem:[#allocation2 + $0x4] ss:$12 sps:$4 sm:$0xff]   ;;  %v14085_v51 = vld [vmem:[#allocation2 + $0x1e0] ss:$12 sps:$4 sm:$0xff]  }
 0x61e   :  { %10473 = vmatprep.mubr.bf16.mxu0 %v14070_v34  ;;  %17591 = vst [vmem:[#allocation23_spill] sm:$0xff] %v14082_v55  ;;  %17592 = vst [vmem:[#allocation24_spill] sm:$0xff] %v14085_v51  ;;  %v14088_v34 = vld [vmem:[#allocation2 + $0x1fc] ss:$12 sps:$4 sm:$0xff]  }
 0x61f   :  { %17593 = vst [vmem:[#allocation58_spill] sm:$0xff] %v14088_v34 }
 0x624   :  { %3350 = vmatmul.mubr.bf16.gmra.mrb[252].mxu1 %v14073_v57  ;;  %v14091_v57 = vld [vmem:[#allocation2 + $0x1f8] ss:$12 sps:$4 sm:$0xff]  }
 0x625   :  { %3357 = vmatprep.mubr.bf16.mxu1 %v14076_v15  ;;  %10474 = vmatmul.mubr.bf16.gmra.mrb[204].mxu0 %v14079_v12  ;;  %17594 = vst [vmem:[#allocation59_spill] sm:$0xff] %v14091_v57  ;;  %v14094_v15 = vld [vmem:[#allocation2 + $0x214] ss:$12 sps:$4 sm:$0xff]   ;;  %v14097_v12 = vld [vmem:[#allocation2 + $0x210] ss:$12 sps:$4 sm:$0xff]  }
 0x626   :  { %3671 = vmatprep.mubr.bf16.mxu0 %v14082_v55  ;;  %17595 = vst [vmem:[#allocation25_spill] sm:$0xff] %v14094_v15  ;;  %17596 = vst [vmem:[#allocation26_spill] sm:$0xff] %v14097_v12  ;;  %v14100_v55 = vld [vmem:[#allocation2 + $0x22c] ss:$12 sps:$4 sm:$0xff]  }
 0x627   :  { %17597 = vst [vmem:[#allocation27_spill] sm:$0xff] %v14100_v55 }
 0x62c   :  { %3358 = vmatmul.mubr.bf16.gmra.mrb[0].mxu1 %v14085_v51  ;;  %v14103_v51 = vld [vmem:[#allocation2 + $0x228] ss:$12 sps:$4 sm:$0xff]  }
 0x62d   :  { %3365 = vmatprep.mubr.bf16.mxu1 %v14088_v34  ;;  %17598 = vst [vmem:[#allocation28_spill] sm:$0xff] %v14103_v51 }
 0x634   :  { %3366 = vmatmul.mubr.bf16.gmra.mrb[4].mxu1 %v14091_v57 }
 0x635   :  { %3373 = vmatprep.mubr.bf16.mxu1 %v14094_v15 }
 0x63c   :  { %3374 = vmatmul.mubr.bf16.gmra.mrb[8].mxu1 %v14097_v12 }
 0x63d   :  { %3381 = vmatprep.mubr.bf16.mxu1 %v14100_v55 }
 0x644   :  { %3382 = vmatmul.mubr.bf16.gmra.mrb[12].mxu1 %v14103_v51 }
 0x645   :  { %10493 = vmatprep.mubr.bf16.mxu1 %v13844_v27 }
 0x65f   :  { %v3199_v34 = vpop.f32.mrb[176].mxu1 }
 0x660   :  { %v3201_v57 = vpop.f32.mrb[177].mxu1 }
 0x661   :  { %v3202_v62 = vpop.f32.mrb[178].mxu1 }
 0x662   :  { %v3204_v37 = vpop.f32.mrb[179].mxu1 }
 0x667   :  { %v3207_v38 = vpop.f32.mrb[180].mxu1 }
 0x668   :  { %v3209_v15 = vpop.f32.mrb[181].mxu1 }
 0x669   :  { %v3210_v61 = vpop.f32.mrb[182].mxu1 }
 0x66a   :  { %v3212_v18 = vpop.f32.mrb[183].mxu1 }
 0x66f   :  { %v3215_v52 = vpop.f32.mrb[184].mxu1 }
 0x670   :  { %v3217_v12 = vpop.f32.mrb[185].mxu1 }
 0x671   :  { %v3218_v30 = vpop.f32.mrb[186].mxu1 }
 0x672   :  { %v3220_v47 = vpop.f32.mrb[187].mxu1 }
 0x677   :  { %v3223_v35 = vpop.f32.mrb[188].mxu1 }
 0x678   :  { %v3225_v55 = vpop.f32.mrb[189].mxu1 }
 0x679   :  { %v3226_v22 = vpop.f32.mrb[190].mxu1 }
 0x67a   :  { %v3228_v23 = vpop.f32.mrb[191].mxu1 }
 0x67f   :  { %v3231_v11 = vpop.f32.mrb[192].mxu1 }
 0x680   :  { %v3233_v51 = vpop.f32.mrb[193].mxu1 }
 0x681   :  { %v3234_v58 = vpop.f32.mrb[194].mxu1 }
 0x682   :  { %v3236_v27 = vpop.f32.mrb[195].mxu1 }
 0x687   :  { %v3239_v4 = vpop.f32.mrb[196].mxu1 }
 0x688   :  { %v3241_v57 = vpop.f32.mrb[197].mxu1 }
 0x689   :  { %v3242_v21 = vpop.f32.mrb[198].mxu1 }
 0x68a   :  { %v3244_v37 = vpop.f32.mrb[199].mxu1 }
 0x68f   :  { %v14107_v32 = vpop.f32.mrb[200].mxu1 }
 0x690   :  { %v3249_v15 = vpop.f32.mrb[201].mxu1 }
 0x691   :  { %v14109_v18 = vpop.f32.mrb[202].mxu1 }
 0x692   :  { %v3252_v12 = vpop.f32.mrb[203].mxu1 }
 0x697   :  { %v3255_v49 = vpop.f32.mrb[204].mxu1 }
 0x698   :  { %v3257_v47 = vpop.f32.mrb[205].mxu1 }
 0x699   :  { %v14111_v8 = vpop.f32.mrb[206].mxu1 }
 0x69a   :  { %v3260_v55 = vpop.f32.mrb[207].mxu1 }
 0x69f   :  { %v14113_v23 = vpop.f32.mrb[208].mxu1 }
 0x6a0   :  { %v10431_v51 = vpop.f32.mrb[160].mxu0  ;;  %v3265_v16 = vpop.f32.mrb[209].mxu1 }
 0x6a1   :  { %v3433_v27 = vadd.f32 %v10431_v51, %v3207_v38  ;;  %v3424_v13 = vpop.f32.mrb[161].mxu0  ;;  %v14115_v57 = vpop.f32.mrb[210].mxu1 }
 0x6a2   :  { %v3425_v37 = vadd.f32 %v3424_v13, %v3199_v34  ;;  %v10432_v33 = vpop.f32.mrb[162].mxu0  ;;  %v3268_v3 = vpop.f32.mrb[211].mxu1 }
 0x6a3   :  { %v3436_v15 = vadd.f32 %v10432_v33, %v3210_v61  ;;  %v3427_v10 = vpop.f32.mrb[163].mxu0 }
 0x6a4   :  { %v3428_v0 = vadd.f32 %v3427_v10, %v3202_v62 }
 0x6a5   :  { %v3616_v12 = vpack.c.bf16 %v3436_v15, %v3433_v27 }
 0x6a6   :  { %v3615_v59 = vpack.c.bf16 %v3428_v0, %v3425_v37 }
 0x6a7   :  { %v3271_v47 = vpop.f32.mrb[212].mxu1 }
 0x6a8   :  { %v10435_v42 = vpop.f32.mrb[164].mxu0  ;;  %3640 = vmatpush1.bf16.msra.mxu0 %v3615_v59  ;;  %v3273_v55 = vpop.f32.mrb[213].mxu1 }
 0x6a9   :  { %v3449_v45 = vadd.f32 %v10435_v42, %v3223_v35  ;;  %v3440_v17 = vpop.f32.mrb[165].mxu0  ;;  %v3274_v40 = vpop.f32.mrb[214].mxu1  ;;  %3641 = vmatprep.subr.bf16.mxu0 %v17499_v28 }
 0x6aa   :  { %v3441_v16 = vadd.f32 %v3440_v17, %v3215_v52  ;;  %v10436_v38 = vpop.f32.mrb[166].mxu0  ;;  %v3276_v51 = vpop.f32.mrb[215].mxu1 }
 0x6ab   :  { %v3452_v13 = vadd.f32 %v10436_v38, %v3226_v22  ;;  %v3443_v34 = vpop.f32.mrb[167].mxu0 }
 0x6ac   :  { %v3444_v3 = vadd.f32 %v3443_v34, %v3218_v30  ;;  %3642 = vmatpush1.bf16.msra.mxu0 %v3616_v12 }
 0x6ad   :  { %v3618_v33 = vpack.c.bf16 %v3452_v13, %v3449_v45  ;;  %3643 = vmatprep.subr.bf16.mxu0 %v17499_v28 }
 0x6ae   :  { %v3617_v0 = vpack.c.bf16 %v3444_v3, %v3441_v16 }
 0x6af   :  { %v3279_v10 = vpop.f32.mrb[216].mxu1 }
 0x6b0   :  { %v10439_v62 = vpop.f32.mrb[168].mxu0  ;;  %3644 = vmatpush1.bf16.msra.mxu0 %v3617_v0  ;;  %v3281_v59 = vpop.f32.mrb[217].mxu1 }
 0x6b1   :  { %v3465_v42 = vadd.f32 %v10439_v62, %v3239_v4  ;;  %v3456_v35 = vpop.f32.mrb[169].mxu0  ;;  %v3282_v61 = vpop.f32.mrb[218].mxu1  ;;  %3645 = vmatprep.subr.bf16.mxu0 %v17499_v28 }
 0x6b2   :  { %v3457_v17 = vadd.f32 %v3456_v35, %v3231_v11  ;;  %v10440_v52 = vpop.f32.mrb[170].mxu0  ;;  %v3284_v27 = vpop.f32.mrb[219].mxu1 }
 0x6b3   :  { %v3468_v22 = vadd.f32 %v10440_v52, %v3242_v21  ;;  %v3459_v37 = vpop.f32.mrb[171].mxu0 }
 0x6b4   :  { %v3460_v30 = vadd.f32 %v3459_v37, %v3234_v58  ;;  %3646 = vmatpush1.bf16.msra.mxu0 %v3618_v33 }
 0x6b5   :  { %v3620_v45 = vpack.c.bf16 %v3468_v22, %v3465_v42  ;;  %3647 = vmatprep.subr.bf16.mxu0 %v17499_v28 }
 0x6b6   :  { %v3619_v15 = vpack.c.bf16 %v3460_v30, %v3457_v17 }
 0x6b7   :  { %v3287_v12 = vpop.f32.mrb[220].mxu1 }
 0x6b8   :  { %v10443_v55 = vpop.f32.mrb[172].mxu0  ;;  %3648 = vmatpush1.bf16.msra.mxu0 %v3619_v15  ;;  %v3289_v16 = vpop.f32.mrb[221].mxu1 }
 0x6b9   :  { %v3481_v4 = vadd.f32 %v10443_v55, %v3255_v49  ;;  %v3472_v38 = vpop.f32.mrb[173].mxu0  ;;  %v3290_v51 = vpop.f32.mrb[222].mxu1  ;;  %3649 = vmatprep.subr.bf16.mxu0 %v17499_v28 }
 0x6ba   :  { %v3473_v11 = vadd.f32 %v3472_v38, %v14107_v32  ;;  %v10444_v13 = vpop.f32.mrb[174].mxu0  ;;  %v3292_v21 = vpop.f32.mrb[223].mxu1 }
 0x6bb   :  { %v3484_v58 = vadd.f32 %v10444_v13, %v14111_v8  ;;  %v3475_v34 = vpop.f32.mrb[175].mxu0 }
 0x6bc   :  { %v3476_v3 = vadd.f32 %v3475_v34, %v14109_v18  ;;  %3650 = vmatpush1.bf16.msra.mxu0 %v3620_v45 }
 0x6bd   :  { %v3622_v33 = vpack.c.bf16 %v3484_v58, %v3481_v4  ;;  %3651 = vmatprep.subr.bf16.mxu0 %v17499_v28 }
 0x6be   :  { %v3621_v0 = vpack.c.bf16 %v3476_v3, %v3473_v11 }
 0x6bf   :  { %v3295_v62 = vpop.f32.mrb[224].mxu1 }
 0x6c0   :  { %v10447_v49 = vpop.f32.mrb[176].mxu0  ;;  %3652 = vmatpush1.bf16.msra.mxu0 %v3621_v0  ;;  %v3297_v59 = vpop.f32.mrb[225].mxu1 }
 0x6c1   :  { %v3497_v42 = vadd.f32 %v10447_v49, %v3271_v47  ;;  %v3488_v35 = vpop.f32.mrb[177].mxu0  ;;  %v3298_v17 = vpop.f32.mrb[226].mxu1  ;;  %3653 = vmatprep.subr.bf16.mxu0 %v17499_v28 }
 0x6c2   :  { %v3489_v32 = vadd.f32 %v3488_v35, %v14113_v23  ;;  %v10448_v8 = vpop.f32.mrb[178].mxu0  ;;  %v3300_v52 = vpop.f32.mrb[227].mxu1 }
 0x6c3   :  { %v3500_v27 = vadd.f32 %v10448_v8, %v3274_v40  ;;  %v3491_v18 = vpop.f32.mrb[179].mxu0 }
 0x6c4   :  { %v3492_v22 = vadd.f32 %v3491_v18, %v14115_v57  ;;  %3654 = vmatpush1.bf16.msra.mxu0 %v3622_v33 }
 0x6c5   :  { %v3624_v37 = vpack.c.bf16 %v3500_v27, %v3497_v42  ;;  %3655 = vmatprep.subr.bf16.mxu0 %v17499_v28 }
 0x6c6   :  { %v3623_v30 = vpack.c.bf16 %v3492_v22, %v3489_v32 }
 0x6c7   :  { %v3303_v45 = vpop.f32.mrb[228].mxu1 }
 0x6c8   :  { %v10451_v15 = vpop.f32.mrb[180].mxu0  ;;  %3656 = vmatpush1.bf16.msra.mxu0 %v3623_v30  ;;  %v3305_v47 = vpop.f32.mrb[229].mxu1 }
 0x6c9   :  { %v3513_v55 = vadd.f32 %v10451_v15, %v3287_v12  ;;  %v3504_v16 = vpop.f32.mrb[181].mxu0  ;;  %v3306_v4 = vpop.f32.mrb[230].mxu1  ;;  %3657 = vmatprep.subr.bf16.mxu0 %v17499_v28 }
 0x6ca   :  { %v3505_v23 = vadd.f32 %v3504_v16, %v3279_v10  ;;  %v10452_v38 = vpop.f32.mrb[182].mxu0  ;;  %v3308_v40 = vpop.f32.mrb[231].mxu1 }
 0x6cb   :  { %v3516_v11 = vadd.f32 %v10452_v38, %v3290_v51  ;;  %v3507_v13 = vpop.f32.mrb[183].mxu0 }
 0x6cc   :  { %v3508_v57 = vadd.f32 %v3507_v13, %v3282_v61  ;;  %3658 = vmatpush1.bf16.msra.mxu0 %v3624_v37 }
 0x6cd   :  { %v3626_v21 = vpack.c.bf16 %v3516_v11, %v3513_v55  ;;  %3659 = vmatprep.subr.bf16.mxu0 %v17499_v28 }
 0x6ce   :  { %v3625_v58 = vpack.c.bf16 %v3508_v57, %v3505_v23 }
 0x6cf   :  { %v3311_v34 = vpop.f32.mrb[232].mxu1 }
 0x6d0   :  { %v10455_v3 = vpop.f32.mrb[184].mxu0  ;;  %3660 = vmatpush1.bf16.msra.mxu0 %v3625_v58  ;;  %v3313_v33 = vpop.f32.mrb[233].mxu1 }
 0x6d1   :  { %v3529_v12 = vadd.f32 %v10455_v3, %v3303_v45  ;;  %v3520_v0 = vpop.f32.mrb[185].mxu0  ;;  %v3314_v49 = vpop.f32.mrb[234].mxu1  ;;  %3661 = vmatprep.subr.bf16.mxu0 %v17499_v28 }
 0x6d2   :  { %v3521_v10 = vadd.f32 %v3520_v0, %v3295_v62  ;;  %v10456_v59 = vpop.f32.mrb[186].mxu0  ;;  %v3316_v42 = vpop.f32.mrb[235].mxu1 }
 0x6d3   :  { %v3532_v51 = vadd.f32 %v10456_v59, %v3306_v4  ;;  %v3523_v35 = vpop.f32.mrb[187].mxu0 }
 0x6d4   :  { %v3524_v61 = vadd.f32 %v3523_v35, %v3298_v17  ;;  %3662 = vmatpush1.bf16.msra.mxu0 %v3626_v21 }
 0x6d5   :  { %v3628_v32 = vpack.c.bf16 %v3532_v51, %v3529_v12  ;;  %3663 = vmatprep.subr.bf16.mxu0 %v17499_v28 }
 0x6d6   :  { %v3627_v8 = vpack.c.bf16 %v3524_v61, %v3521_v10 }
 0x6d7   :  { %v3319_v52 = vpop.f32.mrb[236].mxu1 }
 0x6d8   :  { %v10459_v27 = vpop.f32.mrb[188].mxu0  ;;  %3664 = vmatpush1.bf16.msra.mxu0 %v3627_v8  ;;  %v3321_v18 = vpop.f32.mrb[237].mxu1 }
 0x6d9   :  { %v3545_v22 = vadd.f32 %v10459_v27, %v3319_v52  ;;  %v3536_v37 = vpop.f32.mrb[189].mxu0  ;;  %v3322_v30 = vpop.f32.mrb[238].mxu1  ;;  %3665 = vmatprep.subr.bf16.mxu0 %v17499_v28 }
 0x6da   :  { %v3537_v62 = vadd.f32 %v3536_v37, %v3311_v34  ;;  %v10460_v45 = vpop.f32.mrb[190].mxu0  ;;  %v3324_v15 = vpop.f32.mrb[239].mxu1 }
 0x6db   :  { %v3548_v47 = vadd.f32 %v10460_v45, %v3322_v30  ;;  %v3539_v55 = vpop.f32.mrb[191].mxu0 }
 0x6dc   :  { %v3540_v17 = vadd.f32 %v3539_v55, %v3314_v49  ;;  %3666 = vmatpush1.bf16.msra.mxu0 %v3628_v32 }
 0x6dd   :  { %v3630_v16 = vpack.c.bf16 %v3548_v47, %v3545_v22  ;;  %3667 = vmatprep.subr.bf16.mxu0 %v17499_v28 }
 0x6de   :  { %v3629_v4 = vpack.c.bf16 %v3540_v17, %v3537_v62 }
 0x6df   :  { %v3327_v23 = vpop.f32.mrb[240].mxu1 }
 0x6e0   :  { %v10463_v38 = vpop.f32.mrb[192].mxu0  ;;  %3668 = vmatpush1.bf16.msra.mxu0 %v3629_v4  ;;  %v3329_v40 = vpop.f32.mrb[241].mxu1 }
 0x6e1   :  { %v3552_v11 = vpop.f32.mrb[193].mxu0  ;;  %v3330_v13 = vpop.f32.mrb[242].mxu1  ;;  %3669 = vmatprep.subr.bf16.mxu0 %v17499_v28 }
 0x6e2   :  { %v3553_v57 = vadd.f32 %v3552_v11, %v3327_v23  ;;  %v10464_v21 = vpop.f32.mrb[194].mxu0  ;;  %v3332_v58 = vpop.f32.mrb[243].mxu1 }
 0x6e3   :  { %v3555_v34 = vpop.f32.mrb[195].mxu0 }
 0x6e4   :  { %v3556_v3 = vadd.f32 %v3555_v34, %v3330_v13  ;;  %3670 = vmatpush1.bf16.msra.mxu0 %v3630_v16 }
 0x6e6   :  { %v3631_v33 = vpack.c.bf16 %v3556_v3, %v3553_v57 }
 0x6e7   :  { %v3335_v12 = vpop.f32.mrb[244].mxu1  ;;  %3672 = vmatmul.mubr.bf16.vlgmr.msra.gmra.mrb[208].mxu0 %v13882_v44 }
 0x6e8   :  { %v3561_v0 = vadd.f32 %v10463_v38, %v3335_v12  ;;  %v3337_v49 = vpop.f32.mrb[245].mxu1  ;;  %10477 = vmatprep.subr.bf16.mxu1 %v3631_v33  ;;  %3679 = vmatprep.mubr.bf16.mxu0 %v13885_v7  ;;  %v10467_v10 = vpop.f32.mrb[196].mxu0 }
 0x6e9   :  { %v3338_v59 = vpop.f32.mrb[246].mxu1  ;;  %10478 = vmatpush3.bf16.msra.mxu1 %v3631_v33  ;;  %v3568_v42 = vpop.f32.mrb[197].mxu0 }
 0x6ea   :  { %v3564_v51 = vadd.f32 %v10464_v21, %v3338_v59  ;;  %v3340_v35 = vpop.f32.mrb[247].mxu1  ;;  %v10468_v61 = vpop.f32.mrb[198].mxu0 }
 0x6eb   :  { %v3571_v32 = vpop.f32.mrb[199].mxu0 }
 0x6ec   :  { %v3632_v8 = vpack.c.bf16 %v3564_v51, %v3561_v0 }
 0x6ee   :  { %10479 = vmatprep.subr.bf16.mxu1 %v3632_v8 }
 0x6ef   :  { %3680 = vmatmul.mubr.bf16.gmra.mrb[212].mxu0 %v13888_v20  ;;  %10480 = vmatpush3.bf16.msra.mxu1 %v3632_v8  ;;  %v3343_v52 = vpop.f32.mrb[248].mxu1 }
 0x6f0   :  { %v3569_v44 = vadd.f32 %v3568_v42, %v3343_v52  ;;  %v3345_v27 = vpop.f32.mrb[249].mxu1  ;;  %3687 = vmatprep.mubr.bf16.mxu0 %v13891_v1  ;;  %v10471_v18 = vpop.f32.mrb[200].mxu0 }
 0x6f1   :  { %v3346_v7 = vpop.f32.mrb[250].mxu1  ;;  %v3584_v22 = vpop.f32.mrb[201].mxu0 }
 0x6f2   :  { %v3572_v37 = vadd.f32 %v3571_v32, %v3346_v7  ;;  %v3348_v30 = vpop.f32.mrb[251].mxu1  ;;  %v10472_v62 = vpop.f32.mrb[202].mxu0  ;;  %v17616_v7 = vld [vmem:[#allocation45_spill] sm:$0xff] }
 0x6f3   :  { %v3587_v45 = vpop.f32.mrb[203].mxu0  ;;  %v17619_v30 = vld [vmem:[#allocation46_spill] sm:$0xff] }
 0x6f4   :  { %v3633_v15 = vpack.c.bf16 %v3572_v37, %v3569_v44  ;;  %v17618_v37 = vld [vmem:[#allocation14_spill] sm:$0xff] }
 0x6f6   :  { %10481 = vmatprep.subr.bf16.mxu1 %v3633_v15 }
 0x6f7   :  { %3688 = vmatmul.mubr.bf16.gmra.mrb[216].mxu0 %v13894_v29  ;;  %v3351_v47 = vpop.f32.mrb[252].mxu1  ;;  %10482 = vmatpush3.bf16.msra.mxu1 %v3633_v15  ;;  %v17622_v15 = vld [vmem:[#allocation16_spill] sm:$0xff] }
 0x6f8   :  { %v3577_v20 = vadd.f32 %v10467_v10, %v3351_v47  ;;  %v3353_v55 = vpop.f32.mrb[253].mxu1  ;;  %3695 = vmatprep.mubr.bf16.mxu0 %v13897_v46  ;;  %v10475_v17 = vpop.f32.mrb[204].mxu0  ;;  %v17623_v47 = vld [vmem:[#allocation50_spill] sm:$0xff] }
 0x6f9   :  { %v3354_v16 = vpop.f32.mrb[254].mxu1  ;;  %v3600_v1 = vpop.f32.mrb[205].mxu0  ;;  %v17625_v55 = vld [vmem:[#allocation19_spill] sm:$0xff] }
 0x6fa   :  { %v3580_v4 = vadd.f32 %v10468_v61, %v3354_v16  ;;  %v3356_v23 = vpop.f32.mrb[255].mxu1  ;;  %v10476_v38 = vpop.f32.mrb[206].mxu0  ;;  %v17627_v16 = vld [vmem:[#allocation52_spill] sm:$0xff] }
 0x6fb   :  { %v3603_v40 = vpop.f32.mrb[207].mxu0  ;;  %v17630_v23 = vld [vmem:[#allocation20_spill] sm:$0xff] }
 0x6fc   :  { %v3634_v11 = vpack.c.bf16 %v3580_v4, %v3577_v20  ;;  %v17624_v20 = vld [vmem:[#allocation53_spill] sm:$0xff] }
 0x6fd   :  { %v17629_v4 = vld [vmem:[#allocation21_spill] sm:$0xff] }
 0x6fe   :  { %10483 = vmatprep.subr.bf16.mxu1 %v3634_v11 }
 0x6ff   :  { %3696 = vmatmul.mubr.bf16.gmra.mrb[220].mxu0 %v13901_v31  ;;  %v3359_v13 = vpop.f32.mrb[0].mxu1  ;;  %10484 = vmatpush3.bf16.msra.mxu1 %v3634_v11  ;;  %v17633_v11 = vld [vmem:[#allocation23_spill] sm:$0xff] }
 0x700   :  { %v3585_v29 = vadd.f32 %v3584_v22, %v3359_v13  ;;  %v3361_v57 = vpop.f32.mrb[1].mxu1  ;;  %3703 = vmatprep.mubr.bf16.mxu0 %v13905_v56  ;;  %v17617_v22 = vld [vmem:[#allocation15_spill] sm:$0xff]  ;;  %v17634_v13 = vld [vmem:[#allocation22_spill] sm:$0xff] }
 0x701   :  { %v3362_v21 = vpop.f32.mrb[2].mxu1  ;;  %v17636_v57 = vld [vmem:[#allocation24_spill] sm:$0xff] }
 0x702   :  { %v3588_v58 = vadd.f32 %v3587_v45, %v3362_v21  ;;  %v3364_v46 = vpop.f32.mrb[3].mxu1  ;;  %v17621_v45 = vld [vmem:[#allocation17_spill] sm:$0xff]  ;;  %v17637_v21 = vld [vmem:[#allocation58_spill] sm:$0xff] }
 0x703   :  { %v17639_v46 = vld [vmem:[#allocation25_spill] sm:$0xff] }
 0x704   :  { %v3635_v34 = vpack.c.bf16 %v3588_v58, %v3585_v29  ;;  %v17635_v29 = vld [vmem:[#allocation56_spill] sm:$0xff]  ;;  %v17638_v58 = vld [vmem:[#allocation59_spill] sm:$0xff] }
 0x706   :  { %10485 = vmatprep.subr.bf16.mxu1 %v3635_v34 }
 0x707   :  { %3704 = vmatmul.mubr.bf16.gmra.mrb[224].mxu0 %v13909_v25  ;;  %v3367_v3 = vpop.f32.mrb[4].mxu1  ;;  %10486 = vmatpush3.bf16.msra.mxu1 %v3635_v34  ;;  %v17640_v34 = vld [vmem:[#allocation26_spill] sm:$0xff] }
 0x708   :  { %v3593_v33 = vadd.f32 %v10471_v18, %v3367_v3  ;;  %v3369_v12 = vpop.f32.mrb[5].mxu1  ;;  %3711 = vmatprep.mubr.bf16.mxu0 %v13913_v24  ;;  %v17615_v18 = vld [vmem:[#allocation42_spill] sm:$0xff]  ;;  %v17641_v3 = vld [vmem:[#allocation27_spill] sm:$0xff] }
 0x709   :  { %v3370_v31 = vpop.f32.mrb[6].mxu1  ;;  %v14209_v12 = vld [vmem:[#allocation2 + $0x8] ss:$12 sps:$4 sm:$0xff]  }
 0x70a   :  { %v3596_v0 = vadd.f32 %v10472_v62, %v3370_v31  ;;  %v3372_v49 = vpop.f32.mrb[7].mxu1  ;;  %v17620_v62 = vld [vmem:[#allocation49_spill] sm:$0xff] }
 0x70c   :  { %v3636_v10 = vpack.c.bf16 %v3596_v0, %v3593_v33  ;;  %v17642_v33 = vld [vmem:[#allocation28_spill] sm:$0xff] }
 0x70e   :  { %10487 = vmatprep.subr.bf16.mxu1 %v3636_v10 }
 0x70f   :  { %3712 = vmatmul.mubr.bf16.gmra.mrb[228].mxu0 %v13917_v41  ;;  %v3375_v56 = vpop.f32.mrb[8].mxu1  ;;  %10488 = vmatpush3.bf16.msra.mxu1 %v3636_v10 }
 0x710   :  { %v3601_v59 = vadd.f32 %v3600_v1, %v3375_v56  ;;  %v3377_v42 = vpop.f32.mrb[9].mxu1  ;;  %3719 = vmatprep.mubr.bf16.mxu0 %v13921_v2  ;;  %v17599_v2 = vld [vmem:[#allocation6_spill] sm:$0xff]  ;;  %v17628_v1 = vld [vmem:[#allocation55_spill] sm:$0xff] }
 0x711   :  { %v3378_v25 = vpop.f32.mrb[10].mxu1 }
 0x712   :  { %v3604_v51 = vadd.f32 %v3603_v40, %v3378_v25  ;;  %v3380_v35 = vpop.f32.mrb[11].mxu1  ;;  %v17632_v40 = vld [vmem:[#allocation57_spill] sm:$0xff] }
 0x714   :  { %v3637_v61 = vpack.c.bf16 %v3604_v51, %v3601_v59 }
 0x716   :  { %10489 = vmatprep.subr.bf16.mxu1 %v3637_v61 }
 0x717   :  { %v3383_v32 = vpop.f32.mrb[12].mxu1  ;;  %3720 = vmatmul.mubr.bf16.gmra.mrb[232].mxu0 %v13925_v36  ;;  %10490 = vmatpush3.bf16.msra.mxu1 %v3637_v61  ;;  %v17600_v36 = vld [vmem:[#allocation7_spill] sm:$0xff] }
 0x718   :  { %v3609_v24 = vadd.f32 %v10475_v17, %v3383_v32  ;;  %v3385_v8 = vpop.f32.mrb[13].mxu1  ;;  %3727 = vmatprep.mubr.bf16.mxu0 %v13929_v14  ;;  %v17601_v14 = vld [vmem:[#allocation8_spill] sm:$0xff]  ;;  %v17626_v17 = vld [vmem:[#allocation18_spill] sm:$0xff] }
 0x719   :  { %v3386_v41 = vpop.f32.mrb[14].mxu1 }
 0x71a   :  { %v3612_v52 = vadd.f32 %v10476_v38, %v3386_v41  ;;  %v3388_v44 = vpop.f32.mrb[15].mxu1  ;;  %v17631_v38 = vld [vmem:[#allocation54_spill] sm:$0xff] }
 0x71c   :  { %v3638_v27 = vpack.c.bf16 %v3612_v52, %v3609_v24 }
 0x71e   :  { %10491 = vmatprep.subr.bf16.mxu1 %v3638_v27 }
 0x71f   :  { %3728 = vmatmul.mubr.bf16.gmra.mrb[236].mxu0 %v13933_v19  ;;  %10492 = vmatpush3.bf16.msra.mxu1 %v3638_v27  ;;  %v17602_v19 = vld [vmem:[#allocation29_spill] sm:$0xff] }
 0x720   :  { %3735 = vmatprep.mubr.bf16.mxu0 %v13937_v39  ;;  %4113 = vmatprep.subr.bf16.mxu1 %v17499_v28  ;;  %v17603_v39 = vld [vmem:[#allocation30_spill] sm:$0xff] }
 0x722   :  { %10494 = vmatmul.mubr.bf16.vlgmr.msra.gmra.mrb[16].mxu1 %v13944_v6  ;;  %v17605_v6 = vld [vmem:[#allocation9_spill] sm:$0xff] }
 0x723   :  { %10497 = vmatprep.mubr.bf16.mxu1 %v13950_v53  ;;  %v17607_v53 = vld [vmem:[#allocation34_spill] sm:$0xff] }
 0x727   :  { %3736 = vmatmul.mubr.bf16.gmra.mrb[240].mxu0 %v13941_v43  ;;  %v17604_v43 = vld [vmem:[#allocation10_spill] sm:$0xff] }
 0x728   :  { %3743 = vmatprep.mubr.bf16.mxu0 %v13947_v54  ;;  %v17606_v54 = vld [vmem:[#allocation33_spill] sm:$0xff] }
 0x72a   :  { %10498 = vmatmul.mubr.bf16.gmra.mrb[20].mxu1 %v13956_v26  ;;  %v17609_v26 = vld [vmem:[#allocation5_spill] sm:$0xff] }
 0x72b   :  { %10501 = vmatprep.mubr.bf16.mxu1 %v13962_v50  ;;  %v17611_v50 = vld [vmem:[#allocation38_spill] sm:$0xff] }
 0x72f   :  { %3744 = vmatmul.mubr.bf16.gmra.mrb[244].mxu0 %v13953_v9  ;;  %v17608_v9 = vld [vmem:[#allocation11_spill] sm:$0xff] }
 0x730   :  { %3751 = vmatprep.mubr.bf16.mxu0 %v13959_v60  ;;  %v17610_v60 = vld [vmem:[#allocation37_spill] sm:$0xff] }
 0x732   :  { %10502 = vmatmul.mubr.bf16.gmra.mrb[24].mxu1 %v13968_v48  ;;  %v17613_v48 = vld [vmem:[#allocation13_spill] sm:$0xff] }
 0x733   :  { %10505 = vmatprep.mubr.bf16.mxu1 %v13974_v5  ;;  %v17614_v5 = vld [vmem:[#allocation12_spill] sm:$0xff] }
 0x737   :  { %3752 = vmatmul.mubr.bf16.gmra.mrb[248].mxu0 %v13965_v63  ;;  %v17612_v63 = vld [vmem:[#allocation41_spill] sm:$0xff] }
 0x738   :  { %3759 = vmatprep.mubr.bf16.mxu0 %v17599_v2 }
 0x73a   :  { %10506 = vmatmul.mubr.bf16.gmra.mrb[28].mxu1 %v17600_v36 }
 0x73b   :  { %10509 = vmatprep.mubr.bf16.mxu1 %v17601_v14 }
 0x73f   :  { %3760 = vmatmul.mubr.bf16.gmra.mrb[252].mxu0 %v17602_v19 }
 0x740   :  { %3767 = vmatprep.mubr.bf16.mxu0 %v17603_v39 }
 0x742   :  { %10510 = vmatmul.mubr.bf16.gmra.mrb[32].mxu1 %v17604_v43 }
 0x743   :  { %10513 = vmatprep.mubr.bf16.mxu1 %v17605_v6 }
 0x747   :  { %3768 = vmatmul.mubr.bf16.gmra.mrb[0].mxu0 %v17606_v54 }
 0x748   :  { %3775 = vmatprep.mubr.bf16.mxu0 %v17607_v53 }
 0x74a   :  { %10514 = vmatmul.mubr.bf16.gmra.mrb[36].mxu1 %v17608_v9 }
 0x74b   :  { %10517 = vmatprep.mubr.bf16.mxu1 %v17609_v26 }
 0x74f   :  { %3776 = vmatmul.mubr.bf16.gmra.mrb[4].mxu0 %v17610_v60 }
 0x750   :  { %3783 = vmatprep.mubr.bf16.mxu0 %v17611_v50 }
 0x752   :  { %10518 = vmatmul.mubr.bf16.gmra.mrb[40].mxu1 %v17612_v63 }
 0x753   :  { %10521 = vmatprep.mubr.bf16.mxu1 %v17613_v48 }
 0x757   :  { %3784 = vmatmul.mubr.bf16.gmra.mrb[8].mxu0 %v17614_v5 }
 0x758   :  { %3791 = vmatprep.mubr.bf16.mxu0 %v17615_v18 }
 0x75a   :  { %10522 = vmatmul.mubr.bf16.gmra.mrb[44].mxu1 %v17616_v7 }
 0x75b   :  { %10525 = vmatprep.mubr.bf16.mxu1 %v17617_v22 }
 0x75f   :  { %3792 = vmatmul.mubr.bf16.gmra.mrb[12].mxu0 %v17618_v37 }
 0x760   :  { %3799 = vmatprep.mubr.bf16.mxu0 %v17619_v30 }
 0x762   :  { %10526 = vmatmul.mubr.bf16.gmra.mrb[48].mxu1 %v17620_v62 }
 0x763   :  { %10529 = vmatprep.mubr.bf16.mxu1 %v17621_v45 }
 0x767   :  { %3800 = vmatmul.mubr.bf16.gmra.mrb[16].mxu0 %v17622_v15 }
 0x768   :  { %3807 = vmatprep.mubr.bf16.mxu0 %v17623_v47 }
 0x76a   :  { %10530 = vmatmul.mubr.bf16.gmra.mrb[52].mxu1 %v17624_v20 }
 0x76b   :  { %10533 = vmatprep.mubr.bf16.mxu1 %v17625_v55 }
 0x76f   :  { %3808 = vmatmul.mubr.bf16.gmra.mrb[20].mxu0 %v17626_v17 }
 0x770   :  { %3815 = vmatprep.mubr.bf16.mxu0 %v17627_v16 }
 0x772   :  { %10534 = vmatmul.mubr.bf16.gmra.mrb[56].mxu1 %v17628_v1 }
 0x773   :  { %10537 = vmatprep.mubr.bf16.mxu1 %v17629_v4 }
 0x777   :  { %3816 = vmatmul.mubr.bf16.gmra.mrb[24].mxu0 %v17630_v23 }
 0x778   :  { %3823 = vmatprep.mubr.bf16.mxu0 %v17631_v38 }
 0x77a   :  { %10538 = vmatmul.mubr.bf16.gmra.mrb[60].mxu1 %v17632_v40 }
 0x77b   :  { %4145 = vmatprep.mubr.bf16.mxu1 %v17633_v11 }
 0x77f   :  { %3824 = vmatmul.mubr.bf16.gmra.mrb[28].mxu0 %v17634_v13 }
 0x780   :  { %3831 = vmatprep.mubr.bf16.mxu0 %v17635_v29 }
 0x787   :  { %3832 = vmatmul.mubr.bf16.gmra.mrb[32].mxu0 %v17636_v57 }
 0x788   :  { %3839 = vmatprep.mubr.bf16.mxu0 %v17637_v21 }
 0x78f   :  { %3840 = vmatmul.mubr.bf16.gmra.mrb[36].mxu0 %v17638_v58 }
 0x790   :  { %3847 = vmatprep.mubr.bf16.mxu0 %v17639_v46 }
 0x797   :  { %3848 = vmatmul.mubr.bf16.gmra.mrb[40].mxu0 %v17640_v34 }
 0x798   :  { %3855 = vmatprep.mubr.bf16.mxu0 %v17641_v3 }
 0x79f   :  { %3856 = vmatmul.mubr.bf16.gmra.mrb[44].mxu0 %v17642_v33 }
 0x7a0   :  { %10557 = vmatprep.mubr.bf16.mxu0 %v14209_v12 }
 0x7ba   :  { %v3673_v31 = vpop.f32.mrb[208].mxu0 }
 0x7bb   :  { %v3675_v0 = vpop.f32.mrb[209].mxu0 }
 0x7bc   :  { %v3676_v49 = vpop.f32.mrb[210].mxu0 }
 0x7bd   :  { %v3678_v10 = vpop.f32.mrb[211].mxu0 }
 0x7c2   :  { %v3681_v56 = vpop.f32.mrb[212].mxu0 }
 0x7c3   :  { %v3683_v59 = vpop.f32.mrb[213].mxu0 }
 0x7c4   :  { %v3684_v42 = vpop.f32.mrb[214].mxu0 }
 0x7c5   :  { %v3686_v25 = vpop.f32.mrb[215].mxu0 }
 0x7ca   :  { %v3689_v51 = vpop.f32.mrb[216].mxu0 }
 0x7cb   :  { %v3691_v35 = vpop.f32.mrb[217].mxu0 }
 0x7cc   :  { %v3692_v61 = vpop.f32.mrb[218].mxu0 }
 0x7cd   :  { %v3694_v32 = vpop.f32.mrb[219].mxu0 }
 0x7d2   :  { %v3697_v24 = vpop.f32.mrb[220].mxu0 }
 0x7d3   :  { %v3699_v8 = vpop.f32.mrb[221].mxu0 }
 0x7d4   :  { %v3700_v41 = vpop.f32.mrb[222].mxu0 }
 0x7d5   :  { %v3702_v52 = vpop.f32.mrb[223].mxu0 }
 0x7da   :  { %v3705_v44 = vpop.f32.mrb[224].mxu0 }
 0x7db   :  { %v3707_v27 = vpop.f32.mrb[225].mxu0 }
 0x7dc   :  { %v3708_v2 = vpop.f32.mrb[226].mxu0 }
 0x7dd   :  { %v3710_v36 = vpop.f32.mrb[227].mxu0 }
 0x7e2   :  { %v3713_v14 = vpop.f32.mrb[228].mxu0 }
 0x7e3   :  { %v3715_v19 = vpop.f32.mrb[229].mxu0 }
 0x7e4   :  { %v3716_v39 = vpop.f32.mrb[230].mxu0 }
 0x7e5   :  { %v3718_v43 = vpop.f32.mrb[231].mxu0 }
 0x7ea   :  { %v14212_v6 = vpop.f32.mrb[232].mxu0 }
 0x7eb   :  { %v3723_v54 = vpop.f32.mrb[233].mxu0 }
 0x7ec   :  { %v14214_v53 = vpop.f32.mrb[234].mxu0 }
 0x7ed   :  { %v3726_v9 = vpop.f32.mrb[235].mxu0 }
 0x7f2   :  { %v3729_v26 = vpop.f32.mrb[236].mxu0 }
 0x7f3   :  { %v3731_v60 = vpop.f32.mrb[237].mxu0 }
 0x7f4   :  { %v3732_v50 = vpop.f32.mrb[238].mxu0 }
 0x7f5   :  { %v3734_v63 = vpop.f32.mrb[239].mxu0  ;;  %v10495_v48 = vpop.f32.mrb[16].mxu1 }
 0x7f6   :  { %v3907_v5 = vadd.f32 %v10495_v48, %v3681_v56  ;;  %v3898_v18 = vpop.f32.mrb[17].mxu1 }
 0x7f7   :  { %v3899_v7 = vadd.f32 %v3898_v18, %v3673_v31  ;;  %v10496_v22 = vpop.f32.mrb[18].mxu1 }
 0x7f8   :  { %v3910_v37 = vadd.f32 %v10496_v22, %v3684_v42  ;;  %v3901_v30 = vpop.f32.mrb[19].mxu1 }
 0x7f9   :  { %v3902_v62 = vadd.f32 %v3901_v30, %v3676_v49 }
 0x7fa   :  { %v4090_v45 = vpack.c.bf16 %v3910_v37, %v3907_v5  ;;  %v14216_v15 = vpop.f32.mrb[240].mxu0 }
 0x7fb   :  { %v4089_v47 = vpack.c.bf16 %v3902_v62, %v3899_v7  ;;  %v3739_v20 = vpop.f32.mrb[241].mxu0 }
 0x7fc   :  { %v14218_v55 = vpop.f32.mrb[242].mxu0 }
 0x7fd   :  { %v3742_v17 = vpop.f32.mrb[243].mxu0  ;;  %v10499_v16 = vpop.f32.mrb[20].mxu1  ;;  %4114 = vmatpush1.bf16.msra.mxu1 %v4089_v47 }
 0x7fe   :  { %v3923_v1 = vadd.f32 %v10499_v16, %v3697_v24  ;;  %v3914_v4 = vpop.f32.mrb[21].mxu1  ;;  %4115 = vmatprep.subr.bf16.mxu1 %v17499_v28 }
 0x7ff   :  { %v3915_v23 = vadd.f32 %v3914_v4, %v3689_v51  ;;  %v10500_v38 = vpop.f32.mrb[22].mxu1 }
 0x800   :  { %v3926_v40 = vadd.f32 %v10500_v38, %v3700_v41  ;;  %v3917_v11 = vpop.f32.mrb[23].mxu1 }
 0x801   :  { %v3918_v13 = vadd.f32 %v3917_v11, %v3692_v61  ;;  %4116 = vmatpush1.bf16.msra.mxu1 %v4090_v45 }
 0x802   :  { %v4092_v29 = vpack.c.bf16 %v3926_v40, %v3923_v1  ;;  %v3745_v57 = vpop.f32.mrb[244].mxu0  ;;  %4117 = vmatprep.subr.bf16.mxu1 %v17499_v28 }
 0x803   :  { %v4091_v21 = vpack.c.bf16 %v3918_v13, %v3915_v23  ;;  %v3747_v58 = vpop.f32.mrb[245].mxu0 }
 0x804   :  { %v3748_v46 = vpop.f32.mrb[246].mxu0 }
 0x805   :  { %v3750_v34 = vpop.f32.mrb[247].mxu0  ;;  %v10503_v3 = vpop.f32.mrb[24].mxu1  ;;  %4118 = vmatpush1.bf16.msra.mxu1 %v4091_v21 }
 0x806   :  { %v3939_v33 = vadd.f32 %v10503_v3, %v3713_v14  ;;  %v3930_v31 = vpop.f32.mrb[25].mxu1  ;;  %4119 = vmatprep.subr.bf16.mxu1 %v17499_v28 }
 0x807   :  { %v3931_v0 = vadd.f32 %v3930_v31, %v3705_v44  ;;  %v10504_v49 = vpop.f32.mrb[26].mxu1 }
 0x808   :  { %v3942_v10 = vadd.f32 %v10504_v49, %v3716_v39  ;;  %v3933_v56 = vpop.f32.mrb[27].mxu1 }
 0x809   :  { %v3934_v59 = vadd.f32 %v3933_v56, %v3708_v2  ;;  %4120 = vmatpush1.bf16.msra.mxu1 %v4092_v29 }
 0x80a   :  { %v4094_v42 = vpack.c.bf16 %v3942_v10, %v3939_v33  ;;  %v3753_v25 = vpop.f32.mrb[248].mxu0  ;;  %4121 = vmatprep.subr.bf16.mxu1 %v17499_v28 }
 0x80b   :  { %v4093_v51 = vpack.c.bf16 %v3934_v59, %v3931_v0  ;;  %v3755_v35 = vpop.f32.mrb[249].mxu0 }
 0x80c   :  { %v3756_v61 = vpop.f32.mrb[250].mxu0 }
 0x80d   :  { %v3758_v32 = vpop.f32.mrb[251].mxu0  ;;  %v10507_v24 = vpop.f32.mrb[28].mxu1  ;;  %4122 = vmatpush1.bf16.msra.mxu1 %v4093_v51 }
 0x80e   :  { %v3955_v8 = vadd.f32 %v10507_v24, %v3729_v26  ;;  %v3946_v41 = vpop.f32.mrb[29].mxu1  ;;  %4123 = vmatprep.subr.bf16.mxu1 %v17499_v28 }
 0x80f   :  { %v3947_v52 = vadd.f32 %v3946_v41, %v14212_v6  ;;  %v10508_v44 = vpop.f32.mrb[30].mxu1 }
 0x810   :  { %v3958_v27 = vadd.f32 %v10508_v44, %v3732_v50  ;;  %v3949_v2 = vpop.f32.mrb[31].mxu1 }
 0x811   :  { %v3950_v36 = vadd.f32 %v3949_v2, %v14214_v53  ;;  %4124 = vmatpush1.bf16.msra.mxu1 %v4094_v42 }
 0x812   :  { %v4096_v14 = vpack.c.bf16 %v3958_v27, %v3955_v8  ;;  %v3761_v19 = vpop.f32.mrb[252].mxu0  ;;  %4125 = vmatprep.subr.bf16.mxu1 %v17499_v28 }
 0x813   :  { %v4095_v39 = vpack.c.bf16 %v3950_v36, %v3947_v52  ;;  %v3763_v43 = vpop.f32.mrb[253].mxu0 }
 0x814   :  { %v3764_v54 = vpop.f32.mrb[254].mxu0 }
 0x815   :  { %v3766_v9 = vpop.f32.mrb[255].mxu0  ;;  %v10511_v26 = vpop.f32.mrb[32].mxu1  ;;  %4126 = vmatpush1.bf16.msra.mxu1 %v4095_v39 }
 0x816   :  { %v3971_v60 = vadd.f32 %v10511_v26, %v3745_v57  ;;  %v3962_v63 = vpop.f32.mrb[33].mxu1  ;;  %4127 = vmatprep.subr.bf16.mxu1 %v17499_v28 }
 0x817   :  { %v3963_v6 = vadd.f32 %v3962_v63, %v14216_v15  ;;  %v10512_v50 = vpop.f32.mrb[34].mxu1  ;;  %v14239_v63 = vld [vmem:[#allocation2] ss:$12 sps:$4 sm:$0xff]  }
 0x818   :  { %v3974_v48 = vadd.f32 %v10512_v50, %v3748_v46  ;;  %v3965_v53 = vpop.f32.mrb[35].mxu1 }
 0x819   :  { %v3966_v5 = vadd.f32 %v3965_v53, %v14218_v55  ;;  %4128 = vmatpush1.bf16.msra.mxu1 %v4096_v14 }
 0x81a   :  { %v4098_v18 = vpack.c.bf16 %v3974_v48, %v3971_v60  ;;  %v3769_v7 = vpop.f32.mrb[0].mxu0  ;;  %4129 = vmatprep.subr.bf16.mxu1 %v17499_v28  ;;  %v14242_v48 = vld [vmem:[#allocation2 + $0x1c] ss:$12 sps:$4 sm:$0xff]  }
 0x81b   :  { %v4097_v22 = vpack.c.bf16 %v3966_v5, %v3963_v6  ;;  %v3771_v37 = vpop.f32.mrb[1].mxu0 }
 0x81c   :  { %v3772_v30 = vpop.f32.mrb[2].mxu0 }
 0x81d   :  { %v3774_v62 = vpop.f32.mrb[3].mxu0  ;;  %v10515_v45 = vpop.f32.mrb[36].mxu1  ;;  %4130 = vmatpush1.bf16.msra.mxu1 %v4097_v22 }
 0x81e   :  { %v3987_v47 = vadd.f32 %v10515_v45, %v3761_v19  ;;  %v3978_v20 = vpop.f32.mrb[37].mxu1  ;;  %4131 = vmatprep.subr.bf16.mxu1 %v17499_v28 }
 0x81f   :  { %v3979_v15 = vadd.f32 %v3978_v20, %v3753_v25  ;;  %v10516_v17 = vpop.f32.mrb[38].mxu1 }
 0x820   :  { %v3990_v16 = vadd.f32 %v10516_v17, %v3764_v54  ;;  %v3981_v1 = vpop.f32.mrb[39].mxu1  ;;  %v14248_v17 = vld [vmem:[#allocation2 + $0x34] ss:$12 sps:$4 sm:$0xff]  }
 0x821   :  { %v3982_v55 = vadd.f32 %v3981_v1, %v3756_v61  ;;  %4132 = vmatpush1.bf16.msra.mxu1 %v4098_v18 }
 0x822   :  { %v4100_v4 = vpack.c.bf16 %v3990_v16, %v3987_v47  ;;  %v3777_v23 = vpop.f32.mrb[4].mxu0  ;;  %4133 = vmatprep.subr.bf16.mxu1 %v17499_v28  ;;  %v14245_v47 = vld [vmem:[#allocation2 + $0x18] ss:$12 sps:$4 sm:$0xff]  }
 0x823   :  { %v4099_v38 = vpack.c.bf16 %v3982_v55, %v3979_v15  ;;  %v3779_v40 = vpop.f32.mrb[5].mxu0 }
 0x824   :  { %v3780_v11 = vpop.f32.mrb[6].mxu0 }
 0x825   :  { %v3782_v13 = vpop.f32.mrb[7].mxu0  ;;  %v10519_v29 = vpop.f32.mrb[40].mxu1  ;;  %4134 = vmatpush1.bf16.msra.mxu1 %v4099_v38 }
 0x826   :  { %v4003_v57 = vadd.f32 %v10519_v29, %v3777_v23  ;;  %v3994_v21 = vpop.f32.mrb[41].mxu1  ;;  %4135 = vmatprep.subr.bf16.mxu1 %v17499_v28  ;;  %v14251_v29 = vld [vmem:[#allocation2 + $0x30] ss:$12 sps:$4 sm:$0xff]  }
 0x827   :  { %v3995_v58 = vadd.f32 %v3994_v21, %v3769_v7  ;;  %v10520_v46 = vpop.f32.mrb[42].mxu1 }
 0x828   :  { %v4006_v34 = vadd.f32 %v10520_v46, %v3780_v11  ;;  %v3997_v3 = vpop.f32.mrb[43].mxu1 }
 0x829   :  { %v3998_v33 = vadd.f32 %v3997_v3, %v3772_v30  ;;  %4136 = vmatpush1.bf16.msra.mxu1 %v4100_v4 }
 0x82a   :  { %v4102_v31 = vpack.c.bf16 %v4006_v34, %v4003_v57  ;;  %v3785_v0 = vpop.f32.mrb[8].mxu0  ;;  %4137 = vmatprep.subr.bf16.mxu1 %v17499_v28 }
 0x82b   :  { %v4101_v49 = vpack.c.bf16 %v3998_v33, %v3995_v58  ;;  %v3787_v10 = vpop.f32.mrb[9].mxu0  ;;  %v14254_v58 = vld [vmem:[#allocation2 + $0x4c] ss:$12 sps:$4 sm:$0xff]  }
 0x82c   :  { %v3788_v56 = vpop.f32.mrb[10].mxu0 }
 0x82d   :  { %v3790_v59 = vpop.f32.mrb[11].mxu0  ;;  %v10523_v42 = vpop.f32.mrb[44].mxu1  ;;  %4138 = vmatpush1.bf16.msra.mxu1 %v4101_v49 }
 0x82e   :  { %v4010_v25 = vpop.f32.mrb[45].mxu1  ;;  %4139 = vmatprep.subr.bf16.mxu1 %v17499_v28  ;;  %v14257_v59 = vld [vmem:[#allocation2 + $0x48] ss:$12 sps:$4 sm:$0xff]  }
 0x82f   :  { %v4011_v51 = vadd.f32 %v4010_v25, %v3785_v0  ;;  %v10524_v35 = vpop.f32.mrb[46].mxu1 }
 0x830   :  { %v4013_v61 = vpop.f32.mrb[47].mxu1 }
 0x831   :  { %v4014_v32 = vadd.f32 %v4013_v61, %v3788_v56  ;;  %4140 = vmatpush1.bf16.msra.mxu1 %v4102_v31 }
 0x832   :  { %v3793_v24 = vpop.f32.mrb[12].mxu0  ;;  %4141 = vmatprep.subr.bf16.mxu1 %v17499_v28 }
 0x833   :  { %v4103_v8 = vpack.c.bf16 %v4014_v32, %v4011_v51  ;;  %v4019_v41 = vadd.f32 %v10523_v42, %v3793_v24  ;;  %v3795_v52 = vpop.f32.mrb[13].mxu0  ;;  %v14260_v51 = vld [vmem:[#allocation2 + $0x64] ss:$12 sps:$4 sm:$0xff]  }
 0x834   :  { %v3796_v44 = vpop.f32.mrb[14].mxu0 }
 0x835   :  { %v4022_v27 = vadd.f32 %v10524_v35, %v3796_v44  ;;  %v3798_v2 = vpop.f32.mrb[15].mxu0  ;;  %4142 = vmatpush1.bf16.msra.mxu1 %v4103_v8  ;;  %v10527_v36 = vpop.f32.mrb[48].mxu1 }
 0x836   :  { %v4026_v14 = vpop.f32.mrb[49].mxu1  ;;  %4143 = vmatprep.subr.bf16.mxu1 %v17499_v28 }
 0x837   :  { %v4104_v19 = vpack.c.bf16 %v4022_v27, %v4019_v41  ;;  %v10528_v39 = vpop.f32.mrb[50].mxu1  ;;  %v14263_v41 = vld [vmem:[#allocation2 + $0x60] ss:$12 sps:$4 sm:$0xff]   ;;  %v14266_v27 = vld [vmem:[#allocation2 + $0x7c] ss:$12 sps:$4 sm:$0xff]  }
 0x838   :  { %v4029_v43 = vpop.f32.mrb[51].mxu1 }
 0x839   :  { %4144 = vmatpush1.bf16.msra.mxu1 %v4104_v19 }
 0x83a   :  { %v3801_v54 = vpop.f32.mrb[16].mxu0 }
 0x83b   :  { %v4027_v9 = vadd.f32 %v4026_v14, %v3801_v54  ;;  %v3803_v26 = vpop.f32.mrb[17].mxu0 }
 0x83c   :  { %v3804_v60 = vpop.f32.mrb[18].mxu0  ;;  %4146 = vmatmul.mubr.bf16.vlgmr.msra.gmra.mrb[64].mxu1 %v14239_v63  ;;  %v14272_v26 = vld [vmem:[#allocation2 + $0x94] ss:$12 sps:$4 sm:$0xff]  }
 0x83d   :  { %v4030_v6 = vadd.f32 %v4029_v43, %v3804_v60  ;;  %v3806_v50 = vpop.f32.mrb[19].mxu0  ;;  %4153 = vmatprep.mubr.bf16.mxu1 %v14242_v48  ;;  %v10531_v53 = vpop.f32.mrb[52].mxu1  ;;  %v14269_v43 = vld [vmem:[#allocation2 + $0x78] ss:$12 sps:$4 sm:$0xff]  }
 0x83e   :  { %v4042_v5 = vpop.f32.mrb[53].mxu1 }
 0x83f   :  { %v4105_v18 = vpack.c.bf16 %v4030_v6, %v4027_v9  ;;  %v10532_v7 = vpop.f32.mrb[54].mxu1 }
 0x840   :  { %v4045_v22 = vpop.f32.mrb[55].mxu1 }
 0x841   :  { %10541 = vmatprep.subr.bf16.mxu0 %v4105_v18 }
 0x842   :  { %v3809_v37 = vpop.f32.mrb[20].mxu0  ;;  %10542 = vmatpush3.bf16.msra.mxu0 %v4105_v18  ;;  %v14275_v18 = vld [vmem:[#allocation2 + $0x90] ss:$12 sps:$4 sm:$0xff]  }
 0x843   :  { %v4035_v30 = vadd.f32 %v10527_v36, %v3809_v37  ;;  %v3811_v62 = vpop.f32.mrb[21].mxu0  ;;  %v14278_v37 = vld [vmem:[#allocation2 + $0xac] ss:$12 sps:$4 sm:$0xff]  }
 0x844   :  { %v3812_v45 = vpop.f32.mrb[22].mxu0  ;;  %4154 = vmatmul.mubr.bf16.gmra.mrb[68].mxu1 %v14245_v47 }
 0x845   :  { %v4038_v20 = vadd.f32 %v10528_v39, %v3812_v45  ;;  %v3814_v15 = vpop.f32.mrb[23].mxu0  ;;  %4161 = vmatprep.mubr.bf16.mxu1 %v14248_v17  ;;  %v10535_v16 = vpop.f32.mrb[56].mxu1 }
 0x846   :  { %v4058_v1 = vpop.f32.mrb[57].mxu1 }
 0x847   :  { %v4106_v55 = vpack.c.bf16 %v4038_v20, %v4035_v30  ;;  %v10536_v4 = vpop.f32.mrb[58].mxu1 }
 0x848   :  { %v4061_v23 = vpop.f32.mrb[59].mxu1 }
 0x849   :  { %10543 = vmatprep.subr.bf16.mxu0 %v4106_v55 }
 0x84a   :  { %v3817_v38 = vpop.f32.mrb[24].mxu0  ;;  %10544 = vmatpush3.bf16.msra.mxu0 %v4106_v55 }
 0x84b   :  { %v4043_v40 = vadd.f32 %v4042_v5, %v3817_v38  ;;  %v3819_v11 = vpop.f32.mrb[25].mxu0  ;;  %v14288_v38 = vld [vmem:[#allocation2 + $0xc0] ss:$12 sps:$4 sm:$0xff]  }
 0x84c   :  { %v3820_v13 = vpop.f32.mrb[26].mxu0  ;;  %4162 = vmatmul.mubr.bf16.gmra.mrb[72].mxu1 %v14251_v29  ;;  %v14294_v11 = vld [vmem:[#allocation2 + $0xdc] ss:$12 sps:$4 sm:$0xff]  }
 0x84d   :  { %v4046_v57 = vadd.f32 %v4045_v22, %v3820_v13  ;;  %v3822_v21 = vpop.f32.mrb[27].mxu0  ;;  %4169 = vmatprep.mubr.bf16.mxu1 %v14254_v58  ;;  %v10539_v46 = vpop.f32.mrb[60].mxu1  ;;  %v14297_v13 = vld [vmem:[#allocation2 + $0x38] ss:$12 sps:$4 sm:$0xff]  }
 0x84e   :  { %v4074_v34 = vpop.f32.mrb[61].mxu1  ;;  %v14303_v21 = vld [vmem:[#allocation2 + $0x50] ss:$12 sps:$4 sm:$0xff]  }
 0x84f   :  { %v4107_v3 = vpack.c.bf16 %v4046_v57, %v4043_v40  ;;  %v10540_v33 = vpop.f32.mrb[62].mxu1  ;;  %v14291_v40 = vld [vmem:[#allocation2 + $0x20] ss:$12 sps:$4 sm:$0xff]   ;;  %v14300_v57 = vld [vmem:[#allocation2 + $0xd8] ss:$12 sps:$4 sm:$0xff]  }
 0x850   :  { %v4077_v31 = vpop.f32.mrb[63].mxu1 }
 0x851   :  { %10545 = vmatprep.subr.bf16.mxu0 %v4107_v3 }
 0x852   :  { %v3825_v0 = vpop.f32.mrb[28].mxu0  ;;  %10546 = vmatpush3.bf16.msra.mxu0 %v4107_v3  ;;  %v14312_v3 = vld [vmem:[#allocation2 + $0xf0] ss:$12 sps:$4 sm:$0xff]  }
 0x853   :  { %v4051_v49 = vadd.f32 %v10531_v53, %v3825_v0  ;;  %v3827_v10 = vpop.f32.mrb[29].mxu0  ;;  %v14321_v0 = vld [vmem:[#allocation2 + $0x98] ss:$12 sps:$4 sm:$0xff]  }
 0x854   :  { %v3828_v56 = vpop.f32.mrb[30].mxu0  ;;  %4170 = vmatmul.mubr.bf16.gmra.mrb[76].mxu1 %v14257_v59  ;;  %v14327_v10 = vld [vmem:[#allocation2 + $0xb0] ss:$12 sps:$4 sm:$0xff]  }
 0x855   :  { %v4054_v42 = vadd.f32 %v10532_v7, %v3828_v56  ;;  %v3830_v25 = vpop.f32.mrb[31].mxu0  ;;  %4177 = vmatprep.mubr.bf16.mxu1 %v14260_v51  ;;  %17645 = vst [vmem:[#allocation35_spill] sm:$0xff] %v14327_v10  ;;  %v14330_v56 = vld [vmem:[#allocation2 + $0x124] ss:$12 sps:$4 sm:$0xff]  }
 0x856   :  { %17646 = vst [vmem:[#allocation36_spill] sm:$0xff] %v14330_v56  ;;  %v14336_v25 = vld [vmem:[#allocation2 + $0x120] ss:$12 sps:$4 sm:$0xff]  }
 0x857   :  { %v4108_v35 = vpack.c.bf16 %v4054_v42, %v4051_v49  ;;  %v14324_v49 = vld [vmem:[#allocation2 + $0x108] ss:$12 sps:$4 sm:$0xff]   ;;  %17648 = vst [vmem:[#allocation40_spill] sm:$0xff] %v14336_v25 }
 0x858   :  { %17644 = vst [vmem:[#allocation32_spill] sm:$0xff] %v14324_v49  ;;  %v14333_v42 = vld [vmem:[#allocation2 + $0xc8] ss:$12 sps:$4 sm:$0xff]  }
 0x859   :  { %10547 = vmatprep.subr.bf16.mxu0 %v4108_v35  ;;  %17647 = vst [vmem:[#allocation39_spill] sm:$0xff] %v14333_v42 }
 0x85a   :  { %v3833_v61 = vpop.f32.mrb[32].mxu0  ;;  %10548 = vmatpush3.bf16.msra.mxu0 %v4108_v35  ;;  %v14339_v35 = vld [vmem:[#allocation2 + $0xe0] ss:$12 sps:$4 sm:$0xff]  }
 0x85b   :  { %v4059_v32 = vadd.f32 %v4058_v1, %v3833_v61  ;;  %v3835_v24 = vpop.f32.mrb[33].mxu0  ;;  %17649 = vst [vmem:[#allocation43_spill] sm:$0xff] %v14339_v35  ;;  %v14342_v61 = vld [vmem:[#allocation2 + $0x13c] ss:$12 sps:$4 sm:$0xff]  }
 0x85c   :  { %v3836_v8 = vpop.f32.mrb[34].mxu0  ;;  %4178 = vmatmul.mubr.bf16.gmra.mrb[80].mxu1 %v14263_v41  ;;  %17650 = vst [vmem:[#allocation44_spill] sm:$0xff] %v14342_v61  ;;  %v14348_v24 = vld [vmem:[#allocation2 + $0x138] ss:$12 sps:$4 sm:$0xff]  }
 0x85d   :  { %v4062_v52 = vadd.f32 %v4061_v23, %v3836_v8  ;;  %v3838_v44 = vpop.f32.mrb[35].mxu0  ;;  %4185 = vmatprep.mubr.bf16.mxu1 %v14266_v27  ;;  %17652 = vst [vmem:[#allocation48_spill] sm:$0xff] %v14348_v24  ;;  %v14351_v8 = vld [vmem:[#allocation2 + $0x110] ss:$12 sps:$4 sm:$0xff]  }
 0x85e   :  { %17653 = vst [vmem:[#allocation51_spill] sm:$0xff] %v14351_v8  ;;  %v14357_v44 = vld [vmem:[#allocation2 + $0x128] ss:$12 sps:$4 sm:$0xff]  }
 0x85f   :  { %v4109_v2 = vpack.c.bf16 %v4062_v52, %v4059_v32  ;;  %v14345_v32 = vld [vmem:[#allocation2 + $0xf8] ss:$12 sps:$4 sm:$0xff]   ;;  %v14354_v52 = vld [vmem:[#allocation2 + $0x154] ss:$12 sps:$4 sm:$0xff]   ;;  %17655 = vst [vmem:[#allocation7_spill] sm:$0xff] %v14357_v44 }
 0x860   :  { %17651 = vst [vmem:[#allocation47_spill] sm:$0xff] %v14345_v32  ;;  %17654 = vst [vmem:[#allocation6_spill] sm:$0xff] %v14354_v52 }
 0x861   :  { %10549 = vmatprep.subr.bf16.mxu0 %v4109_v2 }
 0x862   :  { %v3841_v36 = vpop.f32.mrb[36].mxu0  ;;  %10550 = vmatpush3.bf16.msra.mxu0 %v4109_v2  ;;  %v14360_v2 = vld [vmem:[#allocation2 + $0x150] ss:$12 sps:$4 sm:$0xff]  }
 0x863   :  { %v4067_v14 = vadd.f32 %v10535_v16, %v3841_v36  ;;  %v3843_v19 = vpop.f32.mrb[37].mxu0  ;;  %v14281_v16 = vld [vmem:[#allocation2 + $0xa8] ss:$12 sps:$4 sm:$0xff]   ;;  %17656 = vst [vmem:[#allocation8_spill] sm:$0xff] %v14360_v2  ;;  %v14363_v36 = vld [vmem:[#allocation2 + $0x140] ss:$12 sps:$4 sm:$0xff]  }
 0x864   :  { %v3844_v39 = vpop.f32.mrb[38].mxu0  ;;  %4186 = vmatmul.mubr.bf16.gmra.mrb[84].mxu1 %v14269_v43  ;;  %17657 = vst [vmem:[#allocation29_spill] sm:$0xff] %v14363_v36  ;;  %v14369_v19 = vld [vmem:[#allocation2 + $0x158] ss:$12 sps:$4 sm:$0xff]  }
 0x865   :  { %v4070_v54 = vadd.f32 %v10536_v4, %v3844_v39  ;;  %v3846_v9 = vpop.f32.mrb[39].mxu0  ;;  %4193 = vmatprep.mubr.bf16.mxu1 %v14272_v26  ;;  %v14284_v4 = vld [vmem:[#allocation2 + $0xc4] ss:$12 sps:$4 sm:$0xff]   ;;  %17659 = vst [vmem:[#allocation10_spill] sm:$0xff] %v14369_v19  ;;  %v14372_v39 = vld [vmem:[#allocation2 + $0x168] ss:$12 sps:$4 sm:$0xff]  }
 0x866   :  { %17660 = vst [vmem:[#allocation9_spill] sm:$0xff] %v14372_v39  ;;  %v14378_v9 = vld [vmem:[#allocation2 + $0x184] ss:$12 sps:$4 sm:$0xff]  }
 0x867   :  { %v4110_v60 = vpack.c.bf16 %v4070_v54, %v4067_v14  ;;  %v14366_v14 = vld [vmem:[#allocation2 + $0x16c] ss:$12 sps:$4 sm:$0xff]   ;;  %v14375_v54 = vld [vmem:[#allocation2 + $0x170] ss:$12 sps:$4 sm:$0xff]   ;;  %17662 = vst [vmem:[#allocation34_spill] sm:$0xff] %v14378_v9 }
 0x868   :  { %17658 = vst [vmem:[#allocation30_spill] sm:$0xff] %v14366_v14  ;;  %17661 = vst [vmem:[#allocation33_spill] sm:$0xff] %v14375_v54 }
 0x869   :  { %10551 = vmatprep.subr.bf16.mxu0 %v4110_v60 }
 0x86a   :  { %v3849_v6 = vpop.f32.mrb[40].mxu0  ;;  %10552 = vmatpush3.bf16.msra.mxu0 %v4110_v60  ;;  %v14381_v60 = vld [vmem:[#allocation2 + $0x188] ss:$12 sps:$4 sm:$0xff]  }
 0x86b   :  { %v4075_v50 = vadd.f32 %v4074_v34, %v3849_v6  ;;  %v3851_v53 = vpop.f32.mrb[41].mxu0  ;;  %v14309_v34 = vld [vmem:[#allocation2 + $0x68] ss:$12 sps:$4 sm:$0xff]   ;;  %17663 = vst [vmem:[#allocation11_spill] sm:$0xff] %v14381_v60  ;;  %v14384_v6 = vld [vmem:[#allocation2 + $0x180] ss:$12 sps:$4 sm:$0xff]  }
 0x86c   :  { %v3852_v5 = vpop.f32.mrb[42].mxu0  ;;  %4194 = vmatmul.mubr.bf16.gmra.mrb[88].mxu1 %v14275_v18  ;;  %17664 = vst [vmem:[#allocation5_spill] sm:$0xff] %v14384_v6  ;;  %v14390_v53 = vld [vmem:[#allocation2 + $0x19c] ss:$12 sps:$4 sm:$0xff]  }
 0x86d   :  { %v4078_v7 = vadd.f32 %v4077_v31, %v3852_v5  ;;  %v3854_v22 = vpop.f32.mrb[43].mxu0  ;;  %4201 = vmatprep.mubr.bf16.mxu1 %v14278_v37  ;;  %v14318_v31 = vld [vmem:[#allocation2 + $0x10c] ss:$12 sps:$4 sm:$0xff]   ;;  %17666 = vst [vmem:[#allocation38_spill] sm:$0xff] %v14390_v53 }
 0x86e   :  { %17643 = vst [vmem:[#allocation31_spill] sm:$0xff] %v14318_v31  ;;  %v14393_v5 = vld [vmem:[#allocation2 + $0x1b8] ss:$12 sps:$4 sm:$0xff]   ;;  %v14399_v22 = vld [vmem:[#allocation2 + $0x1b4] ss:$12 sps:$4 sm:$0xff]  }
 0x86f   :  { %v4111_v30 = vpack.c.bf16 %v4078_v7, %v4075_v50  ;;  %v14387_v50 = vld [vmem:[#allocation2 + $0x1a0] ss:$12 sps:$4 sm:$0xff]   ;;  %17667 = vst [vmem:[#allocation41_spill] sm:$0xff] %v14393_v5  ;;  %v14396_v7 = vld [vmem:[#allocation2 + $0x198] ss:$12 sps:$4 sm:$0xff]   ;;  %17669 = vst [vmem:[#allocation12_spill] sm:$0xff] %v14399_v22 }
 0x870   :  { %17665 = vst [vmem:[#allocation37_spill] sm:$0xff] %v14387_v50  ;;  %17668 = vst [vmem:[#allocation13_spill] sm:$0xff] %v14396_v7 }
 0x871   :  { %10553 = vmatprep.subr.bf16.mxu0 %v4111_v30 }
 0x872   :  { %v3857_v62 = vpop.f32.mrb[44].mxu0  ;;  %10554 = vmatpush3.bf16.msra.mxu0 %v4111_v30  ;;  %v14402_v30 = vld [vmem:[#allocation2 + $0x1d0] ss:$12 sps:$4 sm:$0xff]  }
 0x873   :  { %v4083_v45 = vadd.f32 %v10539_v46, %v3857_v62  ;;  %v3859_v20 = vpop.f32.mrb[45].mxu0  ;;  %v14306_v46 = vld [vmem:[#allocation2 + $0xf4] ss:$12 sps:$4 sm:$0xff]   ;;  %17670 = vst [vmem:[#allocation42_spill] sm:$0xff] %v14402_v30 }
 0x874   :  { %v3860_v15 = vpop.f32.mrb[46].mxu0  ;;  %4202 = vmatmul.mubr.bf16.gmra.mrb[92].mxu1 %v14281_v16  ;;  %v14405_v62 = vld [vmem:[#allocation2 + $0x1e8] ss:$12 sps:$4 sm:$0xff]   ;;  %v14411_v20 = vld [vmem:[#allocation2 + $0x1cc] ss:$12 sps:$4 sm:$0xff]  }
 0x875   :  { %v4086_v1 = vadd.f32 %v10540_v33, %v3860_v15  ;;  %v3862_v55 = vpop.f32.mrb[47].mxu0  ;;  %4209 = vmatprep.mubr.bf16.mxu1 %v14284_v4  ;;  %v14315_v33 = vld [vmem:[#allocation2 + $0x80] ss:$12 sps:$4 sm:$0xff]   ;;  %17671 = vst [vmem:[#allocation45_spill] sm:$0xff] %v14405_v62  ;;  %17673 = vst [vmem:[#allocation14_spill] sm:$0xff] %v14411_v20 }
 0x876   :  { %v14414_v15 = vld [vmem:[#allocation2 + $0x200] ss:$12 sps:$4 sm:$0xff]   ;;  %v14420_v55 = vld [vmem:[#allocation2 + $0x1c8] ss:$12 sps:$4 sm:$0xff]  }
 0x877   :  { %v4112_v23 = vpack.c.bf16 %v4086_v1, %v4083_v45  ;;  %v14408_v45 = vld [vmem:[#allocation2 + $0x1b0] ss:$12 sps:$4 sm:$0xff]   ;;  %17674 = vst [vmem:[#allocation46_spill] sm:$0xff] %v14414_v15  ;;  %v14417_v1 = vld [vmem:[#allocation2 + $0x218] ss:$12 sps:$4 sm:$0xff]   ;;  %17676 = vst [vmem:[#allocation17_spill] sm:$0xff] %v14420_v55 }
 0x878   :  { %17672 = vst [vmem:[#allocation15_spill] sm:$0xff] %v14408_v45  ;;  %17675 = vst [vmem:[#allocation49_spill] sm:$0xff] %v14417_v1 }
 0x879   :  { %10555 = vmatprep.subr.bf16.mxu0 %v4112_v23 }
 0x87a   :  { %10556 = vmatpush3.bf16.msra.mxu0 %v4112_v23  ;;  %v14423_v23 = vld [vmem:[#allocation2 + $0x1e4] ss:$12 sps:$4 sm:$0xff]  }
 0x87b   :  { %4587 = vmatprep.subr.bf16.mxu0 %v17499_v28  ;;  %17677 = vst [vmem:[#allocation16_spill] sm:$0xff] %v14423_v23 }
 0x87c   :  { %4210 = vmatmul.mubr.bf16.gmra.mrb[96].mxu1 %v14288_v38 }
 0x87d   :  { %10558 = vmatmul.mubr.bf16.vlgmr.msra.gmra.mrb[48].mxu0 %v14291_v40  ;;  %4217 = vmatprep.mubr.bf16.mxu1 %v14294_v11 }
 0x87e   :  { %10561 = vmatprep.mubr.bf16.mxu0 %v14297_v13 }
 0x884   :  { %4218 = vmatmul.mubr.bf16.gmra.mrb[100].mxu1 %v14300_v57 }
 0x885   :  { %10562 = vmatmul.mubr.bf16.gmra.mrb[52].mxu0 %v14303_v21  ;;  %4225 = vmatprep.mubr.bf16.mxu1 %v14306_v46 }
 0x886   :  { %10565 = vmatprep.mubr.bf16.mxu0 %v14309_v34 }
 0x88c   :  { %4226 = vmatmul.mubr.bf16.gmra.mrb[104].mxu1 %v14312_v3 }
 0x88d   :  { %10566 = vmatmul.mubr.bf16.gmra.mrb[56].mxu0 %v14315_v33  ;;  %4233 = vmatprep.mubr.bf16.mxu1 %v14318_v31 }
 0x88e   :  { %10569 = vmatprep.mubr.bf16.mxu0 %v14321_v0 }
 0x894   :  { %4234 = vmatmul.mubr.bf16.gmra.mrb[108].mxu1 %v14324_v49 }
 0x895   :  { %10570 = vmatmul.mubr.bf16.gmra.mrb[60].mxu0 %v14327_v10  ;;  %4241 = vmatprep.mubr.bf16.mxu1 %v14330_v56 }
 0x896   :  { %10573 = vmatprep.mubr.bf16.mxu0 %v14333_v42 }
 0x89c   :  { %4242 = vmatmul.mubr.bf16.gmra.mrb[112].mxu1 %v14336_v25 }
 0x89d   :  { %10574 = vmatmul.mubr.bf16.gmra.mrb[64].mxu0 %v14339_v35  ;;  %4249 = vmatprep.mubr.bf16.mxu1 %v14342_v61 }
 0x89e   :  { %10577 = vmatprep.mubr.bf16.mxu0 %v14345_v32 }
 0x8a4   :  { %4250 = vmatmul.mubr.bf16.gmra.mrb[116].mxu1 %v14348_v24 }
 0x8a5   :  { %10578 = vmatmul.mubr.bf16.gmra.mrb[68].mxu0 %v14351_v8  ;;  %4257 = vmatprep.mubr.bf16.mxu1 %v14354_v52 }
 0x8a6   :  { %10581 = vmatprep.mubr.bf16.mxu0 %v14357_v44 }
 0x8ac   :  { %4258 = vmatmul.mubr.bf16.gmra.mrb[120].mxu1 %v14360_v2 }
 0x8ad   :  { %10582 = vmatmul.mubr.bf16.gmra.mrb[72].mxu0 %v14363_v36  ;;  %4265 = vmatprep.mubr.bf16.mxu1 %v14366_v14 }
 0x8ae   :  { %10585 = vmatprep.mubr.bf16.mxu0 %v14369_v19 }
 0x8b4   :  { %4266 = vmatmul.mubr.bf16.gmra.mrb[124].mxu1 %v14372_v39 }
 0x8b5   :  { %10586 = vmatmul.mubr.bf16.gmra.mrb[76].mxu0 %v14375_v54  ;;  %4273 = vmatprep.mubr.bf16.mxu1 %v14378_v9 }
 0x8b6   :  { %10589 = vmatprep.mubr.bf16.mxu0 %v14381_v60 }
 0x8bc   :  { %4274 = vmatmul.mubr.bf16.gmra.mrb[128].mxu1 %v14384_v6 }
 0x8bd   :  { %10590 = vmatmul.mubr.bf16.gmra.mrb[80].mxu0 %v14387_v50  ;;  %4281 = vmatprep.mubr.bf16.mxu1 %v14390_v53 }
 0x8be   :  { %10593 = vmatprep.mubr.bf16.mxu0 %v14393_v5 }
 0x8c4   :  { %4282 = vmatmul.mubr.bf16.gmra.mrb[132].mxu1 %v14396_v7 }
 0x8c5   :  { %4289 = vmatprep.mubr.bf16.mxu1 %v14399_v22  ;;  %10594 = vmatmul.mubr.bf16.gmra.mrb[84].mxu0 %v14402_v30 }
 0x8c6   :  { %10597 = vmatprep.mubr.bf16.mxu0 %v14405_v62 }
 0x8cc   :  { %4290 = vmatmul.mubr.bf16.gmra.mrb[136].mxu1 %v14408_v45  ;;  %v14426_v45 = vld [vmem:[#allocation2 + $0x230] ss:$12 sps:$4 sm:$0xff]  }
 0x8cd   :  { %4297 = vmatprep.mubr.bf16.mxu1 %v14411_v20  ;;  %10598 = vmatmul.mubr.bf16.gmra.mrb[88].mxu0 %v14414_v15  ;;  %17678 = vst [vmem:[#allocation50_spill] sm:$0xff] %v14426_v45  ;;  %v14429_v20 = vld [vmem:[#allocation2 + $0x4] ss:$12 sps:$4 sm:$0xff]   ;;  %v14432_v15 = vld [vmem:[#allocation2 + $0x1e0] ss:$12 sps:$4 sm:$0xff]  }
 0x8ce   :  { %10601 = vmatprep.mubr.bf16.mxu0 %v14417_v1  ;;  %17679 = vst [vmem:[#allocation53_spill] sm:$0xff] %v14429_v20  ;;  %17680 = vst [vmem:[#allocation19_spill] sm:$0xff] %v14432_v15  ;;  %v14435_v1 = vld [vmem:[#allocation2 + $0x1fc] ss:$12 sps:$4 sm:$0xff]  }
 0x8cf   :  { %17681 = vst [vmem:[#allocation18_spill] sm:$0xff] %v14435_v1 }
 0x8d4   :  { %4298 = vmatmul.mubr.bf16.gmra.mrb[140].mxu1 %v14420_v55  ;;  %v14438_v55 = vld [vmem:[#allocation2 + $0x1f8] ss:$12 sps:$4 sm:$0xff]  }
 0x8d5   :  { %4305 = vmatprep.mubr.bf16.mxu1 %v14423_v23  ;;  %10602 = vmatmul.mubr.bf16.gmra.mrb[92].mxu0 %v14426_v45  ;;  %17682 = vst [vmem:[#allocation52_spill] sm:$0xff] %v14438_v55  ;;  %v14441_v23 = vld [vmem:[#allocation2 + $0x214] ss:$12 sps:$4 sm:$0xff]   ;;  %v14444_v45 = vld [vmem:[#allocation2 + $0x210] ss:$12 sps:$4 sm:$0xff]  }
 0x8d6   :  { %4619 = vmatprep.mubr.bf16.mxu0 %v14429_v20  ;;  %17683 = vst [vmem:[#allocation55_spill] sm:$0xff] %v14441_v23  ;;  %17684 = vst [vmem:[#allocation21_spill] sm:$0xff] %v14444_v45  ;;  %v14447_v20 = vld [vmem:[#allocation2 + $0x22c] ss:$12 sps:$4 sm:$0xff]  }
 0x8d7   :  { %17685 = vst [vmem:[#allocation20_spill] sm:$0xff] %v14447_v20 }
 0x8dc   :  { %4306 = vmatmul.mubr.bf16.gmra.mrb[144].mxu1 %v14432_v15  ;;  %v14450_v15 = vld [vmem:[#allocation2 + $0x228] ss:$12 sps:$4 sm:$0xff]  }
 0x8dd   :  { %4313 = vmatprep.mubr.bf16.mxu1 %v14435_v1  ;;  %17686 = vst [vmem:[#allocation54_spill] sm:$0xff] %v14450_v15 }
 0x8e4   :  { %4314 = vmatmul.mubr.bf16.gmra.mrb[148].mxu1 %v14438_v55 }
 0x8e5   :  { %4321 = vmatprep.mubr.bf16.mxu1 %v14441_v23 }
 0x8ec   :  { %4322 = vmatmul.mubr.bf16.gmra.mrb[152].mxu1 %v14444_v45 }
 0x8ed   :  { %4329 = vmatprep.mubr.bf16.mxu1 %v14447_v20 }
 0x8f4   :  { %4330 = vmatmul.mubr.bf16.gmra.mrb[156].mxu1 %v14450_v15 }
 0x8f5   :  { %10621 = vmatprep.mubr.bf16.mxu1 %v14209_v12 }
 0x90f   :  { %v4147_v1 = vpop.f32.mrb[64].mxu1 }
 0x910   :  { %v4149_v55 = vpop.f32.mrb[65].mxu1 }
 0x911   :  { %v4150_v22 = vpop.f32.mrb[66].mxu1 }
 0x912   :  { %v4152_v7 = vpop.f32.mrb[67].mxu1 }
 0x917   :  { %v4155_v62 = vpop.f32.mrb[68].mxu1 }
 0x918   :  { %v4157_v23 = vpop.f32.mrb[69].mxu1 }
 0x919   :  { %v4158_v30 = vpop.f32.mrb[70].mxu1 }
 0x91a   :  { %v4160_v53 = vpop.f32.mrb[71].mxu1 }
 0x91f   :  { %v4163_v6 = vpop.f32.mrb[72].mxu1 }
 0x920   :  { %v4165_v45 = vpop.f32.mrb[73].mxu1 }
 0x921   :  { %v4166_v5 = vpop.f32.mrb[74].mxu1 }
 0x922   :  { %v4168_v50 = vpop.f32.mrb[75].mxu1 }
 0x927   :  { %v4171_v9 = vpop.f32.mrb[76].mxu1 }
 0x928   :  { %v4173_v20 = vpop.f32.mrb[77].mxu1 }
 0x929   :  { %v4174_v39 = vpop.f32.mrb[78].mxu1 }
 0x92a   :  { %v4176_v60 = vpop.f32.mrb[79].mxu1 }
 0x92f   :  { %v4179_v54 = vpop.f32.mrb[80].mxu1 }
 0x930   :  { %v4181_v15 = vpop.f32.mrb[81].mxu1 }
 0x931   :  { %v4182_v14 = vpop.f32.mrb[82].mxu1 }
 0x932   :  { %v4184_v12 = vpop.f32.mrb[83].mxu1 }
 0x937   :  { %v4187_v2 = vpop.f32.mrb[84].mxu1 }
 0x938   :  { %v4189_v55 = vpop.f32.mrb[85].mxu1 }
 0x939   :  { %v4190_v19 = vpop.f32.mrb[86].mxu1 }
 0x93a   :  { %v4192_v7 = vpop.f32.mrb[87].mxu1 }
 0x93f   :  { %v14454_v36 = vpop.f32.mrb[88].mxu1 }
 0x940   :  { %v4197_v23 = vpop.f32.mrb[89].mxu1 }
 0x941   :  { %v14456_v53 = vpop.f32.mrb[90].mxu1 }
 0x942   :  { %v4200_v45 = vpop.f32.mrb[91].mxu1 }
 0x947   :  { %v4203_v52 = vpop.f32.mrb[92].mxu1 }
 0x948   :  { %v4205_v50 = vpop.f32.mrb[93].mxu1 }
 0x949   :  { %v14458_v24 = vpop.f32.mrb[94].mxu1 }
 0x94a   :  { %v4208_v20 = vpop.f32.mrb[95].mxu1 }
 0x94f   :  { %v14460_v60 = vpop.f32.mrb[96].mxu1 }
 0x950   :  { %v10559_v15 = vpop.f32.mrb[48].mxu0  ;;  %v4213_v44 = vpop.f32.mrb[97].mxu1 }
 0x951   :  { %v4381_v12 = vadd.f32 %v10559_v15, %v4155_v62  ;;  %v4372_v8 = vpop.f32.mrb[49].mxu0  ;;  %v14462_v55 = vpop.f32.mrb[98].mxu1 }
 0x952   :  { %v4373_v7 = vadd.f32 %v4372_v8, %v4147_v1  ;;  %v10560_v61 = vpop.f32.mrb[50].mxu0  ;;  %v4216_v25 = vpop.f32.mrb[99].mxu1 }
 0x953   :  { %v4384_v23 = vadd.f32 %v10560_v61, %v4158_v30  ;;  %v4375_v32 = vpop.f32.mrb[51].mxu0 }
 0x954   :  { %v4376_v35 = vadd.f32 %v4375_v32, %v4150_v22 }
 0x955   :  { %v4564_v45 = vpack.c.bf16 %v4384_v23, %v4381_v12 }
 0x956   :  { %v4563_v56 = vpack.c.bf16 %v4376_v35, %v4373_v7 }
 0x957   :  { %v4219_v50 = vpop.f32.mrb[100].mxu1 }
 0x958   :  { %v10563_v49 = vpop.f32.mrb[52].mxu0  ;;  %4588 = vmatpush1.bf16.msra.mxu0 %v4563_v56  ;;  %v4221_v20 = vpop.f32.mrb[101].mxu1 }
 0x959   :  { %v4397_v42 = vadd.f32 %v10563_v49, %v4171_v9  ;;  %v4388_v10 = vpop.f32.mrb[53].mxu0  ;;  %v4222_v31 = vpop.f32.mrb[102].mxu1  ;;  %4589 = vmatprep.subr.bf16.mxu0 %v17499_v28 }
 0x95a   :  { %v4389_v44 = vadd.f32 %v4388_v10, %v4163_v6  ;;  %v10564_v62 = vpop.f32.mrb[54].mxu0  ;;  %v4224_v15 = vpop.f32.mrb[103].mxu1 }
 0x95b   :  { %v4400_v8 = vadd.f32 %v10564_v62, %v4174_v39  ;;  %v4391_v1 = vpop.f32.mrb[55].mxu0 }
 0x95c   :  { %v4392_v25 = vadd.f32 %v4391_v1, %v4166_v5  ;;  %4590 = vmatpush1.bf16.msra.mxu0 %v4564_v45 }
 0x95d   :  { %v4566_v61 = vpack.c.bf16 %v4400_v8, %v4397_v42  ;;  %4591 = vmatprep.subr.bf16.mxu0 %v17499_v28 }
 0x95e   :  { %v4565_v35 = vpack.c.bf16 %v4392_v25, %v4389_v44 }
 0x95f   :  { %v4227_v32 = vpop.f32.mrb[104].mxu1 }
 0x960   :  { %v10567_v22 = vpop.f32.mrb[56].mxu0  ;;  %4592 = vmatpush1.bf16.msra.mxu0 %v4565_v35  ;;  %v4229_v56 = vpop.f32.mrb[105].mxu1 }
 0x961   :  { %v4413_v49 = vadd.f32 %v10567_v22, %v4187_v2  ;;  %v4404_v9 = vpop.f32.mrb[57].mxu0  ;;  %v4230_v30 = vpop.f32.mrb[106].mxu1  ;;  %4593 = vmatprep.subr.bf16.mxu0 %v17499_v28 }
 0x962   :  { %v4405_v10 = vadd.f32 %v4404_v9, %v4179_v54  ;;  %v10568_v6 = vpop.f32.mrb[58].mxu0  ;;  %v4232_v12 = vpop.f32.mrb[107].mxu1 }
 0x963   :  { %v4416_v39 = vadd.f32 %v10568_v6, %v4190_v19  ;;  %v4407_v7 = vpop.f32.mrb[59].mxu0 }
 0x964   :  { %v4408_v5 = vadd.f32 %v4407_v7, %v4182_v14  ;;  %4594 = vmatpush1.bf16.msra.mxu0 %v4566_v61 }
 0x965   :  { %v4568_v42 = vpack.c.bf16 %v4416_v39, %v4413_v49  ;;  %4595 = vmatprep.subr.bf16.mxu0 %v17499_v28 }
 0x966   :  { %v4567_v23 = vpack.c.bf16 %v4408_v5, %v4405_v10 }
 0x967   :  { %v4235_v45 = vpop.f32.mrb[108].mxu1 }
 0x968   :  { %v10571_v20 = vpop.f32.mrb[60].mxu0  ;;  %4596 = vmatpush1.bf16.msra.mxu0 %v4567_v23  ;;  %v4237_v44 = vpop.f32.mrb[109].mxu1 }
 0x969   :  { %v4429_v2 = vadd.f32 %v10571_v20, %v4203_v52  ;;  %v4420_v62 = vpop.f32.mrb[61].mxu0  ;;  %v4238_v15 = vpop.f32.mrb[110].mxu1  ;;  %4597 = vmatprep.subr.bf16.mxu0 %v17499_v28 }
 0x96a   :  { %v4421_v54 = vadd.f32 %v4420_v62, %v14454_v36  ;;  %v10572_v8 = vpop.f32.mrb[62].mxu0  ;;  %v4240_v19 = vpop.f32.mrb[111].mxu1 }
 0x96b   :  { %v4432_v14 = vadd.f32 %v10572_v8, %v14458_v24  ;;  %v4423_v1 = vpop.f32.mrb[63].mxu0 }
 0x96c   :  { %v4424_v25 = vadd.f32 %v4423_v1, %v14456_v53  ;;  %4598 = vmatpush1.bf16.msra.mxu0 %v4568_v42 }
 0x96d   :  { %v4570_v61 = vpack.c.bf16 %v4432_v14, %v4429_v2  ;;  %4599 = vmatprep.subr.bf16.mxu0 %v17499_v28 }
 0x96e   :  { %v4569_v35 = vpack.c.bf16 %v4424_v25, %v4421_v54 }
 0x96f   :  { %v4243_v22 = vpop.f32.mrb[112].mxu1 }
 0x970   :  { %v10575_v52 = vpop.f32.mrb[64].mxu0  ;;  %4600 = vmatpush1.bf16.msra.mxu0 %v4569_v35  ;;  %v4245_v56 = vpop.f32.mrb[113].mxu1 }
 0x971   :  { %v4445_v49 = vadd.f32 %v10575_v52, %v4219_v50  ;;  %v4436_v9 = vpop.f32.mrb[65].mxu0  ;;  %v4246_v10 = vpop.f32.mrb[114].mxu1  ;;  %4601 = vmatprep.subr.bf16.mxu0 %v17499_v28 }
 0x972   :  { %v4437_v36 = vadd.f32 %v4436_v9, %v14460_v60  ;;  %v10576_v24 = vpop.f32.mrb[66].mxu0  ;;  %v4248_v6 = vpop.f32.mrb[115].mxu1 }
 0x973   :  { %v4448_v12 = vadd.f32 %v10576_v24, %v4222_v31  ;;  %v4439_v53 = vpop.f32.mrb[67].mxu0 }
 0x974   :  { %v4440_v39 = vadd.f32 %v4439_v53, %v14462_v55  ;;  %4602 = vmatpush1.bf16.msra.mxu0 %v4570_v61 }
 0x975   :  { %v4572_v7 = vpack.c.bf16 %v4448_v12, %v4445_v49  ;;  %4603 = vmatprep.subr.bf16.mxu0 %v17499_v28 }
 0x976   :  { %v4571_v5 = vpack.c.bf16 %v4440_v39, %v4437_v36 }
 0x977   :  { %v4251_v42 = vpop.f32.mrb[116].mxu1 }
 0x978   :  { %v10579_v23 = vpop.f32.mrb[68].mxu0  ;;  %4604 = vmatpush1.bf16.msra.mxu0 %v4571_v5  ;;  %v4253_v50 = vpop.f32.mrb[117].mxu1 }
 0x979   :  { %v4461_v20 = vadd.f32 %v10579_v23, %v4235_v45  ;;  %v4452_v44 = vpop.f32.mrb[69].mxu0  ;;  %v4254_v2 = vpop.f32.mrb[118].mxu1  ;;  %4605 = vmatprep.subr.bf16.mxu0 %v17499_v28 }
 0x97a   :  { %v4453_v60 = vadd.f32 %v4452_v44, %v4227_v32  ;;  %v10580_v62 = vpop.f32.mrb[70].mxu0  ;;  %v4256_v31 = vpop.f32.mrb[119].mxu1 }
 0x97b   :  { %v4464_v54 = vadd.f32 %v10580_v62, %v4238_v15  ;;  %v4455_v8 = vpop.f32.mrb[71].mxu0 }
 0x97c   :  { %v4456_v55 = vadd.f32 %v4455_v8, %v4230_v30  ;;  %4606 = vmatpush1.bf16.msra.mxu0 %v4572_v7 }
 0x97d   :  { %v4574_v19 = vpack.c.bf16 %v4464_v54, %v4461_v20  ;;  %4607 = vmatprep.subr.bf16.mxu0 %v17499_v28 }
 0x97e   :  { %v4573_v14 = vpack.c.bf16 %v4456_v55, %v4453_v60 }
 0x97f   :  { %v4259_v1 = vpop.f32.mrb[120].mxu1 }
 0x980   :  { %v10583_v25 = vpop.f32.mrb[72].mxu0  ;;  %4608 = vmatpush1.bf16.msra.mxu0 %v4573_v14  ;;  %v4261_v61 = vpop.f32.mrb[121].mxu1 }
 0x981   :  { %v4477_v45 = vadd.f32 %v10583_v25, %v4251_v42  ;;  %v4468_v35 = vpop.f32.mrb[73].mxu0  ;;  %v4262_v52 = vpop.f32.mrb[122].mxu1  ;;  %4609 = vmatprep.subr.bf16.mxu0 %v17499_v28 }
 0x982   :  { %v4469_v32 = vadd.f32 %v4468_v35, %v4243_v22  ;;  %v10584_v56 = vpop.f32.mrb[74].mxu0  ;;  %v4264_v49 = vpop.f32.mrb[123].mxu1 }
 0x983   :  { %v4480_v15 = vadd.f32 %v10584_v56, %v4254_v2  ;;  %v4471_v9 = vpop.f32.mrb[75].mxu0 }
 0x984   :  { %v4472_v30 = vadd.f32 %v4471_v9, %v4246_v10  ;;  %4610 = vmatpush1.bf16.msra.mxu0 %v4574_v19 }
 0x985   :  { %v4576_v36 = vpack.c.bf16 %v4480_v15, %v4477_v45  ;;  %4611 = vmatprep.subr.bf16.mxu0 %v17499_v28 }
 0x986   :  { %v4575_v24 = vpack.c.bf16 %v4472_v30, %v4469_v32 }
 0x987   :  { %v4267_v6 = vpop.f32.mrb[124].mxu1 }
 0x988   :  { %v10587_v12 = vpop.f32.mrb[76].mxu0  ;;  %4612 = vmatpush1.bf16.msra.mxu0 %v4575_v24  ;;  %v4269_v53 = vpop.f32.mrb[125].mxu1 }
 0x989   :  { %v4493_v39 = vadd.f32 %v10587_v12, %v4267_v6  ;;  %v4484_v7 = vpop.f32.mrb[77].mxu0  ;;  %v4270_v5 = vpop.f32.mrb[126].mxu1  ;;  %4613 = vmatprep.subr.bf16.mxu0 %v17499_v28 }
 0x98a   :  { %v4485_v22 = vadd.f32 %v4484_v7, %v4259_v1  ;;  %v10588_v42 = vpop.f32.mrb[78].mxu0  ;;  %v4272_v23 = vpop.f32.mrb[127].mxu1 }
 0x98b   :  { %v4496_v50 = vadd.f32 %v10588_v42, %v4270_v5  ;;  %v4487_v20 = vpop.f32.mrb[79].mxu0 }
 0x98c   :  { %v4488_v10 = vadd.f32 %v4487_v20, %v4262_v52  ;;  %4614 = vmatpush1.bf16.msra.mxu0 %v4576_v36 }
 0x98d   :  { %v4578_v44 = vpack.c.bf16 %v4496_v50, %v4493_v39  ;;  %4615 = vmatprep.subr.bf16.mxu0 %v17499_v28 }
 0x98e   :  { %v4577_v2 = vpack.c.bf16 %v4488_v10, %v4485_v22 }
 0x98f   :  { %v4275_v60 = vpop.f32.mrb[128].mxu1 }
 0x990   :  { %v10591_v62 = vpop.f32.mrb[80].mxu0  ;;  %4616 = vmatpush1.bf16.msra.mxu0 %v4577_v2  ;;  %v4277_v31 = vpop.f32.mrb[129].mxu1 }
 0x991   :  { %v4500_v54 = vpop.f32.mrb[81].mxu0  ;;  %v4278_v8 = vpop.f32.mrb[130].mxu1  ;;  %4617 = vmatprep.subr.bf16.mxu0 %v17499_v28 }
 0x992   :  { %v4501_v55 = vadd.f32 %v4500_v54, %v4275_v60  ;;  %v10592_v19 = vpop.f32.mrb[82].mxu0  ;;  %v4280_v14 = vpop.f32.mrb[131].mxu1 }
 0x993   :  { %v4503_v1 = vpop.f32.mrb[83].mxu0 }
 0x994   :  { %v4504_v25 = vadd.f32 %v4503_v1, %v4278_v8  ;;  %4618 = vmatpush1.bf16.msra.mxu0 %v4578_v44 }
 0x996   :  { %v4579_v61 = vpack.c.bf16 %v4504_v25, %v4501_v55 }
 0x997   :  { %v4283_v45 = vpop.f32.mrb[132].mxu1  ;;  %4620 = vmatmul.mubr.bf16.vlgmr.msra.gmra.mrb[96].mxu0 %v14239_v63 }
 0x998   :  { %v4285_v35 = vpop.f32.mrb[133].mxu1  ;;  %10605 = vmatprep.subr.bf16.mxu1 %v4579_v61  ;;  %4627 = vmatprep.mubr.bf16.mxu0 %v14242_v48  ;;  %v4509_v52 = vadd.f32 %v10591_v62, %v4283_v45  ;;  %v10595_v32 = vpop.f32.mrb[84].mxu0 }
 0x999   :  { %v4286_v56 = vpop.f32.mrb[134].mxu1  ;;  %10606 = vmatpush3.bf16.msra.mxu1 %v4579_v61  ;;  %v4516_v49 = vpop.f32.mrb[85].mxu0 }
 0x99a   :  { %v4288_v15 = vpop.f32.mrb[135].mxu1  ;;  %v4512_v9 = vadd.f32 %v10592_v19, %v4286_v56  ;;  %v10596_v30 = vpop.f32.mrb[86].mxu0 }
 0x99b   :  { %v4519_v36 = vpop.f32.mrb[87].mxu0 }
 0x99c   :  { %v4580_v24 = vpack.c.bf16 %v4512_v9, %v4509_v52 }
 0x99e   :  { %10607 = vmatprep.subr.bf16.mxu1 %v4580_v24 }
 0x99f   :  { %4628 = vmatmul.mubr.bf16.gmra.mrb[100].mxu0 %v14245_v47  ;;  %10608 = vmatpush3.bf16.msra.mxu1 %v4580_v24  ;;  %v4291_v6 = vpop.f32.mrb[136].mxu1 }
 0x9a0   :  { %v4517_v63 = vadd.f32 %v4516_v49, %v4291_v6  ;;  %v4293_v12 = vpop.f32.mrb[137].mxu1  ;;  %4635 = vmatprep.mubr.bf16.mxu0 %v14248_v17  ;;  %v10599_v48 = vpop.f32.mrb[88].mxu0 }
 0x9a1   :  { %v4294_v53 = vpop.f32.mrb[138].mxu1  ;;  %v4532_v39 = vpop.f32.mrb[89].mxu0 }
 0x9a2   :  { %v4520_v7 = vadd.f32 %v4519_v36, %v4294_v53  ;;  %v4296_v5 = vpop.f32.mrb[139].mxu1  ;;  %v10600_v22 = vpop.f32.mrb[90].mxu0  ;;  %v17704_v53 = vld [vmem:[#allocation33_spill] sm:$0xff] }
 0x9a3   :  { %v4535_v42 = vpop.f32.mrb[91].mxu0  ;;  %v17707_v5 = vld [vmem:[#allocation34_spill] sm:$0xff] }
 0x9a4   :  { %v4581_v23 = vpack.c.bf16 %v4520_v7, %v4517_v63  ;;  %v17706_v7 = vld [vmem:[#allocation9_spill] sm:$0xff] }
 0x9a6   :  { %10609 = vmatprep.subr.bf16.mxu1 %v4581_v23 }
 0x9a7   :  { %4636 = vmatmul.mubr.bf16.gmra.mrb[104].mxu0 %v14251_v29  ;;  %v4299_v50 = vpop.f32.mrb[140].mxu1  ;;  %10610 = vmatpush3.bf16.msra.mxu1 %v4581_v23  ;;  %v17710_v23 = vld [vmem:[#allocation5_spill] sm:$0xff] }
 0x9a8   :  { %v4301_v47 = vpop.f32.mrb[141].mxu1  ;;  %4643 = vmatprep.mubr.bf16.mxu0 %v14254_v58  ;;  %v4525_v20 = vadd.f32 %v10595_v32, %v4299_v50  ;;  %v10603_v10 = vpop.f32.mrb[92].mxu0  ;;  %v17711_v50 = vld [vmem:[#allocation38_spill] sm:$0xff] }
 0x9a9   :  { %v4302_v44 = vpop.f32.mrb[142].mxu1  ;;  %v4548_v17 = vpop.f32.mrb[93].mxu0  ;;  %v17712_v47 = vld [vmem:[#allocation42_spill] sm:$0xff] }
 0x9aa   :  { %v4304_v2 = vpop.f32.mrb[143].mxu1  ;;  %v4528_v60 = vadd.f32 %v10596_v30, %v4302_v44  ;;  %v10604_v62 = vpop.f32.mrb[94].mxu0  ;;  %v17715_v44 = vld [vmem:[#allocation12_spill] sm:$0xff] }
 0x9ab   :  { %v4551_v31 = vpop.f32.mrb[95].mxu0  ;;  %v17717_v2 = vld [vmem:[#allocation49_spill] sm:$0xff] }
 0x9ac   :  { %v4582_v54 = vpack.c.bf16 %v4528_v60, %v4525_v20  ;;  %v17713_v20 = vld [vmem:[#allocation45_spill] sm:$0xff]  ;;  %v17718_v60 = vld [vmem:[#allocation15_spill] sm:$0xff] }
 0x9ae   :  { %10611 = vmatprep.subr.bf16.mxu1 %v4582_v54 }
 0x9af   :  { %4644 = vmatmul.mubr.bf16.gmra.mrb[108].mxu0 %v14257_v59  ;;  %v4307_v8 = vpop.f32.mrb[144].mxu1  ;;  %10612 = vmatpush3.bf16.msra.mxu1 %v4582_v54  ;;  %v17721_v54 = vld [vmem:[#allocation53_spill] sm:$0xff] }
 0x9b0   :  { %v4533_v29 = vadd.f32 %v4532_v39, %v4307_v8  ;;  %v4309_v55 = vpop.f32.mrb[145].mxu1  ;;  %4651 = vmatprep.mubr.bf16.mxu0 %v14260_v51  ;;  %v17705_v39 = vld [vmem:[#allocation11_spill] sm:$0xff]  ;;  %v17722_v8 = vld [vmem:[#allocation17_spill] sm:$0xff] }
 0x9b1   :  { %v4310_v19 = vpop.f32.mrb[146].mxu1  ;;  %v17724_v55 = vld [vmem:[#allocation19_spill] sm:$0xff] }
 0x9b2   :  { %v4536_v58 = vadd.f32 %v4535_v42, %v4310_v19  ;;  %v4312_v14 = vpop.f32.mrb[147].mxu1  ;;  %v17709_v42 = vld [vmem:[#allocation41_spill] sm:$0xff]  ;;  %v17725_v19 = vld [vmem:[#allocation18_spill] sm:$0xff] }
 0x9b3   :  { %v17727_v14 = vld [vmem:[#allocation55_spill] sm:$0xff] }
 0x9b4   :  { %v4583_v1 = vpack.c.bf16 %v4536_v58, %v4533_v29  ;;  %v17723_v29 = vld [vmem:[#allocation16_spill] sm:$0xff] }
 0x9b5   :  { %v17726_v58 = vld [vmem:[#allocation52_spill] sm:$0xff] }
 0x9b6   :  { %10613 = vmatprep.subr.bf16.mxu1 %v4583_v1 }
 0x9b7   :  { %4652 = vmatmul.mubr.bf16.gmra.mrb[112].mxu0 %v14263_v41  ;;  %v4315_v25 = vpop.f32.mrb[148].mxu1  ;;  %10614 = vmatpush3.bf16.msra.mxu1 %v4583_v1  ;;  %v17728_v1 = vld [vmem:[#allocation21_spill] sm:$0xff] }
 0x9b8   :  { %v4541_v61 = vadd.f32 %v10599_v48, %v4315_v25  ;;  %v4317_v45 = vpop.f32.mrb[149].mxu1  ;;  %4659 = vmatprep.mubr.bf16.mxu0 %v14266_v27  ;;  %v17703_v48 = vld [vmem:[#allocation30_spill] sm:$0xff]  ;;  %v17729_v25 = vld [vmem:[#allocation20_spill] sm:$0xff] }
 0x9b9   :  { %v4318_v59 = vpop.f32.mrb[150].mxu1  ;;  %v14556_v45 = vld [vmem:[#allocation2 + $0x8] ss:$12 sps:$4 sm:$0xff]  }
 0x9ba   :  { %v4544_v35 = vadd.f32 %v10600_v22, %v4318_v59  ;;  %v4320_v52 = vpop.f32.mrb[151].mxu1  ;;  %v17708_v22 = vld [vmem:[#allocation37_spill] sm:$0xff] }
 0x9bc   :  { %v4584_v32 = vpack.c.bf16 %v4544_v35, %v4541_v61  ;;  %v17730_v61 = vld [vmem:[#allocation54_spill] sm:$0xff] }
 0x9be   :  { %10615 = vmatprep.subr.bf16.mxu1 %v4584_v32 }
 0x9bf   :  { %4660 = vmatmul.mubr.bf16.gmra.mrb[116].mxu0 %v14269_v43  ;;  %v4323_v51 = vpop.f32.mrb[152].mxu1  ;;  %10616 = vmatpush3.bf16.msra.mxu1 %v4584_v32 }
 0x9c0   :  { %v4549_v56 = vadd.f32 %v4548_v17, %v4323_v51  ;;  %v4325_v49 = vpop.f32.mrb[153].mxu1  ;;  %4667 = vmatprep.mubr.bf16.mxu0 %v14272_v26  ;;  %v17687_v26 = vld [vmem:[#allocation31_spill] sm:$0xff]  ;;  %v17716_v17 = vld [vmem:[#allocation46_spill] sm:$0xff] }
 0x9c1   :  { %v4326_v41 = vpop.f32.mrb[154].mxu1 }
 0x9c2   :  { %v4552_v15 = vadd.f32 %v4551_v31, %v4326_v41  ;;  %v4328_v9 = vpop.f32.mrb[155].mxu1  ;;  %v17720_v31 = vld [vmem:[#allocation50_spill] sm:$0xff] }
 0x9c4   :  { %v4585_v30 = vpack.c.bf16 %v4552_v15, %v4549_v56 }
 0x9c6   :  { %10617 = vmatprep.subr.bf16.mxu1 %v4585_v30 }
 0x9c7   :  { %v4331_v36 = vpop.f32.mrb[156].mxu1  ;;  %4668 = vmatmul.mubr.bf16.gmra.mrb[120].mxu0 %v14275_v18  ;;  %10618 = vmatpush3.bf16.msra.mxu1 %v4585_v30  ;;  %v17688_v18 = vld [vmem:[#allocation35_spill] sm:$0xff] }
 0x9c8   :  { %v4557_v27 = vadd.f32 %v10603_v10, %v4331_v36  ;;  %v4333_v24 = vpop.f32.mrb[157].mxu1  ;;  %4675 = vmatprep.mubr.bf16.mxu0 %v14278_v37  ;;  %v17689_v37 = vld [vmem:[#allocation39_spill] sm:$0xff]  ;;  %v17714_v10 = vld [vmem:[#allocation13_spill] sm:$0xff] }
 0x9c9   :  { %v4334_v43 = vpop.f32.mrb[158].mxu1 }
 0x9ca   :  { %v4560_v6 = vadd.f32 %v10604_v62, %v4334_v43  ;;  %v4336_v63 = vpop.f32.mrb[159].mxu1  ;;  %v17719_v62 = vld [vmem:[#allocation14_spill] sm:$0xff] }
 0x9cc   :  { %v4586_v12 = vpack.c.bf16 %v4560_v6, %v4557_v27 }
 0x9ce   :  { %10619 = vmatprep.subr.bf16.mxu1 %v4586_v12 }
 0x9cf   :  { %4676 = vmatmul.mubr.bf16.gmra.mrb[124].mxu0 %v14281_v16  ;;  %10620 = vmatpush3.bf16.msra.mxu1 %v4586_v12  ;;  %v17690_v16 = vld [vmem:[#allocation32_spill] sm:$0xff] }
 0x9d0   :  { %4683 = vmatprep.mubr.bf16.mxu0 %v14284_v4  ;;  %5063 = vmatprep.subr.bf16.mxu1 %v17499_v28  ;;  %v17691_v4 = vld [vmem:[#allocation36_spill] sm:$0xff] }
 0x9d2   :  { %10622 = vmatmul.mubr.bf16.vlgmr.msra.gmra.mrb[160].mxu1 %v14291_v40  ;;  %v17693_v40 = vld [vmem:[#allocation47_spill] sm:$0xff] }
 0x9d3   :  { %10625 = vmatprep.mubr.bf16.mxu1 %v14297_v13  ;;  %v17695_v13 = vld [vmem:[#allocation44_spill] sm:$0xff] }
 0x9d7   :  { %4684 = vmatmul.mubr.bf16.gmra.mrb[128].mxu0 %v14288_v38  ;;  %v17692_v38 = vld [vmem:[#allocation43_spill] sm:$0xff] }
 0x9d8   :  { %4691 = vmatprep.mubr.bf16.mxu0 %v14294_v11  ;;  %v17694_v11 = vld [vmem:[#allocation40_spill] sm:$0xff] }
 0x9da   :  { %10626 = vmatmul.mubr.bf16.gmra.mrb[164].mxu1 %v14303_v21  ;;  %v17697_v21 = vld [vmem:[#allocation7_spill] sm:$0xff] }
 0x9db   :  { %10629 = vmatprep.mubr.bf16.mxu1 %v14309_v34  ;;  %v17699_v34 = vld [vmem:[#allocation6_spill] sm:$0xff] }
 0x9df   :  { %4692 = vmatmul.mubr.bf16.gmra.mrb[132].mxu0 %v14300_v57  ;;  %v17696_v57 = vld [vmem:[#allocation51_spill] sm:$0xff] }
 0x9e0   :  { %4699 = vmatprep.mubr.bf16.mxu0 %v14306_v46  ;;  %v17698_v46 = vld [vmem:[#allocation48_spill] sm:$0xff] }
 0x9e2   :  { %10630 = vmatmul.mubr.bf16.gmra.mrb[168].mxu1 %v14315_v33  ;;  %v17701_v33 = vld [vmem:[#allocation10_spill] sm:$0xff] }
 0x9e3   :  { %10633 = vmatprep.mubr.bf16.mxu1 %v14321_v0  ;;  %v17702_v0 = vld [vmem:[#allocation8_spill] sm:$0xff] }
 0x9e7   :  { %4700 = vmatmul.mubr.bf16.gmra.mrb[136].mxu0 %v14312_v3  ;;  %v17700_v3 = vld [vmem:[#allocation29_spill] sm:$0xff] }
 0x9e8   :  { %4707 = vmatprep.mubr.bf16.mxu0 %v17687_v26 }
 0x9ea   :  { %10634 = vmatmul.mubr.bf16.gmra.mrb[172].mxu1 %v17688_v18 }
 0x9eb   :  { %10637 = vmatprep.mubr.bf16.mxu1 %v17689_v37 }
 0x9ef   :  { %4708 = vmatmul.mubr.bf16.gmra.mrb[140].mxu0 %v17690_v16 }
 0x9f0   :  { %4715 = vmatprep.mubr.bf16.mxu0 %v17691_v4 }
 0x9f2   :  { %10638 = vmatmul.mubr.bf16.gmra.mrb[176].mxu1 %v17692_v38 }
 0x9f3   :  { %10641 = vmatprep.mubr.bf16.mxu1 %v17693_v40 }
 0x9f7   :  { %4716 = vmatmul.mubr.bf16.gmra.mrb[144].mxu0 %v17694_v11 }
 0x9f8   :  { %4723 = vmatprep.mubr.bf16.mxu0 %v17695_v13 }
 0x9fa   :  { %10642 = vmatmul.mubr.bf16.gmra.mrb[180].mxu1 %v17696_v57 }
 0x9fb   :  { %10645 = vmatprep.mubr.bf16.mxu1 %v17697_v21 }
 0x9ff   :  { %4724 = vmatmul.mubr.bf16.gmra.mrb[148].mxu0 %v17698_v46 }
 0xa00   :  { %4731 = vmatprep.mubr.bf16.mxu0 %v17699_v34 }
 0xa02   :  { %10646 = vmatmul.mubr.bf16.gmra.mrb[184].mxu1 %v17700_v3 }
 0xa03   :  { %10649 = vmatprep.mubr.bf16.mxu1 %v17701_v33 }
 0xa07   :  { %4732 = vmatmul.mubr.bf16.gmra.mrb[152].mxu0 %v17702_v0 }
 0xa08   :  { %4739 = vmatprep.mubr.bf16.mxu0 %v17703_v48 }
 0xa0a   :  { %10650 = vmatmul.mubr.bf16.gmra.mrb[188].mxu1 %v17704_v53 }
 0xa0b   :  { %10653 = vmatprep.mubr.bf16.mxu1 %v17705_v39 }
 0xa0f   :  { %4740 = vmatmul.mubr.bf16.gmra.mrb[156].mxu0 %v17706_v7 }
 0xa10   :  { %4747 = vmatprep.mubr.bf16.mxu0 %v17707_v5 }
 0xa12   :  { %10654 = vmatmul.mubr.bf16.gmra.mrb[192].mxu1 %v17708_v22 }
 0xa13   :  { %10657 = vmatprep.mubr.bf16.mxu1 %v17709_v42 }
 0xa17   :  { %4748 = vmatmul.mubr.bf16.gmra.mrb[160].mxu0 %v17710_v23 }
 0xa18   :  { %4755 = vmatprep.mubr.bf16.mxu0 %v17711_v50 }
 0xa1a   :  { %10658 = vmatmul.mubr.bf16.gmra.mrb[196].mxu1 %v17712_v47 }
 0xa1b   :  { %10661 = vmatprep.mubr.bf16.mxu1 %v17713_v20 }
 0xa1f   :  { %4756 = vmatmul.mubr.bf16.gmra.mrb[164].mxu0 %v17714_v10 }
 0xa20   :  { %4763 = vmatprep.mubr.bf16.mxu0 %v17715_v44 }
 0xa22   :  { %10662 = vmatmul.mubr.bf16.gmra.mrb[200].mxu1 %v17716_v17 }
 0xa23   :  { %10665 = vmatprep.mubr.bf16.mxu1 %v17717_v2 }
 0xa27   :  { %4764 = vmatmul.mubr.bf16.gmra.mrb[168].mxu0 %v17718_v60 }
 0xa28   :  { %4771 = vmatprep.mubr.bf16.mxu0 %v17719_v62 }
 0xa2a   :  { %10666 = vmatmul.mubr.bf16.gmra.mrb[204].mxu1 %v17720_v31 }
 0xa2b   :  { %5095 = vmatprep.mubr.bf16.mxu1 %v17721_v54 }
 0xa2f   :  { %4772 = vmatmul.mubr.bf16.gmra.mrb[172].mxu0 %v17722_v8 }
 0xa30   :  { %4779 = vmatprep.mubr.bf16.mxu0 %v17723_v29 }
 0xa37   :  { %4780 = vmatmul.mubr.bf16.gmra.mrb[176].mxu0 %v17724_v55 }
 0xa38   :  { %4787 = vmatprep.mubr.bf16.mxu0 %v17725_v19 }
 0xa3f   :  { %4788 = vmatmul.mubr.bf16.gmra.mrb[180].mxu0 %v17726_v58 }
 0xa40   :  { %4795 = vmatprep.mubr.bf16.mxu0 %v17727_v14 }
 0xa47   :  { %4796 = vmatmul.mubr.bf16.gmra.mrb[184].mxu0 %v17728_v1 }
 0xa48   :  { %4803 = vmatprep.mubr.bf16.mxu0 %v17729_v25 }
 0xa4f   :  { %4804 = vmatmul.mubr.bf16.gmra.mrb[188].mxu0 %v17730_v61 }
 0xa50   :  { %10685 = vmatprep.mubr.bf16.mxu0 %v14556_v45 }
 0xa6a   :  { %v4621_v59 = vpop.f32.mrb[96].mxu0 }
 0xa6b   :  { %v4623_v35 = vpop.f32.mrb[97].mxu0 }
 0xa6c   :  { %v4624_v52 = vpop.f32.mrb[98].mxu0 }
 0xa6d   :  { %v4626_v32 = vpop.f32.mrb[99].mxu0 }
 0xa72   :  { %v4629_v51 = vpop.f32.mrb[100].mxu0 }
 0xa73   :  { %v4631_v56 = vpop.f32.mrb[101].mxu0 }
 0xa74   :  { %v4632_v49 = vpop.f32.mrb[102].mxu0 }
 0xa75   :  { %v4634_v41 = vpop.f32.mrb[103].mxu0 }
 0xa7a   :  { %v4637_v15 = vpop.f32.mrb[104].mxu0 }
 0xa7b   :  { %v4639_v9 = vpop.f32.mrb[105].mxu0 }
 0xa7c   :  { %v4640_v30 = vpop.f32.mrb[106].mxu0 }
 0xa7d   :  { %v4642_v36 = vpop.f32.mrb[107].mxu0 }
 0xa82   :  { %v4645_v27 = vpop.f32.mrb[108].mxu0 }
 0xa83   :  { %v4647_v24 = vpop.f32.mrb[109].mxu0 }
 0xa84   :  { %v4648_v43 = vpop.f32.mrb[110].mxu0 }
 0xa85   :  { %v4650_v6 = vpop.f32.mrb[111].mxu0 }
 0xa8a   :  { %v4653_v63 = vpop.f32.mrb[112].mxu0 }
 0xa8b   :  { %v4655_v12 = vpop.f32.mrb[113].mxu0 }
 0xa8c   :  { %v4656_v26 = vpop.f32.mrb[114].mxu0 }
 0xa8d   :  { %v4658_v18 = vpop.f32.mrb[115].mxu0 }
 0xa92   :  { %v4661_v37 = vpop.f32.mrb[116].mxu0 }
 0xa93   :  { %v4663_v16 = vpop.f32.mrb[117].mxu0 }
 0xa94   :  { %v4664_v4 = vpop.f32.mrb[118].mxu0 }
 0xa95   :  { %v4666_v38 = vpop.f32.mrb[119].mxu0 }
 0xa9a   :  { %v14559_v40 = vpop.f32.mrb[120].mxu0 }
 0xa9b   :  { %v4671_v11 = vpop.f32.mrb[121].mxu0 }
 0xa9c   :  { %v14561_v13 = vpop.f32.mrb[122].mxu0 }
 0xa9d   :  { %v4674_v57 = vpop.f32.mrb[123].mxu0 }
 0xaa2   :  { %v4677_v21 = vpop.f32.mrb[124].mxu0 }
 0xaa3   :  { %v4679_v46 = vpop.f32.mrb[125].mxu0 }
 0xaa4   :  { %v4680_v34 = vpop.f32.mrb[126].mxu0 }
 0xaa5   :  { %v4682_v3 = vpop.f32.mrb[127].mxu0  ;;  %v10623_v33 = vpop.f32.mrb[160].mxu1 }
 0xaa6   :  { %v4855_v0 = vadd.f32 %v10623_v33, %v4629_v51  ;;  %v4846_v48 = vpop.f32.mrb[161].mxu1 }
 0xaa7   :  { %v4847_v53 = vadd.f32 %v4846_v48, %v4621_v59  ;;  %v10624_v39 = vpop.f32.mrb[162].mxu1 }
 0xaa8   :  { %v4858_v7 = vadd.f32 %v10624_v39, %v4632_v49  ;;  %v4849_v5 = vpop.f32.mrb[163].mxu1 }
 0xaa9   :  { %v4850_v22 = vadd.f32 %v4849_v5, %v4624_v52 }
 0xaaa   :  { %v14563_v42 = vpack.c.bf16 %v4858_v7, %v4855_v0  ;;  %v14565_v23 = vpop.f32.mrb[128].mxu0 }
 0xaab   :  { %v14567_v50 = vpack.c.bf16 %v4850_v22, %v4847_v53  ;;  %v4687_v47 = vpop.f32.mrb[129].mxu0 }
 0xaac   :  { %17731 = vst [vmem:[#allocation57_spill] sm:$0xff] %v14563_v42  ;;  %v14569_v20 = vpop.f32.mrb[130].mxu0 }
 0xaad   :  { %17732 = vst [vmem:[#allocation23_spill] sm:$0xff] %v14567_v50  ;;  %v4690_v10 = vpop.f32.mrb[131].mxu0  ;;  %v10627_v44 = vpop.f32.mrb[164].mxu1  ;;  %5064 = vmatpush1.bf16.msra.mxu1 %v14567_v50  ;;  %v14850_v50 = vld [vmem:[#allocation2 + $0x1e4] ss:$12 sps:$4 sm:$0xff]  }
 0xaae   :  { %v4871_v17 = vadd.f32 %v10627_v44, %v4645_v27  ;;  %v4862_v2 = vpop.f32.mrb[165].mxu1  ;;  %5065 = vmatprep.subr.bf16.mxu1 %v17499_v28  ;;  %17789 = vst [vmem:[#allocation63_spill] sm:$0xff] %v14850_v50 }
 0xaaf   :  { %v4863_v60 = vadd.f32 %v4862_v2, %v4637_v15  ;;  %v10628_v62 = vpop.f32.mrb[166].mxu1 }
 0xab0   :  { %v4874_v31 = vadd.f32 %v10628_v62, %v4648_v43  ;;  %v4865_v54 = vpop.f32.mrb[167].mxu1 }
 0xab1   :  { %v4866_v8 = vadd.f32 %v4865_v54, %v4640_v30  ;;  %5066 = vmatpush1.bf16.msra.mxu1 %v14563_v42  ;;  %v14847_v42 = vld [vmem:[#allocation2 + $0x1c8] ss:$12 sps:$4 sm:$0xff]  }
 0xab2   :  { %v14574_v29 = vpack.c.bf16 %v4874_v31, %v4871_v17  ;;  %v4693_v55 = vpop.f32.mrb[132].mxu0  ;;  %5067 = vmatprep.subr.bf16.mxu1 %v17499_v28  ;;  %17788 = vst [vmem:[#allocation62_spill] sm:$0xff] %v14847_v42 }
 0xab3   :  { %v14577_v19 = vpack.c.bf16 %v4866_v8, %v4863_v60  ;;  %v4695_v58 = vpop.f32.mrb[133].mxu0 }
 0xab4   :  { %17733 = vst [vmem:[#allocation22_spill] sm:$0xff] %v14574_v29  ;;  %v4696_v14 = vpop.f32.mrb[134].mxu0 }
 0xab5   :  { %17734 = vst [vmem:[#allocation56_spill] sm:$0xff] %v14577_v19  ;;  %v4698_v1 = vpop.f32.mrb[135].mxu0  ;;  %v10631_v25 = vpop.f32.mrb[168].mxu1  ;;  %5068 = vmatpush1.bf16.msra.mxu1 %v14577_v19  ;;  %v14844_v19 = vld [vmem:[#allocation2 + $0x218] ss:$12 sps:$4 sm:$0xff]  }
 0xab6   :  { %v4887_v61 = vadd.f32 %v10631_v25, %v4661_v37  ;;  %v4878_v59 = vpop.f32.mrb[169].mxu1  ;;  %5069 = vmatprep.subr.bf16.mxu1 %v17499_v28  ;;  %17787 = vst [vmem:[#allocation61_spill] sm:$0xff] %v14844_v19 }
 0xab7   :  { %v4879_v35 = vadd.f32 %v4878_v59, %v4653_v63  ;;  %v10632_v52 = vpop.f32.mrb[170].mxu1 }
 0xab8   :  { %v4890_v32 = vadd.f32 %v10632_v52, %v4664_v4  ;;  %v4881_v51 = vpop.f32.mrb[171].mxu1 }
 0xab9   :  { %v4882_v56 = vadd.f32 %v4881_v51, %v4656_v26  ;;  %5070 = vmatpush1.bf16.msra.mxu1 %v14574_v29  ;;  %v14841_v29 = vld [vmem:[#allocation2 + $0x200] ss:$12 sps:$4 sm:$0xff]  }
 0xaba   :  { %v14582_v49 = vpack.c.bf16 %v4890_v32, %v4887_v61  ;;  %v4701_v41 = vpop.f32.mrb[136].mxu0  ;;  %5071 = vmatprep.subr.bf16.mxu1 %v17499_v28  ;;  %17786 = vst [vmem:[#allocation60_spill] sm:$0xff] %v14841_v29 }
 0xabb   :  { %v14585_v15 = vpack.c.bf16 %v4882_v56, %v4879_v35  ;;  %v4703_v9 = vpop.f32.mrb[137].mxu0 }
 0xabc   :  { %17735 = vst [vmem:[#allocation24_spill] sm:$0xff] %v14582_v49  ;;  %v4704_v30 = vpop.f32.mrb[138].mxu0 }
 0xabd   :  { %17736 = vst [vmem:[#allocation58_spill] sm:$0xff] %v14585_v15  ;;  %v4706_v36 = vpop.f32.mrb[139].mxu0  ;;  %v10635_v27 = vpop.f32.mrb[172].mxu1  ;;  %5072 = vmatpush1.bf16.msra.mxu1 %v14585_v15  ;;  %v14838_v15 = vld [vmem:[#allocation2 + $0x1cc] ss:$12 sps:$4 sm:$0xff]  }
 0xabe   :  { %v4903_v24 = vadd.f32 %v10635_v27, %v4677_v21  ;;  %v4894_v43 = vpop.f32.mrb[173].mxu1  ;;  %5073 = vmatprep.subr.bf16.mxu1 %v17499_v28  ;;  %17785 = vst [vmem:[#allocation54_spill] sm:$0xff] %v14838_v15 }
 0xabf   :  { %v4895_v6 = vadd.f32 %v4894_v43, %v14559_v40  ;;  %v10636_v63 = vpop.f32.mrb[174].mxu1 }
 0xac0   :  { %v4906_v12 = vadd.f32 %v10636_v63, %v4680_v34  ;;  %v4897_v26 = vpop.f32.mrb[175].mxu1 }
 0xac1   :  { %v4898_v18 = vadd.f32 %v4897_v26, %v14561_v13  ;;  %5074 = vmatpush1.bf16.msra.mxu1 %v14582_v49  ;;  %v14835_v49 = vld [vmem:[#allocation2 + $0x1b0] ss:$12 sps:$4 sm:$0xff]  }
 0xac2   :  { %v14592_v37 = vpack.c.bf16 %v4906_v12, %v4903_v24  ;;  %v4709_v16 = vpop.f32.mrb[140].mxu0  ;;  %5075 = vmatprep.subr.bf16.mxu1 %v17499_v28  ;;  %17784 = vst [vmem:[#allocation20_spill] sm:$0xff] %v14835_v49 }
 0xac3   :  { %v14595_v4 = vpack.c.bf16 %v4898_v18, %v4895_v6  ;;  %v4711_v38 = vpop.f32.mrb[141].mxu0 }
 0xac4   :  { %17737 = vst [vmem:[#allocation59_spill] sm:$0xff] %v14592_v37  ;;  %v4712_v11 = vpop.f32.mrb[142].mxu0 }
 0xac5   :  { %17738 = vst [vmem:[#allocation25_spill] sm:$0xff] %v14595_v4  ;;  %v4714_v57 = vpop.f32.mrb[143].mxu0  ;;  %v10639_v21 = vpop.f32.mrb[176].mxu1  ;;  %5076 = vmatpush1.bf16.msra.mxu1 %v14595_v4  ;;  %v14832_v4 = vld [vmem:[#allocation2 + $0x1e8] ss:$12 sps:$4 sm:$0xff]  }
 0xac6   :  { %v4919_v40 = vadd.f32 %v10639_v21, %v4693_v55  ;;  %v4910_v46 = vpop.f32.mrb[177].mxu1  ;;  %5077 = vmatprep.subr.bf16.mxu1 %v17499_v28  ;;  %17783 = vst [vmem:[#allocation21_spill] sm:$0xff] %v14832_v4 }
 0xac7   :  { %v4911_v13 = vadd.f32 %v4910_v46, %v14565_v23  ;;  %v10640_v34 = vpop.f32.mrb[178].mxu1 }
 0xac8   :  { %v4922_v3 = vadd.f32 %v10640_v34, %v4696_v14  ;;  %v4913_v33 = vpop.f32.mrb[179].mxu1 }
 0xac9   :  { %v4914_v0 = vadd.f32 %v4913_v33, %v14569_v20  ;;  %5078 = vmatpush1.bf16.msra.mxu1 %v14592_v37  ;;  %v14829_v37 = vld [vmem:[#allocation2 + $0x1d0] ss:$12 sps:$4 sm:$0xff]  }
 0xaca   :  { %v14602_v48 = vpack.c.bf16 %v4922_v3, %v4919_v40  ;;  %v4717_v53 = vpop.f32.mrb[144].mxu0  ;;  %5079 = vmatprep.subr.bf16.mxu1 %v17499_v28  ;;  %17782 = vst [vmem:[#allocation55_spill] sm:$0xff] %v14829_v37 }
 0xacb   :  { %v14605_v39 = vpack.c.bf16 %v4914_v0, %v4911_v13  ;;  %v4719_v7 = vpop.f32.mrb[145].mxu0 }
 0xacc   :  { %17739 = vst [vmem:[#allocation26_spill] sm:$0xff] %v14602_v48  ;;  %v4720_v5 = vpop.f32.mrb[146].mxu0 }
 0xacd   :  { %17740 = vst [vmem:[#allocation27_spill] sm:$0xff] %v14605_v39  ;;  %v4722_v22 = vpop.f32.mrb[147].mxu0  ;;  %v10643_v47 = vpop.f32.mrb[180].mxu1  ;;  %5080 = vmatpush1.bf16.msra.mxu1 %v14605_v39  ;;  %v14826_v39 = vld [vmem:[#allocation2 + $0x1b4] ss:$12 sps:$4 sm:$0xff]  }
 0xace   :  { %v4935_v23 = vadd.f32 %v10643_v47, %v4709_v16  ;;  %v4926_v10 = vpop.f32.mrb[181].mxu1  ;;  %5081 = vmatprep.subr.bf16.mxu1 %v17499_v28  ;;  %17781 = vst [vmem:[#allocation52_spill] sm:$0xff] %v14826_v39 }
 0xacf   :  { %v4927_v20 = vadd.f32 %v4926_v10, %v4701_v41  ;;  %v10644_v44 = vpop.f32.mrb[182].mxu1 }
 0xad0   :  { %v4938_v17 = vadd.f32 %v10644_v44, %v4712_v11  ;;  %v4929_v2 = vpop.f32.mrb[183].mxu1 }
 0xad1   :  { %v4930_v60 = vadd.f32 %v4929_v2, %v4704_v30  ;;  %5082 = vmatpush1.bf16.msra.mxu1 %v14602_v48  ;;  %v14823_v48 = vld [vmem:[#allocation2 + $0x198] ss:$12 sps:$4 sm:$0xff]  }
 0xad2   :  { %v14610_v62 = vpack.c.bf16 %v4938_v17, %v4935_v23  ;;  %v4725_v31 = vpop.f32.mrb[148].mxu0  ;;  %5083 = vmatprep.subr.bf16.mxu1 %v17499_v28  ;;  %v14637_v23 = vld [vmem:[#allocation2 + $0x1c] ss:$12 sps:$4 sm:$0xff]   ;;  %17780 = vst [vmem:[#allocation18_spill] sm:$0xff] %v14823_v48 }
 0xad3   :  { %v14613_v54 = vpack.c.bf16 %v4930_v60, %v4927_v20  ;;  %v4727_v8 = vpop.f32.mrb[149].mxu0 }
 0xad4   :  { %17741 = vst [vmem:[#allocation28_spill] sm:$0xff] %v14610_v62  ;;  %v4728_v55 = vpop.f32.mrb[150].mxu0 }
 0xad5   :  { %17742 = vst [vmem:[#allocation31_spill] sm:$0xff] %v14613_v54  ;;  %v4730_v58 = vpop.f32.mrb[151].mxu0  ;;  %v10647_v14 = vpop.f32.mrb[184].mxu1  ;;  %5084 = vmatpush1.bf16.msra.mxu1 %v14613_v54  ;;  %v14820_v54 = vld [vmem:[#allocation2 + $0x1b8] ss:$12 sps:$4 sm:$0xff]  }
 0xad6   :  { %v4951_v1 = vadd.f32 %v10647_v14, %v4725_v31  ;;  %v4942_v25 = vpop.f32.mrb[185].mxu1  ;;  %5085 = vmatprep.subr.bf16.mxu1 %v17499_v28  ;;  %v14644_v58 = vld [vmem:[#allocation2 + $0x18] ss:$12 sps:$4 sm:$0xff]   ;;  %17779 = vst [vmem:[#allocation19_spill] sm:$0xff] %v14820_v54 }
 0xad7   :  { %v4943_v61 = vadd.f32 %v4942_v25, %v4717_v53  ;;  %v10648_v59 = vpop.f32.mrb[186].mxu1  ;;  %v14647_v25 = vld [vmem:[#allocation2 + $0x34] ss:$12 sps:$4 sm:$0xff]  }
 0xad8   :  { %v4954_v35 = vadd.f32 %v10648_v59, %v4728_v55  ;;  %v4945_v52 = vpop.f32.mrb[187].mxu1 }
 0xad9   :  { %v4946_v32 = vadd.f32 %v4945_v52, %v4720_v5  ;;  %5086 = vmatpush1.bf16.msra.mxu1 %v14610_v62  ;;  %v14634_v5 = vld [vmem:[#allocation2] ss:$12 sps:$4 sm:$0xff]  }
 0xada   :  { %v14618_v51 = vpack.c.bf16 %v4954_v35, %v4951_v1  ;;  %v4733_v56 = vpop.f32.mrb[152].mxu0  ;;  %5087 = vmatprep.subr.bf16.mxu1 %v17499_v28  ;;  %v14817_v62 = vld [vmem:[#allocation2 + $0x1a0] ss:$12 sps:$4 sm:$0xff]  }
 0xadb   :  { %v14621_v41 = vpack.c.bf16 %v4946_v32, %v4943_v61  ;;  %v4735_v9 = vpop.f32.mrb[153].mxu0  ;;  %17778 = vst [vmem:[#allocation16_spill] sm:$0xff] %v14817_v62 }
 0xadc   :  { %17743 = vst [vmem:[#allocation35_spill] sm:$0xff] %v14618_v51  ;;  %v4736_v30 = vpop.f32.mrb[154].mxu0 }
 0xadd   :  { %17744 = vst [vmem:[#allocation39_spill] sm:$0xff] %v14621_v41  ;;  %v4738_v36 = vpop.f32.mrb[155].mxu0  ;;  %v10651_v27 = vpop.f32.mrb[188].mxu1  ;;  %5088 = vmatpush1.bf16.msra.mxu1 %v14621_v41  ;;  %v14814_v41 = vld [vmem:[#allocation2 + $0x19c] ss:$12 sps:$4 sm:$0xff]  }
 0xade   :  { %v4958_v24 = vpop.f32.mrb[189].mxu1  ;;  %5089 = vmatprep.subr.bf16.mxu1 %v17499_v28  ;;  %v14654_v36 = vld [vmem:[#allocation2 + $0x30] ss:$12 sps:$4 sm:$0xff]   ;;  %17777 = vst [vmem:[#allocation17_spill] sm:$0xff] %v14814_v41 }
 0xadf   :  { %v4959_v43 = vadd.f32 %v4958_v24, %v4733_v56  ;;  %v10652_v6 = vpop.f32.mrb[190].mxu1 }
 0xae0   :  { %v4961_v63 = vpop.f32.mrb[191].mxu1 }
 0xae1   :  { %v4962_v12 = vadd.f32 %v4961_v63, %v4736_v30  ;;  %5090 = vmatpush1.bf16.msra.mxu1 %v14618_v51  ;;  %v14811_v51 = vld [vmem:[#allocation2 + $0x180] ss:$12 sps:$4 sm:$0xff]  }
 0xae2   :  { %v4741_v26 = vpop.f32.mrb[156].mxu0  ;;  %5091 = vmatprep.subr.bf16.mxu1 %v17499_v28  ;;  %17776 = vst [vmem:[#allocation53_spill] sm:$0xff] %v14811_v51 }
 0xae3   :  { %v14627_v18 = vpack.c.bf16 %v4962_v12, %v4959_v43  ;;  %v4967_v16 = vadd.f32 %v10651_v27, %v4741_v26  ;;  %v4743_v38 = vpop.f32.mrb[157].mxu0 }
 0xae4   :  { %v4744_v11 = vpop.f32.mrb[158].mxu0 }
 0xae5   :  { %17745 = vst [vmem:[#allocation32_spill] sm:$0xff] %v14627_v18  ;;  %v4970_v57 = vadd.f32 %v10652_v6, %v4744_v11  ;;  %v4746_v21 = vpop.f32.mrb[159].mxu0  ;;  %5092 = vmatpush1.bf16.msra.mxu1 %v14627_v18  ;;  %v10655_v40 = vpop.f32.mrb[192].mxu1  ;;  %v14657_v6 = vld [vmem:[#allocation2 + $0x4c] ss:$12 sps:$4 sm:$0xff]  }
 0xae6   :  { %v4974_v46 = vpop.f32.mrb[193].mxu1  ;;  %5093 = vmatprep.subr.bf16.mxu1 %v17499_v28  ;;  %v14808_v18 = vld [vmem:[#allocation2 + $0x188] ss:$12 sps:$4 sm:$0xff]  }
 0xae7   :  { %v14631_v13 = vpack.c.bf16 %v4970_v57, %v4967_v16  ;;  %v10656_v34 = vpop.f32.mrb[194].mxu1  ;;  %17775 = vst [vmem:[#allocation50_spill] sm:$0xff] %v14808_v18 }
 0xae8   :  { %v4977_v3 = vpop.f32.mrb[195].mxu1 }
 0xae9   :  { %17746 = vst [vmem:[#allocation36_spill] sm:$0xff] %v14631_v13  ;;  %5094 = vmatpush1.bf16.msra.mxu1 %v14631_v13  ;;  %v14805_v13 = vld [vmem:[#allocation2 + $0x184] ss:$12 sps:$4 sm:$0xff]  }
 0xaea   :  { %v4749_v33 = vpop.f32.mrb[160].mxu0  ;;  %17774 = vst [vmem:[#allocation14_spill] sm:$0xff] %v14805_v13 }
 0xaeb   :  { %v4975_v0 = vadd.f32 %v4974_v46, %v4749_v33  ;;  %v4751_v53 = vpop.f32.mrb[161].mxu0  ;;  %v14667_v33 = vld [vmem:[#allocation2 + $0x64] ss:$12 sps:$4 sm:$0xff]  }
 0xaec   :  { %v4752_v7 = vpop.f32.mrb[162].mxu0  ;;  %5096 = vmatmul.mubr.bf16.vlgmr.msra.gmra.mrb[208].mxu1 %v14634_v5 }
 0xaed   :  { %v4978_v22 = vadd.f32 %v4977_v3, %v4752_v7  ;;  %v4754_v47 = vpop.f32.mrb[163].mxu0  ;;  %5103 = vmatprep.mubr.bf16.mxu1 %v14637_v23  ;;  %v10659_v10 = vpop.f32.mrb[196].mxu1 }
 0xaee   :  { %v4990_v20 = vpop.f32.mrb[197].mxu1  ;;  %v14674_v47 = vld [vmem:[#allocation2 + $0x60] ss:$12 sps:$4 sm:$0xff]  }
 0xaef   :  { %v14640_v44 = vpack.c.bf16 %v4978_v22, %v4975_v0  ;;  %v10660_v17 = vpop.f32.mrb[198].mxu1 }
 0xaf0   :  { %v4993_v2 = vpop.f32.mrb[199].mxu1 }
 0xaf1   :  { %17747 = vst [vmem:[#allocation43_spill] sm:$0xff] %v14640_v44  ;;  %10669 = vmatprep.subr.bf16.mxu0 %v14640_v44 }
 0xaf2   :  { %v4757_v60 = vpop.f32.mrb[164].mxu0  ;;  %10670 = vmatpush3.bf16.msra.mxu0 %v14640_v44  ;;  %v14802_v44 = vld [vmem:[#allocation2 + $0x170] ss:$12 sps:$4 sm:$0xff]  }
 0xaf3   :  { %v4983_v31 = vadd.f32 %v10655_v40, %v4757_v60  ;;  %v4759_v8 = vpop.f32.mrb[165].mxu0  ;;  %v14664_v40 = vld [vmem:[#allocation2 + $0x48] ss:$12 sps:$4 sm:$0xff]   ;;  %17773 = vst [vmem:[#allocation15_spill] sm:$0xff] %v14802_v44 }
 0xaf4   :  { %v4760_v55 = vpop.f32.mrb[166].mxu0  ;;  %5104 = vmatmul.mubr.bf16.gmra.mrb[212].mxu1 %v14644_v58 }
 0xaf5   :  { %v4986_v14 = vadd.f32 %v10656_v34, %v4760_v55  ;;  %v4762_v1 = vpop.f32.mrb[167].mxu0  ;;  %5111 = vmatprep.mubr.bf16.mxu1 %v14647_v25  ;;  %v10663_v61 = vpop.f32.mrb[200].mxu1 }
 0xaf6   :  { %v5006_v59 = vpop.f32.mrb[201].mxu1 }
 0xaf7   :  { %v14650_v35 = vpack.c.bf16 %v4986_v14, %v4983_v31  ;;  %v10664_v52 = vpop.f32.mrb[202].mxu1  ;;  %v14684_v14 = vld [vmem:[#allocation2 + $0x78] ss:$12 sps:$4 sm:$0xff]  }
 0xaf8   :  { %v5009_v32 = vpop.f32.mrb[203].mxu1 }
 0xaf9   :  { %17748 = vst [vmem:[#allocation47_spill] sm:$0xff] %v14650_v35  ;;  %10671 = vmatprep.subr.bf16.mxu0 %v14650_v35 }
 0xafa   :  { %10672 = vmatpush3.bf16.msra.mxu0 %v14650_v35  ;;  %v4765_v56 = vpop.f32.mrb[168].mxu0  ;;  %v14799_v35 = vld [vmem:[#allocation2 + $0x168] ss:$12 sps:$4 sm:$0xff]  }
 0xafb   :  { %v4991_v9 = vadd.f32 %v4990_v20, %v4765_v56  ;;  %v4767_v30 = vpop.f32.mrb[169].mxu0  ;;  %v14687_v56 = vld [vmem:[#allocation2 + $0x94] ss:$12 sps:$4 sm:$0xff]   ;;  %17772 = vst [vmem:[#allocation49_spill] sm:$0xff] %v14799_v35 }
 0xafc   :  { %5112 = vmatmul.mubr.bf16.gmra.mrb[216].mxu1 %v14654_v36  ;;  %v4768_v27 = vpop.f32.mrb[170].mxu0 }
 0xafd   :  { %v4994_v24 = vadd.f32 %v4993_v2, %v4768_v27  ;;  %v4770_v43 = vpop.f32.mrb[171].mxu0  ;;  %5119 = vmatprep.mubr.bf16.mxu1 %v14657_v6  ;;  %v10667_v63 = vpop.f32.mrb[204].mxu1  ;;  %v14677_v2 = vld [vmem:[#allocation2 + $0x7c] ss:$12 sps:$4 sm:$0xff]  }
 0xafe   :  { %v5022_v12 = vpop.f32.mrb[205].mxu1 }
 0xaff   :  { %v14660_v26 = vpack.c.bf16 %v4994_v24, %v4991_v9  ;;  %v10668_v16 = vpop.f32.mrb[206].mxu1  ;;  %v14694_v24 = vld [vmem:[#allocation2 + $0x90] ss:$12 sps:$4 sm:$0xff]  }
 0xb00   :  { %v5025_v38 = vpop.f32.mrb[207].mxu1 }
 0xb01   :  { %17749 = vst [vmem:[#allocation40_spill] sm:$0xff] %v14660_v26  ;;  %10673 = vmatprep.subr.bf16.mxu0 %v14660_v26 }
 0xb02   :  { %v4773_v11 = vpop.f32.mrb[172].mxu0  ;;  %10674 = vmatpush3.bf16.msra.mxu0 %v14660_v26  ;;  %v14796_v26 = vld [vmem:[#allocation2 + $0x158] ss:$12 sps:$4 sm:$0xff]  }
 0xb03   :  { %v4999_v57 = vadd.f32 %v10659_v10, %v4773_v11  ;;  %v4775_v21 = vpop.f32.mrb[173].mxu0  ;;  %17771 = vst [vmem:[#allocation46_spill] sm:$0xff] %v14796_v26 }
 0xb04   :  { %5120 = vmatmul.mubr.bf16.gmra.mrb[220].mxu1 %v14664_v40  ;;  %v4776_v46 = vpop.f32.mrb[174].mxu0 }
 0xb05   :  { %v5002_v34 = vadd.f32 %v10660_v17, %v4776_v46  ;;  %v4778_v3 = vpop.f32.mrb[175].mxu0  ;;  %5127 = vmatprep.mubr.bf16.mxu1 %v14667_v33 }
 0xb07   :  { %v14670_v0 = vpack.c.bf16 %v5002_v34, %v4999_v57  ;;  %v14697_v57 = vld [vmem:[#allocation2 + $0xac] ss:$12 sps:$4 sm:$0xff]  }
 0xb09   :  { %17750 = vst [vmem:[#allocation44_spill] sm:$0xff] %v14670_v0  ;;  %10675 = vmatprep.subr.bf16.mxu0 %v14670_v0 }
 0xb0a   :  { %v4781_v53 = vpop.f32.mrb[176].mxu0  ;;  %10676 = vmatpush3.bf16.msra.mxu0 %v14670_v0  ;;  %v14793_v0 = vld [vmem:[#allocation2 + $0x16c] ss:$12 sps:$4 sm:$0xff]  }
 0xb0b   :  { %v5007_v7 = vadd.f32 %v5006_v59, %v4781_v53  ;;  %v4783_v22 = vpop.f32.mrb[177].mxu0  ;;  %v14704_v53 = vld [vmem:[#allocation2 + $0xa8] ss:$12 sps:$4 sm:$0xff]   ;;  %17770 = vst [vmem:[#allocation12_spill] sm:$0xff] %v14793_v0 }
 0xb0c   :  { %5128 = vmatmul.mubr.bf16.gmra.mrb[224].mxu1 %v14674_v47  ;;  %v4784_v10 = vpop.f32.mrb[178].mxu0  ;;  %v14707_v22 = vld [vmem:[#allocation2 + $0xc4] ss:$12 sps:$4 sm:$0xff]  }
 0xb0d   :  { %v5010_v20 = vadd.f32 %v5009_v32, %v4784_v10  ;;  %v4786_v17 = vpop.f32.mrb[179].mxu0  ;;  %5135 = vmatprep.mubr.bf16.mxu1 %v14677_v2 }
 0xb0e   :  { %v14724_v17 = vld [vmem:[#allocation2 + $0x38] ss:$12 sps:$4 sm:$0xff]  }
 0xb0f   :  { %v14680_v60 = vpack.c.bf16 %v5010_v20, %v5007_v7  ;;  %v14718_v20 = vld [vmem:[#allocation2 + $0x20] ss:$12 sps:$4 sm:$0xff]  }
 0xb11   :  { %17751 = vst [vmem:[#allocation51_spill] sm:$0xff] %v14680_v60  ;;  %10677 = vmatprep.subr.bf16.mxu0 %v14680_v60 }
 0xb12   :  { %v4789_v31 = vpop.f32.mrb[180].mxu0  ;;  %10678 = vmatpush3.bf16.msra.mxu0 %v14680_v60  ;;  %v14790_v60 = vld [vmem:[#allocation2 + $0x140] ss:$12 sps:$4 sm:$0xff]  }
 0xb13   :  { %v5015_v8 = vadd.f32 %v10663_v61, %v4789_v31  ;;  %v4791_v55 = vpop.f32.mrb[181].mxu0  ;;  %v14727_v31 = vld [vmem:[#allocation2 + $0xd8] ss:$12 sps:$4 sm:$0xff]   ;;  %17769 = vst [vmem:[#allocation13_spill] sm:$0xff] %v14790_v60 }
 0xb14   :  { %5136 = vmatmul.mubr.bf16.gmra.mrb[228].mxu1 %v14684_v14  ;;  %v4792_v1 = vpop.f32.mrb[182].mxu0  ;;  %v14733_v55 = vld [vmem:[#allocation2 + $0xf4] ss:$12 sps:$4 sm:$0xff]  }
 0xb15   :  { %v5018_v59 = vadd.f32 %v10664_v52, %v4792_v1  ;;  %v4794_v32 = vpop.f32.mrb[183].mxu0  ;;  %5143 = vmatprep.mubr.bf16.mxu1 %v14687_v56  ;;  %v14736_v1 = vld [vmem:[#allocation2 + $0x68] ss:$12 sps:$4 sm:$0xff]  }
 0xb16   :  { %v14742_v32 = vld [vmem:[#allocation2 + $0x80] ss:$12 sps:$4 sm:$0xff]  }
 0xb17   :  { %v14690_v9 = vpack.c.bf16 %v5018_v59, %v5015_v8  ;;  %v14730_v8 = vld [vmem:[#allocation2 + $0x50] ss:$12 sps:$4 sm:$0xff]  }
 0xb18   :  { %v14739_v59 = vld [vmem:[#allocation2 + $0xf0] ss:$12 sps:$4 sm:$0xff]  }
 0xb19   :  { %17752 = vst [vmem:[#allocation7_spill] sm:$0xff] %v14690_v9  ;;  %10679 = vmatprep.subr.bf16.mxu0 %v14690_v9 }
 0xb1a   :  { %v4797_v30 = vpop.f32.mrb[184].mxu0  ;;  %10680 = vmatpush3.bf16.msra.mxu0 %v14690_v9  ;;  %v14787_v9 = vld [vmem:[#allocation2 + $0x150] ss:$12 sps:$4 sm:$0xff]  }
 0xb1b   :  { %v5023_v61 = vadd.f32 %v5022_v12, %v4797_v30  ;;  %v4799_v27 = vpop.f32.mrb[185].mxu0  ;;  %v14745_v30 = vld [vmem:[#allocation2 + $0x10c] ss:$12 sps:$4 sm:$0xff]   ;;  %17768 = vst [vmem:[#allocation45_spill] sm:$0xff] %v14787_v9 }
 0xb1c   :  { %5144 = vmatmul.mubr.bf16.gmra.mrb[232].mxu1 %v14694_v24  ;;  %v4800_v43 = vpop.f32.mrb[186].mxu0  ;;  %17755 = vst [vmem:[#allocation29_spill] sm:$0xff] %v14745_v30  ;;  %v14751_v27 = vld [vmem:[#allocation2 + $0x108] ss:$12 sps:$4 sm:$0xff]  }
 0xb1d   :  { %v5026_v52 = vadd.f32 %v5025_v38, %v4800_v43  ;;  %v4802_v11 = vpop.f32.mrb[187].mxu0  ;;  %5151 = vmatprep.mubr.bf16.mxu1 %v14697_v57  ;;  %17756 = vst [vmem:[#allocation10_spill] sm:$0xff] %v14751_v27  ;;  %v14754_v43 = vld [vmem:[#allocation2 + $0xb0] ss:$12 sps:$4 sm:$0xff]  }
 0xb1e   :  { %17757 = vst [vmem:[#allocation8_spill] sm:$0xff] %v14754_v43  ;;  %v14760_v11 = vld [vmem:[#allocation2 + $0xc8] ss:$12 sps:$4 sm:$0xff]  }
 0xb1f   :  { %v14700_v21 = vpack.c.bf16 %v5026_v52, %v5023_v61  ;;  %v14748_v61 = vld [vmem:[#allocation2 + $0x98] ss:$12 sps:$4 sm:$0xff]   ;;  %17759 = vst [vmem:[#allocation33_spill] sm:$0xff] %v14760_v11 }
 0xb20   :  { %v14757_v52 = vld [vmem:[#allocation2 + $0x124] ss:$12 sps:$4 sm:$0xff]  }
 0xb21   :  { %17753 = vst [vmem:[#allocation48_spill] sm:$0xff] %v14700_v21  ;;  %10681 = vmatprep.subr.bf16.mxu0 %v14700_v21  ;;  %17758 = vst [vmem:[#allocation30_spill] sm:$0xff] %v14757_v52 }
 0xb22   :  { %v4805_v46 = vpop.f32.mrb[188].mxu0  ;;  %10682 = vmatpush3.bf16.msra.mxu0 %v14700_v21  ;;  %v14784_v21 = vld [vmem:[#allocation2 + $0x128] ss:$12 sps:$4 sm:$0xff]  }
 0xb23   :  { %v5031_v12 = vadd.f32 %v10667_v63, %v4805_v46  ;;  %v4807_v34 = vpop.f32.mrb[189].mxu0  ;;  %v14715_v63 = vld [vmem:[#allocation2 + $0xc0] ss:$12 sps:$4 sm:$0xff]   ;;  %17767 = vst [vmem:[#allocation42_spill] sm:$0xff] %v14784_v21 }
 0xb24   :  { %v4808_v3 = vpop.f32.mrb[190].mxu0  ;;  %5152 = vmatmul.mubr.bf16.gmra.mrb[236].mxu1 %v14704_v53  ;;  %v14763_v46 = vld [vmem:[#allocation2 + $0x120] ss:$12 sps:$4 sm:$0xff]   ;;  %v14769_v34 = vld [vmem:[#allocation2 + $0x13c] ss:$12 sps:$4 sm:$0xff]  }
 0xb25   :  { %v5034_v38 = vadd.f32 %v10668_v16, %v4808_v3  ;;  %v4810_v7 = vpop.f32.mrb[191].mxu0  ;;  %5159 = vmatprep.mubr.bf16.mxu1 %v14707_v22  ;;  %v14721_v16 = vld [vmem:[#allocation2 + $0xdc] ss:$12 sps:$4 sm:$0xff]   ;;  %17760 = vst [vmem:[#allocation11_spill] sm:$0xff] %v14763_v46  ;;  %17762 = vst [vmem:[#allocation34_spill] sm:$0xff] %v14769_v34 }
 0xb26   :  { %v14772_v3 = vld [vmem:[#allocation2 + $0xf8] ss:$12 sps:$4 sm:$0xff]   ;;  %v14778_v7 = vld [vmem:[#allocation2 + $0x110] ss:$12 sps:$4 sm:$0xff]  }
 0xb27   :  { %v14710_v10 = vpack.c.bf16 %v5034_v38, %v5031_v12  ;;  %v14766_v12 = vld [vmem:[#allocation2 + $0xe0] ss:$12 sps:$4 sm:$0xff]   ;;  %17763 = vst [vmem:[#allocation37_spill] sm:$0xff] %v14772_v3  ;;  %v14775_v38 = vld [vmem:[#allocation2 + $0x138] ss:$12 sps:$4 sm:$0xff]   ;;  %17765 = vst [vmem:[#allocation5_spill] sm:$0xff] %v14778_v7 }
 0xb28   :  { %17761 = vst [vmem:[#allocation9_spill] sm:$0xff] %v14766_v12  ;;  %17764 = vst [vmem:[#allocation41_spill] sm:$0xff] %v14775_v38 }
 0xb29   :  { %17754 = vst [vmem:[#allocation6_spill] sm:$0xff] %v14710_v10  ;;  %10683 = vmatprep.subr.bf16.mxu0 %v14710_v10 }
 0xb2a   :  { %10684 = vmatpush3.bf16.msra.mxu0 %v14710_v10  ;;  %v14781_v10 = vld [vmem:[#allocation2 + $0x154] ss:$12 sps:$4 sm:$0xff]  }
 0xb2b   :  { %5537 = vmatprep.subr.bf16.mxu0 %v17499_v28  ;;  %17766 = vst [vmem:[#allocation38_spill] sm:$0xff] %v14781_v10 }
 0xb2c   :  { %5160 = vmatmul.mubr.bf16.gmra.mrb[240].mxu1 %v14715_v63 }
 0xb2d   :  { %10686 = vmatmul.mubr.bf16.vlgmr.msra.gmra.mrb[192].mxu0 %v14718_v20  ;;  %5167 = vmatprep.mubr.bf16.mxu1 %v14721_v16 }
 0xb2e   :  { %10689 = vmatprep.mubr.bf16.mxu0 %v14724_v17 }
 0xb34   :  { %5168 = vmatmul.mubr.bf16.gmra.mrb[244].mxu1 %v14727_v31 }
 0xb35   :  { %10690 = vmatmul.mubr.bf16.gmra.mrb[196].mxu0 %v14730_v8  ;;  %5175 = vmatprep.mubr.bf16.mxu1 %v14733_v55 }
 0xb36   :  { %10693 = vmatprep.mubr.bf16.mxu0 %v14736_v1 }
 0xb3c   :  { %5176 = vmatmul.mubr.bf16.gmra.mrb[248].mxu1 %v14739_v59 }
 0xb3d   :  { %10694 = vmatmul.mubr.bf16.gmra.mrb[200].mxu0 %v14742_v32  ;;  %5183 = vmatprep.mubr.bf16.mxu1 %v14745_v30 }
 0xb3e   :  { %10697 = vmatprep.mubr.bf16.mxu0 %v14748_v61 }
 0xb44   :  { %5184 = vmatmul.mubr.bf16.gmra.mrb[252].mxu1 %v14751_v27 }
 0xb45   :  { %10698 = vmatmul.mubr.bf16.gmra.mrb[204].mxu0 %v14754_v43  ;;  %5191 = vmatprep.mubr.bf16.mxu1 %v14757_v52 }
 0xb46   :  { %10701 = vmatprep.mubr.bf16.mxu0 %v14760_v11 }
 0xb4c   :  { %5192 = vmatmul.mubr.bf16.gmra.mrb[0].mxu1 %v14763_v46 }
 0xb4d   :  { %10702 = vmatmul.mubr.bf16.gmra.mrb[208].mxu0 %v14766_v12  ;;  %5199 = vmatprep.mubr.bf16.mxu1 %v14769_v34 }
 0xb4e   :  { %10705 = vmatprep.mubr.bf16.mxu0 %v14772_v3 }
 0xb54   :  { %5200 = vmatmul.mubr.bf16.gmra.mrb[4].mxu1 %v14775_v38 }
 0xb55   :  { %10706 = vmatmul.mubr.bf16.gmra.mrb[212].mxu0 %v14778_v7  ;;  %5207 = vmatprep.mubr.bf16.mxu1 %v14781_v10 }
 0xb56   :  { %10709 = vmatprep.mubr.bf16.mxu0 %v14784_v21 }
 0xb5c   :  { %5208 = vmatmul.mubr.bf16.gmra.mrb[8].mxu1 %v14787_v9 }
 0xb5d   :  { %10710 = vmatmul.mubr.bf16.gmra.mrb[216].mxu0 %v14790_v60  ;;  %5215 = vmatprep.mubr.bf16.mxu1 %v14793_v0 }
 0xb5e   :  { %10713 = vmatprep.mubr.bf16.mxu0 %v14796_v26 }
 0xb64   :  { %5216 = vmatmul.mubr.bf16.gmra.mrb[12].mxu1 %v14799_v35 }
 0xb65   :  { %10714 = vmatmul.mubr.bf16.gmra.mrb[220].mxu0 %v14802_v44  ;;  %5223 = vmatprep.mubr.bf16.mxu1 %v14805_v13 }
 0xb66   :  { %10717 = vmatprep.mubr.bf16.mxu0 %v14808_v18 }
 0xb6c   :  { %5224 = vmatmul.mubr.bf16.gmra.mrb[16].mxu1 %v14811_v51 }
 0xb6d   :  { %5231 = vmatprep.mubr.bf16.mxu1 %v14814_v41  ;;  %10718 = vmatmul.mubr.bf16.gmra.mrb[224].mxu0 %v14817_v62 }
 0xb6e   :  { %10721 = vmatprep.mubr.bf16.mxu0 %v14820_v54 }
 0xb74   :  { %5232 = vmatmul.mubr.bf16.gmra.mrb[20].mxu1 %v14823_v48 }
 0xb75   :  { %5239 = vmatprep.mubr.bf16.mxu1 %v14826_v39  ;;  %10722 = vmatmul.mubr.bf16.gmra.mrb[228].mxu0 %v14829_v37 }
 0xb76   :  { %10725 = vmatprep.mubr.bf16.mxu0 %v14832_v4 }
 0xb7c   :  { %5240 = vmatmul.mubr.bf16.gmra.mrb[24].mxu1 %v14835_v49  ;;  %v14853_v49 = vld [vmem:[#allocation2 + $0x230] ss:$12 sps:$4 sm:$0xff]  }
 0xb7d   :  { %5247 = vmatprep.mubr.bf16.mxu1 %v14838_v15  ;;  %10726 = vmatmul.mubr.bf16.gmra.mrb[232].mxu0 %v14841_v29  ;;  %17790 = vst [vmem:[#allocation64_spill] sm:$0xff] %v14853_v49  ;;  %v14856_v15 = vld [vmem:[#allocation2 + $0x4] ss:$12 sps:$4 sm:$0xff]   ;;  %v14859_v29 = vld [vmem:[#allocation2 + $0x1e0] ss:$12 sps:$4 sm:$0xff]  }
 0xb7e   :  { %10729 = vmatprep.mubr.bf16.mxu0 %v14844_v19  ;;  %17791 = vst [vmem:[#allocation65_spill] sm:$0xff] %v14856_v15  ;;  %17792 = vst [vmem:[#allocation66_spill] sm:$0xff] %v14859_v29  ;;  %v14862_v19 = vld [vmem:[#allocation2 + $0x1fc] ss:$12 sps:$4 sm:$0xff]  }
 0xb7f   :  { %17793 = vst [vmem:[#allocation67_spill] sm:$0xff] %v14862_v19 }
 0xb84   :  { %5248 = vmatmul.mubr.bf16.gmra.mrb[28].mxu1 %v14847_v42  ;;  %v14865_v42 = vld [vmem:[#allocation2 + $0x1f8] ss:$12 sps:$4 sm:$0xff]  }
 0xb85   :  { %5255 = vmatprep.mubr.bf16.mxu1 %v14850_v50  ;;  %10730 = vmatmul.mubr.bf16.gmra.mrb[236].mxu0 %v14853_v49  ;;  %17794 = vst [vmem:[#allocation68_spill] sm:$0xff] %v14865_v42  ;;  %v14868_v50 = vld [vmem:[#allocation2 + $0x214] ss:$12 sps:$4 sm:$0xff]   ;;  %v14871_v49 = vld [vmem:[#allocation2 + $0x210] ss:$12 sps:$4 sm:$0xff]  }
 0xb86   :  { %5569 = vmatprep.mubr.bf16.mxu0 %v14856_v15  ;;  %17795 = vst [vmem:[#allocation69_spill] sm:$0xff] %v14868_v50  ;;  %17796 = vst [vmem:[#allocation70_spill] sm:$0xff] %v14871_v49  ;;  %v14874_v15 = vld [vmem:[#allocation2 + $0x22c] ss:$12 sps:$4 sm:$0xff]  }
 0xb87   :  { %17797 = vst [vmem:[#allocation71_spill] sm:$0xff] %v14874_v15 }
 0xb8c   :  { %5256 = vmatmul.mubr.bf16.gmra.mrb[32].mxu1 %v14859_v29  ;;  %v14877_v29 = vld [vmem:[#allocation2 + $0x228] ss:$12 sps:$4 sm:$0xff]  }
 0xb8d   :  { %5263 = vmatprep.mubr.bf16.mxu1 %v14862_v19  ;;  %17798 = vst [vmem:[#allocation72_spill] sm:$0xff] %v14877_v29 }
 0xb94   :  { %5264 = vmatmul.mubr.bf16.gmra.mrb[36].mxu1 %v14865_v42 }
 0xb95   :  { %5271 = vmatprep.mubr.bf16.mxu1 %v14868_v50 }
 0xb9c   :  { %5272 = vmatmul.mubr.bf16.gmra.mrb[40].mxu1 %v14871_v49 }
 0xb9d   :  { %5279 = vmatprep.mubr.bf16.mxu1 %v14874_v15 }
 0xba4   :  { %5280 = vmatmul.mubr.bf16.gmra.mrb[44].mxu1 %v14877_v29 }
 0xba5   :  { %10749 = vmatprep.mubr.bf16.mxu1 %v14556_v45 }
 0xbbf   :  { %v5097_v19 = vpop.f32.mrb[208].mxu1 }
 0xbc0   :  { %v5099_v42 = vpop.f32.mrb[209].mxu1 }
 0xbc1   :  { %v5100_v39 = vpop.f32.mrb[210].mxu1 }
 0xbc2   :  { %v5102_v48 = vpop.f32.mrb[211].mxu1 }
 0xbc7   :  { %v5105_v4 = vpop.f32.mrb[212].mxu1 }
 0xbc8   :  { %v5107_v50 = vpop.f32.mrb[213].mxu1 }
 0xbc9   :  { %v5108_v37 = vpop.f32.mrb[214].mxu1 }
 0xbca   :  { %v5110_v41 = vpop.f32.mrb[215].mxu1 }
 0xbcf   :  { %v5113_v51 = vpop.f32.mrb[216].mxu1 }
 0xbd0   :  { %v5115_v49 = vpop.f32.mrb[217].mxu1 }
 0xbd1   :  { %v5116_v54 = vpop.f32.mrb[218].mxu1 }
 0xbd2   :  { %v5118_v62 = vpop.f32.mrb[219].mxu1 }
 0xbd7   :  { %v5121_v13 = vpop.f32.mrb[220].mxu1 }
 0xbd8   :  { %v5123_v15 = vpop.f32.mrb[221].mxu1 }
 0xbd9   :  { %v5124_v35 = vpop.f32.mrb[222].mxu1 }
 0xbda   :  { %v5126_v18 = vpop.f32.mrb[223].mxu1 }
 0xbdf   :  { %v5129_v44 = vpop.f32.mrb[224].mxu1 }
 0xbe0   :  { %v5131_v29 = vpop.f32.mrb[225].mxu1 }
 0xbe1   :  { %v5132_v0 = vpop.f32.mrb[226].mxu1 }
 0xbe2   :  { %v5134_v45 = vpop.f32.mrb[227].mxu1 }
 0xbe7   :  { %v5137_v9 = vpop.f32.mrb[228].mxu1 }
 0xbe8   :  { %v5139_v42 = vpop.f32.mrb[229].mxu1 }
 0xbe9   :  { %v5140_v26 = vpop.f32.mrb[230].mxu1 }
 0xbea   :  { %v5142_v48 = vpop.f32.mrb[231].mxu1 }
 0xbef   :  { %v14881_v60 = vpop.f32.mrb[232].mxu1 }
 0xbf0   :  { %v5147_v50 = vpop.f32.mrb[233].mxu1 }
 0xbf1   :  { %v14883_v41 = vpop.f32.mrb[234].mxu1 }
 0xbf2   :  { %v5150_v49 = vpop.f32.mrb[235].mxu1 }
 0xbf7   :  { %v5153_v10 = vpop.f32.mrb[236].mxu1 }
 0xbf8   :  { %v5155_v62 = vpop.f32.mrb[237].mxu1 }
 0xbf9   :  { %v14885_v38 = vpop.f32.mrb[238].mxu1 }
 0xbfa   :  { %v5158_v15 = vpop.f32.mrb[239].mxu1 }
 0xbff   :  { %v14887_v18 = vpop.f32.mrb[240].mxu1 }
 0xc00   :  { %v10687_v29 = vpop.f32.mrb[192].mxu0  ;;  %v5163_v21 = vpop.f32.mrb[241].mxu1 }
 0xc01   :  { %v5331_v45 = vadd.f32 %v10687_v29, %v5105_v4  ;;  %v5322_v7 = vpop.f32.mrb[193].mxu0  ;;  %v14889_v42 = vpop.f32.mrb[242].mxu1 }
 0xc02   :  { %v5323_v48 = vadd.f32 %v5322_v7, %v5097_v19  ;;  %v10688_v34 = vpop.f32.mrb[194].mxu0  ;;  %v5166_v46 = vpop.f32.mrb[243].mxu1 }
 0xc03   :  { %v5334_v50 = vadd.f32 %v10688_v34, %v5108_v37  ;;  %v5325_v3 = vpop.f32.mrb[195].mxu0 }
 0xc04   :  { %v5326_v12 = vadd.f32 %v5325_v3, %v5100_v39 }
 0xc05   :  { %v5514_v49 = vpack.c.bf16 %v5334_v50, %v5331_v45 }
 0xc06   :  { %v5513_v52 = vpack.c.bf16 %v5326_v12, %v5323_v48 }
 0xc07   :  { %v5169_v62 = vpop.f32.mrb[244].mxu1 }
 0xc08   :  { %v10691_v27 = vpop.f32.mrb[196].mxu0  ;;  %5538 = vmatpush1.bf16.msra.mxu0 %v5513_v52  ;;  %v5171_v15 = vpop.f32.mrb[245].mxu1 }
 0xc09   :  { %v5347_v11 = vadd.f32 %v10691_v27, %v5121_v13  ;;  %v5338_v43 = vpop.f32.mrb[197].mxu0  ;;  %5539 = vmatprep.subr.bf16.mxu0 %v17499_v28  ;;  %v5172_v4 = vpop.f32.mrb[246].mxu1 }
 0xc0a   :  { %v5339_v21 = vadd.f32 %v5338_v43, %v5113_v51  ;;  %v10692_v29 = vpop.f32.mrb[198].mxu0  ;;  %v5174_v30 = vpop.f32.mrb[247].mxu1 }
 0xc0b   :  { %v5350_v19 = vadd.f32 %v10692_v29, %v5124_v35  ;;  %v5341_v7 = vpop.f32.mrb[199].mxu0 }
 0xc0c   :  { %v5342_v46 = vadd.f32 %v5341_v7, %v5116_v54  ;;  %5540 = vmatpush1.bf16.msra.mxu0 %v5514_v49 }
 0xc0d   :  { %v5516_v37 = vpack.c.bf16 %v5350_v19, %v5347_v11  ;;  %5541 = vmatprep.subr.bf16.mxu0 %v17499_v28 }
 0xc0e   :  { %v5515_v39 = vpack.c.bf16 %v5342_v46, %v5339_v21 }
 0xc0f   :  { %v5177_v12 = vpop.f32.mrb[248].mxu1 }
 0xc10   :  { %v10695_v34 = vpop.f32.mrb[200].mxu0  ;;  %5542 = vmatpush1.bf16.msra.mxu0 %v5515_v39  ;;  %v5179_v52 = vpop.f32.mrb[249].mxu1 }
 0xc11   :  { %v5363_v13 = vadd.f32 %v10695_v34, %v5137_v9  ;;  %v5354_v27 = vpop.f32.mrb[201].mxu0  ;;  %5543 = vmatprep.subr.bf16.mxu0 %v17499_v28  ;;  %v5180_v3 = vpop.f32.mrb[250].mxu1 }
 0xc12   :  { %v5355_v51 = vadd.f32 %v5354_v27, %v5129_v44  ;;  %v10696_v43 = vpop.f32.mrb[202].mxu0  ;;  %v5182_v30 = vpop.f32.mrb[251].mxu1 }
 0xc13   :  { %v5366_v35 = vadd.f32 %v10696_v43, %v5140_v26  ;;  %v5357_v45 = vpop.f32.mrb[203].mxu0 }
 0xc14   :  { %v5358_v54 = vadd.f32 %v5357_v45, %v5132_v0  ;;  %5544 = vmatpush1.bf16.msra.mxu0 %v5516_v37 }
 0xc15   :  { %v5518_v11 = vpack.c.bf16 %v5366_v35, %v5363_v13  ;;  %5545 = vmatprep.subr.bf16.mxu0 %v17499_v28 }
 0xc16   :  { %v5517_v48 = vpack.c.bf16 %v5358_v54, %v5355_v51 }
 0xc17   :  { %v5185_v50 = vpop.f32.mrb[252].mxu1 }
 0xc18   :  { %v10699_v49 = vpop.f32.mrb[204].mxu0  ;;  %5546 = vmatpush1.bf16.msra.mxu0 %v5517_v48  ;;  %v5187_v15 = vpop.f32.mrb[253].mxu1 }
 0xc19   :  { %v5379_v9 = vadd.f32 %v10699_v49, %v5153_v10  ;;  %v5370_v21 = vpop.f32.mrb[205].mxu0  ;;  %5547 = vmatprep.subr.bf16.mxu0 %v17499_v28  ;;  %v5188_v29 = vpop.f32.mrb[254].mxu1 }
 0xc1a   :  { %v5371_v44 = vadd.f32 %v5370_v21, %v14881_v60  ;;  %v10700_v19 = vpop.f32.mrb[206].mxu0  ;;  %v5190_v26 = vpop.f32.mrb[255].mxu1 }
 0xc1b   :  { %v5382_v0 = vadd.f32 %v10700_v19, %v14885_v38  ;;  %v5373_v7 = vpop.f32.mrb[207].mxu0 }
 0xc1c   :  { %v5374_v46 = vadd.f32 %v5373_v7, %v14883_v41  ;;  %5548 = vmatpush1.bf16.msra.mxu0 %v5518_v11 }
 0xc1d   :  { %v5520_v37 = vpack.c.bf16 %v5382_v0, %v5379_v9  ;;  %5549 = vmatprep.subr.bf16.mxu0 %v17499_v28 }
 0xc1e   :  { %v5519_v39 = vpack.c.bf16 %v5374_v46, %v5371_v44 }
 0xc1f   :  { %v5193_v34 = vpop.f32.mrb[0].mxu1 }
 0xc20   :  { %v10703_v10 = vpop.f32.mrb[208].mxu0  ;;  %5550 = vmatpush1.bf16.msra.mxu0 %v5519_v39  ;;  %v5195_v52 = vpop.f32.mrb[1].mxu1 }
 0xc21   :  { %v5395_v13 = vadd.f32 %v10703_v10, %v5169_v62  ;;  %v5386_v27 = vpop.f32.mrb[209].mxu0  ;;  %5551 = vmatprep.subr.bf16.mxu0 %v17499_v28  ;;  %v5196_v60 = vpop.f32.mrb[2].mxu1 }
 0xc22   :  { %v5387_v51 = vadd.f32 %v5386_v27, %v14887_v18  ;;  %v10704_v38 = vpop.f32.mrb[210].mxu0  ;;  %v5198_v43 = vpop.f32.mrb[3].mxu1 }
 0xc23   :  { %v5398_v30 = vadd.f32 %v10704_v38, %v5172_v4  ;;  %v5389_v41 = vpop.f32.mrb[211].mxu0 }
 0xc24   :  { %v5390_v35 = vadd.f32 %v5389_v41, %v14889_v42  ;;  %5552 = vmatpush1.bf16.msra.mxu0 %v5520_v37 }
 0xc25   :  { %v5522_v45 = vpack.c.bf16 %v5398_v30, %v5395_v13  ;;  %5553 = vmatprep.subr.bf16.mxu0 %v17499_v28 }
 0xc26   :  { %v5521_v54 = vpack.c.bf16 %v5390_v35, %v5387_v51 }
 0xc27   :  { %v5201_v11 = vpop.f32.mrb[4].mxu1 }
 0xc28   :  { %v10707_v48 = vpop.f32.mrb[212].mxu0  ;;  %5554 = vmatpush1.bf16.msra.mxu0 %v5521_v54  ;;  %v5203_v62 = vpop.f32.mrb[5].mxu1 }
 0xc29   :  { %v5411_v49 = vadd.f32 %v10707_v48, %v5185_v50  ;;  %v5402_v15 = vpop.f32.mrb[213].mxu0  ;;  %5555 = vmatprep.subr.bf16.mxu0 %v17499_v28  ;;  %v5204_v18 = vpop.f32.mrb[6].mxu1 }
 0xc2a   :  { %v5403_v9 = vadd.f32 %v5402_v15, %v5177_v12  ;;  %v10708_v21 = vpop.f32.mrb[214].mxu0  ;;  %v5206_v4 = vpop.f32.mrb[7].mxu1 }
 0xc2b   :  { %v5414_v44 = vadd.f32 %v10708_v21, %v5188_v29  ;;  %v5405_v19 = vpop.f32.mrb[215].mxu0 }
 0xc2c   :  { %v5406_v42 = vadd.f32 %v5405_v19, %v5180_v3  ;;  %5556 = vmatpush1.bf16.msra.mxu0 %v5522_v45 }
 0xc2d   :  { %v5524_v26 = vpack.c.bf16 %v5414_v44, %v5411_v49  ;;  %5557 = vmatprep.subr.bf16.mxu0 %v17499_v28 }
 0xc2e   :  { %v5523_v0 = vpack.c.bf16 %v5406_v42, %v5403_v9 }
 0xc2f   :  { %v5209_v7 = vpop.f32.mrb[8].mxu1 }
 0xc30   :  { %v10711_v46 = vpop.f32.mrb[216].mxu0  ;;  %5558 = vmatpush1.bf16.msra.mxu0 %v5523_v0  ;;  %v5211_v37 = vpop.f32.mrb[9].mxu1 }
 0xc31   :  { %v5427_v50 = vadd.f32 %v10711_v46, %v5201_v11  ;;  %v5418_v39 = vpop.f32.mrb[217].mxu0  ;;  %5559 = vmatprep.subr.bf16.mxu0 %v17499_v28  ;;  %v5212_v10 = vpop.f32.mrb[10].mxu1 }
 0xc32   :  { %v5419_v12 = vadd.f32 %v5418_v39, %v5193_v34  ;;  %v10712_v52 = vpop.f32.mrb[218].mxu0  ;;  %v5214_v13 = vpop.f32.mrb[11].mxu1 }
 0xc33   :  { %v5430_v29 = vadd.f32 %v10712_v52, %v5204_v18  ;;  %v5421_v27 = vpop.f32.mrb[219].mxu0 }
 0xc34   :  { %v5422_v3 = vadd.f32 %v5421_v27, %v5196_v60  ;;  %5560 = vmatpush1.bf16.msra.mxu0 %v5524_v26 }
 0xc35   :  { %v5526_v51 = vpack.c.bf16 %v5430_v29, %v5427_v50  ;;  %5561 = vmatprep.subr.bf16.mxu0 %v17499_v28 }
 0xc36   :  { %v5525_v38 = vpack.c.bf16 %v5422_v3, %v5419_v12 }
 0xc37   :  { %v5217_v43 = vpop.f32.mrb[12].mxu1 }
 0xc38   :  { %v10715_v30 = vpop.f32.mrb[220].mxu0  ;;  %5562 = vmatpush1.bf16.msra.mxu0 %v5525_v38  ;;  %v5219_v41 = vpop.f32.mrb[13].mxu1 }
 0xc39   :  { %v5434_v35 = vpop.f32.mrb[221].mxu0  ;;  %v5443_v45 = vadd.f32 %v10715_v30, %v5217_v43  ;;  %5563 = vmatprep.subr.bf16.mxu0 %v17499_v28  ;;  %v5220_v54 = vpop.f32.mrb[14].mxu1 }
 0xc3a   :  { %v5435_v34 = vadd.f32 %v5434_v35, %v5209_v7  ;;  %v10716_v11 = vpop.f32.mrb[222].mxu0  ;;  %v5222_v48 = vpop.f32.mrb[15].mxu1 }
 0xc3b   :  { %v5437_v62 = vpop.f32.mrb[223].mxu0  ;;  %v5446_v49 = vadd.f32 %v10716_v11, %v5220_v54 }
 0xc3c   :  { %v5438_v60 = vadd.f32 %v5437_v62, %v5212_v10  ;;  %5564 = vmatpush1.bf16.msra.mxu0 %v5526_v51 }
 0xc3d   :  { %v5528_v15 = vpack.c.bf16 %v5446_v49, %v5443_v45  ;;  %5565 = vmatprep.subr.bf16.mxu0 %v17499_v28 }
 0xc3e   :  { %v5527_v18 = vpack.c.bf16 %v5438_v60, %v5435_v34 }
 0xc3f   :  { %v5225_v9 = vpop.f32.mrb[16].mxu1 }
 0xc40   :  { %5566 = vmatpush1.bf16.msra.mxu0 %v5527_v18  ;;  %v10719_v21 = vpop.f32.mrb[224].mxu0  ;;  %v5227_v4 = vpop.f32.mrb[17].mxu1 }
 0xc41   :  { %5567 = vmatprep.subr.bf16.mxu0 %v17499_v28  ;;  %v5450_v44 = vpop.f32.mrb[225].mxu0  ;;  %v5228_v19 = vpop.f32.mrb[18].mxu1 }
 0xc42   :  { %v5451_v42 = vadd.f32 %v5450_v44, %v5225_v9  ;;  %v10720_v26 = vpop.f32.mrb[226].mxu0  ;;  %v5230_v0 = vpop.f32.mrb[19].mxu1 }
 0xc43   :  { %v5453_v7 = vpop.f32.mrb[227].mxu0 }
 0xc44   :  { %5568 = vmatpush1.bf16.msra.mxu0 %v5528_v15  ;;  %v5454_v46 = vadd.f32 %v5453_v7, %v5228_v19 }
 0xc45   :  { %6620 = vmatprep.subr.bf16.mxu0 %v17499_v28 }
 0xc46   :  { %v5529_v37 = vpack.c.bf16 %v5454_v46, %v5451_v42 }
 0xc47   :  { %5570 = vmatmul.mubr.bf16.vlgmr.msra.gmra.mrb[240].mxu0 %v14634_v5  ;;  %v5233_v50 = vpop.f32.mrb[20].mxu1 }
 0xc48   :  { %5577 = vmatprep.mubr.bf16.mxu0 %v14637_v23  ;;  %v5459_v39 = vadd.f32 %v10719_v21, %v5233_v50  ;;  %v5235_v10 = vpop.f32.mrb[21].mxu1  ;;  %10733 = vmatprep.subr.bf16.mxu1 %v5529_v37  ;;  %v10723_v12 = vpop.f32.mrb[228].mxu0 }
 0xc49   :  { %v5236_v52 = vpop.f32.mrb[22].mxu1  ;;  %10734 = vmatpush3.bf16.msra.mxu1 %v5529_v37  ;;  %v5466_v13 = vpop.f32.mrb[229].mxu0 }
 0xc4a   :  { %v5462_v29 = vadd.f32 %v10720_v26, %v5236_v52  ;;  %v5238_v27 = vpop.f32.mrb[23].mxu1  ;;  %v10724_v3 = vpop.f32.mrb[230].mxu0 }
 0xc4b   :  { %v5469_v51 = vpop.f32.mrb[231].mxu0 }
 0xc4c   :  { %v5530_v38 = vpack.c.bf16 %v5462_v29, %v5459_v39 }
 0xc4e   :  { %10735 = vmatprep.subr.bf16.mxu1 %v5530_v38 }
 0xc4f   :  { %5578 = vmatmul.mubr.bf16.gmra.mrb[244].mxu0 %v14644_v58  ;;  %v5241_v43 = vpop.f32.mrb[24].mxu1  ;;  %10736 = vmatpush3.bf16.msra.mxu1 %v5530_v38 }
 0xc50   :  { %5585 = vmatprep.mubr.bf16.mxu0 %v14647_v25  ;;  %v5467_v5 = vadd.f32 %v5466_v13, %v5241_v43  ;;  %v5243_v23 = vpop.f32.mrb[25].mxu1  ;;  %v10727_v30 = vpop.f32.mrb[232].mxu0 }
 0xc51   :  { %v5244_v41 = vpop.f32.mrb[26].mxu1  ;;  %v5482_v35 = vpop.f32.mrb[233].mxu0 }
 0xc52   :  { %v5470_v45 = vadd.f32 %v5469_v51, %v5244_v41  ;;  %v5246_v54 = vpop.f32.mrb[27].mxu1  ;;  %v10728_v34 = vpop.f32.mrb[234].mxu0  ;;  %v17816_v41 = vld [vmem:[#allocation15_spill] sm:$0xff] }
 0xc53   :  { %v5485_v11 = vpop.f32.mrb[235].mxu0  ;;  %v17819_v54 = vld [vmem:[#allocation14_spill] sm:$0xff] }
 0xc54   :  { %v5531_v48 = vpack.c.bf16 %v5470_v45, %v5467_v5  ;;  %v17818_v45 = vld [vmem:[#allocation49_spill] sm:$0xff] }
 0xc56   :  { %10737 = vmatprep.subr.bf16.mxu1 %v5531_v48 }
 0xc57   :  { %5586 = vmatmul.mubr.bf16.gmra.mrb[248].mxu0 %v14654_v36  ;;  %v5249_v62 = vpop.f32.mrb[28].mxu1  ;;  %10738 = vmatpush3.bf16.msra.mxu1 %v5531_v48  ;;  %v17822_v48 = vld [vmem:[#allocation53_spill] sm:$0xff] }
 0xc58   :  { %5593 = vmatprep.mubr.bf16.mxu0 %v14657_v6  ;;  %v5475_v58 = vadd.f32 %v10723_v12, %v5249_v62  ;;  %v5251_v49 = vpop.f32.mrb[29].mxu1  ;;  %v10731_v25 = vpop.f32.mrb[236].mxu0  ;;  %v17823_v62 = vld [vmem:[#allocation17_spill] sm:$0xff] }
 0xc59   :  { %v5252_v60 = vpop.f32.mrb[30].mxu1  ;;  %v5498_v15 = vpop.f32.mrb[237].mxu0  ;;  %v17825_v49 = vld [vmem:[#allocation21_spill] sm:$0xff] }
 0xc5a   :  { %v5478_v18 = vadd.f32 %v10724_v3, %v5252_v60  ;;  %v5254_v9 = vpop.f32.mrb[31].mxu1  ;;  %v10732_v21 = vpop.f32.mrb[238].mxu0  ;;  %v17827_v60 = vld [vmem:[#allocation52_spill] sm:$0xff] }
 0xc5b   :  { %v5501_v4 = vpop.f32.mrb[239].mxu0  ;;  %v17830_v9 = vld [vmem:[#allocation20_spill] sm:$0xff] }
 0xc5c   :  { %v5532_v44 = vpack.c.bf16 %v5478_v18, %v5475_v58  ;;  %v17824_v58 = vld [vmem:[#allocation55_spill] sm:$0xff]  ;;  %v17829_v18 = vld [vmem:[#allocation61_spill] sm:$0xff] }
 0xc5e   :  { %10739 = vmatprep.subr.bf16.mxu1 %v5532_v44 }
 0xc5f   :  { %5594 = vmatmul.mubr.bf16.gmra.mrb[252].mxu0 %v14664_v40  ;;  %v5257_v19 = vpop.f32.mrb[32].mxu1  ;;  %10740 = vmatpush3.bf16.msra.mxu1 %v5532_v44  ;;  %v11371_v44 = vld [vmem:[%s17119_s6 + $0x8] sm:$0xff]  }
 0xc60   :  { %5601 = vmatprep.mubr.bf16.mxu0 %v14667_v33  ;;  %v5483_v36 = vadd.f32 %v5482_v35, %v5257_v19  ;;  %v5259_v42 = vpop.f32.mrb[33].mxu1  ;;  %v17817_v35 = vld [vmem:[#allocation50_spill] sm:$0xff] }
 0xc61   :  { %v5260_v6 = vpop.f32.mrb[34].mxu1  ;;  %v17833_v19 = vld [vmem:[#allocation62_spill] sm:$0xff] }
 0xc62   :  { %v5486_v26 = vadd.f32 %v5485_v11, %v5260_v6  ;;  %v5262_v0 = vpop.f32.mrb[35].mxu1  ;;  %v17821_v11 = vld [vmem:[#allocation19_spill] sm:$0xff]  ;;  %v17835_v42 = vld [vmem:[#allocation66_spill] sm:$0xff] }
 0xc63   :  { %v17836_v6 = vld [vmem:[#allocation67_spill] sm:$0xff]  ;;  %v17838_v0 = vld [vmem:[#allocation69_spill] sm:$0xff] }
 0xc64   :  { %v5533_v7 = vpack.c.bf16 %v5486_v26, %v5483_v36  ;;  %v17834_v36 = vld [vmem:[#allocation63_spill] sm:$0xff]  ;;  %v17837_v26 = vld [vmem:[#allocation68_spill] sm:$0xff] }
 0xc66   :  { %10741 = vmatprep.subr.bf16.mxu1 %v5533_v7 }
 0xc67   :  { %5602 = vmatmul.mubr.bf16.gmra.mrb[0].mxu0 %v14674_v47  ;;  %v5265_v46 = vpop.f32.mrb[36].mxu1  ;;  %10742 = vmatpush3.bf16.msra.mxu1 %v5533_v7  ;;  %v17839_v7 = vld [vmem:[#allocation70_spill] sm:$0xff] }
 0xc68   :  { %5609 = vmatprep.mubr.bf16.mxu0 %v14677_v2  ;;  %v5491_v37 = vadd.f32 %v10727_v30, %v5265_v46  ;;  %v5267_v50 = vpop.f32.mrb[37].mxu1  ;;  %v17815_v30 = vld [vmem:[#allocation12_spill] sm:$0xff]  ;;  %v17840_v46 = vld [vmem:[#allocation71_spill] sm:$0xff] }
 0xc69   :  { %v5268_v40 = vpop.f32.mrb[38].mxu1  ;;  %v17842_v50 = vld [vmem:[#allocation65_spill] sm:$0xff] }
 0xc6a   :  { %v5494_v39 = vadd.f32 %v10728_v34, %v5268_v40  ;;  %v5270_v10 = vpop.f32.mrb[39].mxu1  ;;  %v17820_v34 = vld [vmem:[#allocation16_spill] sm:$0xff] }
 0xc6c   :  { %v5534_v12 = vpack.c.bf16 %v5494_v39, %v5491_v37  ;;  %v17841_v37 = vld [vmem:[#allocation72_spill] sm:$0xff] }
 0xc6e   :  { %10743 = vmatprep.subr.bf16.mxu1 %v5534_v12 }
 0xc6f   :  { %5610 = vmatmul.mubr.bf16.gmra.mrb[4].mxu0 %v14684_v14  ;;  %v5273_v33 = vpop.f32.mrb[40].mxu1  ;;  %10744 = vmatpush3.bf16.msra.mxu1 %v5534_v12 }
 0xc70   :  { %v5499_v52 = vadd.f32 %v5498_v15, %v5273_v33  ;;  %v5275_v13 = vpop.f32.mrb[41].mxu1  ;;  %5617 = vmatprep.mubr.bf16.mxu0 %v14687_v56  ;;  %v17799_v56 = vld [vmem:[#allocation29_spill] sm:$0xff]  ;;  %v17828_v15 = vld [vmem:[#allocation60_spill] sm:$0xff] }
 0xc71   :  { %v5276_v47 = vpop.f32.mrb[42].mxu1  ;;  %v11372_v33 = vld [vmem:[%s17119_s6] sm:$0xff]  }
 0xc72   :  { %v5502_v29 = vadd.f32 %v5501_v4, %v5276_v47  ;;  %v5278_v27 = vpop.f32.mrb[43].mxu1  ;;  %v17832_v4 = vld [vmem:[#allocation64_spill] sm:$0xff] }
 0xc74   :  { %v5535_v3 = vpack.c.bf16 %v5502_v29, %v5499_v52 }
 0xc76   :  { %10745 = vmatprep.subr.bf16.mxu1 %v5535_v3 }
 0xc77   :  { %v5281_v2 = vpop.f32.mrb[44].mxu1  ;;  %5618 = vmatmul.mubr.bf16.gmra.mrb[8].mxu0 %v14694_v24  ;;  %10746 = vmatpush3.bf16.msra.mxu1 %v5535_v3  ;;  %v17800_v24 = vld [vmem:[#allocation8_spill] sm:$0xff] }
 0xc78   :  { %v5507_v51 = vadd.f32 %v10731_v25, %v5281_v2  ;;  %v5283_v38 = vpop.f32.mrb[45].mxu1  ;;  %5625 = vmatprep.mubr.bf16.mxu0 %v14697_v57  ;;  %v17801_v57 = vld [vmem:[#allocation33_spill] sm:$0xff]  ;;  %v17826_v25 = vld [vmem:[#allocation18_spill] sm:$0xff] }
 0xc79   :  { %v5284_v14 = vpop.f32.mrb[46].mxu1 }
 0xc7a   :  { %v5510_v43 = vadd.f32 %v10732_v21, %v5284_v14  ;;  %v5286_v5 = vpop.f32.mrb[47].mxu1  ;;  %v17831_v21 = vld [vmem:[#allocation54_spill] sm:$0xff] }
 0xc7c   :  { %v5536_v23 = vpack.c.bf16 %v5510_v43, %v5507_v51 }
 0xc7e   :  { %10747 = vmatprep.subr.bf16.mxu1 %v5536_v23 }
 0xc7f   :  { %5626 = vmatmul.mubr.bf16.gmra.mrb[12].mxu0 %v14704_v53  ;;  %10748 = vmatpush3.bf16.msra.mxu1 %v5536_v23  ;;  %v17802_v53 = vld [vmem:[#allocation10_spill] sm:$0xff] }
 0xc80   :  { %5633 = vmatprep.mubr.bf16.mxu0 %v14707_v22  ;;  %v17803_v22 = vld [vmem:[#allocation30_spill] sm:$0xff]  ;;  %10797 = vmatprep.subr.bf16.mxu1 %v11371_v44 }
 0xc82   :  { %10750 = vmatmul.mubr.bf16.vlgmr.msra.gmra.mrb[48].mxu1 %v14718_v20  ;;  %v17805_v20 = vld [vmem:[#allocation37_spill] sm:$0xff] }
 0xc83   :  { %10753 = vmatprep.mubr.bf16.mxu1 %v14724_v17  ;;  %v17807_v17 = vld [vmem:[#allocation34_spill] sm:$0xff]  ;;  %10798 = vmatpush3.bf16.msra.mxu1 %v11371_v44 }
 0xc84   :  { %10847 = vmatprep.subr.bf16.mxu1 %v11372_v33 }
 0xc87   :  { %5634 = vmatmul.mubr.bf16.gmra.mrb[16].mxu0 %v14715_v63  ;;  %v17804_v63 = vld [vmem:[#allocation9_spill] sm:$0xff] }
 0xc88   :  { %5641 = vmatprep.mubr.bf16.mxu0 %v14721_v16  ;;  %v17806_v16 = vld [vmem:[#allocation11_spill] sm:$0xff] }
 0xc8a   :  { %10754 = vmatmul.mubr.bf16.gmra.mrb[52].mxu1 %v14730_v8  ;;  %v17809_v8 = vld [vmem:[#allocation42_spill] sm:$0xff] }
 0xc8b   :  { %10757 = vmatprep.mubr.bf16.mxu1 %v14736_v1  ;;  %v17811_v1 = vld [vmem:[#allocation38_spill] sm:$0xff] }
 0xc8f   :  { %5642 = vmatmul.mubr.bf16.gmra.mrb[20].mxu0 %v14727_v31  ;;  %v17808_v31 = vld [vmem:[#allocation5_spill] sm:$0xff] }
 0xc90   :  { %5649 = vmatprep.mubr.bf16.mxu0 %v14733_v55  ;;  %v17810_v55 = vld [vmem:[#allocation41_spill] sm:$0xff] }
 0xc92   :  { %10758 = vmatmul.mubr.bf16.gmra.mrb[56].mxu1 %v14742_v32  ;;  %v17813_v32 = vld [vmem:[#allocation46_spill] sm:$0xff] }
 0xc93   :  { %10761 = vmatprep.mubr.bf16.mxu1 %v14748_v61  ;;  %v17814_v61 = vld [vmem:[#allocation45_spill] sm:$0xff] }
 0xc97   :  { %5650 = vmatmul.mubr.bf16.gmra.mrb[24].mxu0 %v14739_v59  ;;  %v17812_v59 = vld [vmem:[#allocation13_spill] sm:$0xff] }
 0xc98   :  { %5657 = vmatprep.mubr.bf16.mxu0 %v17799_v56 }
 0xc9a   :  { %10762 = vmatmul.mubr.bf16.gmra.mrb[60].mxu1 %v17800_v24 }
 0xc9b   :  { %10765 = vmatprep.mubr.bf16.mxu1 %v17801_v57 }
 0xc9f   :  { %5658 = vmatmul.mubr.bf16.gmra.mrb[28].mxu0 %v17802_v53 }
 0xca0   :  { %5665 = vmatprep.mubr.bf16.mxu0 %v17803_v22 }
 0xca2   :  { %10766 = vmatmul.mubr.bf16.gmra.mrb[64].mxu1 %v17804_v63 }
 0xca3   :  { %10769 = vmatprep.mubr.bf16.mxu1 %v17805_v20 }
 0xca7   :  { %5666 = vmatmul.mubr.bf16.gmra.mrb[32].mxu0 %v17806_v16 }
 0xca8   :  { %5673 = vmatprep.mubr.bf16.mxu0 %v17807_v17 }
 0xcaa   :  { %10770 = vmatmul.mubr.bf16.gmra.mrb[68].mxu1 %v17808_v31 }
 0xcab   :  { %10773 = vmatprep.mubr.bf16.mxu1 %v17809_v8 }
 0xcaf   :  { %5674 = vmatmul.mubr.bf16.gmra.mrb[36].mxu0 %v17810_v55 }
 0xcb0   :  { %5681 = vmatprep.mubr.bf16.mxu0 %v17811_v1 }
 0xcb2   :  { %10774 = vmatmul.mubr.bf16.gmra.mrb[72].mxu1 %v17812_v59 }
 0xcb3   :  { %10777 = vmatprep.mubr.bf16.mxu1 %v17813_v32 }
 0xcb7   :  { %5682 = vmatmul.mubr.bf16.gmra.mrb[40].mxu0 %v17814_v61 }
 0xcb8   :  { %5689 = vmatprep.mubr.bf16.mxu0 %v17815_v30 }
 0xcba   :  { %10778 = vmatmul.mubr.bf16.gmra.mrb[76].mxu1 %v17816_v41 }
 0xcbb   :  { %10781 = vmatprep.mubr.bf16.mxu1 %v17817_v35 }
 0xcbf   :  { %5690 = vmatmul.mubr.bf16.gmra.mrb[44].mxu0 %v17818_v45 }
 0xcc0   :  { %5697 = vmatprep.mubr.bf16.mxu0 %v17819_v54 }
 0xcc2   :  { %10782 = vmatmul.mubr.bf16.gmra.mrb[80].mxu1 %v17820_v34 }
 0xcc3   :  { %10785 = vmatprep.mubr.bf16.mxu1 %v17821_v11 }
 0xcc7   :  { %5698 = vmatmul.mubr.bf16.gmra.mrb[48].mxu0 %v17822_v48 }
 0xcc8   :  { %5705 = vmatprep.mubr.bf16.mxu0 %v17823_v62 }
 0xcca   :  { %10786 = vmatmul.mubr.bf16.gmra.mrb[84].mxu1 %v17824_v58 }
 0xccb   :  { %10789 = vmatprep.mubr.bf16.mxu1 %v17825_v49 }
 0xccf   :  { %5706 = vmatmul.mubr.bf16.gmra.mrb[52].mxu0 %v17826_v25 }
 0xcd0   :  { %5713 = vmatprep.mubr.bf16.mxu0 %v17827_v60 }
 0xcd2   :  { %10790 = vmatmul.mubr.bf16.gmra.mrb[88].mxu1 %v17828_v15 }
 0xcd3   :  { %10793 = vmatprep.mubr.bf16.mxu1 %v17829_v18 }
 0xcd7   :  { %5714 = vmatmul.mubr.bf16.gmra.mrb[56].mxu0 %v17830_v9 }
 0xcd8   :  { %5721 = vmatprep.mubr.bf16.mxu0 %v17831_v21 }
 0xcda   :  { %10794 = vmatmul.mubr.bf16.gmra.mrb[92].mxu1 %v17832_v4 }
 0xcdf   :  { %5722 = vmatmul.mubr.bf16.gmra.mrb[60].mxu0 %v17833_v19 }
 0xce0   :  { %5729 = vmatprep.mubr.bf16.mxu0 %v17834_v36 }
 0xce7   :  { %5730 = vmatmul.mubr.bf16.gmra.mrb[64].mxu0 %v17835_v42 }
 0xce8   :  { %5737 = vmatprep.mubr.bf16.mxu0 %v17836_v6 }
 0xcef   :  { %5738 = vmatmul.mubr.bf16.gmra.mrb[68].mxu0 %v17837_v26 }
 0xcf0   :  { %5745 = vmatprep.mubr.bf16.mxu0 %v17838_v0 }
 0xcf7   :  { %5746 = vmatmul.mubr.bf16.gmra.mrb[72].mxu0 %v17839_v7 }
 0xcf8   :  { %5753 = vmatprep.mubr.bf16.mxu0 %v17840_v46 }
 0xcff   :  { %5754 = vmatmul.mubr.bf16.gmra.mrb[76].mxu0 %v17841_v37 }
 0xd00   :  { %6652 = vmatprep.mubr.bf16.mxu0 %v17842_v50 }
 0xd1a   :  { %v5571_v40 = vpop.f32.mrb[240].mxu0 }
 0xd1b   :  { %v5573_v39 = vpop.f32.mrb[241].mxu0 }
 0xd1c   :  { %v5574_v10 = vpop.f32.mrb[242].mxu0 }
 0xd1d   :  { %v5576_v12 = vpop.f32.mrb[243].mxu0 }
 0xd22   :  { %v5579_v52 = vpop.f32.mrb[244].mxu0 }
 0xd23   :  { %v5581_v13 = vpop.f32.mrb[245].mxu0 }
 0xd24   :  { %v5582_v47 = vpop.f32.mrb[246].mxu0 }
 0xd25   :  { %v5584_v29 = vpop.f32.mrb[247].mxu0 }
 0xd2a   :  { %v5587_v27 = vpop.f32.mrb[248].mxu0 }
 0xd2b   :  { %v5589_v3 = vpop.f32.mrb[249].mxu0 }
 0xd2c   :  { %v5590_v2 = vpop.f32.mrb[250].mxu0 }
 0xd2d   :  { %v5592_v51 = vpop.f32.mrb[251].mxu0 }
 0xd32   :  { %v5595_v38 = vpop.f32.mrb[252].mxu0 }
 0xd33   :  { %v5597_v14 = vpop.f32.mrb[253].mxu0 }
 0xd34   :  { %v5598_v43 = vpop.f32.mrb[254].mxu0 }
 0xd35   :  { %v5600_v5 = vpop.f32.mrb[255].mxu0 }
 0xd3a   :  { %v5603_v23 = vpop.f32.mrb[0].mxu0 }
 0xd3b   :  { %v5605_v56 = vpop.f32.mrb[1].mxu0 }
 0xd3c   :  { %v5606_v24 = vpop.f32.mrb[2].mxu0 }
 0xd3d   :  { %v5608_v57 = vpop.f32.mrb[3].mxu0 }
 0xd42   :  { %v5611_v53 = vpop.f32.mrb[4].mxu0 }
 0xd43   :  { %v5613_v22 = vpop.f32.mrb[5].mxu0 }
 0xd44   :  { %v5614_v63 = vpop.f32.mrb[6].mxu0 }
 0xd45   :  { %v5616_v20 = vpop.f32.mrb[7].mxu0 }
 0xd4a   :  { %v14989_v16 = vpop.f32.mrb[8].mxu0 }
 0xd4b   :  { %v5621_v17 = vpop.f32.mrb[9].mxu0 }
 0xd4c   :  { %v14991_v31 = vpop.f32.mrb[10].mxu0 }
 0xd4d   :  { %v5624_v8 = vpop.f32.mrb[11].mxu0 }
 0xd52   :  { %v5627_v55 = vpop.f32.mrb[12].mxu0 }
 0xd53   :  { %v5629_v1 = vpop.f32.mrb[13].mxu0 }
 0xd54   :  { %v14993_v59 = vpop.f32.mrb[14].mxu0 }
 0xd55   :  { %v10751_v32 = vpop.f32.mrb[48].mxu1  ;;  %v5632_v61 = vpop.f32.mrb[15].mxu0 }
 0xd56   :  { %v5805_v30 = vadd.f32 %v10751_v32, %v5579_v52  ;;  %v5796_v41 = vpop.f32.mrb[49].mxu1 }
 0xd57   :  { %v5797_v35 = vadd.f32 %v5796_v41, %v5571_v40  ;;  %v10752_v45 = vpop.f32.mrb[50].mxu1 }
 0xd58   :  { %v5808_v54 = vadd.f32 %v10752_v45, %v5582_v47  ;;  %v5799_v34 = vpop.f32.mrb[51].mxu1 }
 0xd59   :  { %v5800_v11 = vadd.f32 %v5799_v34, %v5574_v10 }
 0xd5a   :  { %v5988_v48 = vpack.c.bf16 %v5808_v54, %v5805_v30  ;;  %v14995_v62 = vpop.f32.mrb[16].mxu0 }
 0xd5b   :  { %v5987_v58 = vpack.c.bf16 %v5800_v11, %v5797_v35  ;;  %v5637_v49 = vpop.f32.mrb[17].mxu0 }
 0xd5c   :  { %v14997_v25 = vpop.f32.mrb[18].mxu0 }
 0xd5d   :  { %v10755_v60 = vpop.f32.mrb[52].mxu1  ;;  %10799 = vmatprep.mubr.msk.bf16.mxu1 %vm979_vm1, %v5987_v58  ;;  %6621 = vmatpush1.bf16.msra.mxu0 %v5987_v58  ;;  %v5640_v15 = vpop.f32.mrb[19].mxu0 }
 0xd5e   :  { %v5821_v18 = vadd.f32 %v10755_v60, %v5595_v38  ;;  %v5812_v9 = vpop.f32.mrb[53].mxu1  ;;  %10800 = vmatmul.mubr.msk.bf16.vlgmr.msra.gmra.mrb[96].mxu1 %vm979_vm1, %v5988_v48  ;;  %6622 = vmatprep.subr.bf16.mxu0 %v17499_v28 }
 0xd5f   :  { %v5813_v21 = vadd.f32 %v5812_v9, %v5587_v27  ;;  %v10756_v4 = vpop.f32.mrb[54].mxu1  ;;  %10848 = vmatpush3.bf16.msra.mxu1 %v11372_v33 }
 0xd60   :  { %v5824_v44 = vadd.f32 %v10756_v4, %v5598_v43  ;;  %v5815_v19 = vpop.f32.mrb[55].mxu1 }
 0xd61   :  { %v5816_v36 = vadd.f32 %v5815_v19, %v5590_v2  ;;  %6623 = vmatpush1.bf16.msra.mxu0 %v5988_v48 }
 0xd62   :  { %v5990_v42 = vpack.c.bf16 %v5824_v44, %v5821_v18  ;;  %v5643_v6 = vpop.f32.mrb[20].mxu0  ;;  %6624 = vmatprep.subr.bf16.mxu0 %v17499_v28 }
 0xd63   :  { %v5989_v26 = vpack.c.bf16 %v5816_v36, %v5813_v21  ;;  %v5645_v0 = vpop.f32.mrb[21].mxu0 }
 0xd64   :  { %v5646_v7 = vpop.f32.mrb[22].mxu0 }
 0xd65   :  { %v10759_v46 = vpop.f32.mrb[56].mxu1  ;;  %10803 = vmatprep.mubr.msk.bf16.mxu1 %vm979_vm1, %v5989_v26  ;;  %6625 = vmatpush1.bf16.msra.mxu0 %v5989_v26  ;;  %v5648_v37 = vpop.f32.mrb[23].mxu0 }
 0xd66   :  { %v5837_v50 = vadd.f32 %v10759_v46, %v5611_v53  ;;  %v5828_v40 = vpop.f32.mrb[57].mxu1  ;;  %10804 = vmatmul.mubr.msk.bf16.gmra.mrb[100].mxu1 %vm979_vm1, %v5990_v42  ;;  %6626 = vmatprep.subr.bf16.mxu0 %v17499_v28 }
 0xd67   :  { %v5829_v39 = vadd.f32 %v5828_v40, %v5603_v23  ;;  %v10760_v10 = vpop.f32.mrb[58].mxu1 }
 0xd68   :  { %v5840_v12 = vadd.f32 %v10760_v10, %v5614_v63  ;;  %v5831_v33 = vpop.f32.mrb[59].mxu1 }
 0xd69   :  { %v5832_v52 = vadd.f32 %v5831_v33, %v5606_v24  ;;  %6627 = vmatpush1.bf16.msra.mxu0 %v5990_v42 }
 0xd6a   :  { %v5992_v13 = vpack.c.bf16 %v5840_v12, %v5837_v50  ;;  %v5651_v47 = vpop.f32.mrb[24].mxu0  ;;  %6628 = vmatprep.subr.bf16.mxu0 %v17499_v28 }
 0xd6b   :  { %v5991_v29 = vpack.c.bf16 %v5832_v52, %v5829_v39  ;;  %v5653_v27 = vpop.f32.mrb[25].mxu0 }
 0xd6c   :  { %v5654_v3 = vpop.f32.mrb[26].mxu0 }
 0xd6d   :  { %v10763_v2 = vpop.f32.mrb[60].mxu1  ;;  %10807 = vmatprep.mubr.msk.bf16.mxu1 %vm979_vm1, %v5991_v29  ;;  %6629 = vmatpush1.bf16.msra.mxu0 %v5991_v29  ;;  %v5656_v51 = vpop.f32.mrb[27].mxu0 }
 0xd6e   :  { %v5853_v38 = vadd.f32 %v10763_v2, %v5627_v55  ;;  %v5844_v14 = vpop.f32.mrb[61].mxu1  ;;  %10808 = vmatmul.mubr.msk.bf16.gmra.mrb[104].mxu1 %vm979_vm1, %v5992_v13  ;;  %6630 = vmatprep.subr.bf16.mxu0 %v17499_v28 }
 0xd6f   :  { %v5845_v43 = vadd.f32 %v5844_v14, %v14989_v16  ;;  %v10764_v5 = vpop.f32.mrb[62].mxu1 }
 0xd70   :  { %v5856_v23 = vadd.f32 %v10764_v5, %v14993_v59  ;;  %v5847_v56 = vpop.f32.mrb[63].mxu1 }
 0xd71   :  { %v5848_v24 = vadd.f32 %v5847_v56, %v14991_v31  ;;  %6631 = vmatpush1.bf16.msra.mxu0 %v5992_v13 }
 0xd72   :  { %v5994_v57 = vpack.c.bf16 %v5856_v23, %v5853_v38  ;;  %v5659_v53 = vpop.f32.mrb[28].mxu0  ;;  %6632 = vmatprep.subr.bf16.mxu0 %v17499_v28 }
 0xd73   :  { %v5993_v22 = vpack.c.bf16 %v5848_v24, %v5845_v43  ;;  %v5661_v63 = vpop.f32.mrb[29].mxu0 }
 0xd74   :  { %v5662_v20 = vpop.f32.mrb[30].mxu0 }
 0xd75   :  { %v10767_v17 = vpop.f32.mrb[64].mxu1  ;;  %10811 = vmatprep.mubr.msk.bf16.mxu1 %vm979_vm1, %v5993_v22  ;;  %6633 = vmatpush1.bf16.msra.mxu0 %v5993_v22  ;;  %v5664_v8 = vpop.f32.mrb[31].mxu0 }
 0xd76   :  { %v5869_v16 = vadd.f32 %v10767_v17, %v5643_v6  ;;  %v5860_v55 = vpop.f32.mrb[65].mxu1  ;;  %10812 = vmatmul.mubr.msk.bf16.gmra.mrb[108].mxu1 %vm979_vm1, %v5994_v57  ;;  %6634 = vmatprep.subr.bf16.mxu0 %v17499_v28 }
 0xd77   :  { %v5861_v31 = vadd.f32 %v5860_v55, %v14995_v62  ;;  %v10768_v1 = vpop.f32.mrb[66].mxu1 }
 0xd78   :  { %v5872_v59 = vadd.f32 %v10768_v1, %v5646_v7  ;;  %v5863_v32 = vpop.f32.mrb[67].mxu1 }
 0xd79   :  { %v5864_v61 = vadd.f32 %v5863_v32, %v14997_v25  ;;  %6635 = vmatpush1.bf16.msra.mxu0 %v5994_v57 }
 0xd7a   :  { %v5996_v30 = vpack.c.bf16 %v5872_v59, %v5869_v16  ;;  %v5667_v41 = vpop.f32.mrb[32].mxu0  ;;  %6636 = vmatprep.subr.bf16.mxu0 %v17499_v28  ;;  %v15036_v16 = vld [vmem:[#allocation2] ss:$12 sps:$4 sm:$0xff]   ;;  %v15039_v59 = vld [vmem:[#allocation2 + $0x1c] ss:$12 sps:$4 sm:$0xff]  }
 0xd7b   :  { %v5995_v35 = vpack.c.bf16 %v5864_v61, %v5861_v31  ;;  %v5669_v45 = vpop.f32.mrb[33].mxu0 }
 0xd7c   :  { %v5670_v54 = vpop.f32.mrb[34].mxu0 }
 0xd7d   :  { %v10771_v34 = vpop.f32.mrb[68].mxu1  ;;  %10815 = vmatprep.mubr.msk.bf16.mxu1 %vm979_vm1, %v5995_v35  ;;  %6637 = vmatpush1.bf16.msra.mxu0 %v5995_v35  ;;  %v5672_v11 = vpop.f32.mrb[35].mxu0 }
 0xd7e   :  { %v5885_v48 = vadd.f32 %v10771_v34, %v5659_v53  ;;  %v5876_v62 = vpop.f32.mrb[69].mxu1  ;;  %10816 = vmatmul.mubr.msk.bf16.gmra.mrb[112].mxu1 %vm979_vm1, %v5996_v30  ;;  %6638 = vmatprep.subr.bf16.mxu0 %v17499_v28  ;;  %v15047_v11 = vld [vmem:[#allocation2 + $0x18] ss:$12 sps:$4 sm:$0xff]  }
 0xd7f   :  { %v5877_v58 = vadd.f32 %v5876_v62, %v5651_v47  ;;  %v10772_v49 = vpop.f32.mrb[70].mxu1 }
 0xd80   :  { %v5888_v25 = vadd.f32 %v10772_v49, %v5662_v20  ;;  %v5879_v60 = vpop.f32.mrb[71].mxu1  ;;  %v15050_v49 = vld [vmem:[#allocation2 + $0x34] ss:$12 sps:$4 sm:$0xff]  }
 0xd81   :  { %v5880_v15 = vadd.f32 %v5879_v60, %v5654_v3  ;;  %6639 = vmatpush1.bf16.msra.mxu0 %v5996_v30 }
 0xd82   :  { %v5998_v18 = vpack.c.bf16 %v5888_v25, %v5885_v48  ;;  %v5675_v9 = vpop.f32.mrb[36].mxu0  ;;  %6640 = vmatprep.subr.bf16.mxu0 %v17499_v28 }
 0xd83   :  { %v5997_v21 = vpack.c.bf16 %v5880_v15, %v5877_v58  ;;  %v5677_v4 = vpop.f32.mrb[37].mxu0 }
 0xd84   :  { %v5678_v44 = vpop.f32.mrb[38].mxu0 }
 0xd85   :  { %v10775_v19 = vpop.f32.mrb[72].mxu1  ;;  %10819 = vmatprep.mubr.msk.bf16.mxu1 %vm979_vm1, %v5997_v21  ;;  %6641 = vmatpush1.bf16.msra.mxu0 %v5997_v21  ;;  %v5680_v36 = vpop.f32.mrb[39].mxu0 }
 0xd86   :  { %v5901_v42 = vadd.f32 %v10775_v19, %v5675_v9  ;;  %v5892_v6 = vpop.f32.mrb[73].mxu1  ;;  %10820 = vmatmul.mubr.msk.bf16.gmra.mrb[116].mxu1 %vm979_vm1, %v5998_v18  ;;  %6642 = vmatprep.subr.bf16.mxu0 %v17499_v28  ;;  %v15057_v19 = vld [vmem:[#allocation2 + $0x30] ss:$12 sps:$4 sm:$0xff]  }
 0xd87   :  { %v5893_v26 = vadd.f32 %v5892_v6, %v5667_v41  ;;  %v10776_v0 = vpop.f32.mrb[74].mxu1 }
 0xd88   :  { %v5904_v7 = vadd.f32 %v10776_v0, %v5678_v44  ;;  %v5895_v46 = vpop.f32.mrb[75].mxu1 }
 0xd89   :  { %v5896_v37 = vadd.f32 %v5895_v46, %v5670_v54  ;;  %6643 = vmatpush1.bf16.msra.mxu0 %v5998_v18 }
 0xd8a   :  { %v6000_v50 = vpack.c.bf16 %v5904_v7, %v5901_v42  ;;  %v5683_v40 = vpop.f32.mrb[40].mxu0  ;;  %6644 = vmatprep.subr.bf16.mxu0 %v17499_v28 }
 0xd8b   :  { %v5999_v39 = vpack.c.bf16 %v5896_v37, %v5893_v26  ;;  %v5685_v10 = vpop.f32.mrb[41].mxu0  ;;  %v15060_v26 = vld [vmem:[#allocation2 + $0x4c] ss:$12 sps:$4 sm:$0xff]  }
 0xd8c   :  { %v5686_v12 = vpop.f32.mrb[42].mxu0  ;;  %17843 = vst [vmem:[#allocation29_spill] sm:$0xff] %v15060_v26 }
 0xd8d   :  { %v10779_v33 = vpop.f32.mrb[76].mxu1  ;;  %10823 = vmatprep.mubr.msk.bf16.mxu1 %vm979_vm1, %v5999_v39  ;;  %6645 = vmatpush1.bf16.msra.mxu0 %v5999_v39  ;;  %v5688_v52 = vpop.f32.mrb[43].mxu0 }
 0xd8e   :  { %v5908_v13 = vpop.f32.mrb[77].mxu1  ;;  %10824 = vmatmul.mubr.msk.bf16.gmra.mrb[120].mxu1 %vm979_vm1, %v6000_v50  ;;  %6646 = vmatprep.subr.bf16.mxu0 %v17499_v28 }
 0xd8f   :  { %v5909_v47 = vadd.f32 %v5908_v13, %v5683_v40  ;;  %v10780_v29 = vpop.f32.mrb[78].mxu1  ;;  %v15070_v13 = vld [vmem:[#allocation2 + $0x64] ss:$12 sps:$4 sm:$0xff]  }
 0xd90   :  { %v5911_v27 = vpop.f32.mrb[79].mxu1  ;;  %17845 = vst [vmem:[#allocation33_spill] sm:$0xff] %v15070_v13 }
 0xd91   :  { %v5912_v3 = vadd.f32 %v5911_v27, %v5686_v12  ;;  %6647 = vmatpush1.bf16.msra.mxu0 %v6000_v50  ;;  %v15067_v12 = vld [vmem:[#allocation2 + $0x48] ss:$12 sps:$4 sm:$0xff]  }
 0xd92   :  { %v5691_v2 = vpop.f32.mrb[44].mxu0  ;;  %6648 = vmatprep.subr.bf16.mxu0 %v17499_v28  ;;  %17844 = vst [vmem:[#allocation8_spill] sm:$0xff] %v15067_v12 }
 0xd93   :  { %v6001_v51 = vpack.c.bf16 %v5912_v3, %v5909_v47  ;;  %v5917_v38 = vadd.f32 %v10779_v33, %v5691_v2  ;;  %v5693_v14 = vpop.f32.mrb[45].mxu0 }
 0xd94   :  { %v5694_v43 = vpop.f32.mrb[46].mxu0 }
 0xd95   :  { %v5920_v5 = vadd.f32 %v10780_v29, %v5694_v43  ;;  %10827 = vmatprep.mubr.msk.bf16.mxu1 %vm979_vm1, %v6001_v51  ;;  %6649 = vmatpush1.bf16.msra.mxu0 %v6001_v51  ;;  %v5696_v23 = vpop.f32.mrb[47].mxu0  ;;  %v10783_v56 = vpop.f32.mrb[80].mxu1  ;;  %v15077_v51 = vld [vmem:[#allocation2 + $0x60] ss:$12 sps:$4 sm:$0xff]   ;;  %v15080_v43 = vld [vmem:[#allocation2 + $0x7c] ss:$12 sps:$4 sm:$0xff]  }
 0xd96   :  { %6650 = vmatprep.subr.bf16.mxu0 %v17499_v28  ;;  %v5924_v24 = vpop.f32.mrb[81].mxu1  ;;  %17846 = vst [vmem:[#allocation10_spill] sm:$0xff] %v15077_v51  ;;  %17847 = vst [vmem:[#allocation30_spill] sm:$0xff] %v15080_v43 }
 0xd97   :  { %v6002_v57 = vpack.c.bf16 %v5920_v5, %v5917_v38  ;;  %v10784_v53 = vpop.f32.mrb[82].mxu1 }
 0xd98   :  { %v5927_v22 = vpop.f32.mrb[83].mxu1 }
 0xd99   :  { %10828 = vmatmul.mubr.msk.bf16.gmra.mrb[124].mxu1 %vm979_vm1, %v6002_v57  ;;  %6651 = vmatpush1.bf16.msra.mxu0 %v6002_v57 }
 0xd9a   :  { %v5699_v63 = vpop.f32.mrb[48].mxu0  ;;  %7094 = vmatprep.subr.bf16.mxu0 %v17499_v28 }
 0xd9b   :  { %v5701_v20 = vpop.f32.mrb[49].mxu0  ;;  %v5925_v17 = vadd.f32 %v5924_v24, %v5699_v63 }
 0xd9c   :  { %v5702_v8 = vpop.f32.mrb[50].mxu0  ;;  %6653 = vmatmul.mubr.bf16.vlgmr.msra.gmra.mrb[80].mxu0 %v15036_v16  ;;  %v15090_v20 = vld [vmem:[#allocation2 + $0x94] ss:$12 sps:$4 sm:$0xff]  }
 0xd9d   :  { %v5704_v55 = vpop.f32.mrb[51].mxu0  ;;  %v5928_v31 = vadd.f32 %v5927_v22, %v5702_v8  ;;  %v10787_v1 = vpop.f32.mrb[84].mxu1  ;;  %6660 = vmatprep.mubr.bf16.mxu0 %v15039_v59  ;;  %17849 = vst [vmem:[#allocation37_spill] sm:$0xff] %v15090_v20 }
 0xd9e   :  { %v5940_v32 = vpop.f32.mrb[85].mxu1 }
 0xd9f   :  { %v15042_v61 = vpack.c.bf16 %v5928_v31, %v5925_v17  ;;  %v10788_v30 = vpop.f32.mrb[86].mxu1 }
 0xda0   :  { %v5943_v41 = vpop.f32.mrb[87].mxu1 }
 0xda1   :  { %10831 = vmatprep.mubr.msk.bf16.mxu1 %vm979_vm1, %v15042_v61  ;;  %10897 = vmatprep.subr.bf16.mxu1 %v15042_v61 }
 0xda2   :  { %v5707_v35 = vpop.f32.mrb[52].mxu0 }
 0xda3   :  { %v5933_v45 = vadd.f32 %v10783_v56, %v5707_v35  ;;  %v5709_v54 = vpop.f32.mrb[53].mxu0  ;;  %v15097_v35 = vld [vmem:[#allocation2 + $0xac] ss:$12 sps:$4 sm:$0xff]  }
 0xda4   :  { %v5710_v34 = vpop.f32.mrb[54].mxu0  ;;  %6661 = vmatmul.mubr.bf16.gmra.mrb[84].mxu0 %v15047_v11  ;;  %17851 = vst [vmem:[#allocation34_spill] sm:$0xff] %v15097_v35 }
 0xda5   :  { %v5936_v48 = vadd.f32 %v10784_v53, %v5710_v34  ;;  %v5712_v62 = vpop.f32.mrb[55].mxu0  ;;  %v10791_v58 = vpop.f32.mrb[88].mxu1  ;;  %6668 = vmatprep.mubr.bf16.mxu0 %v15050_v49  ;;  %v15087_v53 = vld [vmem:[#allocation2 + $0x78] ss:$12 sps:$4 sm:$0xff]  }
 0xda6   :  { %v5956_v25 = vpop.f32.mrb[89].mxu1  ;;  %17848 = vst [vmem:[#allocation9_spill] sm:$0xff] %v15087_v53 }
 0xda7   :  { %v15053_v60 = vpack.c.bf16 %v5936_v48, %v5933_v45  ;;  %v10792_v15 = vpop.f32.mrb[90].mxu1 }
 0xda8   :  { %v5959_v18 = vpop.f32.mrb[91].mxu1 }
 0xda9   :  { %10832 = vmatmul.mubr.msk.bf16.gmra.mrb[128].mxu1 %vm979_vm1, %v15053_v60 }
 0xdaa   :  { %v5715_v9 = vpop.f32.mrb[56].mxu0 }
 0xdab   :  { %v5717_v21 = vpop.f32.mrb[57].mxu0  ;;  %v5941_v4 = vadd.f32 %v5940_v32, %v5715_v9  ;;  %v15094_v32 = vld [vmem:[#allocation2 + $0x90] ss:$12 sps:$4 sm:$0xff]  }
 0xdac   :  { %v5718_v44 = vpop.f32.mrb[58].mxu0  ;;  %6669 = vmatmul.mubr.bf16.gmra.mrb[88].mxu0 %v15057_v19  ;;  %17850 = vst [vmem:[#allocation11_spill] sm:$0xff] %v15094_v32  ;;  %v17854_v21 = vld [vmem:[#allocation23_spill] sm:$0xff] }
 0xdad   :  { %v5720_v36 = vpop.f32.mrb[59].mxu0  ;;  %v5944_v42 = vadd.f32 %v5943_v41, %v5718_v44  ;;  %v10795_v6 = vpop.f32.mrb[92].mxu1  ;;  %6676 = vmatprep.mubr.bf16.mxu0 %v15060_v26  ;;  %v15113_v44 = vld [vmem:[#allocation2 + $0xdc] ss:$12 sps:$4 sm:$0xff]  }
 0xdae   :  { %v5972_v0 = vpop.f32.mrb[93].mxu1  ;;  %17856 = vst [vmem:[#allocation38_spill] sm:$0xff] %v15113_v44  ;;  %v17857_v36 = vld [vmem:[#allocation57_spill] sm:$0xff] }
 0xdaf   :  { %v15063_v7 = vpack.c.bf16 %v5944_v42, %v5941_v4  ;;  %v10796_v46 = vpop.f32.mrb[94].mxu1  ;;  %v15110_v4 = vld [vmem:[#allocation2 + $0xc0] ss:$12 sps:$4 sm:$0xff]   ;;  %v17858_v42 = vld [vmem:[#allocation56_spill] sm:$0xff] }
 0xdb0   :  { %v5975_v37 = vpop.f32.mrb[95].mxu1  ;;  %17855 = vst [vmem:[#allocation41_spill] sm:$0xff] %v15110_v4 }
 0xdb1   :  { %10835 = vmatprep.mubr.msk.bf16.mxu1 %vm979_vm1, %v15063_v7 }
 0xdb2   :  { %v5723_v50 = vpop.f32.mrb[60].mxu0 }
 0xdb3   :  { %v5949_v40 = vadd.f32 %v10787_v1, %v5723_v50  ;;  %v5725_v39 = vpop.f32.mrb[61].mxu0  ;;  %v15139_v50 = vld [vmem:[#allocation2 + $0x10c] ss:$12 sps:$4 sm:$0xff]  }
 0xdb4   :  { %v5726_v10 = vpop.f32.mrb[62].mxu0  ;;  %6677 = vmatmul.mubr.bf16.gmra.mrb[92].mxu0 %v15067_v12  ;;  %17864 = vst [vmem:[#allocation12_spill] sm:$0xff] %v15139_v50  ;;  %v15152_v39 = vld [vmem:[#allocation2 + $0x124] ss:$12 sps:$4 sm:$0xff]  }
 0xdb5   :  { %v5952_v33 = vadd.f32 %v10788_v30, %v5726_v10  ;;  %v5728_v52 = vpop.f32.mrb[63].mxu0  ;;  %6684 = vmatprep.mubr.bf16.mxu0 %v15070_v13  ;;  %17868 = vst [vmem:[#allocation50_spill] sm:$0xff] %v15152_v39  ;;  %v17869_v10 = vld [vmem:[#allocation59_spill] sm:$0xff] }
 0xdb6   :  { %v15159_v52 = vld [vmem:[#allocation2 + $0x120] ss:$12 sps:$4 sm:$0xff]  }
 0xdb7   :  { %v15073_v47 = vpack.c.bf16 %v5952_v33, %v5949_v40  ;;  %v15149_v40 = vld [vmem:[#allocation2 + $0x108] ss:$12 sps:$4 sm:$0xff]   ;;  %17871 = vst [vmem:[#allocation49_spill] sm:$0xff] %v15159_v52 }
 0xdb8   :  { %17867 = vst [vmem:[#allocation15_spill] sm:$0xff] %v15149_v40  ;;  %v17870_v33 = vld [vmem:[#allocation27_spill] sm:$0xff] }
 0xdb9   :  { %10836 = vmatmul.mubr.msk.bf16.gmra.mrb[132].mxu1 %vm979_vm1, %v15073_v47 }
 0xdba   :  { %v5731_v29 = vpop.f32.mrb[64].mxu0 }
 0xdbb   :  { %v5733_v27 = vpop.f32.mrb[65].mxu0  ;;  %v5957_v3 = vadd.f32 %v5956_v25, %v5731_v29  ;;  %v17873_v29 = vld [vmem:[#allocation26_spill] sm:$0xff] }
 0xdbc   :  { %v5734_v2 = vpop.f32.mrb[66].mxu0  ;;  %6685 = vmatmul.mubr.bf16.gmra.mrb[96].mxu0 %v15077_v51  ;;  %v17874_v27 = vld [vmem:[#allocation31_spill] sm:$0xff] }
 0xdbd   :  { %v5736_v38 = vpop.f32.mrb[67].mxu0  ;;  %v5960_v14 = vadd.f32 %v5959_v18, %v5734_v2  ;;  %6692 = vmatprep.mubr.bf16.mxu0 %v15080_v43  ;;  %v15104_v18 = vld [vmem:[#allocation2 + $0xc4] ss:$12 sps:$4 sm:$0xff]   ;;  %v15172_v2 = vld [vmem:[#allocation2 + $0x154] ss:$12 sps:$4 sm:$0xff]  }
 0xdbe   :  { %17853 = vst [vmem:[#allocation42_spill] sm:$0xff] %v15104_v18  ;;  %17876 = vst [vmem:[#allocation19_spill] sm:$0xff] %v15172_v2  ;;  %v17877_v38 = vld [vmem:[#allocation28_spill] sm:$0xff] }
 0xdbf   :  { %v15083_v5 = vpack.c.bf16 %v5960_v14, %v5957_v3  ;;  %v15169_v3 = vld [vmem:[#allocation2 + $0x138] ss:$12 sps:$4 sm:$0xff]   ;;  %v17878_v14 = vld [vmem:[#allocation39_spill] sm:$0xff] }
 0xdc0   :  { %17875 = vst [vmem:[#allocation16_spill] sm:$0xff] %v15169_v3 }
 0xdc1   :  { %10839 = vmatprep.mubr.msk.bf16.mxu1 %vm979_vm1, %v15083_v5 }
 0xdc2   :  { %v5739_v23 = vpop.f32.mrb[68].mxu0 }
 0xdc3   :  { %v5965_v56 = vadd.f32 %v10791_v58, %v5739_v23  ;;  %v5741_v24 = vpop.f32.mrb[69].mxu0  ;;  %v15101_v58 = vld [vmem:[#allocation2 + $0xa8] ss:$12 sps:$4 sm:$0xff]   ;;  %v15182_v23 = vld [vmem:[#allocation2 + $0x16c] ss:$12 sps:$4 sm:$0xff]  }
 0xdc4   :  { %v5742_v57 = vpop.f32.mrb[70].mxu0  ;;  %6693 = vmatmul.mubr.bf16.gmra.mrb[100].mxu0 %v15087_v53  ;;  %17852 = vst [vmem:[#allocation5_spill] sm:$0xff] %v15101_v58  ;;  %17880 = vst [vmem:[#allocation17_spill] sm:$0xff] %v15182_v23  ;;  %v17882_v24 = vld [vmem:[#allocation32_spill] sm:$0xff] }
 0xdc5   :  { %v5968_v22 = vadd.f32 %v10792_v15, %v5742_v57  ;;  %v5744_v63 = vpop.f32.mrb[71].mxu0  ;;  %6700 = vmatprep.mubr.bf16.mxu0 %v15090_v20  ;;  %v15189_v57 = vld [vmem:[#allocation2 + $0x168] ss:$12 sps:$4 sm:$0xff]  }
 0xdc6   :  { %17883 = vst [vmem:[#allocation55_spill] sm:$0xff] %v15189_v57  ;;  %v17885_v63 = vld [vmem:[#allocation36_spill] sm:$0xff] }
 0xdc7   :  { %v6008_v17 = vpack.c.bf16 %v5968_v22, %v5965_v56  ;;  %v17881_v56 = vld [vmem:[#allocation35_spill] sm:$0xff] }
 0xdc8   :  { %v15192_v22 = vld [vmem:[#allocation2 + $0x184] ss:$12 sps:$4 sm:$0xff]  }
 0xdc9   :  { %10840 = vmatmul.mubr.msk.bf16.gmra.mrb[136].mxu1 %vm979_vm1, %v6008_v17  ;;  %17884 = vst [vmem:[#allocation21_spill] sm:$0xff] %v15192_v22 }
 0xdca   :  { %v5747_v8 = vpop.f32.mrb[72].mxu0 }
 0xdcb   :  { %v5749_v55 = vpop.f32.mrb[73].mxu0  ;;  %v5973_v31 = vadd.f32 %v5972_v0, %v5747_v8  ;;  %v15125_v0 = vld [vmem:[#allocation2 + $0xf4] ss:$12 sps:$4 sm:$0xff]  }
 0xdcc   :  { %v5750_v1 = vpop.f32.mrb[74].mxu0  ;;  %6701 = vmatmul.mubr.bf16.gmra.mrb[104].mxu0 %v15094_v32  ;;  %17860 = vst [vmem:[#allocation46_spill] sm:$0xff] %v15125_v0  ;;  %v15199_v8 = vld [vmem:[#allocation2 + $0x180] ss:$12 sps:$4 sm:$0xff]   ;;  %v15202_v55 = vld [vmem:[#allocation2 + $0x19c] ss:$12 sps:$4 sm:$0xff]  }
 0xdcd   :  { %v5752_v30 = vpop.f32.mrb[75].mxu0  ;;  %v5976_v41 = vadd.f32 %v5975_v37, %v5750_v1  ;;  %6708 = vmatprep.mubr.bf16.mxu0 %v15097_v35  ;;  %v15136_v37 = vld [vmem:[#allocation2 + $0xf0] ss:$12 sps:$4 sm:$0xff]   ;;  %17887 = vst [vmem:[#allocation18_spill] sm:$0xff] %v15199_v8  ;;  %17888 = vst [vmem:[#allocation52_spill] sm:$0xff] %v15202_v55 }
 0xdce   :  { %17863 = vst [vmem:[#allocation45_spill] sm:$0xff] %v15136_v37  ;;  %v17890_v1 = vld [vmem:[#allocation40_spill] sm:$0xff] }
 0xdcf   :  { %v6009_v45 = vpack.c.bf16 %v5976_v41, %v5973_v31  ;;  %v17889_v31 = vld [vmem:[#allocation47_spill] sm:$0xff]  ;;  %v15209_v30 = vld [vmem:[#allocation2 + $0x198] ss:$12 sps:$4 sm:$0xff]  }
 0xdd0   :  { %17891 = vst [vmem:[#allocation60_spill] sm:$0xff] %v15209_v30  ;;  %v15212_v41 = vld [vmem:[#allocation2 + $0x1b4] ss:$12 sps:$4 sm:$0xff]  }
 0xdd1   :  { %10843 = vmatprep.mubr.msk.bf16.mxu1 %vm979_vm1, %v6009_v45  ;;  %17892 = vst [vmem:[#allocation61_spill] sm:$0xff] %v15212_v41 }
 0xdd2   :  { %v5755_v54 = vpop.f32.mrb[76].mxu0 }
 0xdd3   :  { %v5981_v34 = vadd.f32 %v10795_v6, %v5755_v54  ;;  %v5757_v48 = vpop.f32.mrb[77].mxu0  ;;  %v15122_v6 = vld [vmem:[#allocation2 + $0xd8] ss:$12 sps:$4 sm:$0xff]   ;;  %v17894_v54 = vld [vmem:[#allocation51_spill] sm:$0xff] }
 0xdd4   :  { %v5758_v62 = vpop.f32.mrb[78].mxu0  ;;  %6709 = vmatmul.mubr.bf16.gmra.mrb[108].mxu0 %v15101_v58  ;;  %17859 = vst [vmem:[#allocation13_spill] sm:$0xff] %v15122_v6  ;;  %v15222_v48 = vld [vmem:[#allocation2 + $0x1cc] ss:$12 sps:$4 sm:$0xff]  }
 0xdd5   :  { %v5984_v25 = vadd.f32 %v10796_v46, %v5758_v62  ;;  %v5760_v15 = vpop.f32.mrb[79].mxu0  ;;  %6716 = vmatprep.mubr.bf16.mxu0 %v15104_v18  ;;  %v17861_v46 = vld [vmem:[#allocation22_spill] sm:$0xff]  ;;  %17896 = vst [vmem:[#allocation54_spill] sm:$0xff] %v15222_v48  ;;  %v17897_v62 = vld [vmem:[#allocation7_spill] sm:$0xff] }
 0xdd6   :  { %v15229_v15 = vld [vmem:[#allocation2 + $0x1c8] ss:$12 sps:$4 sm:$0xff]  }
 0xdd7   :  { %v6010_v9 = vpack.c.bf16 %v5984_v25, %v5981_v34  ;;  %v15219_v34 = vld [vmem:[#allocation2 + $0x1b0] ss:$12 sps:$4 sm:$0xff]   ;;  %17899 = vst [vmem:[#allocation64_spill] sm:$0xff] %v15229_v15 }
 0xdd8   :  { %17895 = vst [vmem:[#allocation20_spill] sm:$0xff] %v15219_v34  ;;  %v17898_v25 = vld [vmem:[#allocation48_spill] sm:$0xff] }
 0xdd9   :  { %10844 = vmatmul.mubr.msk.bf16.gmra.mrb[140].mxu1 %vm979_vm1, %v6010_v9 }
 0xdda   :  { %10849 = vmatprep.mubr.msk.bf16.mxu1 %vm979_vm1, %v17854_v21  ;;  %v17901_v21 = vld [vmem:[#allocation6_spill] sm:$0xff] }
 0xddc   :  { %6717 = vmatmul.mubr.bf16.gmra.mrb[112].mxu0 %v15110_v4 }
 0xddd   :  { %6724 = vmatprep.mubr.bf16.mxu0 %v15113_v44 }
 0xde1   :  { %10850 = vmatmul.mubr.msk.bf16.vlgmr.msra.gmra.mrb[96].mxu1 %vm979_vm1, %v17857_v36  ;;  %v15237_v36 = vld [vmem:[#allocation2 + $0x8] ss:$12 sps:$4 sm:$0xff]  }
 0xde2   :  { %10898 = vmatpush3.bf16.msra.mxu1 %v15042_v61  ;;  %10853 = vmatprep.mubr.msk.bf16.mxu1 %vm979_vm1, %v17858_v42  ;;  %v17862_v61 = vld [vmem:[#allocation58_spill] sm:$0xff]  ;;  %17902 = vst [vmem:[#allocation63_spill] sm:$0xff] %v15237_v36 }
 0xde3   :  { %10899 = vmatprep.subr.bf16.mxu1 %v15053_v60  ;;  %v15240_v42 = vld [vmem:[#allocation2 + $0x1e0] ss:$12 sps:$4 sm:$0xff]  }
 0xde4   :  { %6725 = vmatmul.mubr.bf16.gmra.mrb[116].mxu0 %v15122_v6  ;;  %17903 = vst [vmem:[#allocation66_spill] sm:$0xff] %v15240_v42 }
 0xde5   :  { %6732 = vmatprep.mubr.bf16.mxu0 %v15125_v0 }
 0xde6   :  { %10900 = vmatpush3.bf16.msra.mxu1 %v15053_v60  ;;  %v17865_v60 = vld [vmem:[#allocation24_spill] sm:$0xff] }
 0xde7   :  { %10901 = vmatprep.subr.bf16.mxu1 %v15063_v7 }
 0xde9   :  { %10854 = vmatmul.mubr.msk.bf16.gmra.mrb[100].mxu1 %vm979_vm1, %v17861_v46  ;;  %v15243_v46 = vld [vmem:[#allocation2 + $0x1fc] ss:$12 sps:$4 sm:$0xff]  }
 0xdea   :  { %10902 = vmatpush3.bf16.msra.mxu1 %v15063_v7  ;;  %10857 = vmatprep.mubr.msk.bf16.mxu1 %vm979_vm1, %v17862_v61  ;;  %v17866_v7 = vld [vmem:[#allocation25_spill] sm:$0xff]  ;;  %17904 = vst [vmem:[#allocation67_spill] sm:$0xff] %v15243_v46 }
 0xdeb   :  { %10903 = vmatprep.subr.bf16.mxu1 %v15073_v47  ;;  %v15246_v61 = vld [vmem:[#allocation2 + $0x20] ss:$12 sps:$4 sm:$0xff]  }
 0xdec   :  { %6733 = vmatmul.mubr.bf16.gmra.mrb[120].mxu0 %v15136_v37  ;;  %17905 = vst [vmem:[#allocation68_spill] sm:$0xff] %v15246_v61 }
 0xded   :  { %6740 = vmatprep.mubr.bf16.mxu0 %v15139_v50 }
 0xdee   :  { %10904 = vmatpush3.bf16.msra.mxu1 %v15073_v47  ;;  %v15162_v47 = vld [vmem:[#allocation2 + $0x13c] ss:$12 sps:$4 sm:$0xff]  }
 0xdef   :  { %10905 = vmatprep.subr.bf16.mxu1 %v15083_v5  ;;  %17872 = vst [vmem:[#allocation14_spill] sm:$0xff] %v15162_v47 }
 0xdf1   :  { %10858 = vmatmul.mubr.msk.bf16.gmra.mrb[104].mxu1 %vm979_vm1, %v17865_v60  ;;  %v15249_v60 = vld [vmem:[#allocation2 + $0x38] ss:$12 sps:$4 sm:$0xff]  }
 0xdf2   :  { %10906 = vmatpush3.bf16.msra.mxu1 %v15083_v5  ;;  %10861 = vmatprep.mubr.msk.bf16.mxu1 %vm979_vm1, %v17866_v7  ;;  %v15179_v5 = vld [vmem:[#allocation2 + $0x150] ss:$12 sps:$4 sm:$0xff]   ;;  %17906 = vst [vmem:[#allocation69_spill] sm:$0xff] %v15249_v60  ;;  %v15252_v7 = vld [vmem:[#allocation2 + $0x1f8] ss:$12 sps:$4 sm:$0xff]  }
 0xdf3   :  { %10907 = vmatprep.subr.bf16.mxu1 %v6008_v17  ;;  %17879 = vst [vmem:[#allocation53_spill] sm:$0xff] %v15179_v5  ;;  %17907 = vst [vmem:[#allocation70_spill] sm:$0xff] %v15252_v7 }
 0xdf4   :  { %6741 = vmatmul.mubr.bf16.gmra.mrb[124].mxu0 %v15149_v40 }
 0xdf5   :  { %6748 = vmatprep.mubr.bf16.mxu0 %v15152_v39 }
 0xdf6   :  { %10908 = vmatpush3.bf16.msra.mxu1 %v6008_v17  ;;  %v17886_v17 = vld [vmem:[#allocation43_spill] sm:$0xff] }
 0xdf7   :  { %10909 = vmatprep.subr.bf16.mxu1 %v6009_v45 }
 0xdf9   :  { %10862 = vmatmul.mubr.msk.bf16.gmra.mrb[108].mxu1 %vm979_vm1, %v17869_v10  ;;  %v15255_v10 = vld [vmem:[#allocation2 + $0x214] ss:$12 sps:$4 sm:$0xff]  }
 0xdfa   :  { %10910 = vmatpush3.bf16.msra.mxu1 %v6009_v45  ;;  %10865 = vmatprep.mubr.msk.bf16.mxu1 %vm979_vm1, %v17870_v33  ;;  %v17893_v45 = vld [vmem:[#allocation44_spill] sm:$0xff]  ;;  %17908 = vst [vmem:[#allocation71_spill] sm:$0xff] %v15255_v10 }
 0xdfb   :  { %10911 = vmatprep.subr.bf16.mxu1 %v6010_v9  ;;  %v15258_v33 = vld [vmem:[#allocation2 + $0x50] ss:$12 sps:$4 sm:$0xff]  }
 0xdfc   :  { %6749 = vmatmul.mubr.bf16.gmra.mrb[128].mxu0 %v15159_v52  ;;  %17909 = vst [vmem:[#allocation72_spill] sm:$0xff] %v15258_v33 }
 0xdfd   :  { %6756 = vmatprep.mubr.bf16.mxu0 %v15162_v47 }
 0xdfe   :  { %10912 = vmatpush3.bf16.msra.mxu1 %v6010_v9  ;;  %v15232_v9 = vld [vmem:[#allocation2 + $0x1e4] ss:$12 sps:$4 sm:$0xff]  }
 0xdff   :  { %17900 = vst [vmem:[#allocation62_spill] sm:$0xff] %v15232_v9 }
 0xe01   :  { %10866 = vmatmul.mubr.msk.bf16.gmra.mrb[112].mxu1 %vm979_vm1, %v17873_v29  ;;  %v15261_v29 = vld [vmem:[#allocation2 + $0x68] ss:$12 sps:$4 sm:$0xff]  }
 0xe02   :  { %10869 = vmatprep.mubr.msk.bf16.mxu1 %vm979_vm1, %v17874_v27  ;;  %v15264_v27 = vld [vmem:[#allocation2 + $0x210] ss:$12 sps:$4 sm:$0xff]  }
 0xe03   :  { %17910 = vst [vmem:[#allocation65_spill] sm:$0xff] %v15264_v27 }
 0xe04   :  { %6757 = vmatmul.mubr.bf16.gmra.mrb[132].mxu0 %v15169_v3 }
 0xe05   :  { %6764 = vmatprep.mubr.bf16.mxu0 %v15172_v2 }
 0xe09   :  { %10870 = vmatmul.mubr.msk.bf16.gmra.mrb[116].mxu1 %vm979_vm1, %v17877_v38  ;;  %v15267_v38 = vld [vmem:[#allocation2 + $0x22c] ss:$12 sps:$4 sm:$0xff]  }
 0xe0a   :  { %10873 = vmatprep.mubr.msk.bf16.mxu1 %vm979_vm1, %v17878_v14  ;;  %17911 = vst [vmem:[#allocation23_spill] sm:$0xff] %v15267_v38  ;;  %v15270_v14 = vld [vmem:[#allocation2 + $0x80] ss:$12 sps:$4 sm:$0xff]  }
 0xe0b   :  { %17912 = vst [vmem:[#allocation57_spill] sm:$0xff] %v15270_v14 }
 0xe0c   :  { %6765 = vmatmul.mubr.bf16.gmra.mrb[136].mxu0 %v15179_v5 }
 0xe0d   :  { %6772 = vmatprep.mubr.bf16.mxu0 %v15182_v23 }
 0xe11   :  { %10874 = vmatmul.mubr.msk.bf16.gmra.mrb[120].mxu1 %vm979_vm1, %v17881_v56  ;;  %v15273_v56 = vld [vmem:[#allocation2 + $0x98] ss:$12 sps:$4 sm:$0xff]  }
 0xe12   :  { %10877 = vmatprep.mubr.msk.bf16.mxu1 %vm979_vm1, %v17882_v24  ;;  %17913 = vst [vmem:[#allocation56_spill] sm:$0xff] %v15273_v56  ;;  %v15276_v24 = vld [vmem:[#allocation2 + $0x228] ss:$12 sps:$4 sm:$0xff]  }
 0xe13   :  { %17914 = vst [vmem:[#allocation22_spill] sm:$0xff] %v15276_v24 }
 0xe14   :  { %6773 = vmatmul.mubr.bf16.gmra.mrb[140].mxu0 %v15189_v57 }
 0xe15   :  { %6780 = vmatprep.mubr.bf16.mxu0 %v15192_v22  ;;  %v15343_v22 = vld [vmem:[#allocation2 + $0x230] ss:$12 sps:$4 sm:$0xff]  }
 0xe16   :  { %17931 = vst [vmem:[#allocation51_spill] sm:$0xff] %v15343_v22 }
 0xe19   :  { %10878 = vmatmul.mubr.msk.bf16.gmra.mrb[124].mxu1 %vm979_vm1, %v17885_v63  ;;  %v12033_v63 = vld [vmem:[#allocation2 + $0x4] ss:$12 sps:$4 sm:$0xff]  }
 0xe1a   :  { %10881 = vmatprep.mubr.msk.bf16.mxu1 %vm979_vm1, %v17886_v17  ;;  %v15279_v17 = vld [vmem:[#allocation2 + $0xb0] ss:$12 sps:$4 sm:$0xff]  }
 0xe1b   :  { %17915 = vst [vmem:[#allocation58_spill] sm:$0xff] %v15279_v17 }
 0xe1c   :  { %6781 = vmatmul.mubr.bf16.gmra.mrb[144].mxu0 %v15199_v8 }
 0xe1d   :  { %6788 = vmatprep.mubr.bf16.mxu0 %v15202_v55 }
 0xe21   :  { %10882 = vmatmul.mubr.msk.bf16.gmra.mrb[128].mxu1 %vm979_vm1, %v17889_v31  ;;  %v15282_v31 = vld [vmem:[#allocation2 + $0xc8] ss:$12 sps:$4 sm:$0xff]  }
 0xe22   :  { %10885 = vmatprep.mubr.msk.bf16.mxu1 %vm979_vm1, %v17890_v1  ;;  %17916 = vst [vmem:[#allocation24_spill] sm:$0xff] %v15282_v31  ;;  %v15285_v1 = vld [vmem:[#allocation2 + $0xe0] ss:$12 sps:$4 sm:$0xff]  }
 0xe23   :  { %17917 = vst [vmem:[#allocation25_spill] sm:$0xff] %v15285_v1 }
 0xe24   :  { %6789 = vmatmul.mubr.bf16.gmra.mrb[148].mxu0 %v15209_v30 }
 0xe25   :  { %6796 = vmatprep.mubr.bf16.mxu0 %v15212_v41  ;;  %v15333_v41 = vld [vmem:[#allocation2 + $0x200] ss:$12 sps:$4 sm:$0xff]  }
 0xe26   :  { %17929 = vst [vmem:[#allocation40_spill] sm:$0xff] %v15333_v41 }
 0xe29   :  { %10886 = vmatmul.mubr.msk.bf16.gmra.mrb[132].mxu1 %vm979_vm1, %v17893_v45  ;;  %v15288_v45 = vld [vmem:[#allocation2 + $0xf8] ss:$12 sps:$4 sm:$0xff]  }
 0xe2a   :  { %10889 = vmatprep.mubr.msk.bf16.mxu1 %vm979_vm1, %v17894_v54  ;;  %17918 = vst [vmem:[#allocation59_spill] sm:$0xff] %v15288_v45  ;;  %v15291_v54 = vld [vmem:[#allocation2 + $0x110] ss:$12 sps:$4 sm:$0xff]  }
 0xe2b   :  { %17919 = vst [vmem:[#allocation27_spill] sm:$0xff] %v15291_v54 }
 0xe2c   :  { %6797 = vmatmul.mubr.bf16.gmra.mrb[152].mxu0 %v15219_v34 }
 0xe2d   :  { %6804 = vmatprep.mubr.bf16.mxu0 %v15222_v48 }
 0xe31   :  { %10890 = vmatmul.mubr.msk.bf16.gmra.mrb[136].mxu1 %vm979_vm1, %v17897_v62  ;;  %v15294_v62 = vld [vmem:[#allocation2 + $0x128] ss:$12 sps:$4 sm:$0xff]  }
 0xe32   :  { %10893 = vmatprep.mubr.msk.bf16.mxu1 %vm979_vm1, %v17898_v25  ;;  %17920 = vst [vmem:[#allocation26_spill] sm:$0xff] %v15294_v62 }
 0xe34   :  { %6805 = vmatmul.mubr.bf16.gmra.mrb[156].mxu0 %v15229_v15 }
 0xe35   :  { %6812 = vmatprep.mubr.bf16.mxu0 %v15232_v9 }
 0xe39   :  { %10894 = vmatmul.mubr.msk.bf16.gmra.mrb[140].mxu1 %vm979_vm1, %v17901_v21 }
 0xe3a   :  { %10913 = vmatprep.mubr.bf16.mxu1 %v15237_v36  ;;  %v15307_v36 = vld [vmem:[#allocation2 + $0x170] ss:$12 sps:$4 sm:$0xff]  }
 0xe3b   :  { %17923 = vst [vmem:[#allocation39_spill] sm:$0xff] %v15307_v36 }
 0xe3c   :  { %6813 = vmatmul.mubr.bf16.gmra.mrb[160].mxu0 %v15240_v42  ;;  %v15326_v42 = vld [vmem:[#allocation2 + $0x1e8] ss:$12 sps:$4 sm:$0xff]  }
 0xe3d   :  { %6820 = vmatprep.mubr.bf16.mxu0 %v15243_v46  ;;  %v15323_v46 = vld [vmem:[#allocation2 + $0x1d0] ss:$12 sps:$4 sm:$0xff]   ;;  %17928 = vst [vmem:[#allocation47_spill] sm:$0xff] %v15326_v42 }
 0xe3e   :  { %17927 = vst [vmem:[#allocation43_spill] sm:$0xff] %v15323_v46 }
 0xe41   :  { %10914 = vmatmul.mubr.bf16.vlgmr.msra.gmra.mrb[144].mxu1 %v15246_v61 }
 0xe42   :  { %10917 = vmatprep.mubr.bf16.mxu1 %v15249_v60  ;;  %v15304_v60 = vld [vmem:[#allocation2 + $0x158] ss:$12 sps:$4 sm:$0xff]  }
 0xe43   :  { %17922 = vst [vmem:[#allocation28_spill] sm:$0xff] %v15304_v60 }
 0xe44   :  { %6821 = vmatmul.mubr.bf16.gmra.mrb[164].mxu0 %v15252_v7 }
 0xe45   :  { %6828 = vmatprep.mubr.bf16.mxu0 %v15255_v10 }
 0xe49   :  { %10918 = vmatmul.mubr.bf16.gmra.mrb[148].mxu1 %v15258_v33 }
 0xe4a   :  { %10921 = vmatprep.mubr.bf16.mxu1 %v15261_v29 }
 0xe4c   :  { %6829 = vmatmul.mubr.bf16.gmra.mrb[168].mxu0 %v15264_v27 }
 0xe4d   :  { %6836 = vmatprep.mubr.bf16.mxu0 %v15267_v38  ;;  %v15316_v38 = vld [vmem:[#allocation2 + $0x1b8] ss:$12 sps:$4 sm:$0xff]  }
 0xe4e   :  { %17926 = vst [vmem:[#allocation36_spill] sm:$0xff] %v15316_v38 }
 0xe51   :  { %10922 = vmatmul.mubr.bf16.gmra.mrb[152].mxu1 %v15270_v14 }
 0xe52   :  { %10925 = vmatprep.mubr.bf16.mxu1 %v15273_v56 }
 0xe54   :  { %6837 = vmatmul.mubr.bf16.gmra.mrb[172].mxu0 %v15276_v24  ;;  %v15310_v24 = vld [vmem:[#allocation2 + $0x188] ss:$12 sps:$4 sm:$0xff]  }
 0xe55   :  { %7126 = vmatprep.mubr.bf16.mxu0 %v12033_v63  ;;  %v15299_v63 = vld [vmem:[#allocation2 + $0x140] ss:$12 sps:$4 sm:$0xff]   ;;  %17924 = vst [vmem:[#allocation35_spill] sm:$0xff] %v15310_v24 }
 0xe56   :  { %17921 = vst [vmem:[#allocation31_spill] sm:$0xff] %v15299_v63 }
 0xe59   :  { %10926 = vmatmul.mubr.bf16.gmra.mrb[156].mxu1 %v15279_v17 }
 0xe5a   :  { %10929 = vmatprep.mubr.bf16.mxu1 %v15282_v31 }
 0xe61   :  { %10930 = vmatmul.mubr.bf16.gmra.mrb[160].mxu1 %v15285_v1 }
 0xe62   :  { %10933 = vmatprep.mubr.bf16.mxu1 %v15288_v45 }
 0xe69   :  { %10934 = vmatmul.mubr.bf16.gmra.mrb[164].mxu1 %v15291_v54 }
 0xe6a   :  { %10937 = vmatprep.mubr.bf16.mxu1 %v15294_v62 }
 0xe6f   :  { %v15297_v25 = vpop.f32.mrb[80].mxu0 }
 0xe70   :  { %v6656_v21 = vpop.f32.mrb[81].mxu0 }
 0xe71   :  { %10938 = vmatmul.mubr.bf16.gmra.mrb[168].mxu1 %v15299_v63  ;;  %v15302_v33 = vpop.f32.mrb[82].mxu0  ;;  %v15313_v21 = vld [vmem:[#allocation2 + $0x1a0] ss:$12 sps:$4 sm:$0xff]  }
 0xe72   :  { %10941 = vmatprep.mubr.bf16.mxu1 %v15304_v60  ;;  %v6659_v61 = vpop.f32.mrb[83].mxu0  ;;  %17925 = vst [vmem:[#allocation32_spill] sm:$0xff] %v15313_v21 }
 0xe77   :  { %v15319_v27 = vpop.f32.mrb[84].mxu0 }
 0xe78   :  { %v6664_v10 = vpop.f32.mrb[85].mxu0 }
 0xe79   :  { %10942 = vmatmul.mubr.bf16.gmra.mrb[172].mxu1 %v15307_v36  ;;  %v15321_v61 = vpop.f32.mrb[86].mxu0  ;;  %v15336_v10 = vld [vmem:[#allocation2 + $0x218] ss:$12 sps:$4 sm:$0xff]  }
 0xe7a   :  { %10945 = vmatprep.mubr.bf16.mxu1 %v15310_v24  ;;  %v6667_v7 = vpop.f32.mrb[87].mxu0  ;;  %17930 = vst [vmem:[#allocation44_spill] sm:$0xff] %v15336_v10 }
 0xe7f   :  { %v15329_v9 = vpop.f32.mrb[88].mxu0 }
 0xe80   :  { %v6672_v15 = vpop.f32.mrb[89].mxu0 }
 0xe81   :  { %10946 = vmatmul.mubr.bf16.gmra.mrb[176].mxu1 %v15313_v21  ;;  %v15331_v48 = vpop.f32.mrb[90].mxu0 }
 0xe82   :  { %10949 = vmatprep.mubr.bf16.mxu1 %v15316_v38  ;;  %v6675_v34 = vpop.f32.mrb[91].mxu0 }
 0xe87   :  { %v15339_v7 = vpop.f32.mrb[92].mxu0 }
 0xe88   :  { %v6680_v30 = vpop.f32.mrb[93].mxu0 }
 0xe89   :  { %10950 = vmatmul.mubr.bf16.gmra.mrb[180].mxu1 %v15323_v46  ;;  %v15341_v55 = vpop.f32.mrb[94].mxu0 }
 0xe8a   :  { %10953 = vmatprep.mubr.bf16.mxu1 %v15326_v42  ;;  %v6683_v8 = vpop.f32.mrb[95].mxu0 }
 0xe8f   :  { %v15347_v34 = vpop.f32.mrb[96].mxu0 }
 0xe90   :  { %v6688_v15 = vpop.f32.mrb[97].mxu0 }
 0xe91   :  { %10954 = vmatmul.mubr.bf16.gmra.mrb[184].mxu1 %v15333_v41  ;;  %v15349_v57 = vpop.f32.mrb[98].mxu0 }
 0xe92   :  { %10957 = vmatprep.mubr.bf16.mxu1 %v15336_v10  ;;  %v6691_v23 = vpop.f32.mrb[99].mxu0 }
 0xe97   :  { %v15351_v5 = vpop.f32.mrb[100].mxu0 }
 0xe98   :  { %v6696_v2 = vpop.f32.mrb[101].mxu0 }
 0xe99   :  { %10958 = vmatmul.mubr.bf16.gmra.mrb[188].mxu1 %v15343_v22  ;;  %v15353_v3 = vpop.f32.mrb[102].mxu0 }
 0xe9a   :  { %10985 = vmatprep.mubr.bf16.mxu1 %v15261_v29  ;;  %v6699_v30 = vpop.f32.mrb[103].mxu0 }
 0xe9f   :  { %v15355_v10 = vpop.f32.mrb[104].mxu0 }
 0xea0   :  { %v6704_v8 = vpop.f32.mrb[105].mxu0 }
 0xea1   :  { %v15357_v41 = vpop.f32.mrb[106].mxu0 }
 0xea2   :  { %v6707_v22 = vpop.f32.mrb[107].mxu0 }
 0xea7   :  { %v15359_v47 = vpop.f32.mrb[108].mxu0 }
 0xea8   :  { %v6712_v29 = vpop.f32.mrb[109].mxu0 }
 0xea9   :  { %v15361_v52 = vpop.f32.mrb[110].mxu0 }
 0xeaa   :  { %v6715_v15 = vpop.f32.mrb[111].mxu0 }
 0xeaf   :  { %v15363_v42 = vpop.f32.mrb[112].mxu0 }
 0xeb0   :  { %v6720_v23 = vpop.f32.mrb[113].mxu0 }
 0xeb1   :  { %v15365_v46 = vpop.f32.mrb[114].mxu0 }
 0xeb2   :  { %v6723_v2 = vpop.f32.mrb[115].mxu0 }
 0xeb7   :  { %v15367_v39 = vpop.f32.mrb[116].mxu0 }
 0xeb8   :  { %v6728_v30 = vpop.f32.mrb[117].mxu0 }
 0xeb9   :  { %v15369_v40 = vpop.f32.mrb[118].mxu0 }
 0xeba   :  { %v6731_v8 = vpop.f32.mrb[119].mxu0 }
 0xebf   :  { %v15371_v38 = vpop.f32.mrb[120].mxu0 }
 0xec0   :  { %v6736_v22 = vpop.f32.mrb[121].mxu0 }
 0xec1   :  { %v15373_v21 = vpop.f32.mrb[122].mxu0 }
 0xec2   :  { %v6739_v29 = vpop.f32.mrb[123].mxu0 }
 0xec7   :  { %v15375_v50 = vpop.f32.mrb[124].mxu0 }
 0xec8   :  { %v6744_v15 = vpop.f32.mrb[125].mxu0 }
 0xec9   :  { %v15377_v37 = vpop.f32.mrb[126].mxu0 }
 0xeca   :  { %v6747_v23 = vpop.f32.mrb[127].mxu0 }
 0xecf   :  { %v15379_v24 = vpop.f32.mrb[128].mxu0 }
 0xed0   :  { %v6752_v2 = vpop.f32.mrb[129].mxu0 }
 0xed1   :  { %v15381_v36 = vpop.f32.mrb[130].mxu0 }
 0xed2   :  { %v6755_v30 = vpop.f32.mrb[131].mxu0 }
 0xed7   :  { %v15383_v0 = vpop.f32.mrb[132].mxu0 }
 0xed8   :  { %v6760_v8 = vpop.f32.mrb[133].mxu0 }
 0xed9   :  { %v15385_v6 = vpop.f32.mrb[134].mxu0 }
 0xeda   :  { %v6763_v22 = vpop.f32.mrb[135].mxu0 }
 0xedf   :  { %v15387_v60 = vpop.f32.mrb[136].mxu0 }
 0xee0   :  { %v6768_v29 = vpop.f32.mrb[137].mxu0 }
 0xee1   :  { %v15389_v63 = vpop.f32.mrb[138].mxu0 }
 0xee2   :  { %v6771_v15 = vpop.f32.mrb[139].mxu0 }
 0xee7   :  { %v15391_v44 = vpop.f32.mrb[140].mxu0 }
 0xee8   :  { %v6776_v23 = vpop.f32.mrb[141].mxu0 }
 0xee9   :  { %v15393_v4 = vpop.f32.mrb[142].mxu0 }
 0xeea   :  { %v6779_v2 = vpop.f32.mrb[143].mxu0 }
 0xeef   :  { %v15395_v62 = vpop.f32.mrb[144].mxu0 }
 0xef0   :  { %v6784_v30 = vpop.f32.mrb[145].mxu0 }
 0xef1   :  { %v15397_v54 = vpop.f32.mrb[146].mxu0 }
 0xef2   :  { %v6787_v8 = vpop.f32.mrb[147].mxu0 }
 0xef7   :  { %v15399_v18 = vpop.f32.mrb[148].mxu0 }
 0xef8   :  { %v6792_v22 = vpop.f32.mrb[149].mxu0 }
 0xef9   :  { %v15401_v58 = vpop.f32.mrb[150].mxu0 }
 0xefa   :  { %v6795_v29 = vpop.f32.mrb[151].mxu0 }
 0xeff   :  { %v15403_v45 = vpop.f32.mrb[152].mxu0 }
 0xf00   :  { %v6800_v15 = vpop.f32.mrb[153].mxu0 }
 0xf01   :  { %v15405_v1 = vpop.f32.mrb[154].mxu0 }
 0xf02   :  { %v6803_v23 = vpop.f32.mrb[155].mxu0 }
 0xf07   :  { %v15407_v35 = vpop.f32.mrb[156].mxu0 }
 0xf08   :  { %v6808_v2 = vpop.f32.mrb[157].mxu0 }
 0xf09   :  { %v15409_v32 = vpop.f32.mrb[158].mxu0 }
 0xf0a   :  { %v6811_v30 = vpop.f32.mrb[159].mxu0 }
 0xf0f   :  { %v15411_v31 = vpop.f32.mrb[160].mxu0 }
 0xf10   :  { %v6816_v8 = vpop.f32.mrb[161].mxu0 }
 0xf11   :  { %v15413_v17 = vpop.f32.mrb[162].mxu0 }
 0xf12   :  { %v6819_v22 = vpop.f32.mrb[163].mxu0 }
 0xf14   :  { %v10915_v20 = vpop.f32.mrb[144].mxu1 }
 0xf15   :  { %v6879_v29 = vpop.f32.mrb[145].mxu1  ;;  %v6888_v53 = vadd.f32 %v10915_v20, %v15319_v27 }
 0xf16   :  { %v6880_v15 = vadd.f32 %v6879_v29, %v15297_v25  ;;  %v10916_v56 = vpop.f32.mrb[146].mxu1 }
 0xf17   :  { %v6882_v23 = vpop.f32.mrb[147].mxu1  ;;  %v6891_v14 = vadd.f32 %v10916_v56, %v15321_v61  ;;  %v15418_v2 = vpop.f32.mrb[164].mxu0 }
 0xf18   :  { %v6883_v30 = vadd.f32 %v6882_v23, %v15302_v33  ;;  %v6824_v43 = vpop.f32.mrb[165].mxu0 }
 0xf19   :  { %v7071_v51 = vpack.c.bf16 %v6891_v14, %v6888_v53  ;;  %v15421_v8 = vpop.f32.mrb[166].mxu0 }
 0xf1a   :  { %v7070_v13 = vpack.c.bf16 %v6883_v30, %v6880_v15  ;;  %v6827_v22 = vpop.f32.mrb[167].mxu0 }
 0xf1c   :  { %v10919_v12 = vpop.f32.mrb[148].mxu1  ;;  %7095 = vmatpush1.bf16.msra.mxu0 %v7070_v13 }
 0xf1d   :  { %v6895_v26 = vpop.f32.mrb[149].mxu1  ;;  %7096 = vmatprep.subr.bf16.mxu0 %v17499_v28  ;;  %v6904_v20 = vadd.f32 %v10919_v12, %v15339_v7 }
 0xf1e   :  { %v6896_v27 = vadd.f32 %v6895_v26, %v15329_v9  ;;  %v10920_v56 = vpop.f32.mrb[150].mxu1 }
 0xf1f   :  { %v6898_v25 = vpop.f32.mrb[151].mxu1  ;;  %v6907_v61 = vadd.f32 %v10920_v56, %v15341_v55  ;;  %v15427_v33 = vpop.f32.mrb[168].mxu0 }
 0xf20   :  { %v6899_v43 = vadd.f32 %v6898_v25, %v15331_v48  ;;  %7097 = vmatpush1.bf16.msra.mxu0 %v7071_v51  ;;  %v6832_v53 = vpop.f32.mrb[169].mxu0 }
 0xf21   :  { %v7073_v14 = vpack.c.bf16 %v6907_v61, %v6904_v20  ;;  %7098 = vmatprep.subr.bf16.mxu0 %v17499_v28  ;;  %v15431_v13 = vpop.f32.mrb[170].mxu0 }
 0xf22   :  { %v7072_v29 = vpack.c.bf16 %v6899_v43, %v6896_v27  ;;  %v6835_v15 = vpop.f32.mrb[171].mxu0 }
 0xf24   :  { %v10923_v12 = vpop.f32.mrb[152].mxu1  ;;  %7099 = vmatpush1.bf16.msra.mxu0 %v7072_v29 }
 0xf25   :  { %v6911_v26 = vpop.f32.mrb[153].mxu1  ;;  %7100 = vmatprep.subr.bf16.mxu0 %v17499_v28  ;;  %v6920_v55 = vadd.f32 %v10923_v12, %v15351_v5 }
 0xf26   :  { %v6912_v9 = vadd.f32 %v6911_v26, %v15347_v34  ;;  %v10924_v7 = vpop.f32.mrb[154].mxu1 }
 0xf27   :  { %v6914_v48 = vpop.f32.mrb[155].mxu1  ;;  %v6923_v51 = vadd.f32 %v10924_v7, %v15353_v3  ;;  %v15437_v23 = vpop.f32.mrb[172].mxu0 }
 0xf28   :  { %v6915_v30 = vadd.f32 %v6914_v48, %v15349_v57  ;;  %7101 = vmatpush1.bf16.msra.mxu0 %v7073_v14  ;;  %v6840_v22 = vpop.f32.mrb[173].mxu0 }
 0xf29   :  { %v7075_v20 = vpack.c.bf16 %v6923_v51, %v6920_v55  ;;  %7102 = vmatprep.subr.bf16.mxu0 %v17499_v28  ;;  %v15441_v27 = vpop.f32.mrb[174].mxu0 }
 0xf2a   :  { %v7074_v56 = vpack.c.bf16 %v6915_v30, %v6912_v9  ;;  %v6843_v25 = vpop.f32.mrb[175].mxu0 }
 0xf2c   :  { %v10927_v5 = vpop.f32.mrb[156].mxu1  ;;  %7103 = vmatpush1.bf16.msra.mxu0 %v7074_v56 }
 0xf2d   :  { %v6927_v34 = vpop.f32.mrb[157].mxu1  ;;  %7104 = vmatprep.subr.bf16.mxu0 %v17499_v28  ;;  %v6936_v3 = vadd.f32 %v10927_v5, %v15359_v47 }
 0xf2e   :  { %v6928_v61 = vadd.f32 %v6927_v34, %v15355_v10  ;;  %v10928_v43 = vpop.f32.mrb[158].mxu1 }
 0xf2f   :  { %v6930_v57 = vpop.f32.mrb[159].mxu1  ;;  %v6939_v53 = vadd.f32 %v10928_v43, %v15361_v52 }
 0xf30   :  { %v6931_v14 = vadd.f32 %v6930_v57, %v15357_v41  ;;  %7105 = vmatpush1.bf16.msra.mxu0 %v7075_v20 }
 0xf31   :  { %v7077_v29 = vpack.c.bf16 %v6939_v53, %v6936_v3  ;;  %7106 = vmatprep.subr.bf16.mxu0 %v17499_v28 }
 0xf32   :  { %v7076_v15 = vpack.c.bf16 %v6931_v14, %v6928_v61 }
 0xf34   :  { %v10931_v12 = vpop.f32.mrb[160].mxu1  ;;  %7107 = vmatpush1.bf16.msra.mxu0 %v7076_v15 }
 0xf35   :  { %v6943_v26 = vpop.f32.mrb[161].mxu1  ;;  %7108 = vmatprep.subr.bf16.mxu0 %v17499_v28  ;;  %v6952_v47 = vadd.f32 %v10931_v12, %v15367_v39 }
 0xf36   :  { %v6944_v10 = vadd.f32 %v6943_v26, %v15363_v42  ;;  %v10932_v55 = vpop.f32.mrb[162].mxu1 }
 0xf37   :  { %v6946_v9 = vpop.f32.mrb[163].mxu1  ;;  %v6955_v52 = vadd.f32 %v10932_v55, %v15369_v40 }
 0xf38   :  { %v6947_v41 = vadd.f32 %v6946_v9, %v15365_v46  ;;  %7109 = vmatpush1.bf16.msra.mxu0 %v7077_v29 }
 0xf39   :  { %v7079_v7 = vpack.c.bf16 %v6955_v52, %v6952_v47  ;;  %7110 = vmatprep.subr.bf16.mxu0 %v17499_v28 }
 0xf3a   :  { %v7078_v48 = vpack.c.bf16 %v6947_v41, %v6944_v10 }
 0xf3c   :  { %v10935_v51 = vpop.f32.mrb[164].mxu1  ;;  %7111 = vmatpush1.bf16.msra.mxu0 %v7078_v48 }
 0xf3d   :  { %v6959_v30 = vpop.f32.mrb[165].mxu1  ;;  %7112 = vmatprep.subr.bf16.mxu0 %v17499_v28  ;;  %v6968_v39 = vadd.f32 %v10935_v51, %v15375_v50 }
 0xf3e   :  { %v6960_v42 = vadd.f32 %v6959_v30, %v15371_v38  ;;  %v10936_v22 = vpop.f32.mrb[166].mxu1 }
 0xf3f   :  { %v6962_v20 = vpop.f32.mrb[167].mxu1  ;;  %v6971_v40 = vadd.f32 %v10936_v22, %v15377_v37 }
 0xf40   :  { %v6963_v46 = vadd.f32 %v6962_v20, %v15373_v21  ;;  %7113 = vmatpush1.bf16.msra.mxu0 %v7079_v7 }
 0xf41   :  { %v7081_v56 = vpack.c.bf16 %v6971_v40, %v6968_v39  ;;  %7114 = vmatprep.subr.bf16.mxu0 %v17499_v28 }
 0xf42   :  { %v7080_v25 = vpack.c.bf16 %v6963_v46, %v6960_v42 }
 0xf44   :  { %v10939_v5 = vpop.f32.mrb[168].mxu1  ;;  %7115 = vmatpush1.bf16.msra.mxu0 %v7080_v25 }
 0xf45   :  { %v6975_v34 = vpop.f32.mrb[169].mxu1  ;;  %7116 = vmatprep.subr.bf16.mxu0 %v17499_v28  ;;  %v6984_v50 = vadd.f32 %v10939_v5, %v15383_v0 }
 0xf46   :  { %v6976_v38 = vadd.f32 %v6975_v34, %v15379_v24  ;;  %v10940_v3 = vpop.f32.mrb[170].mxu1  ;;  %v17933_v34 = vld [vmem:[#allocation8_spill] sm:$0xff] }
 0xf47   :  { %v6978_v61 = vpop.f32.mrb[171].mxu1  ;;  %v6987_v37 = vadd.f32 %v10940_v3, %v15385_v6  ;;  %v17940_v3 = vld [vmem:[#allocation37_spill] sm:$0xff] }
 0xf48   :  { %v6979_v21 = vadd.f32 %v6978_v61, %v15381_v36  ;;  %7117 = vmatpush1.bf16.msra.mxu0 %v7081_v56  ;;  %v17941_v61 = vld [vmem:[#allocation58_spill] sm:$0xff] }
 0xf49   :  { %v7083_v43 = vpack.c.bf16 %v6987_v37, %v6984_v50  ;;  %7118 = vmatprep.subr.bf16.mxu0 %v17499_v28  ;;  %v17938_v50 = vld [vmem:[#allocation56_spill] sm:$0xff] }
 0xf4a   :  { %v7082_v57 = vpack.c.bf16 %v6979_v21, %v6976_v38  ;;  %v17939_v38 = vld [vmem:[#allocation9_spill] sm:$0xff]  ;;  %v17942_v37 = vld [vmem:[#allocation24_spill] sm:$0xff]  ;;  %v17943_v21 = vld [vmem:[#allocation11_spill] sm:$0xff] }
 0xf4c   :  { %v10943_v53 = vpop.f32.mrb[172].mxu1  ;;  %7119 = vmatpush1.bf16.msra.mxu0 %v7082_v57  ;;  %v17945_v57 = vld [vmem:[#allocation25_spill] sm:$0xff] }
 0xf4d   :  { %v6991_v14 = vpop.f32.mrb[173].mxu1  ;;  %7120 = vmatprep.subr.bf16.mxu0 %v17499_v28  ;;  %v7000_v0 = vadd.f32 %v10943_v53, %v15391_v44  ;;  %v17946_v53 = vld [vmem:[#allocation59_spill] sm:$0xff] }
 0xf4e   :  { %v6992_v24 = vadd.f32 %v6991_v14, %v15387_v60  ;;  %v10944_v29 = vpop.f32.mrb[174].mxu1  ;;  %v17947_v14 = vld [vmem:[#allocation5_spill] sm:$0xff] }
 0xf4f   :  { %v6994_v15 = vpop.f32.mrb[175].mxu1  ;;  %v7003_v6 = vadd.f32 %v10944_v29, %v15393_v4  ;;  %v17950_v29 = vld [vmem:[#allocation26_spill] sm:$0xff] }
 0xf50   :  { %v6995_v36 = vadd.f32 %v6994_v15, %v15389_v63  ;;  %7121 = vmatpush1.bf16.msra.mxu0 %v7083_v43  ;;  %v17944_v43 = vld [vmem:[#allocation34_spill] sm:$0xff]  ;;  %v17951_v15 = vld [vmem:[#allocation41_spill] sm:$0xff] }
 0xf51   :  { %v7085_v12 = vpack.c.bf16 %v7003_v6, %v7000_v0  ;;  %7122 = vmatprep.subr.bf16.mxu0 %v17499_v28  ;;  %v17948_v0 = vld [vmem:[#allocation42_spill] sm:$0xff] }
 0xf52   :  { %v7084_v26 = vpack.c.bf16 %v6995_v36, %v6992_v24  ;;  %v17949_v24 = vld [vmem:[#allocation27_spill] sm:$0xff]  ;;  %v17952_v6 = vld [vmem:[#allocation38_spill] sm:$0xff] }
 0xf53   :  { %v17953_v36 = vld [vmem:[#allocation31_spill] sm:$0xff] }
 0xf54   :  { %7123 = vmatpush1.bf16.msra.mxu0 %v7084_v26  ;;  %v10947_v47 = vpop.f32.mrb[176].mxu1  ;;  %v17955_v26 = vld [vmem:[#allocation13_spill] sm:$0xff] }
 0xf55   :  { %7124 = vmatprep.subr.bf16.mxu0 %v17499_v28  ;;  %v7007_v10 = vpop.f32.mrb[177].mxu1  ;;  %v7016_v44 = vadd.f32 %v10947_v47, %v15399_v18  ;;  %v17956_v47 = vld [vmem:[#allocation46_spill] sm:$0xff] }
 0xf56   :  { %v7008_v60 = vadd.f32 %v7007_v10, %v15395_v62  ;;  %v10948_v55 = vpop.f32.mrb[178].mxu1  ;;  %v17957_v10 = vld [vmem:[#allocation39_spill] sm:$0xff] }
 0xf57   :  { %v7010_v9 = vpop.f32.mrb[179].mxu1  ;;  %v7019_v4 = vadd.f32 %v10948_v55, %v15401_v58  ;;  %v17960_v55 = vld [vmem:[#allocation12_spill] sm:$0xff] }
 0xf58   :  { %7125 = vmatpush1.bf16.msra.mxu0 %v7085_v12  ;;  %v7011_v63 = vadd.f32 %v7010_v9, %v15397_v54  ;;  %v17954_v12 = vld [vmem:[#allocation28_spill] sm:$0xff] }
 0xf59   :  { %v7087_v52 = vpack.c.bf16 %v7019_v4, %v7016_v44  ;;  %v17958_v44 = vld [vmem:[#allocation35_spill] sm:$0xff]  ;;  %v17961_v9 = vld [vmem:[#allocation32_spill] sm:$0xff] }
 0xf5a   :  { %v7086_v41 = vpack.c.bf16 %v7011_v63, %v7008_v60  ;;  %v17959_v60 = vld [vmem:[#allocation45_spill] sm:$0xff]  ;;  %v17962_v4 = vld [vmem:[#allocation36_spill] sm:$0xff]  ;;  %v17963_v63 = vld [vmem:[#allocation15_spill] sm:$0xff] }
 0xf5b   :  { %7127 = vmatmul.mubr.bf16.vlgmr.msra.gmra.mrb[176].mxu0 %v15036_v16 }
 0xf5c   :  { %7134 = vmatprep.mubr.bf16.mxu0 %v15039_v59  ;;  %10961 = vmatprep.subr.bf16.mxu0 %v7086_v41  ;;  %v10951_v28 = vpop.f32.mrb[180].mxu1 }
 0xf5d   :  { %11133 = vmatprep.subr.bf16.mxu1 %v7086_v41  ;;  %10962 = vmatpush3.bf16.msra.mxu0 %v7086_v41  ;;  %v7023_v18 = vpop.f32.mrb[181].mxu1  ;;  %v7032_v62 = vadd.f32 %v10951_v28, %v15407_v35  ;;  %v17966_v28 = vld [vmem:[#allocation47_spill] sm:$0xff] }
 0xf5e   :  { %11141 = vmatpush3.bf16.msra.mxu1 %v7086_v41  ;;  %10963 = vmatprep.subr.bf16.mxu0 %v7087_v52  ;;  %v7024_v58 = vadd.f32 %v7023_v18, %v15403_v45  ;;  %v10952_v7 = vpop.f32.mrb[182].mxu1  ;;  %v17965_v41 = vld [vmem:[#allocation43_spill] sm:$0xff]  ;;  %v17967_v18 = vld [vmem:[#allocation49_spill] sm:$0xff] }
 0xf5f   :  { %11134 = vmatprep.subr.bf16.mxu1 %v7087_v52  ;;  %v7026_v54 = vpop.f32.mrb[183].mxu1  ;;  %v7035_v48 = vadd.f32 %v10952_v7, %v15409_v32  ;;  %v17970_v7 = vld [vmem:[#allocation44_spill] sm:$0xff] }
 0xf60   :  { %v7027_v16 = vadd.f32 %v7026_v54, %v15405_v1  ;;  %v17971_v54 = vld [vmem:[#allocation16_spill] sm:$0xff] }
 0xf61   :  { %10964 = vmatpush3.bf16.msra.mxu0 %v7087_v52  ;;  %v7089_v59 = vpack.c.bf16 %v7035_v48, %v7032_v62  ;;  %v17968_v62 = vld [vmem:[#allocation14_spill] sm:$0xff]  ;;  %v17972_v48 = vld [vmem:[#allocation19_spill] sm:$0xff] }
 0xf62   :  { %11142 = vmatpush3.bf16.msra.mxu1 %v7087_v52  ;;  %v7088_v51 = vpack.c.bf16 %v7027_v16, %v7024_v58  ;;  %v17964_v52 = vld [vmem:[#allocation50_spill] sm:$0xff]  ;;  %v17969_v58 = vld [vmem:[#allocation40_spill] sm:$0xff]  ;;  %v17973_v16 = vld [vmem:[#allocation51_spill] sm:$0xff] }
 0xf63   :  { %7135 = vmatmul.mubr.bf16.gmra.mrb[180].mxu0 %v15047_v11 }
 0xf64   :  { %7142 = vmatprep.mubr.bf16.mxu0 %v15050_v49  ;;  %v10955_v35 = vpop.f32.mrb[184].mxu1  ;;  %11135 = vmatprep.subr.bf16.mxu1 %v7088_v51 }
 0xf65   :  { %v7039_v30 = vpop.f32.mrb[185].mxu1  ;;  %v7048_v45 = vadd.f32 %v10955_v35, %v15418_v2  ;;  %10965 = vmatprep.subr.bf16.mxu0 %v7088_v51  ;;  %v17932_v2 = vld [vmem:[#allocation29_spill] sm:$0xff]  ;;  %v17976_v35 = vld [vmem:[#allocation55_spill] sm:$0xff] }
 0xf66   :  { %v7040_v39 = vadd.f32 %v7039_v30, %v15411_v31  ;;  %11143 = vmatpush3.bf16.msra.mxu1 %v7088_v51  ;;  %v10956_v32 = vpop.f32.mrb[186].mxu1  ;;  %10966 = vmatpush3.bf16.msra.mxu0 %v7088_v51  ;;  %v17975_v51 = vld [vmem:[#allocation17_spill] sm:$0xff] }
 0xf67   :  { %v7042_v1 = vpop.f32.mrb[187].mxu1  ;;  %11136 = vmatprep.subr.bf16.mxu1 %v7089_v59  ;;  %v7051_v42 = vadd.f32 %v10956_v32, %v15421_v8  ;;  %10967 = vmatprep.subr.bf16.mxu0 %v7089_v59  ;;  %v17977_v30 = vld [vmem:[#allocation21_spill] sm:$0xff]  ;;  %v17980_v32 = vld [vmem:[#allocation60_spill] sm:$0xff] }
 0xf68   :  { %v7043_v11 = vadd.f32 %v7042_v1, %v15413_v17  ;;  %v17981_v1 = vld [vmem:[#allocation61_spill] sm:$0xff] }
 0xf69   :  { %v7091_v22 = vpack.c.bf16 %v7051_v42, %v7048_v45  ;;  %v17978_v45 = vld [vmem:[#allocation18_spill] sm:$0xff]  ;;  %v17982_v42 = vld [vmem:[#allocation20_spill] sm:$0xff] }
 0xf6a   :  { %v7090_v49 = vpack.c.bf16 %v7043_v11, %v7040_v39  ;;  %11144 = vmatpush3.bf16.msra.mxu1 %v7089_v59  ;;  %10968 = vmatpush3.bf16.msra.mxu0 %v7089_v59  ;;  %v17974_v59 = vld [vmem:[#allocation53_spill] sm:$0xff]  ;;  %v17979_v39 = vld [vmem:[#allocation52_spill] sm:$0xff]  ;;  %v17983_v11 = vld [vmem:[#allocation54_spill] sm:$0xff] }
 0xf6b   :  { %7143 = vmatmul.mubr.bf16.gmra.mrb[184].mxu0 %v15057_v19 }
 0xf6c   :  { %7150 = vmatprep.mubr.bf16.mxu0 %v17932_v2  ;;  %v10959_v20 = vpop.f32.mrb[188].mxu1  ;;  %11137 = vmatprep.subr.bf16.mxu1 %v7090_v49  ;;  %v17986_v2 = vld [vmem:[#allocation66_spill] sm:$0xff] }
 0xf6d   :  { %v7055_v31 = vpop.f32.mrb[189].mxu1  ;;  %v7064_v40 = vadd.f32 %v10959_v20, %v15437_v23  ;;  %10969 = vmatprep.subr.bf16.mxu0 %v7090_v49  ;;  %v17934_v23 = vld [vmem:[#allocation33_spill] sm:$0xff]  ;;  %v17987_v20 = vld [vmem:[#allocation67_spill] sm:$0xff] }
 0xf6e   :  { %v7056_v46 = vadd.f32 %v7055_v31, %v15427_v33  ;;  %11145 = vmatpush3.bf16.msra.mxu1 %v7090_v49  ;;  %v10960_v8 = vpop.f32.mrb[190].mxu1  ;;  %10970 = vmatpush3.bf16.msra.mxu0 %v7090_v49  ;;  %v17935_v33 = vld [vmem:[#allocation10_spill] sm:$0xff] }
 0xf6f   :  { %v7058_v17 = vpop.f32.mrb[191].mxu1  ;;  %11138 = vmatprep.subr.bf16.mxu1 %v7091_v22  ;;  %v7067_v56 = vadd.f32 %v10960_v8, %v15441_v27  ;;  %10971 = vmatprep.subr.bf16.mxu0 %v7091_v22  ;;  %v17936_v27 = vld [vmem:[#allocation30_spill] sm:$0xff]  ;;  %v17991_v8 = vld [vmem:[#allocation23_spill] sm:$0xff] }
 0xf70   :  { %v7059_v19 = vadd.f32 %v7058_v17, %v15431_v13  ;;  %v17937_v13 = vld [vmem:[#allocation57_spill] sm:$0xff]  ;;  %v17985_v49 = vld [vmem:[#allocation62_spill] sm:$0xff] }
 0xf71   :  { %v7093_v25 = vpack.c.bf16 %v7067_v56, %v7064_v40  ;;  %v17988_v31 = vld [vmem:[#allocation70_spill] sm:$0xff]  ;;  %v17989_v40 = vld [vmem:[#allocation71_spill] sm:$0xff] }
 0xf72   :  { %v7092_v5 = vpack.c.bf16 %v7059_v19, %v7056_v46  ;;  %11146 = vmatpush3.bf16.msra.mxu1 %v7091_v22  ;;  %10972 = vmatpush3.bf16.msra.mxu0 %v7091_v22  ;;  %v17984_v22 = vld [vmem:[#allocation64_spill] sm:$0xff]  ;;  %v17990_v46 = vld [vmem:[#allocation65_spill] sm:$0xff]  ;;  %v17992_v17 = vld [vmem:[#allocation22_spill] sm:$0xff] }
 0xf73   :  { %7151 = vmatmul.mubr.bf16.gmra.mrb[188].mxu0 %v17933_v34  ;;  %v17993_v56 = vld [vmem:[#allocation63_spill] sm:$0xff]  ;;  %v17994_v19 = vld [vmem:[#allocation68_spill] sm:$0xff] }
 0xf74   :  { %7158 = vmatprep.mubr.bf16.mxu0 %v17934_v23  ;;  %11139 = vmatprep.subr.bf16.mxu1 %v7092_v5 }
 0xf75   :  { %10973 = vmatprep.subr.bf16.mxu0 %v7092_v5 }
 0xf76   :  { %11147 = vmatpush3.bf16.msra.mxu1 %v7092_v5  ;;  %10974 = vmatpush3.bf16.msra.mxu0 %v7092_v5  ;;  %v17996_v5 = vld [vmem:[#allocation72_spill] sm:$0xff] }
 0xf77   :  { %11140 = vmatprep.subr.bf16.mxu1 %v7093_v25  ;;  %10975 = vmatprep.subr.bf16.mxu0 %v7093_v25 }
 0xf7a   :  { %11148 = vmatpush3.bf16.msra.mxu1 %v7093_v25  ;;  %10976 = vmatpush3.bf16.msra.mxu0 %v7093_v25  ;;  %v17995_v25 = vld [vmem:[#allocation69_spill] sm:$0xff] }
 0xf7b   :  { %7159 = vmatmul.mubr.bf16.gmra.mrb[192].mxu0 %v17935_v33 }
 0xf7c   :  { %7166 = vmatprep.mubr.bf16.mxu0 %v17936_v27 }
 0xf7d   :  { %10986 = vmatmul.mubr.bf16.vlgmr.msra.gmra.mrb[192].mxu1 %v17937_v13 }
 0xf7e   :  { %10989 = vmatprep.mubr.bf16.mxu1 %v17938_v50 }
 0xf83   :  { %7167 = vmatmul.mubr.bf16.gmra.mrb[196].mxu0 %v17939_v38 }
 0xf84   :  { %7174 = vmatprep.mubr.bf16.mxu0 %v17940_v3 }
 0xf85   :  { %10990 = vmatmul.mubr.bf16.gmra.mrb[196].mxu1 %v17941_v61 }
 0xf86   :  { %10993 = vmatprep.mubr.bf16.mxu1 %v17942_v37 }
 0xf8b   :  { %7175 = vmatmul.mubr.bf16.gmra.mrb[200].mxu0 %v17943_v21 }
 0xf8c   :  { %7182 = vmatprep.mubr.bf16.mxu0 %v17944_v43 }
 0xf8d   :  { %10994 = vmatmul.mubr.bf16.gmra.mrb[200].mxu1 %v17945_v57 }
 0xf8e   :  { %10997 = vmatprep.mubr.bf16.mxu1 %v17946_v53 }
 0xf93   :  { %7183 = vmatmul.mubr.bf16.gmra.mrb[204].mxu0 %v17947_v14 }
 0xf94   :  { %7190 = vmatprep.mubr.bf16.mxu0 %v17948_v0 }
 0xf95   :  { %10998 = vmatmul.mubr.bf16.gmra.mrb[204].mxu1 %v17949_v24 }
 0xf96   :  { %11001 = vmatprep.mubr.bf16.mxu1 %v17950_v29 }
 0xf9b   :  { %7191 = vmatmul.mubr.bf16.gmra.mrb[208].mxu0 %v17951_v15 }
 0xf9c   :  { %7198 = vmatprep.mubr.bf16.mxu0 %v17952_v6 }
 0xf9d   :  { %11002 = vmatmul.mubr.bf16.gmra.mrb[208].mxu1 %v17953_v36 }
 0xf9e   :  { %11005 = vmatprep.mubr.bf16.mxu1 %v17954_v12 }
 0xfa3   :  { %7199 = vmatmul.mubr.bf16.gmra.mrb[212].mxu0 %v17955_v26 }
 0xfa4   :  { %7206 = vmatprep.mubr.bf16.mxu0 %v17956_v47 }
 0xfa5   :  { %11006 = vmatmul.mubr.bf16.gmra.mrb[212].mxu1 %v17957_v10 }
 0xfa6   :  { %11009 = vmatprep.mubr.bf16.mxu1 %v17958_v44 }
 0xfab   :  { %7207 = vmatmul.mubr.bf16.gmra.mrb[216].mxu0 %v17959_v60 }
 0xfac   :  { %7214 = vmatprep.mubr.bf16.mxu0 %v17960_v55 }
 0xfad   :  { %11010 = vmatmul.mubr.bf16.gmra.mrb[216].mxu1 %v17961_v9 }
 0xfae   :  { %11013 = vmatprep.mubr.bf16.mxu1 %v17962_v4 }
 0xfb3   :  { %7215 = vmatmul.mubr.bf16.gmra.mrb[220].mxu0 %v17963_v63 }
 0xfb4   :  { %7222 = vmatprep.mubr.bf16.mxu0 %v17964_v52 }
 0xfb5   :  { %11014 = vmatmul.mubr.bf16.gmra.mrb[220].mxu1 %v17965_v41 }
 0xfb6   :  { %11017 = vmatprep.mubr.bf16.mxu1 %v17966_v28 }
 0xfbb   :  { %7223 = vmatmul.mubr.bf16.gmra.mrb[224].mxu0 %v17967_v18 }
 0xfbc   :  { %7230 = vmatprep.mubr.bf16.mxu0 %v17968_v62 }
 0xfbd   :  { %11018 = vmatmul.mubr.bf16.gmra.mrb[224].mxu1 %v17969_v58 }
 0xfbe   :  { %11021 = vmatprep.mubr.bf16.mxu1 %v17970_v7 }
 0xfc3   :  { %7231 = vmatmul.mubr.bf16.gmra.mrb[228].mxu0 %v17971_v54 }
 0xfc4   :  { %7238 = vmatprep.mubr.bf16.mxu0 %v17972_v48 }
 0xfc5   :  { %11022 = vmatmul.mubr.bf16.gmra.mrb[228].mxu1 %v17973_v16 }
 0xfcb   :  { %7239 = vmatmul.mubr.bf16.gmra.mrb[232].mxu0 %v17974_v59 }
 0xfcc   :  { %7246 = vmatprep.mubr.bf16.mxu0 %v17975_v51 }
 0xfd3   :  { %7247 = vmatmul.mubr.bf16.gmra.mrb[236].mxu0 %v17976_v35 }
 0xfd4   :  { %7254 = vmatprep.mubr.bf16.mxu0 %v17977_v30 }
 0xfdb   :  { %7255 = vmatmul.mubr.bf16.gmra.mrb[240].mxu0 %v17978_v45 }
 0xfdc   :  { %7262 = vmatprep.mubr.bf16.mxu0 %v17979_v39 }
 0xfe3   :  { %7263 = vmatmul.mubr.bf16.gmra.mrb[244].mxu0 %v17980_v32 }
 0xfe4   :  { %7270 = vmatprep.mubr.bf16.mxu0 %v17981_v1 }
 0xfeb   :  { %7271 = vmatmul.mubr.bf16.gmra.mrb[248].mxu0 %v17982_v42 }
 0xfec   :  { %7278 = vmatprep.mubr.bf16.mxu0 %v17983_v11 }
 0xff3   :  { %7279 = vmatmul.mubr.bf16.gmra.mrb[252].mxu0 %v17984_v22 }
 0xff4   :  { %7286 = vmatprep.mubr.bf16.mxu0 %v17985_v49 }
 0xffb   :  { %7287 = vmatmul.mubr.bf16.gmra.mrb[0].mxu0 %v17986_v2 }
 0xffc   :  { %7294 = vmatprep.mubr.bf16.mxu0 %v17987_v20 }
0x1003   :  { %7295 = vmatmul.mubr.bf16.gmra.mrb[4].mxu0 %v17988_v31 }
0x1004   :  { %7302 = vmatprep.mubr.bf16.mxu0 %v17989_v40 }
0x100b   :  { %7303 = vmatmul.mubr.bf16.gmra.mrb[8].mxu0 %v17990_v46 }
0x100c   :  { %7310 = vmatprep.mubr.bf16.mxu0 %v17991_v8 }
0x1013   :  { %7311 = vmatmul.mubr.bf16.gmra.mrb[12].mxu0 %v17992_v17 }
0x1014   :  { %10977 = vmatprep.mubr.bf16.mxu0 %v17993_v56 }
0x101b   :  { %10978 = vmatmul.mubr.bf16.vlgmr.msra.gmra.mrb[16].mxu0 %v17994_v19 }
0x101c   :  { %10981 = vmatprep.mubr.bf16.mxu0 %v17995_v25 }
0x1023   :  { %10982 = vmatmul.mubr.bf16.gmra.mrb[20].mxu0 %v17996_v5 }
0x102e   :  { %v15560_v34 = vpop.f32.mrb[176].mxu0 }
0x102f   :  { %v7130_v23 = vpop.f32.mrb[177].mxu0 }
0x1030   :  { %v15562_v33 = vpop.f32.mrb[178].mxu0 }
0x1031   :  { %v7133_v27 = vpop.f32.mrb[179].mxu0 }
0x1036   :  { %v15564_v13 = vpop.f32.mrb[180].mxu0 }
0x1037   :  { %v7138_v50 = vpop.f32.mrb[181].mxu0 }
0x1038   :  { %v15566_v38 = vpop.f32.mrb[182].mxu0 }
0x1039   :  { %v7141_v3 = vpop.f32.mrb[183].mxu0 }
0x103e   :  { %v15568_v61 = vpop.f32.mrb[184].mxu0 }
0x103f   :  { %v7146_v37 = vpop.f32.mrb[185].mxu0 }
0x1040   :  { %v15570_v21 = vpop.f32.mrb[186].mxu0 }
0x1041   :  { %v7149_v43 = vpop.f32.mrb[187].mxu0 }
0x1046   :  { %v15572_v57 = vpop.f32.mrb[188].mxu0 }
0x1047   :  { %v7154_v53 = vpop.f32.mrb[189].mxu0 }
0x1048   :  { %v15574_v14 = vpop.f32.mrb[190].mxu0 }
0x1049   :  { %v7157_v0 = vpop.f32.mrb[191].mxu0 }
0x104a   :  { %v11373_v0 = vld [vmem:[%s17119_s6 + $0x10] sm:$0xff]  }
0x104b   :  { %11025 = vmatprep.subr.bf16.mxu1 %v11373_v0 }
0x104c   :  { %11026 = vmatpush3.bf16.msra.mxu1 %v11373_v0 }
0x104e   :  { %v7160_v24 = vpop.f32.mrb[192].mxu0 }
0x104f   :  { %v7162_v29 = vpop.f32.mrb[193].mxu0 }
0x1050   :  { %v7163_v15 = vpop.f32.mrb[194].mxu0  ;;  %v10987_v6 = vpop.f32.mrb[192].mxu1 }
0x1051   :  { %v7165_v36 = vpop.f32.mrb[195].mxu0  ;;  %v7385_v12 = vpop.f32.mrb[193].mxu1 }
0x1052   :  { %v15576_v26 = vadd.f32 %v7385_v12, %v7160_v24  ;;  %v10988_v47 = vpop.f32.mrb[194].mxu1 }
0x1053   :  { %v7388_v10 = vpop.f32.mrb[195].mxu1 }
0x1054   :  { %v15578_v44 = vadd.f32 %v7388_v10, %v7163_v15 }
0x1056   :  { %v7168_v60 = vpop.f32.mrb[196].mxu0 }
0x1057   :  { %v7170_v9 = vpop.f32.mrb[197].mxu0  ;;  %v15582_v4 = vadd.f32 %v10987_v6, %v7168_v60 }
0x1058   :  { %v7171_v63 = vpop.f32.mrb[198].mxu0  ;;  %v10991_v52 = vpop.f32.mrb[196].mxu1 }
0x1059   :  { %v7173_v41 = vpop.f32.mrb[199].mxu0  ;;  %v15584_v28 = vadd.f32 %v10988_v47, %v7171_v63  ;;  %v7401_v18 = vpop.f32.mrb[197].mxu1 }
0x105a   :  { %v10992_v62 = vpop.f32.mrb[198].mxu1 }
0x105b   :  { %v7404_v7 = vpop.f32.mrb[199].mxu1 }
0x105e   :  { %v7176_v54 = vpop.f32.mrb[200].mxu0 }
0x105f   :  { %v7178_v48 = vpop.f32.mrb[201].mxu0  ;;  %v15588_v16 = vadd.f32 %v7401_v18, %v7176_v54 }
0x1060   :  { %v7179_v59 = vpop.f32.mrb[202].mxu0  ;;  %v10995_v51 = vpop.f32.mrb[200].mxu1 }
0x1061   :  { %v7181_v35 = vpop.f32.mrb[203].mxu0  ;;  %v15590_v30 = vadd.f32 %v7404_v7, %v7179_v59  ;;  %v7417_v45 = vpop.f32.mrb[201].mxu1 }
0x1062   :  { %v10996_v39 = vpop.f32.mrb[202].mxu1 }
0x1063   :  { %v7420_v1 = vpop.f32.mrb[203].mxu1 }
0x1066   :  { %v7184_v42 = vpop.f32.mrb[204].mxu0 }
0x1067   :  { %v7186_v11 = vpop.f32.mrb[205].mxu0  ;;  %v15594_v22 = vadd.f32 %v10991_v52, %v7184_v42 }
0x1068   :  { %v7187_v49 = vpop.f32.mrb[206].mxu0  ;;  %v10999_v2 = vpop.f32.mrb[204].mxu1 }
0x1069   :  { %v7189_v20 = vpop.f32.mrb[207].mxu0  ;;  %v15596_v31 = vadd.f32 %v10992_v62, %v7187_v49  ;;  %v7433_v40 = vpop.f32.mrb[205].mxu1 }
0x106a   :  { %v11000_v46 = vpop.f32.mrb[206].mxu1 }
0x106b   :  { %v7436_v17 = vpop.f32.mrb[207].mxu1 }
0x106e   :  { %v7192_v56 = vpop.f32.mrb[208].mxu0 }
0x106f   :  { %v7194_v19 = vpop.f32.mrb[209].mxu0  ;;  %v15600_v25 = vadd.f32 %v7417_v45, %v7192_v56 }
0x1070   :  { %v7195_v5 = vpop.f32.mrb[210].mxu0  ;;  %v11003_v23 = vpop.f32.mrb[208].mxu1 }
0x1071   :  { %v7197_v27 = vpop.f32.mrb[211].mxu0  ;;  %v15602_v50 = vadd.f32 %v7420_v1, %v7195_v5  ;;  %v7449_v3 = vpop.f32.mrb[209].mxu1 }
0x1072   :  { %v11004_v37 = vpop.f32.mrb[210].mxu1 }
0x1073   :  { %v7452_v53 = vpop.f32.mrb[211].mxu1 }
0x1076   :  { %v7200_v24 = vpop.f32.mrb[212].mxu0 }
0x1077   :  { %v7202_v29 = vpop.f32.mrb[213].mxu0  ;;  %v15609_v15 = vadd.f32 %v10995_v51, %v7200_v24 }
0x1078   :  { %v7203_v6 = vpop.f32.mrb[214].mxu0  ;;  %v11007_v36 = vpop.f32.mrb[212].mxu1 }
0x1079   :  { %v7205_v12 = vpop.f32.mrb[215].mxu0  ;;  %v15611_v47 = vadd.f32 %v10996_v39, %v7203_v6  ;;  %v7465_v10 = vpop.f32.mrb[213].mxu1 }
0x107a   :  { %v11008_v60 = vpop.f32.mrb[214].mxu1 }
0x107b   :  { %v7468_v63 = vpop.f32.mrb[215].mxu1 }
0x107e   :  { %v7208_v52 = vpop.f32.mrb[216].mxu0 }
0x107f   :  { %v7210_v41 = vpop.f32.mrb[217].mxu0  ;;  %v15615_v18 = vadd.f32 %v7433_v40, %v7208_v52 }
0x1080   :  { %v7211_v62 = vpop.f32.mrb[218].mxu0  ;;  %v15617_v7 = vpop.f32.mrb[216].mxu1 }
0x1081   :  { %v7213_v54 = vpop.f32.mrb[219].mxu0  ;;  %v15619_v48 = vadd.f32 %v7436_v17, %v7211_v62  ;;  %v7481_v59 = vpop.f32.mrb[217].mxu1 }
0x1082   :  { %v11012_v51 = vpop.f32.mrb[218].mxu1 }
0x1083   :  { %v7484_v45 = vpop.f32.mrb[219].mxu1 }
0x1086   :  { %v7216_v39 = vpop.f32.mrb[220].mxu0 }
0x1087   :  { %v7218_v1 = vpop.f32.mrb[221].mxu0  ;;  %v15623_v42 = vadd.f32 %v10999_v2, %v7216_v39 }
0x1088   :  { %v7219_v11 = vpop.f32.mrb[222].mxu0  ;;  %v15625_v49 = vpop.f32.mrb[220].mxu1 }
0x1089   :  { %v7221_v20 = vpop.f32.mrb[223].mxu0  ;;  %v15627_v40 = vadd.f32 %v11000_v46, %v7219_v11  ;;  %v7497_v56 = vpop.f32.mrb[221].mxu1 }
0x108a   :  { %v15629_v19 = vpop.f32.mrb[222].mxu1 }
0x108b   :  { %v7500_v5 = vpop.f32.mrb[223].mxu1 }
0x108e   :  { %v7224_v27 = vpop.f32.mrb[224].mxu0 }
0x108f   :  { %v7226_v0 = vpop.f32.mrb[225].mxu0  ;;  %v15633_v24 = vadd.f32 %v7449_v3, %v7224_v27 }
0x1090   :  { %v7227_v29 = vpop.f32.mrb[226].mxu0  ;;  %v15635_v2 = vpop.f32.mrb[224].mxu1 }
0x1091   :  { %v7229_v6 = vpop.f32.mrb[227].mxu0  ;;  %v15637_v12 = vadd.f32 %v7452_v53, %v7227_v29  ;;  %v7513_v52 = vpop.f32.mrb[225].mxu1 }
0x1092   :  { %v15639_v46 = vpop.f32.mrb[226].mxu1 }
0x1093   :  { %v7516_v62 = vpop.f32.mrb[227].mxu1 }
0x1096   :  { %v7232_v54 = vpop.f32.mrb[228].mxu0 }
0x1097   :  { %v7234_v39 = vpop.f32.mrb[229].mxu0  ;;  %v15643_v1 = vadd.f32 %v11003_v23, %v7232_v54 }
0x1098   :  { %v7235_v11 = vpop.f32.mrb[230].mxu0  ;;  %v15645_v3 = vpop.f32.mrb[228].mxu1 }
0x1099   :  { %v7237_v20 = vpop.f32.mrb[231].mxu0  ;;  %v15647_v27 = vadd.f32 %v11004_v37, %v7235_v11  ;;  %v7529_v0 = vpop.f32.mrb[229].mxu1 }
0x109a   :  { %v15649_v53 = vpop.f32.mrb[230].mxu1 }
0x109b   :  { %v7532_v6 = vpop.f32.mrb[231].mxu1 }
0x109e   :  { %v7240_v17 = vpop.f32.mrb[232].mxu0 }
0x109f   :  { %v7242_v41 = vpop.f32.mrb[233].mxu0  ;;  %v15653_v35 = vadd.f32 %v7465_v10, %v7240_v17 }
0x10a0   :  { %v7243_v39 = vpop.f32.mrb[234].mxu0 }
0x10a1   :  { %v7245_v23 = vpop.f32.mrb[235].mxu0  ;;  %v15655_v54 = vadd.f32 %v7468_v63, %v7243_v39 }
0x10a6   :  { %v7248_v37 = vpop.f32.mrb[236].mxu0 }
0x10a7   :  { %v7250_v11 = vpop.f32.mrb[237].mxu0  ;;  %v15659_v9 = vadd.f32 %v11007_v36, %v7248_v37 }
0x10a8   :  { %v7251_v43 = vpop.f32.mrb[238].mxu0 }
0x10a9   :  { %v7253_v8 = vpop.f32.mrb[239].mxu0  ;;  %v15661_v32 = vadd.f32 %v11008_v60, %v7251_v43 }
0x10ae   :  { %v7256_v10 = vpop.f32.mrb[240].mxu0 }
0x10af   :  { %v7258_v17 = vpop.f32.mrb[241].mxu0  ;;  %v15665_v29 = vadd.f32 %v7481_v59, %v7256_v10 }
0x10b0   :  { %v7259_v63 = vpop.f32.mrb[242].mxu0 }
0x10b1   :  { %v7261_v39 = vpop.f32.mrb[243].mxu0  ;;  %v15667_v23 = vadd.f32 %v7484_v45, %v7259_v63 }
0x10b6   :  { %v7264_v36 = vpop.f32.mrb[244].mxu0 }
0x10b7   :  { %v7266_v37 = vpop.f32.mrb[245].mxu0  ;;  %v15672_v8 = vadd.f32 %v15617_v7, %v7264_v36 }
0x10b8   :  { %v7267_v43 = vpop.f32.mrb[246].mxu0 }
0x10b9   :  { %v7269_v60 = vpop.f32.mrb[247].mxu0  ;;  %v15674_v20 = vadd.f32 %v11012_v51, %v7267_v43 }
0x10be   :  { %v7272_v10 = vpop.f32.mrb[248].mxu0 }
0x10bf   :  { %v7274_v17 = vpop.f32.mrb[249].mxu0  ;;  %v15678_v39 = vadd.f32 %v7497_v56, %v7272_v10 }
0x10c0   :  { %v7275_v45 = vpop.f32.mrb[250].mxu0 }
0x10c1   :  { %v7277_v63 = vpop.f32.mrb[251].mxu0  ;;  %v15680_v41 = vadd.f32 %v7500_v5, %v7275_v45 }
0x10c6   :  { %v7280_v7 = vpop.f32.mrb[252].mxu0 }
0x10c7   :  { %v7282_v36 = vpop.f32.mrb[253].mxu0  ;;  %v15685_v60 = vadd.f32 %v15625_v49, %v7280_v7 }
0x10c8   :  { %v7283_v51 = vpop.f32.mrb[254].mxu0 }
0x10c9   :  { %17997 = vst [vmem:[#allocation7_spill] sm:$0xff] %v15685_v60  ;;  %v7285_v43 = vpop.f32.mrb[255].mxu0  ;;  %v15688_v59 = vadd.f32 %v15629_v19, %v7283_v51 }
0x10ce   :  { %v7288_v10 = vpop.f32.mrb[0].mxu0 }
0x10cf   :  { %v7290_v17 = vpop.f32.mrb[1].mxu0  ;;  %v15692_v5 = vadd.f32 %v7513_v52, %v7288_v10 }
0x10d0   :  { %v7291_v45 = vpop.f32.mrb[2].mxu0 }
0x10d1   :  { %v7293_v63 = vpop.f32.mrb[3].mxu0  ;;  %v15694_v37 = vadd.f32 %v7516_v62, %v7291_v45 }
0x10d3   :  { %v7564_v49 = vpack.c.bf16 %v15694_v37, %v15692_v5 }
0x10d6   :  { %v7296_v7 = vpop.f32.mrb[4].mxu0 }
0x10d7   :  { %v7298_v36 = vpop.f32.mrb[5].mxu0  ;;  %v7522_v43 = vadd.f32 %v15635_v2, %v7296_v7 }
0x10d8   :  { %v7299_v19 = vpop.f32.mrb[6].mxu0 }
0x10d9   :  { %v7301_v51 = vpop.f32.mrb[7].mxu0  ;;  %v7525_v11 = vadd.f32 %v15639_v46, %v7299_v19 }
0x10db   :  { %v7565_v56 = vpack.c.bf16 %v7525_v11, %v7522_v43 }
0x10de   :  { %v7304_v58 = vpop.f32.mrb[8].mxu0 }
0x10df   :  { %v7306_v17 = vpop.f32.mrb[9].mxu0  ;;  %v7530_v52 = vadd.f32 %v7529_v0, %v7304_v58 }
0x10e0   :  { %v7307_v10 = vpop.f32.mrb[10].mxu0 }
0x10e1   :  { %v7309_v55 = vpop.f32.mrb[11].mxu0  ;;  %v7533_v63 = vadd.f32 %v7532_v6, %v7307_v10 }
0x10e3   :  { %v7566_v62 = vpack.c.bf16 %v7533_v63, %v7530_v52 }
0x10e6   :  { %v7312_v45 = vpop.f32.mrb[12].mxu0 }
0x10e7   :  { %v7314_v60 = vpop.f32.mrb[13].mxu0  ;;  %v7538_v37 = vadd.f32 %v15645_v3, %v7312_v45 }
0x10e8   :  { %v7315_v5 = vpop.f32.mrb[14].mxu0 }
0x10e9   :  { %v7317_v36 = vpop.f32.mrb[15].mxu0  ;;  %v7541_v2 = vadd.f32 %v15649_v53, %v7315_v5 }
0x10eb   :  { %v7567_v7 = vpack.c.bf16 %v7541_v2, %v7538_v37 }
0x10ee   :  { %v10979_v51 = vpop.f32.mrb[16].mxu0 }
0x10ef   :  { %v7362_v46 = vadd.f32 %v10979_v51, %v15564_v13  ;;  %v7353_v11 = vpop.f32.mrb[17].mxu0 }
0x10f0   :  { %v7354_v43 = vadd.f32 %v7353_v11, %v15560_v34  ;;  %v10980_v58 = vpop.f32.mrb[18].mxu0 }
0x10f1   :  { %v7365_v55 = vadd.f32 %v10980_v58, %v15566_v38  ;;  %v7356_v0 = vpop.f32.mrb[19].mxu0 }
0x10f2   :  { %v7357_v6 = vadd.f32 %v7356_v0, %v15562_v33 }
0x10f3   :  { %v7545_v60 = vpack.c.bf16 %v7365_v55, %v7362_v46 }
0x10f4   :  { %v7544_v19 = vpack.c.bf16 %v7357_v6, %v7354_v43 }
0x10f6   :  { %v10983_v3 = vpop.f32.mrb[20].mxu0  ;;  %11027 = vmatprep.mubr.msk.bf16.mxu1 %vm979_vm1, %v7544_v19 }
0x10f7   :  { %v7378_v53 = vadd.f32 %v10983_v3, %v15572_v57  ;;  %v7369_v17 = vpop.f32.mrb[21].mxu0  ;;  %11028 = vmatmul.mubr.msk.bf16.vlgmr.msra.gmra.mrb[96].mxu1 %vm979_vm1, %v7545_v60  ;;  %v17998_v57 = vpack.c.bf16 %v15578_v44, %v15576_v26  ;;  %v18002_v26 = vpack.c.bf16 %v15602_v50, %v15600_v25  ;;  %v18003_v44 = vpack.c.bf16 %v15611_v47, %v15609_v15  ;;  %v18013_v47 = vld [vmem:[#allocation7_spill] sm:$0xff] }
0x10f8   :  { %v7370_v13 = vadd.f32 %v7369_v17, %v15568_v61  ;;  %v10984_v52 = vpop.f32.mrb[22].mxu0  ;;  %v17999_v61 = vpack.c.bf16 %v15584_v28, %v15582_v4  ;;  %v18004_v4 = vpack.c.bf16 %v15619_v48, %v15615_v18  ;;  %v18005_v28 = vpack.c.bf16 %v15627_v40, %v15623_v42 }
0x10f9   :  { %v7381_v34 = vadd.f32 %v10984_v52, %v15574_v14  ;;  %v7372_v10 = vpop.f32.mrb[23].mxu0  ;;  %v18000_v14 = vpack.c.bf16 %v15590_v30, %v15588_v16  ;;  %v18006_v16 = vpack.c.bf16 %v15637_v12, %v15633_v24  ;;  %v18007_v30 = vpack.c.bf16 %v15647_v27, %v15643_v1 }
0x10fa   :  { %v7373_v38 = vadd.f32 %v7372_v10, %v15570_v21  ;;  %v18001_v21 = vpack.c.bf16 %v15596_v31, %v15594_v22  ;;  %v18008_v22 = vpack.c.bf16 %v15655_v54, %v15653_v35  ;;  %v18009_v31 = vpack.c.bf16 %v15661_v32, %v15659_v9  ;;  %v15785_v9 = vld [vmem:[%s17120_s7] ss:$0 sm:$0xff] }
0x10fb   :  { %v7547_v63 = vpack.c.bf16 %v7381_v34, %v7378_v53  ;;  %v18010_v25 = vpack.c.bf16 %v15667_v23, %v15665_v29  ;;  %v18011_v50 = vpack.c.bf16 %v15674_v20, %v15672_v8  ;;  %v18012_v15 = vpack.c.bf16 %v15680_v41, %v15678_v39 }
0x10fc   :  { %v7546_v33 = vpack.c.bf16 %v7373_v38, %v7370_v13  ;;  %v18014_v32 = vpack.c.bf16 %v15688_v59, %v18013_v47 }
0x10fe   :  { %11031 = vmatprep.mubr.msk.bf16.mxu1 %vm979_vm1, %v7546_v33 }
0x10ff   :  { %11032 = vmatmul.mubr.msk.bf16.gmra.mrb[100].mxu1 %vm979_vm1, %v7547_v63 }
0x1100   :  { %11035 = vmatprep.mubr.msk.bf16.mxu1 %vm979_vm1, %v17998_v57 }
0x1107   :  { %11036 = vmatmul.mubr.msk.bf16.gmra.mrb[104].mxu1 %vm979_vm1, %v17999_v61 }
0x1108   :  { %11039 = vmatprep.mubr.msk.bf16.mxu1 %vm979_vm1, %v18000_v14 }
0x110f   :  { %11040 = vmatmul.mubr.msk.bf16.gmra.mrb[108].mxu1 %vm979_vm1, %v18001_v21 }
0x1110   :  { %11043 = vmatprep.mubr.msk.bf16.mxu1 %vm979_vm1, %v18002_v26 }
0x1117   :  { %11044 = vmatmul.mubr.msk.bf16.gmra.mrb[112].mxu1 %vm979_vm1, %v18003_v44 }
0x1118   :  { %11047 = vmatprep.mubr.msk.bf16.mxu1 %vm979_vm1, %v18004_v4 }
0x111f   :  { %11048 = vmatmul.mubr.msk.bf16.gmra.mrb[116].mxu1 %vm979_vm1, %v18005_v28 }
0x1120   :  { %11051 = vmatprep.mubr.msk.bf16.mxu1 %vm979_vm1, %v18006_v16 }
0x1127   :  { %11052 = vmatmul.mubr.msk.bf16.gmra.mrb[120].mxu1 %vm979_vm1, %v18007_v30 }
0x1128   :  { %11055 = vmatprep.mubr.msk.bf16.mxu1 %vm979_vm1, %v18008_v22 }
0x112f   :  { %11056 = vmatmul.mubr.msk.bf16.gmra.mrb[124].mxu1 %vm979_vm1, %v18009_v31 }
0x1130   :  { %11059 = vmatprep.mubr.msk.bf16.mxu1 %vm979_vm1, %v18010_v25 }
0x1137   :  { %11060 = vmatmul.mubr.msk.bf16.gmra.mrb[128].mxu1 %vm979_vm1, %v18011_v50 }
0x1138   :  { %11063 = vmatprep.mubr.msk.bf16.mxu1 %vm979_vm1, %v18012_v15 }
0x113f   :  { %11064 = vmatmul.mubr.msk.bf16.gmra.mrb[132].mxu1 %vm979_vm1, %v18014_v32 }
0x1140   :  { %11067 = vmatprep.mubr.msk.bf16.mxu1 %vm979_vm1, %v7564_v49 }
0x1147   :  { %11068 = vmatmul.mubr.msk.bf16.gmra.mrb[136].mxu1 %vm979_vm1, %v7565_v56 }
0x1148   :  { %11071 = vmatprep.mubr.msk.bf16.mxu1 %vm979_vm1, %v7566_v62 }
0x114f   :  { %11072 = vmatmul.mubr.msk.bf16.gmra.mrb[140].mxu1 %vm979_vm1, %v7567_v7 }
0x11ca   :  { %v11029_v18 = vpop.f32.mrb[96].mxu1 }
0x11cb   :  { %v15788_v48 = vadd.f32 %v11029_v18, %v15785_v9  ;;  %v7683_v35 = vpop.f32.mrb[97].mxu1 }
0x11cc   :  { %v15791_v42 = vadd.f32 %v15785_v9, %v7683_v35  ;;  %v11030_v40 = vpop.f32.mrb[98].mxu1 }
0x11cd   :  { %v8027_v24 = vmul.f32 0.044715, %v15788_v48  ;;  %v15795_v12 = vadd.f32 %v11030_v40, %v15785_v9  ;;  %v7686_v1 = vpop.f32.mrb[99].mxu1 }
0x11ce   :  { %v8025_v27 = vmul.f32 0.044715, %v15791_v42  ;;  %v15799_v29 = vadd.f32 %v15785_v9, %v7686_v1 }
0x11cf   :  { %v8028_v54 = vmul.f32 0.044715, %v15795_v12  ;;  %v8075_v20 = vmul.f32 %v8027_v24, %v15788_v48 }
0x11d0   :  { %v8073_v41 = vmul.f32 %v8025_v27, %v15791_v42  ;;  %v8026_v23 = vmul.f32 0.044715, %v15799_v29 }
0x11d1   :  { %v8123_v8 = vmul.f32 %v8075_v20, %v15788_v48  ;;  %v8076_v59 = vmul.f32 %v8028_v54, %v15795_v12 }
0x11d2   :  { %v8074_v39 = vmul.f32 %v8026_v23, %v15799_v29  ;;  %v11033_v56 = vpop.f32.mrb[100].mxu1  ;;  %v8121_v49 = vmul.f32 %v8073_v41, %v15791_v42 }
0x11d3   :  { %v15810_v62 = vadd.f32 %v11033_v56, %v15785_v9  ;;  %v7699_v45 = vpop.f32.mrb[101].mxu1  ;;  %v8171_v37 = vadd.f32 %v8123_v8, %v15788_v48  ;;  %v8124_v5 = vmul.f32 %v8076_v59, %v15795_v12  ;;  %v7979_v8 = vmul.f32 0.5, %v15788_v48 }
0x11d4   :  { %v15815_v36 = vadd.f32 %v15785_v9, %v7699_v45  ;;  %v11034_v2 = vpop.f32.mrb[102].mxu1  ;;  %v8169_v7 = vadd.f32 %v8121_v49, %v15791_v42  ;;  %v8122_v51 = vmul.f32 %v8074_v39, %v15799_v29  ;;  %v7980_v49 = vmul.f32 0.5, %v15795_v12 }
0x11d5   :  { %v8031_v46 = vmul.f32 0.044715, %v15810_v62  ;;  %v15821_v11 = vadd.f32 %v11034_v2, %v15785_v9  ;;  %v7702_v43 = vpop.f32.mrb[103].mxu1  ;;  %v8219_v58 = vmul.f32 0.7978846, %v8171_v37  ;;  %v8172_v55 = vadd.f32 %v8124_v5, %v15795_v12 }
0x11d6   :  { %v8029_v0 = vmul.f32 0.044715, %v15815_v36  ;;  %v15826_v6 = vadd.f32 %v15785_v9, %v7702_v43  ;;  %v8217_v60 = vmul.f32 0.7978846, %v8169_v7  ;;  %v8170_v19 = vadd.f32 %v8122_v51, %v15799_v29 }
0x11d7   :  { %v8079_v3 = vmul.f32 %v8031_v46, %v15810_v62  ;;  %v8032_v53 = vmul.f32 0.044715, %v15821_v11  ;;  %11569 = vtanh.f32 %v8219_v58  ;;  %v8220_v17 = vmul.f32 0.7978846, %v8172_v55 }
0x11d8   :  { %v8077_v13 = vmul.f32 %v8029_v0, %v15815_v36  ;;  %v8030_v52 = vmul.f32 0.044715, %v15826_v6  ;;  %11571 = vtanh.f32 %v8217_v60  ;;  %v8218_v34 = vmul.f32 0.7978846, %v8170_v19 }
0x11d9   :  { %v8080_v10 = vmul.f32 %v8032_v53, %v15821_v11  ;;  %11573 = vtanh.f32 %v8220_v17  ;;  %v8127_v38 = vmul.f32 %v8079_v3, %v15810_v62  ;;  %v7977_v45 = vmul.f32 0.5, %v15791_v42 }
0x11da   :  { %v8078_v63 = vmul.f32 %v8030_v52, %v15826_v6  ;;  %v11037_v33 = vpop.f32.mrb[104].mxu1  ;;  %11575 = vtanh.f32 %v8218_v34  ;;  %v8125_v26 = vmul.f32 %v8077_v13, %v15815_v36  ;;  %v7978_v46 = vmul.f32 0.5, %v15799_v29 }
0x11db   :  { %v15837_v57 = vadd.f32 %v11037_v33, %v15785_v9  ;;  %v7715_v61 = vpop.f32.mrb[105].mxu1  ;;  %v8175_v14 = vadd.f32 %v8127_v38, %v15810_v62  ;;  %v8128_v21 = vmul.f32 %v8080_v10, %v15821_v11  ;;  %v7983_v53 = vmul.f32 0.5, %v15810_v62 }
0x11dc   :  { %v11038_v44 = vpop.f32.mrb[106].mxu1  ;;  %v8126_v4 = vmul.f32 %v8078_v63, %v15826_v6  ;;  %v15849_v25 = vadd.f32 %v15785_v9, %v7715_v61  ;;  %v8173_v50 = vadd.f32 %v8125_v26, %v15815_v36  ;;  %v7984_v52 = vmul.f32 0.5, %v15821_v11 }
0x11dd   :  { %v8035_v28 = vmul.f32 0.044715, %v15837_v57  ;;  %v15845_v16 = vadd.f32 %v11038_v44, %v15785_v9  ;;  %v7718_v30 = vpop.f32.mrb[107].mxu1  ;;  %v8223_v22 = vmul.f32 0.7978846, %v8175_v14  ;;  %v8176_v31 = vadd.f32 %v8128_v21, %v15821_v11 }
0x11de   :  { %v8174_v15 = vadd.f32 %v8126_v4, %v15826_v6  ;;  %v8221_v35 = vmul.f32 0.7978846, %v8173_v50  ;;  %v15857_v27 = vadd.f32 %v15785_v9, %v7718_v30  ;;  %v8033_v41 = vmul.f32 0.044715, %v15849_v25 }
0x11df   :  { %v8083_v47 = vmul.f32 %v8035_v28, %v15837_v57  ;;  %v8036_v32 = vmul.f32 0.044715, %v15845_v16  ;;  %11577 = vtanh.f32 %v8223_v22  ;;  %v8224_v18 = vmul.f32 0.7978846, %v8176_v31 }
0x11e0   :  { %v8222_v40 = vmul.f32 0.7978846, %v8174_v15  ;;  %v8034_v48 = vmul.f32 0.044715, %v15857_v27  ;;  %v8081_v0 = vmul.f32 %v8033_v41, %v15849_v25  ;;  %v7981_v33 = vmul.f32 0.5, %v15815_v36 }
0x11e1   :  { %v11570_v24 = vpop.eup %11569  ;;  %v8084_v1 = vmul.f32 %v8036_v32, %v15845_v16  ;;  %11579 = vtanh.f32 %v8224_v18  ;;  %v8131_v54 = vmul.f32 %v8083_v47, %v15837_v57  ;;  %v7982_v36 = vmul.f32 0.5, %v15826_v6 }
0x11e2   :  { %v11572_v20 = vpop.eup %11571  ;;  %v11041_v23 = vpop.f32.mrb[108].mxu1  ;;  %v8315_v59 = vadd.f32 1.0, %v11570_v24  ;;  %11581 = vtanh.f32 %v8221_v35  ;;  %v8082_v38 = vmul.f32 %v8034_v48, %v15857_v27  ;;  %v8129_v26 = vmul.f32 %v8081_v0, %v15849_v25 }
0x11e3   :  { %v11574_v39 = vpop.eup %11573  ;;  %v7731_v56 = vpop.f32.mrb[109].mxu1  ;;  %v8313_v37 = vadd.f32 1.0, %v11572_v20  ;;  %11583 = vtanh.f32 %v8222_v40  ;;  %v8179_v43 = vadd.f32 %v8131_v54, %v15837_v57  ;;  %v15870_v58 = vadd.f32 %v11041_v23, %v15785_v9 }
0x11e4   :  { %v11576_v5 = vpop.eup %11575  ;;  %v11042_v2 = vpop.f32.mrb[110].mxu1  ;;  %v15864_v7 = vmul.f32 %v8315_v59, %v7979_v8  ;;  %v8316_v51 = vadd.f32 1.0, %v11574_v39  ;;  %v8132_v42 = vmul.f32 %v8084_v1, %v15845_v16  ;;  %v15897_v44 = vadd.f32 %v15785_v9, %v7731_v56 }
0x11e5   :  { %v7734_v55 = vpop.f32.mrb[111].mxu1  ;;  %v8314_v12 = vadd.f32 1.0, %v11576_v5  ;;  %v15878_v3 = vmul.f32 %v8313_v37, %v7977_v45  ;;  %v15881_v29 = vadd.f32 %v11042_v2, %v15785_v9  ;;  %v8227_v34 = vmul.f32 0.7978846, %v8179_v43 }
0x11e6   :  { %v8418_v60 = vsel %vm8411_vm2, %v15864_v7, 0.0  ;;  %v15876_v19 = vmul.f32 %v8316_v51, %v7980_v49  ;;  %v8039_v63 = vmul.f32 0.044715, %v15870_v58  ;;  %v8180_v61 = vadd.f32 %v8132_v42, %v15845_v16 }
0x11e7   :  { %8419 = vadd.xlane.f32.xlu0 %v8418_v60  ;;  %v15886_v13 = vmul.f32 %v8314_v12, %v7978_v46  ;;  %v8412_v62 = vsel %vm8411_vm2, %v15878_v3, 0.0  ;;  %11585 = vtanh.f32 %v8227_v34  ;;  %v8040_v4 = vmul.f32 0.044715, %v15881_v29 }
0x11e8   :  { %v8421_v17 = vsel %vm8411_vm2, %v15876_v19, 0.0  ;;  %v8228_v30 = vmul.f32 0.7978846, %v8180_v61  ;;  %v8177_v32 = vadd.f32 %v8129_v26, %v15849_v25  ;;  %v15907_v35 = vadd.f32 %v15785_v9, %v7734_v55 }
0x11e9   :  { %v11578_v10 = vpop.eup %11577  ;;  %8422 = vadd.xlane.f32.xlu1 %v8421_v17  ;;  %v8415_v50 = vsel %vm8411_vm2, %v15886_v13, 0.0  ;;  %v8130_v6 = vmul.f32 %v8082_v38, %v15857_v27  ;;  %v8087_v1 = vmul.f32 %v8039_v63, %v15870_v58  ;;  %v7987_v41 = vmul.f32 0.5, %v15837_v57 }
0x11ea   :  { %v11045_v14 = vpop.f32.mrb[112].mxu1  ;;  %v8319_v21 = vadd.f32 1.0, %v11578_v10  ;;  %11587 = vtanh.f32 %v8228_v30  ;;  %v8037_v23 = vmul.f32 0.044715, %v15897_v44  ;;  %v8088_v56 = vmul.f32 %v8040_v4, %v15881_v29 }
0x11eb   :  { %v11580_v11 = vpop.eup %11579  ;;  %8413 = vadd.xlane.f32.xlu0 %v8412_v62  ;;  %v7747_v28 = vpop.f32.mrb[113].mxu1  ;;  %v15918_v8 = vadd.f32 %v11045_v14, %v15785_v9  ;;  %v8225_v37 = vmul.f32 0.7978846, %v8177_v32  ;;  %v8038_v57 = vmul.f32 0.044715, %v15907_v35  ;;  %v7988_v2 = vmul.f32 0.5, %v15845_v16 }
0x11ec   :  { %v11582_v22 = vpop.eup %11581  ;;  %v11046_v31 = vpop.f32.mrb[114].mxu1  ;;  %v15903_v15 = vmul.f32 %v8319_v21, %v7983_v53  ;;  %v8320_v47 = vadd.f32 1.0, %v11580_v11  ;;  %v15924_v49 = vadd.f32 %v15785_v9, %v7747_v28  ;;  %v8178_v51 = vadd.f32 %v8130_v6, %v15857_v27 }
0x11ed   :  { %v11584_v18 = vpop.eup %11583  ;;  %8416 = vadd.xlane.f32.xlu1 %v8415_v50  ;;  %v7750_v40 = vpop.f32.mrb[115].mxu1  ;;  %v8317_v24 = vadd.f32 1.0, %v11582_v22  ;;  %v15934_v46 = vadd.f32 %v11046_v31, %v15785_v9  ;;  %11589 = vtanh.f32 %v8225_v37  ;;  %v8135_v55 = vmul.f32 %v8087_v1, %v15870_v58 }
0x11ee   :  { %v8430_v54 = vsel %vm8411_vm2, %v15903_v15, 0.0  ;;  %v15913_v20 = vmul.f32 %v8320_v47, %v7984_v52  ;;  %v8318_v39 = vadd.f32 1.0, %v11584_v18  ;;  %v8085_v12 = vmul.f32 %v8037_v23, %v15897_v44 }
0x11ef   :  { %8431 = vadd.xlane.f32.xlu0 %v8430_v54  ;;  %v15920_v59 = vmul.f32 %v8317_v24, %v7981_v33  ;;  %v8043_v42 = vmul.f32 0.044715, %v15918_v8  ;;  %v7985_v16 = vmul.f32 0.5, %v15849_v25  ;;  %v8226_v60 = vmul.f32 0.7978846, %v8178_v51 }
0x11f0   :  { %v8433_v45 = vsel %vm8411_vm2, %v15913_v20, 0.0  ;;  %v15929_v5 = vmul.f32 %v8318_v39, %v7982_v36  ;;  %v8041_v17 = vmul.f32 0.044715, %v15924_v49  ;;  %v8183_v10 = vadd.f32 %v8135_v55, %v15870_v58 }
0x11f1   :  { %8434 = vadd.xlane.f32.xlu1 %v8433_v45  ;;  %v8424_v48 = vsel %vm8411_vm2, %v15920_v59, 0.0  ;;  %v11586_v53 = vpop.eup %11585  ;;  %v8136_v38 = vmul.f32 %v8088_v56, %v15881_v29  ;;  %v8086_v63 = vmul.f32 %v8038_v57, %v15907_v35  ;;  %v15949_v33 = vadd.f32 %v15785_v9, %v7750_v40 }
0x11f2   :  { %v11049_v43 = vpop.f32.mrb[116].mxu1  ;;  %v8427_v34 = vsel %vm8411_vm2, %v15929_v5, 0.0  ;;  %v8323_v25 = vadd.f32 1.0, %v11586_v53  ;;  %11591 = vtanh.f32 %v8226_v60  ;;  %v8044_v14 = vmul.f32 0.044715, %v15934_v46 }
0x11f3   :  { %8425 = vadd.xlane.f32.xlu0 %v8424_v48  ;;  %v7763_v0 = vpop.f32.mrb[117].mxu1  ;;  %v15953_v62 = vadd.f32 %v11049_v43, %v15785_v9  ;;  %v8231_v21 = vmul.f32 0.7978846, %v8183_v10  ;;  %v8184_v26 = vadd.f32 %v8136_v38, %v15881_v29  ;;  %v7986_v36 = vmul.f32 0.5, %v15857_v27 }
0x11f4   :  { %v11050_v52 = vpop.f32.mrb[118].mxu1  ;;  %v11588_v11 = vpop.eup %11587  ;;  %v15957_v4 = vadd.f32 %v15785_v9, %v7763_v0  ;;  %v15959_v28 = vmul.f32 %v8323_v25, %v7987_v41  ;;  %v8133_v30 = vmul.f32 %v8085_v12, %v15897_v44  ;;  %v8091_v22 = vmul.f32 %v8043_v42, %v15918_v8 }
0x11f5   :  { %8428 = vadd.xlane.f32.xlu1 %v8427_v34  ;;  %v7766_v61 = vpop.f32.mrb[119].mxu1  ;;  %v8089_v31 = vmul.f32 %v8041_v17, %v15924_v49  ;;  %v8324_v50 = vadd.f32 1.0, %v11588_v11  ;;  %11593 = vtanh.f32 %v8231_v21  ;;  %v8042_v47 = vmul.f32 0.044715, %v15949_v33 }
0x11f6   :  { %v8442_v32 = vsel %vm8411_vm2, %v15959_v28, 0.0  ;;  %v8232_v18 = vmul.f32 0.7978846, %v8184_v26  ;;  %v8181_v40 = vadd.f32 %v8133_v30, %v15897_v44  ;;  %v8092_v24 = vmul.f32 %v8044_v14, %v15934_v46 }
0x11f7   :  { %v8047_v27 = vmul.f32 0.044715, %v15953_v62  ;;  %8443 = vadd.xlane.f32.xlu0 %v8442_v32  ;;  %v15971_v6 = vmul.f32 %v8324_v50, %v7988_v2  ;;  %v8134_v54 = vmul.f32 %v8086_v63, %v15907_v35  ;;  %v8045_v41 = vmul.f32 0.044715, %v15957_v4  ;;  %v11590_v45 = vpop.eup %11589 }
0x11f8   :  { %v15976_v23 = vadd.f32 %v11050_v52, %v15785_v9  ;;  %11595 = vtanh.f32 %v8232_v18  ;;  %v8229_v56 = vmul.f32 0.7978846, %v8181_v40  ;;  %v15979_v37 = vadd.f32 %v15785_v9, %v7766_v61 }
0x11f9   :  { %v8445_v57 = vsel %vm8411_vm2, %v15971_v6, 0.0  ;;  %v8182_v51 = vadd.f32 %v8134_v54, %v15907_v35  ;;  %v8139_v43 = vmul.f32 %v8091_v22, %v15918_v8  ;;  %v15986_v48 = vmul.f32 %v8042_v47, %v15949_v33 }
0x11fa   :  { %v11053_v1 = vpop.f32.mrb[120].mxu1  ;;  %8446 = vadd.xlane.f32.xlu1 %v8445_v57  ;;  %v8321_v55 = vadd.f32 1.0, %v11590_v45  ;;  %v7991_v42 = vmul.f32 0.5, %v15870_v58  ;;  %11597 = vtanh.f32 %v8229_v56  ;;  %v7992_v60 = vmul.f32 0.5, %v15881_v29 }
0x11fb   :  { %v7779_v39 = vpop.f32.mrb[121].mxu1  ;;  %v15990_v0 = vadd.f32 %v11053_v1, %v15785_v9  ;;  %v8230_v53 = vmul.f32 0.7978846, %v8182_v51  ;;  %v8187_v17 = vadd.f32 %v8139_v43, %v15918_v8  ;;  %v8095_v34 = vmul.f32 %v8047_v27, %v15953_v62 }
0x11fc   :  { %v11054_v2 = vpop.f32.mrb[122].mxu1  ;;  %v11592_v52 = vpop.eup %11591  ;;  %v8048_v10 = vmul.f32 0.044715, %v15976_v23  ;;  %v15996_v38 = vmul.f32 %v8321_v55, %v7985_v16  ;;  %v7989_v63 = vmul.f32 0.5, %v15897_v44  ;;  %v16000_v58 = vmul.f32 %v8045_v41, %v15957_v4 }
0x11fd   :  { %v7782_v12 = vpop.f32.mrb[123].mxu1  ;;  %v8046_v61 = vmul.f32 0.044715, %v15979_v37  ;;  %v8322_v25 = vadd.f32 1.0, %v11592_v52  ;;  %11599 = vtanh.f32 %v8230_v53  ;;  %v16006_v14 = vadd.f32 %v15785_v9, %v7779_v39 }
0x11fe   :  { %v8436_v29 = vsel %vm8411_vm2, %v15996_v38, 0.0  ;;  %v8235_v21 = vmul.f32 0.7978846, %v8187_v17  ;;  %v8140_v26 = vmul.f32 %v8092_v24, %v15934_v46  ;;  %v8051_v11 = vmul.f32 0.044715, %v15990_v0 }
0x11ff   :  { %v11594_v16 = vpop.eup %11593  ;;  %8437 = vadd.xlane.f32.xlu0 %v8436_v29  ;;  %v16011_v44 = vadd.f32 %v11054_v2, %v15785_v9  ;;  %v16013_v30 = vmul.f32 %v8322_v25, %v7986_v36  ;;  %v8137_v50 = vmul.f32 %v8089_v31, %v15924_v49  ;;  %v16017_v47 = vadd.f32 %v15785_v9, %v7782_v12 }
0x1200   :  { %v8327_v32 = vadd.f32 1.0, %v11594_v16  ;;  %11601 = vtanh.f32 %v8235_v21  ;;  %v8188_v40 = vadd.f32 %v8140_v26, %v15934_v46  ;;  %v8096_v24 = vmul.f32 %v8048_v10, %v15976_v23 }
0x1201   :  { %v16022_v27 = vmul.f32 %v8046_v61, %v15979_v37  ;;  %v8439_v36 = vsel %vm8411_vm2, %v16013_v30, 0.0  ;;  %v8185_v54 = vadd.f32 %v8137_v50, %v15924_v49  ;;  %v8049_v41 = vmul.f32 0.044715, %v16006_v14 }
0x1202   :  { %v11057_v22 = vpop.f32.mrb[124].mxu1  ;;  %v11596_v31 = vpop.eup %11595  ;;  %8440 = vadd.xlane.f32.xlu1 %v8439_v36  ;;  %v16028_v39 = vmul.f32 %v8327_v32, %v7991_v42  ;;  %v7990_v56 = vmul.f32 0.5, %v15907_v35  ;;  %v8236_v57 = vmul.f32 0.7978846, %v8188_v40  ;;  %v16032_v2 = vmul.f32 %v8051_v11, %v15990_v0 }
0x1203   :  { %v7795_v18 = vpop.f32.mrb[125].mxu1  ;;  %v8328_v51 = vadd.f32 1.0, %v11596_v31  ;;  %v7995_v43 = vmul.f32 0.5, %v15918_v8  ;;  %v8233_v55 = vmul.f32 0.7978846, %v8185_v54  ;;  %v16042_v52 = vadd.f32 %v11057_v22, %v15785_v9 }
0x1204   :  { %v11058_v1 = vpop.f32.mrb[126].mxu1  ;;  %18015 = vst [vmem:[#allocation48_spill] sm:$0xff] %v16028_v39  ;;  %v11598_v12 = vpop.eup %11597  ;;  %v8052_v53 = vmul.f32 0.044715, %v16011_v44  ;;  %v8050_v17 = vmul.f32 0.044715, %v16017_v47  ;;  %11603 = vtanh.f32 %v8236_v57  ;;  %v16046_v8 = vmul.f32 %v8049_v41, %v16006_v14 }
0x1205   :  { %v7798_v45 = vpop.f32.mrb[127].mxu1  ;;  %v8454_v42 = vsel %vm8411_vm2, %v16028_v39, 0.0  ;;  %v16039_v35 = vmul.f32 %v8328_v51, %v7992_v60  ;;  %v8325_v10 = vadd.f32 1.0, %v11598_v12  ;;  %v7996_v61 = vmul.f32 0.5, %v15934_v46 }
0x1206   :  { %8455 = vadd.xlane.f32.xlu0 %v8454_v42  ;;  %v16049_v25 = vadd.f32 %v15785_v9, %v7795_v18  ;;  %11605 = vtanh.f32 %v8233_v55  ;;  %v8138_v29 = vmul.f32 %v15986_v48, %v15949_v33  ;;  %v16058_v16 = vadd.f32 %v11058_v1, %v15785_v9 }
0x1207   :  { %18016 = vst [vmem:[#allocation6_spill] sm:$0xff] %v16039_v35  ;;  %v11600_v21 = vpop.eup %11599  ;;  %v8457_v60 = vsel %vm8411_vm2, %v16039_v35, 0.0  ;;  %v16055_v26 = vmul.f32 %v8325_v10, %v7989_v63  ;;  %v8143_v11 = vmul.f32 %v8095_v34, %v15953_v62  ;;  %v16062_v22 = vmul.f32 %v8052_v53, %v16011_v44 }
0x1208   :  { %v16065_v50 = vmul.f32 %v8050_v17, %v16017_v47  ;;  %8458 = vadd.xlane.f32.xlu1 %v8457_v60  ;;  %v8326_v48 = vadd.f32 1.0, %v11600_v21  ;;  %v8186_v18 = vadd.f32 %v8138_v29, %v15949_v33  ;;  %v8055_v63 = vmul.f32 0.044715, %v16042_v52 }
0x1209   :  { %18017 = vst [vmem:[#allocation29_spill] sm:$0xff] %v16055_v26  ;;  %v8448_v40 = vsel %vm8411_vm2, %v16055_v26, 0.0  ;;  %v16072_v36 = vadd.f32 %v15785_v9, %v7798_v45  ;;  %v8191_v1 = vadd.f32 %v8143_v11, %v15953_v62  ;;  %v8053_v31 = vmul.f32 0.044715, %v16049_v25 }
0x120a   :  { %v11061_v46 = vpop.f32.mrb[128].mxu1  ;;  %v11602_v54 = vpop.eup %11601  ;;  %8449 = vadd.xlane.f32.xlu0 %v8448_v40  ;;  %v16076_v41 = vmul.f32 %v8326_v48, %v7990_v56  ;;  %v8234_v57 = vmul.f32 0.7978846, %v8186_v18  ;;  %v8144_v55 = vmul.f32 %v8096_v24, %v15976_v23  ;;  %v8056_v12 = vmul.f32 0.044715, %v16058_v16 }
0x120b   :  { %v7811_v32 = vpop.f32.mrb[129].mxu1  ;;  %v8331_v53 = vadd.f32 1.0, %v11602_v54  ;;  %v7993_v17 = vmul.f32 0.5, %v15924_v49  ;;  %v8239_v45 = vmul.f32 0.7978846, %v8191_v1  ;;  %v16084_v10 = vadd.f32 %v11061_v46, %v15785_v9 }
0x120c   :  { %v11062_v34 = vpop.f32.mrb[130].mxu1  ;;  %18018 = vst [vmem:[#allocation8_spill] sm:$0xff] %v16076_v41  ;;  %v8451_v42 = vsel %vm8411_vm2, %v16076_v41, 0.0  ;;  %v16087_v29 = vmul.f32 0.5, %v15949_v33  ;;  %11607 = vtanh.f32 %v8234_v57  ;;  %v16090_v56 = vmul.f32 %v8055_v63, %v16042_v52 }
0x120d   :  { %v7814_v51 = vpop.f32.mrb[131].mxu1  ;;  %8452 = vadd.xlane.f32.xlu1 %v8451_v42  ;;  %v8054_v24 = vmul.f32 0.044715, %v16072_v36  ;;  %v16093_v21 = vmul.f32 %v8331_v53, %v7995_v43  ;;  %11609 = vtanh.f32 %v8239_v45  ;;  %v16096_v60 = vmul.f32 %v8053_v31, %v16049_v25 }
0x120e   :  { %v11604_v49 = vpop.eup %11603  ;;  %v16099_v46 = vadd.f32 %v15785_v9, %v7811_v32  ;;  %v8192_v33 = vadd.f32 %v8144_v55, %v15976_v23  ;;  %v8141_v11 = vmul.f32 %v16000_v58, %v15957_v4  ;;  %v16105_v48 = vmul.f32 %v8056_v12, %v16058_v16 }
0x120f   :  { %18019 = vst [vmem:[#allocation33_spill] sm:$0xff] %v16093_v21  ;;  %v8466_v43 = vsel %vm8411_vm2, %v16093_v21, 0.0  ;;  %v8332_v18 = vadd.f32 1.0, %v11604_v49  ;;  %v16110_v63 = vadd.f32 %v11062_v34, %v15785_v9  ;;  %v8059_v32 = vmul.f32 0.044715, %v16084_v10 }
0x1210   :  { %v11606_v1 = vpop.eup %11605  ;;  %8467 = vadd.xlane.f32.xlu0 %v8466_v43  ;;  %v8240_v54 = vmul.f32 0.7978846, %v8192_v33  ;;  %v8189_v31 = vadd.f32 %v8141_v11, %v15957_v4  ;;  %v8142_v58 = vmul.f32 %v16022_v27, %v15979_v37  ;;  %v16117_v55 = vmul.f32 %v8054_v24, %v16072_v36 }
0x1211   :  { %v16119_v12 = vmul.f32 %v8332_v18, %v7996_v61  ;;  %v8329_v53 = vadd.f32 1.0, %v11606_v1  ;;  %v7999_v34 = vmul.f32 0.5, %v15953_v62  ;;  %v8057_v42 = vmul.f32 0.044715, %v16099_v46 }
0x1212   :  { %v11065_v40 = vpop.f32.mrb[132].mxu1  ;;  %v16124_v49 = vadd.f32 %v15785_v9, %v7814_v51  ;;  %11611 = vtanh.f32 %v8240_v54  ;;  %v8237_v33 = vmul.f32 0.7978846, %v8189_v31  ;;  %v8060_v61 = vmul.f32 0.044715, %v16110_v63 }
0x1213   :  { %v7827_v57 = vpop.f32.mrb[133].mxu1  ;;  %18020 = vst [vmem:[#allocation10_spill] sm:$0xff] %v16119_v12  ;;  %v8469_v27 = vsel %vm8411_vm2, %v16119_v12, 0.0  ;;  %v16128_v43 = vmul.f32 %v8329_v53, %v7993_v17  ;;  %v8190_v24 = vadd.f32 %v8142_v58, %v15979_v37  ;;  %v16133_v62 = vmul.f32 %v8059_v32, %v16084_v10 }
0x1214   :  { %v11066_v45 = vpop.f32.mrb[134].mxu1  ;;  %8470 = vadd.xlane.f32.xlu1 %v8469_v27  ;;  %v8000_v18 = vmul.f32 0.5, %v15976_v23  ;;  %v16137_v51 = vadd.f32 %v11065_v40, %v15785_v9  ;;  %11613 = vtanh.f32 %v8237_v33  ;;  %v16142_v17 = vadd.f32 %v15785_v9, %v7827_v57 }
0x1215   :  { %v7830_v11 = vpop.f32.mrb[135].mxu1  ;;  %18021 = vst [vmem:[#allocation30_spill] sm:$0xff] %v16128_v43  ;;  %v8460_v1 = vsel %vm8411_vm2, %v16128_v43, 0.0  ;;  %v8238_v54 = vmul.f32 0.7978846, %v8190_v24  ;;  %v8147_v31 = vmul.f32 %v16032_v2, %v15990_v0  ;;  %v16147_v32 = vmul.f32 %v8057_v42, %v16099_v46 }
0x1216   :  { %v11608_v58 = vpop.eup %11607  ;;  %8461 = vadd.xlane.f32.xlu0 %v8460_v1  ;;  %v8058_v23 = vmul.f32 0.044715, %v16124_v49  ;;  %v16151_v40 = vadd.f32 %v11066_v45, %v15785_v9  ;;  %v8148_v53 = vmul.f32 %v16062_v22, %v16011_v44  ;;  %v16156_v57 = vmul.f32 %v8060_v61, %v16110_v63 }
0x1217   :  { %v11610_v33 = vpop.eup %11609  ;;  %v8330_v27 = vadd.f32 1.0, %v11608_v58  ;;  %11615 = vtanh.f32 %v8238_v54  ;;  %v8195_v2 = vadd.f32 %v8147_v31, %v15990_v0  ;;  %v8063_v42 = vmul.f32 0.044715, %v16137_v51 }
0x1218   :  { %v8335_v1 = vadd.f32 1.0, %v11610_v33  ;;  %v7997_v12 = vmul.f32 0.5, %v15957_v4  ;;  %v8196_v45 = vadd.f32 %v8148_v53, %v16011_v44  ;;  %v8061_v22 = vmul.f32 0.044715, %v16142_v17 }
0x1219   :  { %v16163_v21 = vmul.f32 %v8330_v27, %v16087_v29  ;;  %v8243_v61 = vmul.f32 0.7978846, %v8195_v2  ;;  %v8145_v54 = vmul.f32 %v16046_v8, %v16006_v14  ;;  %v16169_v31 = vmul.f32 %v8058_v23, %v16124_v49 }
0x121a   :  { %v11069_v24 = vpop.f32.mrb[136].mxu1  ;;  %v16171_v33 = vmul.f32 %v8335_v1, %v7999_v34  ;;  %v8064_v4 = vmul.f32 0.044715, %v16151_v40  ;;  %v8244_v41 = vmul.f32 0.7978846, %v8196_v45  ;;  %v7998_v27 = vmul.f32 0.5, %v15979_v37 }
0x121b   :  { %v7843_v43 = vpop.f32.mrb[137].mxu1  ;;  %18022 = vst [vmem:[#allocation57_spill] sm:$0xff] %v16163_v21  ;;  %v8463_v29 = vsel %vm8411_vm2, %v16163_v21, 0.0  ;;  %11617 = vtanh.f32 %v8243_v61  ;;  %v8193_v2 = vadd.f32 %v8145_v54, %v16006_v14  ;;  %v16181_v34 = vadd.f32 %v15785_v9, %v7830_v11 }
0x121c   :  { %v11070_v58 = vpop.f32.mrb[138].mxu1  ;;  %18023 = vst [vmem:[#allocation56_spill] sm:$0xff] %v16171_v33  ;;  %v11612_v35 = vpop.eup %11611  ;;  %8464 = vadd.xlane.f32.xlu1 %v8463_v29  ;;  %v8478_v8 = vsel %vm8411_vm2, %v16171_v33, 0.0  ;;  %v8003_v23 = vmul.f32 0.5, %v15990_v0  ;;  %11619 = vtanh.f32 %v8244_v41  ;;  %v16185_v45 = vmul.f32 %v8063_v42, %v16137_v51 }
0x121d   :  { %v7846_v53 = vpop.f32.mrb[139].mxu1  ;;  %8479 = vadd.xlane.f32.xlu0 %v8478_v8  ;;  %v8336_v1 = vadd.f32 1.0, %v11612_v35  ;;  %v16188_v37 = vmul.f32 %v8061_v22, %v16142_v17  ;;  %v8241_v61 = vmul.f32 0.7978846, %v8193_v2  ;;  %v16191_v29 = vmul.f32 %v8064_v4, %v16151_v40 }
0x121e   :  { %v11614_v54 = vpop.eup %11613  ;;  %v16194_v33 = vadd.f32 %v11069_v24, %v15785_v9  ;;  %v16197_v11 = vadd.f32 %v15785_v9, %v7843_v43  ;;  %v8146_v0 = vmul.f32 %v16065_v50, %v16017_v47  ;;  %v8151_v42 = vmul.f32 %v16090_v56, %v16042_v52 }
0x121f   :  { %v16201_v35 = vmul.f32 %v8336_v1, %v8000_v18  ;;  %v8333_v41 = vadd.f32 1.0, %v11614_v54  ;;  %11621 = vtanh.f32 %v8241_v61  ;;  %v8062_v4 = vmul.f32 0.044715, %v16181_v34 }
0x1220   :  { %v8004_v24 = vmul.f32 0.5, %v16011_v44  ;;  %v8194_v2 = vadd.f32 %v8146_v0, %v16017_v47  ;;  %v8152_v43 = vmul.f32 %v16105_v48, %v16058_v16  ;;  %v16217_v56 = vadd.f32 %v11070_v58, %v15785_v9 }
0x1221   :  { %18024 = vst [vmem:[#allocation9_spill] sm:$0xff] %v16201_v35  ;;  %v11616_v50 = vpop.eup %11615  ;;  %v8481_v18 = vsel %vm8411_vm2, %v16201_v35, 0.0  ;;  %v16214_v1 = vmul.f32 %v8333_v41, %v7997_v12  ;;  %v8199_v61 = vadd.f32 %v8151_v42, %v16042_v52  ;;  %v8067_v0 = vmul.f32 0.044715, %v16194_v33 }
0x1222   :  { %v16205_v22 = vpop.f32.mrb[140].mxu1  ;;  %8482 = vadd.xlane.f32.xlu1 %v8481_v18  ;;  %v8334_v44 = vadd.f32 1.0, %v11616_v50  ;;  %v8242_v21 = vmul.f32 0.7978846, %v8194_v2  ;;  %v8200_v48 = vadd.f32 %v8152_v43, %v16058_v16  ;;  %v8065_v12 = vmul.f32 0.044715, %v16197_v11 }
0x1223   :  { %v7859_v8 = vpop.f32.mrb[141].mxu1  ;;  %18025 = vst [vmem:[#allocation37_spill] sm:$0xff] %v16214_v1  ;;  %v8472_v35 = vsel %vm8411_vm2, %v16214_v1, 0.0  ;;  %v16228_v58 = vadd.f32 %v15785_v9, %v7846_v53  ;;  %v8247_v41 = vmul.f32 0.7978846, %v8199_v61  ;;  %v8149_v2 = vmul.f32 %v16096_v60, %v16049_v25 }
0x1224   :  { %v16220_v54 = vpop.f32.mrb[142].mxu1  ;;  %8473 = vadd.xlane.f32.xlu0 %v8472_v35  ;;  %v16230_v42 = vmul.f32 %v8334_v44, %v7998_v27  ;;  %11623 = vtanh.f32 %v8242_v21  ;;  %v8248_v50 = vmul.f32 0.7978846, %v8200_v48  ;;  %v16235_v43 = vmul.f32 %v8062_v4, %v16181_v34 }
0x1225   :  { %v7862_v26 = vpop.f32.mrb[143].mxu1  ;;  %v11618_v18 = vpop.eup %11617  ;;  %v8001_v1 = vmul.f32 0.5, %v16006_v14  ;;  %v8068_v39 = vmul.f32 0.044715, %v16217_v56  ;;  %11625 = vtanh.f32 %v8247_v41  ;;  %v8197_v21 = vadd.f32 %v8149_v2, %v16049_v25 }
0x1226   :  { %v11620_v53 = vpop.eup %11619  ;;  %v8475_v35 = vsel %vm8411_vm2, %v16230_v42, 0.0  ;;  %v8339_v27 = vadd.f32 1.0, %v11618_v18  ;;  %11627 = vtanh.f32 %v8248_v50  ;;  %v16243_v60 = vmul.f32 %v8067_v0, %v16194_v33 }
0x1227   :  { %8476 = vadd.xlane.f32.xlu1 %v8475_v35  ;;  %v8340_v61 = vadd.f32 1.0, %v11620_v53  ;;  %v16246_v4 = vmul.f32 %v8065_v12, %v16197_v11  ;;  %v8066_v14 = vmul.f32 0.044715, %v16228_v58  ;;  %v8002_v48 = vmul.f32 0.5, %v16017_v47 }
0x1228   :  { %v16249_v44 = vmul.f32 %v8339_v27, %v8003_v23  ;;  %v8245_v41 = vmul.f32 0.7978846, %v8197_v21  ;;  %v8150_v50 = vmul.f32 %v16117_v55, %v16072_v36  ;;  %v16257_v53 = vmul.f32 %v8068_v39, %v16217_v56 }
0x1229   :  { %v11622_v18 = vpop.eup %11621  ;;  %v16254_v2 = vmul.f32 %v8340_v61, %v8004_v24  ;;  %v8007_v0 = vmul.f32 0.5, %v16042_v52  ;;  %v16261_v12 = vadd.f32 %v15785_v9, %v7859_v8  ;;  %v16269_v24 = vmul.f32 %v8066_v14, %v16228_v58 }
0x122a   :  { %v8490_v23 = vsel %vm8411_vm2, %v16249_v44, 0.0  ;;  %v8337_v35 = vadd.f32 1.0, %v11622_v18  ;;  %11629 = vtanh.f32 %v8245_v41  ;;  %v8198_v47 = vadd.f32 %v8150_v50, %v16072_v36 }
0x122b   :  { %18026 = vst [vmem:[#allocation58_spill] sm:$0xff] %v16254_v2  ;;  %8491 = vadd.xlane.f32.xlu0 %v8490_v23  ;;  %v8493_v55 = vsel %vm8411_vm2, %v16254_v2, 0.0  ;;  %v8008_v39 = vmul.f32 0.5, %v16058_v16  ;;  %v8155_v52 = vmul.f32 %v16133_v62, %v16084_v10  ;;  %v8005_v27 = vmul.f32 0.5, %v16049_v25 }
0x122c   :  { %8494 = vadd.xlane.f32.xlu1 %v8493_v55  ;;  %v16274_v8 = vmul.f32 %v8337_v35, %v8001_v1  ;;  %v8246_v21 = vmul.f32 0.7978846, %v8198_v47  ;;  %v8156_v61 = vmul.f32 %v16156_v57, %v16110_v63  ;;  %v8069_v41 = vmul.f32 0.044715, %v16261_v12 }
0x122d   :  { %v16281_v50 = vmul.f32 0.5, %v16072_v36  ;;  %v8203_v14 = vadd.f32 %v8155_v52, %v16084_v10  ;;  %v8153_v16 = vmul.f32 %v16147_v32, %v16099_v46  ;;  %v8154_v57 = vmul.f32 %v16169_v31, %v16124_v49 }
0x122e   :  { %v11624_v62 = vpop.eup %11623  ;;  %v8484_v1 = vsel %vm8411_vm2, %v16274_v8, 0.0  ;;  %11631 = vtanh.f32 %v8246_v21  ;;  %v8204_v25 = vadd.f32 %v8156_v61, %v16110_v63  ;;  %v16292_v36 = vadd.f32 %v15785_v9, %v7862_v26 }
0x122f   :  { %v11626_v18 = vpop.eup %11625  ;;  %8485 = vadd.xlane.f32.xlu0 %v8484_v1  ;;  %v8338_v23 = vadd.f32 1.0, %v11624_v62  ;;  %v8251_v35 = vmul.f32 0.7978846, %v8203_v14  ;;  %v8201_v47 = vadd.f32 %v8153_v16, %v16099_v46  ;;  %v8202_v2 = vadd.f32 %v8154_v57, %v16124_v49 }
0x1230   :  { %v11628_v32 = vpop.eup %11627  ;;  %v8343_v55 = vadd.f32 1.0, %v11626_v18  ;;  %v8252_v52 = vmul.f32 0.7978846, %v8204_v25  ;;  %v8159_v21 = vmul.f32 %v16185_v45, %v16137_v51  ;;  %v16308_v25 = vmul.f32 %v8069_v41, %v16261_v12 }
0x1231   :  { %v16298_v61 = vmul.f32 %v8338_v23, %v8002_v48  ;;  %v8344_v31 = vadd.f32 1.0, %v11628_v32  ;;  %11633 = vtanh.f32 %v8251_v35  ;;  %v8249_v1 = vmul.f32 0.7978846, %v8201_v47 }
0x1232   :  { %v16300_v62 = vmul.f32 %v8343_v55, %v8007_v0  ;;  %11635 = vtanh.f32 %v8252_v52  ;;  %v8250_v9 = vmul.f32 0.7978846, %v8202_v2  ;;  %v8207_v26 = vadd.f32 %v8159_v21, %v16137_v51 }
0x1233   :  { %v8487_v14 = vsel %vm8411_vm2, %v16298_v61, 0.0  ;;  %v16305_v16 = vmul.f32 %v8344_v31, %v8008_v39  ;;  %11637 = vtanh.f32 %v8249_v1  ;;  %v8160_v2 = vmul.f32 %v16191_v29, %v16151_v40 }
0x1234   :  { %v11630_v45 = vpop.eup %11629  ;;  %8488 = vadd.xlane.f32.xlu1 %v8487_v14  ;;  %v8502_v48 = vsel %vm8411_vm2, %v16300_v62, 0.0  ;;  %11639 = vtanh.f32 %v8250_v9  ;;  %v8255_v0 = vmul.f32 0.7978846, %v8207_v26  ;;  %v8011_v18 = vmul.f32 0.5, %v16084_v10 }
0x1235   :  { %8503 = vadd.xlane.f32.xlu0 %v8502_v48  ;;  %v8505_v57 = vsel %vm8411_vm2, %v16305_v16, 0.0  ;;  %v8341_v39 = vadd.f32 1.0, %v11630_v45  ;;  %v8157_v41 = vmul.f32 %v16188_v37, %v16142_v17  ;;  %v8070_v23 = vmul.f32 0.044715, %v16292_v36 }
0x1236   :  { %11641 = vtanh.f32 %v8255_v0  ;;  %v8208_v35 = vadd.f32 %v8160_v2, %v16151_v40  ;;  %v8158_v47 = vmul.f32 %v16235_v43, %v16181_v34  ;;  %v8012_v29 = vmul.f32 0.5, %v16110_v63 }
0x1237   :  { %v16323_v32 = vmul.f32 %v8341_v39, %v8005_v27  ;;  %v8205_v55 = vadd.f32 %v8157_v41, %v16142_v17  ;;  %v8163_v10 = vmul.f32 %v16243_v60, %v16194_v33  ;;  %v8009_v37 = vmul.f32 0.5, %v16099_v46 }
0x1238   :  { %v11632_v52 = vpop.eup %11631  ;;  %8506 = vadd.xlane.f32.xlu1 %v8505_v57  ;;  %v8256_v21 = vmul.f32 0.7978846, %v8208_v35  ;;  %v8206_v31 = vadd.f32 %v8158_v47, %v16181_v34  ;;  %v8164_v1 = vmul.f32 %v16257_v53, %v16217_v56  ;;  %v8118_v60 = vmul.f32 %v8070_v23, %v16292_v36 }
0x1239   :  { %v8496_v43 = vsel %vm8411_vm2, %v16323_v32, 0.0  ;;  %v8342_v27 = vadd.f32 1.0, %v11632_v52  ;;  %v8253_v63 = vmul.f32 0.7978846, %v8205_v55  ;;  %v8211_v9 = vadd.f32 %v8163_v10, %v16194_v33 }
0x123a   :  { %8497 = vadd.xlane.f32.xlu0 %v8496_v43  ;;  %11643 = vtanh.f32 %v8256_v21  ;;  %v8254_v26 = vmul.f32 0.7978846, %v8206_v31  ;;  %v8212_v46 = vadd.f32 %v8164_v1, %v16217_v56  ;;  %v8161_v48 = vmul.f32 %v16246_v4, %v16197_v11 }
0x123b   :  { %v11634_v14 = vpop.eup %11633  ;;  %v16339_v45 = vmul.f32 %v8342_v27, %v16281_v50  ;;  %11645 = vtanh.f32 %v8253_v63  ;;  %v8259_v53 = vmul.f32 0.7978846, %v8211_v9  ;;  %v8010_v57 = vmul.f32 0.5, %v16124_v49 }
0x123c   :  { %v11636_v0 = vpop.eup %11635  ;;  %v8347_v2 = vadd.f32 1.0, %v11634_v14  ;;  %11647 = vtanh.f32 %v8254_v26  ;;  %v8260_v39 = vmul.f32 0.7978846, %v8212_v46  ;;  %v8209_v50 = vadd.f32 %v8161_v48, %v16197_v11 }
0x123d   :  { %v11638_v41 = vpop.eup %11637  ;;  %v8499_v23 = vsel %vm8411_vm2, %v16339_v45, 0.0  ;;  %v8348_v35 = vadd.f32 1.0, %v11636_v0  ;;  %11649 = vtanh.f32 %v8259_v53  ;;  %v8162_v4 = vmul.f32 %v16269_v24, %v16228_v58 }
0x123e   :  { %v11640_v47 = vpop.eup %11639  ;;  %8500 = vadd.xlane.f32.xlu1 %v8499_v23  ;;  %v16347_v55 = vmul.f32 %v8347_v2, %v8011_v18  ;;  %v8345_v10 = vadd.f32 1.0, %v11638_v41  ;;  %11651 = vtanh.f32 %v8260_v39  ;;  %v8015_v21 = vmul.f32 0.5, %v16137_v51 }
0x123f   :  { %v16351_v49 = vmul.f32 %v8348_v35, %v8012_v29  ;;  %v8346_v52 = vadd.f32 1.0, %v11640_v47  ;;  %v8257_v31 = vmul.f32 0.7978846, %v8209_v50  ;;  %v8210_v18 = vadd.f32 %v8162_v4, %v16228_v58 }
0x1240   :  { %v11642_v1 = vpop.eup %11641  ;;  %v8514_v43 = vsel %vm8411_vm2, %v16347_v55, 0.0  ;;  %v16356_v27 = vmul.f32 %v8345_v10, %v8009_v37  ;;  %v8165_v63 = vmul.f32 %v16308_v25, %v16261_v12  ;;  %v8166_v37 = vmul.f32 %v8118_v60, %v16292_v36 }
0x1241   :  { %8515 = vadd.xlane.f32.xlu0 %v8514_v43  ;;  %v8517_v24 = vsel %vm8411_vm2, %v16351_v49, 0.0  ;;  %v16363_v29 = vmul.f32 %v8346_v52, %v8010_v57  ;;  %v8351_v9 = vadd.f32 1.0, %v11642_v1  ;;  %11653 = vtanh.f32 %v8257_v31 }
0x1242   :  { %8518 = vadd.xlane.f32.xlu1 %v8517_v24  ;;  %v8258_v51 = vmul.f32 0.7978846, %v8210_v18  ;;  %v8213_v26 = vadd.f32 %v8165_v63, %v16261_v12  ;;  %v8508_v25 = vsel %vm8411_vm2, %v16356_v27, 0.0  ;;  %v8016_v2 = vmul.f32 0.5, %v16151_v40 }
0x1243   :  { %v16366_v46 = vmul.f32 %v8351_v9, %v8015_v21  ;;  %v8511_v0 = vsel %vm8411_vm2, %v16363_v29, 0.0  ;;  %v8214_v39 = vadd.f32 %v8166_v37, %v16292_v36  ;;  %v8013_v23 = vmul.f32 0.5, %v16142_v17 }
0x1244   :  { %v11644_v14 = vpop.eup %11643  ;;  %11655 = vtanh.f32 %v8258_v51  ;;  %v8261_v53 = vmul.f32 0.7978846, %v8213_v26  ;;  %v8014_v10 = vmul.f32 0.5, %v16181_v34  ;;  %v8019_v31 = vmul.f32 0.5, %v16194_v33 }
0x1245   :  { %v11646_v48 = vpop.eup %11645  ;;  %8509 = vadd.xlane.f32.xlu0 %v8508_v25  ;;  %v8352_v57 = vadd.f32 1.0, %v11644_v14  ;;  %v8526_v60 = vsel %vm8411_vm2, %v16366_v46, 0.0  ;;  %v8262_v52 = vmul.f32 0.7978846, %v8214_v39  ;;  %v8020_v43 = vmul.f32 0.5, %v16217_v56 }
0x1246   :  { %v11648_v41 = vpop.eup %11647  ;;  %8512 = vadd.xlane.f32.xlu1 %v8511_v0  ;;  %v8349_v35 = vadd.f32 1.0, %v11646_v48  ;;  %11657 = vtanh.f32 %v8261_v53  ;;  %v8017_v14 = vmul.f32 0.5, %v16197_v11  ;;  %v8018_v53 = vmul.f32 0.5, %v16228_v58 }
0x1247   :  { %v11650_v50 = vpop.eup %11649  ;;  %v16378_v47 = vmul.f32 %v8352_v57, %v8016_v2  ;;  %v8350_v4 = vadd.f32 1.0, %v11648_v41  ;;  %11659 = vtanh.f32 %v8262_v52  ;;  %v8021_v39 = vmul.f32 0.5, %v16261_v12  ;;  %v12051_v52 = vld [vmem:[%s17120_s7] ss:$0 sm:$0xff] }
0x1248   :  { %v11652_v40 = vpop.eup %11651  ;;  %v16381_v21 = vmul.f32 %v8349_v35, %v8013_v23  ;;  %v8355_v1 = vadd.f32 1.0, %v11650_v50  ;;  %v8022_v35 = vmul.f32 0.5, %v16292_v36  ;;  %v7975_v36 = vadd.f32 %v12051_v52, %v16205_v22 }
0x1249   :  { %8527 = vadd.xlane.f32.xlu0 %v8526_v60  ;;  %v8529_v17 = vsel %vm8411_vm2, %v16378_v47, 0.0  ;;  %v16387_v18 = vmul.f32 %v8350_v4, %v8014_v10  ;;  %v8356_v63 = vadd.f32 1.0, %v11652_v40  ;;  %v16426_v40 = vadd.f32 %v12051_v52, %v16220_v54 }
0x124a   :  { %8530 = vadd.xlane.f32.xlu1 %v8529_v17  ;;  %v16389_v34 = vmul.f32 %v8355_v1, %v8019_v31  ;;  %v8520_v33 = vsel %vm8411_vm2, %v16381_v21, 0.0  ;;  %v8071_v31 = vmul.f32 0.044715, %v7975_v36 }
0x124b   :  { %v11654_v24 = vpop.eup %11653  ;;  %v16391_v9 = vmul.f32 %v8356_v63, %v8020_v43  ;;  %v8523_v56 = vsel %vm8411_vm2, %v16387_v18, 0.0  ;;  %v8072_v1 = vmul.f32 0.044715, %v16426_v40 }
0x124c   :  { %v8353_v51 = vadd.f32 1.0, %v11654_v24  ;;  %v8538_v37 = vsel %vm8411_vm2, %v16389_v34, 0.0  ;;  %v8119_v43 = vmul.f32 %v8071_v31, %v7975_v36 }
0x124d   :  { %8521 = vadd.xlane.f32.xlu0 %v8520_v33  ;;  %v8541_v25 = vsel %vm8411_vm2, %v16391_v9, 0.0  ;;  %v8120_v17 = vmul.f32 %v8072_v1, %v16426_v40 }
0x124e   :  { %v11656_v26 = vpop.eup %11655  ;;  %8524 = vadd.xlane.f32.xlu1 %v8523_v56  ;;  %v16403_v2 = vmul.f32 %v8353_v51, %v8017_v14  ;;  %v8167_v63 = vmul.f32 %v8119_v43, %v7975_v36 }
0x124f   :  { %v8354_v48 = vadd.f32 1.0, %v11656_v26  ;;  %v8168_v24 = vmul.f32 %v8120_v17, %v16426_v40 }
0x1250   :  { %v11658_v0 = vpop.eup %11657  ;;  %v8532_v11 = vsel %vm8411_vm2, %v16403_v2, 0.0  ;;  %v8215_v33 = vadd.f32 %v8167_v63, %v7975_v36 }
0x1251   :  { %8539 = vadd.xlane.f32.xlu0 %v8538_v37  ;;  %v16405_v57 = vmul.f32 %v8354_v48, %v8018_v53  ;;  %v8357_v41 = vadd.f32 1.0, %v11658_v0  ;;  %v11660_v60 = vpop.eup %11659  ;;  %v8216_v51 = vadd.f32 %v8168_v24, %v16426_v40 }
0x1252   :  { %8542 = vadd.xlane.f32.xlu1 %v8541_v25  ;;  %v8358_v58 = vadd.f32 1.0, %v11660_v60  ;;  %v8263_v56 = vmul.f32 0.7978846, %v8215_v33 }
0x1253   :  { %v16408_v23 = vmul.f32 %v8357_v41, %v8021_v39  ;;  %v8535_v50 = vsel %vm8411_vm2, %v16405_v57, 0.0  ;;  %v8264_v37 = vmul.f32 0.7978846, %v8216_v51 }
0x1254   :  { %v16417_v12 = vmul.f32 %v8358_v58, %v8022_v35  ;;  %11661 = vtanh.f32 %v8263_v56 }
0x1255   :  { %8533 = vadd.xlane.f32.xlu0 %v8532_v11  ;;  %v8544_v10 = vsel %vm8411_vm2, %v16408_v23, 0.0  ;;  %11663 = vtanh.f32 %v8264_v37 }
0x1256   :  { %8536 = vadd.xlane.f32.xlu1 %v8535_v50  ;;  %v8547_v4 = vsel %vm8411_vm2, %v16417_v12, 0.0 }
0x1259   :  { %8545 = vadd.xlane.f32.xlu0 %v8544_v10 }
0x125a   :  { %8548 = vadd.xlane.f32.xlu1 %v8547_v4 }
0x1274   :  { %v8420_v26 = vpop.xlane.xlu0 %8419 }
0x1275   :  { %v8559_v22 = vmul.f32 0.020833334, %v8420_v26 }
0x1276   :  { %v8423_v14 = vpop.xlane.xlu1 %8422 }
0x1277   :  { %v16433_v54 = vsub.f32 %v15864_v7, %v8559_v22  ;;  %v8560_v25 = vmul.f32 0.020833334, %v8423_v14 }
0x1278   :  { %v8414_v53 = vpop.xlane.xlu0 %8413 }
0x1279   :  { %v16436_v48 = vsub.f32 %v15876_v19, %v8560_v25  ;;  %v8557_v0 = vmul.f32 0.020833334, %v8414_v53  ;;  %v8655_v39 = vmul.f32 %v16433_v54, %v16433_v54  ;;  %v8023_v25 = vmul.f32 0.5, %v7975_v36 }
0x127a   :  { %v8417_v41 = vpop.xlane.xlu1 %8416 }
0x127b   :  { %v16441_v60 = vsub.f32 %v15878_v3, %v8557_v0  ;;  %v8558_v11 = vmul.f32 0.020833334, %v8417_v41  ;;  %v8707_v35 = vsel %vm8411_vm2, %v8655_v39, 0.0  ;;  %v8656_v7 = vmul.f32 %v16436_v48, %v16436_v48  ;;  %v11662_v3 = vpop.eup %11661 }
0x127c   :  { %v8432_v58 = vpop.xlane.xlu0 %8431  ;;  %8708 = vadd.xlane.f32.xlu0 %v8707_v35  ;;  %v11664_v56 = vpop.eup %11663  ;;  %v8359_v26 = vadd.f32 1.0, %v11662_v3 }
0x127d   :  { %v16447_v50 = vsub.f32 %v15886_v13, %v8558_v11  ;;  %v8563_v19 = vmul.f32 0.020833334, %v8432_v58  ;;  %v8710_v10 = vsel %vm8411_vm2, %v8656_v7, 0.0  ;;  %v8653_v4 = vmul.f32 %v16441_v60, %v16441_v60 }
0x127e   :  { %v8435_v52 = vpop.xlane.xlu1 %8434  ;;  %8711 = vadd.xlane.f32.xlu1 %v8710_v10  ;;  %v8360_v41 = vadd.f32 1.0, %v11664_v56  ;;  %v16479_v35 = vmul.f32 %v8359_v26, %v8023_v25  ;;  %v8024_v7 = vmul.f32 0.5, %v16426_v40 }
0x127f   :  { %v16453_v31 = vsub.f32 %v15903_v15, %v8563_v19  ;;  %v8564_v1 = vmul.f32 0.020833334, %v8435_v52  ;;  %v8701_v43 = vsel %vm8411_vm2, %v8653_v4, 0.0  ;;  %v8654_v17 = vmul.f32 %v16447_v50, %v16447_v50 }
0x1280   :  { %v8426_v13 = vpop.xlane.xlu0 %8425  ;;  %8702 = vadd.xlane.f32.xlu0 %v8701_v43  ;;  %v16483_v58 = vmul.f32 %v8360_v41, %v8024_v7  ;;  %v8550_v19 = vsel %vm8411_vm2, %v16479_v35, 0.0  ;;  %v18027_v41 = vld [vmem:[#allocation48_spill] sm:$0xff] }
0x1281   :  { %v16459_v63 = vsub.f32 %v15913_v20, %v8564_v1  ;;  %v8561_v24 = vmul.f32 0.020833334, %v8426_v13  ;;  %v8704_v33 = vsel %vm8411_vm2, %v8654_v17, 0.0  ;;  %v8659_v51 = vmul.f32 %v16453_v31, %v16453_v31 }
0x1282   :  { %v8429_v15 = vpop.xlane.xlu1 %8428  ;;  %8705 = vadd.xlane.f32.xlu1 %v8704_v33  ;;  %v8553_v4 = vsel %vm8411_vm2, %v16483_v58, 0.0 }
0x1283   :  { %v16465_v37 = vsub.f32 %v15920_v59, %v8561_v24  ;;  %v8562_v22 = vmul.f32 0.020833334, %v8429_v15  ;;  %v8719_v14 = vsel %vm8411_vm2, %v8659_v51, 0.0  ;;  %v8660_v20 = vmul.f32 %v16459_v63, %v16459_v63 }
0x1284   :  { %8720 = vadd.xlane.f32.xlu0 %v8719_v14  ;;  %v8444_v36 = vpop.xlane.xlu0 %8443 }
0x1285   :  { %v16471_v53 = vsub.f32 %v15929_v5, %v8562_v22  ;;  %v8722_v0 = vsel %vm8411_vm2, %v8660_v20, 0.0  ;;  %v8657_v39 = vmul.f32 %v16465_v37, %v16465_v37  ;;  %v8567_v52 = vmul.f32 0.020833334, %v8444_v36 }
0x1286   :  { %8723 = vadd.xlane.f32.xlu1 %v8722_v0 }
0x1287   :  { %v8713_v59 = vsel %vm8411_vm2, %v8657_v39, 0.0  ;;  %v8658_v11 = vmul.f32 %v16471_v53, %v16471_v53  ;;  %v8447_v10 = vpop.xlane.xlu1 %8446  ;;  %v16490_v43 = vsub.f32 %v15959_v28, %v8567_v52 }
0x1288   :  { %8714 = vadd.xlane.f32.xlu0 %v8713_v59  ;;  %v8568_v40 = vmul.f32 0.020833334, %v8447_v10 }
0x1289   :  { %v8716_v5 = vsel %vm8411_vm2, %v8658_v11, 0.0  ;;  %v8663_v28 = vmul.f32 %v16490_v43, %v16490_v43  ;;  %v18028_v11 = vld [vmem:[#allocation29_spill] sm:$0xff] }
0x128a   :  { %8717 = vadd.xlane.f32.xlu1 %v8716_v5  ;;  %v16498_v51 = vsub.f32 %v15971_v6, %v8568_v40 }
0x128c   :  { %8551 = vadd.xlane.f32.xlu0 %v8550_v19  ;;  %v8438_v3 = vpop.xlane.xlu0 %8437  ;;  %v8664_v6 = vmul.f32 %v16498_v51, %v16498_v51 }
0x128d   :  { %v8565_v1 = vmul.f32 0.020833334, %v8438_v3  ;;  %v18030_v3 = vld [vmem:[#allocation8_spill] sm:$0xff] }
0x128e   :  { %8554 = vadd.xlane.f32.xlu1 %v8553_v4  ;;  %v8734_v5 = vsel %vm8411_vm2, %v8664_v6, 0.0  ;;  %v18029_v4 = vld [vmem:[#allocation6_spill] sm:$0xff] }
0x128f   :  { %v16493_v17 = vsub.f32 %v15996_v38, %v8565_v1  ;;  %v8441_v13 = vpop.xlane.xlu1 %8440 }
0x1290   :  { %v8566_v24 = vmul.f32 0.020833334, %v8441_v13 }
0x1291   :  { %v8661_v33 = vmul.f32 %v16493_v17, %v16493_v17 }
0x1292   :  { %v16501_v56 = vsub.f32 %v16013_v30, %v8566_v24  ;;  %v8731_v30 = vsel %vm8411_vm2, %v8663_v28, 0.0 }
0x1293   :  { %v8456_v15 = vpop.xlane.xlu0 %8455  ;;  %v8725_v26 = vsel %vm8411_vm2, %v8661_v33, 0.0 }
0x1294   :  { %8726 = vadd.xlane.f32.xlu0 %v8725_v26  ;;  %v8662_v38 = vmul.f32 %v16501_v56, %v16501_v56  ;;  %v8571_v14 = vmul.f32 0.020833334, %v8456_v15 }
0x1295   :  { %v8459_v22 = vpop.xlane.xlu1 %8458 }
0x1296   :  { %v8728_v20 = vsel %vm8411_vm2, %v8662_v38, 0.0  ;;  %v8572_v39 = vmul.f32 0.020833334, %v8459_v22  ;;  %v16513_v59 = vsub.f32 %v18027_v41, %v8571_v14  ;;  %v11374_v41 = vld [vmem:[%s17123_s10] sm:$0xff]  }
0x1297   :  { %v8450_v25 = vpop.xlane.xlu0 %8449  ;;  %8729 = vadd.xlane.f32.xlu1 %v8728_v20  ;;  %11075 = vmatprep.subr.bf16.mxu0 %v11374_v41 }
0x1298   :  { %v8569_v0 = vmul.f32 0.020833334, %v8450_v25  ;;  %8732 = vadd.xlane.f32.xlu0 %v8731_v30  ;;  %v16522_v52 = vsub.f32 %v18029_v4, %v8572_v39  ;;  %v8667_v24 = vmul.f32 %v16513_v59, %v16513_v59  ;;  %v18031_v25 = vld [vmem:[#allocation33_spill] sm:$0xff]  ;;  %11076 = vmatpush3.bf16.msra.mxu0 %v11374_v41 }
0x129a   :  { %v16516_v7 = vsub.f32 %v18028_v11, %v8569_v0  ;;  %v8453_v36 = vpop.xlane.xlu1 %8452  ;;  %v8668_v26 = vmul.f32 %v16522_v52, %v16522_v52  ;;  %v8743_v38 = vsel %vm8411_vm2, %v8667_v24, 0.0  ;;  %v18032_v0 = vld [vmem:[#allocation30_spill] sm:$0xff]  ;;  %v18034_v24 = vld [vmem:[#allocation57_spill] sm:$0xff] }
0x129b   :  { %v8570_v19 = vmul.f32 0.020833334, %v8453_v36  ;;  %8735 = vadd.xlane.f32.xlu1 %v8734_v5 }
0x129c   :  { %v8665_v10 = vmul.f32 %v16516_v7, %v16516_v7  ;;  %v8746_v6 = vsel %vm8411_vm2, %v8668_v26, 0.0 }
0x129d   :  { %v16525_v1 = vsub.f32 %v18030_v3, %v8570_v19  ;;  %v8468_v40 = vpop.xlane.xlu0 %8467 }
0x129e   :  { %v8737_v13 = vsel %vm8411_vm2, %v8665_v10, 0.0  ;;  %v8575_v28 = vmul.f32 0.020833334, %v8468_v40  ;;  %v18033_v40 = vld [vmem:[#allocation10_spill] sm:$0xff] }
0x129f   :  { %8738 = vadd.xlane.f32.xlu0 %v8737_v13  ;;  %v8666_v33 = vmul.f32 %v16525_v1, %v16525_v1 }
0x12a0   :  { %v16538_v30 = vsub.f32 %v18031_v25, %v8575_v28 }
0x12a1   :  { %v8740_v15 = vsel %vm8411_vm2, %v8666_v33, 0.0  ;;  %v8471_v22 = vpop.xlane.xlu1 %8470 }
0x12a2   :  { %8741 = vadd.xlane.f32.xlu1 %v8740_v15  ;;  %v8576_v11 = vmul.f32 0.020833334, %v8471_v22  ;;  %v8671_v4 = vmul.f32 %v16538_v30, %v16538_v30 }
0x12a3   :  { %v8462_v14 = vpop.xlane.xlu0 %8461  ;;  %8744 = vadd.xlane.f32.xlu0 %v8743_v38 }
0x12a4   :  { %v8573_v20 = vmul.f32 0.020833334, %v8462_v14  ;;  %v16552_v13 = vsub.f32 %v18033_v40, %v8576_v11  ;;  %v8755_v26 = vsel %vm8411_vm2, %v8671_v4, 0.0  ;;  %v18036_v11 = vld [vmem:[#allocation37_spill] sm:$0xff] }
0x12a5   :  { %v18037_v40 = vld [vmem:[#allocation9_spill] sm:$0xff] }
0x12a6   :  { %v16541_v39 = vsub.f32 %v18032_v0, %v8573_v20  ;;  %8747 = vadd.xlane.f32.xlu1 %v8746_v6  ;;  %v8672_v14 = vmul.f32 %v16552_v13, %v16552_v13  ;;  %v18035_v0 = vld [vmem:[#allocation56_spill] sm:$0xff] }
0x12a8   :  { %v8669_v36 = vmul.f32 %v16541_v39, %v16541_v39 }
0x12a9   :  { %v8465_v5 = vpop.xlane.xlu1 %8464 }
0x12aa   :  { %v8574_v19 = vmul.f32 0.020833334, %v8465_v5  ;;  %v8749_v10 = vsel %vm8411_vm2, %v8669_v36, 0.0  ;;  %v8480_v3 = vpop.xlane.xlu0 %8479 }
0x12ab   :  { %8750 = vadd.xlane.f32.xlu0 %v8749_v10  ;;  %v8579_v38 = vmul.f32 0.020833334, %v8480_v3  ;;  %v11375_v10 = vld [vmem:[%s17123_s10 + $0x8] sm:$0xff]  }
0x12ac   :  { %v16555_v33 = vsub.f32 %v18034_v24, %v8574_v19  ;;  %v8758_v19 = vsel %vm8411_vm2, %v8672_v14, 0.0  ;;  %11077 = vmatprep.subr.bf16.mxu0 %v11375_v10 }
0x12ad   :  { %v16564_v41 = vsub.f32 %v18035_v0, %v8579_v38  ;;  %11078 = vmatpush3.bf16.msra.mxu0 %v11375_v10 }
0x12ae   :  { %v8670_v15 = vmul.f32 %v16555_v33, %v16555_v33 }
0x12af   :  { %v8483_v28 = vpop.xlane.xlu1 %8482  ;;  %8756 = vadd.xlane.f32.xlu0 %v8755_v26  ;;  %v8675_v38 = vmul.f32 %v16564_v41, %v16564_v41 }
0x12b0   :  { %v8752_v22 = vsel %vm8411_vm2, %v8670_v15, 0.0  ;;  %v8580_v25 = vmul.f32 0.020833334, %v8483_v28 }
0x12b1   :  { %v8474_v20 = vpop.xlane.xlu0 %8473  ;;  %8753 = vadd.xlane.f32.xlu1 %v8752_v22  ;;  %v8767_v0 = vsel %vm8411_vm2, %v8675_v38, 0.0 }
0x12b2   :  { %v8577_v6 = vmul.f32 0.020833334, %v8474_v20  ;;  %v16576_v24 = vsub.f32 %v18037_v40, %v8580_v25 }
0x12b4   :  { %v16567_v36 = vsub.f32 %v18036_v11, %v8577_v6  ;;  %v8477_v5 = vpop.xlane.xlu1 %8476  ;;  %v8676_v25 = vmul.f32 %v16576_v24, %v16576_v24 }
0x12b5   :  { %v8578_v4 = vmul.f32 0.020833334, %v8477_v5  ;;  %8759 = vadd.xlane.f32.xlu1 %v8758_v19  ;;  %v11376_v5 = vld [vmem:[%s17123_s10 + $0x10] sm:$0xff]  }
0x12b6   :  { %v8673_v3 = vmul.f32 %v16567_v36, %v16567_v36  ;;  %11079 = vmatprep.subr.bf16.mxu0 %v11376_v5 }
0x12b7   :  { %v16579_v15 = vsub.f32 %v16230_v42, %v8578_v4  ;;  %v8770_v4 = vsel %vm8411_vm2, %v8676_v25, 0.0  ;;  %11080 = vmatpush3.bf16.msra.mxu0 %v11376_v5 }
0x12b8   :  { %v8492_v26 = vpop.xlane.xlu0 %8491  ;;  %v8761_v28 = vsel %vm8411_vm2, %v8673_v3, 0.0 }
0x12b9   :  { %8762 = vadd.xlane.f32.xlu0 %v8761_v28  ;;  %v8674_v22 = vmul.f32 %v16579_v15, %v16579_v15  ;;  %v8583_v14 = vmul.f32 0.020833334, %v8492_v26  ;;  %v8495_v20 = vpop.xlane.xlu1 %8494 }
0x12ba   :  { %v8584_v3 = vmul.f32 0.020833334, %v8495_v20 }
0x12bb   :  { %v8764_v6 = vsel %vm8411_vm2, %v8674_v22, 0.0  ;;  %v16594_v19 = vsub.f32 %v16249_v44, %v8583_v14  ;;  %v18038_v14 = vld [vmem:[#allocation58_spill] sm:$0xff] }
0x12bc   :  { %v8486_v42 = vpop.xlane.xlu0 %8485  ;;  %8765 = vadd.xlane.f32.xlu1 %v8764_v6 }
0x12bd   :  { %v8581_v11 = vmul.f32 0.020833334, %v8486_v42  ;;  %8768 = vadd.xlane.f32.xlu0 %v8767_v0  ;;  %v8679_v44 = vmul.f32 %v16594_v19, %v16594_v19 }
0x12bf   :  { %v16597_v10 = vsub.f32 %v16274_v8, %v8581_v11  ;;  %v16606_v8 = vsub.f32 %v18038_v14, %v8584_v3  ;;  %v8779_v11 = vsel %vm8411_vm2, %v8679_v44, 0.0 }
0x12c0   :  { %8771 = vadd.xlane.f32.xlu1 %v8770_v4 }
0x12c1   :  { %v8489_v40 = vpop.xlane.xlu1 %8488  ;;  %v8677_v26 = vmul.f32 %v16597_v10, %v16597_v10  ;;  %v8680_v3 = vmul.f32 %v16606_v8, %v16606_v8 }
0x12c2   :  { %v8582_v28 = vmul.f32 0.020833334, %v8489_v40  ;;  %v8504_v38 = vpop.xlane.xlu0 %8503 }
0x12c3   :  { %v8773_v22 = vsel %vm8411_vm2, %v8677_v26, 0.0  ;;  %v8587_v25 = vmul.f32 0.020833334, %v8504_v38 }
0x12c4   :  { %v16609_v6 = vsub.f32 %v16298_v61, %v8582_v28  ;;  %8774 = vadd.xlane.f32.xlu0 %v8773_v22  ;;  %v8782_v22 = vsel %vm8411_vm2, %v8680_v3, 0.0 }
0x12c5   :  { %v8507_v20 = vpop.xlane.xlu1 %8506  ;;  %v16618_v61 = vsub.f32 %v16300_v62, %v8587_v25 }
0x12c6   :  { %v8678_v42 = vmul.f32 %v16609_v6, %v16609_v6  ;;  %v8588_v40 = vmul.f32 0.020833334, %v8507_v20 }
0x12c7   :  { %v8498_v0 = vpop.xlane.xlu0 %8497 }
0x12c8   :  { %v8585_v5 = vmul.f32 0.020833334, %v8498_v0  ;;  %v8776_v4 = vsel %vm8411_vm2, %v8678_v42, 0.0  ;;  %8780 = vadd.xlane.f32.xlu0 %v8779_v11  ;;  %v16627_v14 = vsub.f32 %v16305_v16, %v8588_v40 }
0x12c9   :  { %8777 = vadd.xlane.f32.xlu1 %v8776_v4 }
0x12ca   :  { %v16621_v26 = vsub.f32 %v16323_v32, %v8585_v5  ;;  %v8683_v32 = vmul.f32 %v16618_v61, %v16618_v61 }
0x12cb   :  { %v8501_v28 = vpop.xlane.xlu1 %8500 }
0x12cc   :  { %v8586_v38 = vmul.f32 0.020833334, %v8501_v28  ;;  %v8681_v44 = vmul.f32 %v16621_v26, %v16621_v26  ;;  %v8791_v3 = vsel %vm8411_vm2, %v8683_v32, 0.0 }
0x12cd   :  { %8783 = vadd.xlane.f32.xlu1 %v8782_v22 }
0x12ce   :  { %v16630_v42 = vsub.f32 %v16339_v45, %v8586_v38  ;;  %v8516_v62 = vpop.xlane.xlu0 %8515  ;;  %v8785_v20 = vsel %vm8411_vm2, %v8681_v44, 0.0  ;;  %v8684_v45 = vmul.f32 %v16627_v14, %v16627_v14 }
0x12cf   :  { %v8519_v25 = vpop.xlane.xlu1 %8518  ;;  %8786 = vadd.xlane.f32.xlu0 %v8785_v20  ;;  %v8591_v11 = vmul.f32 0.020833334, %v8516_v62 }
0x12d0   :  { %v8682_v0 = vmul.f32 %v16630_v42, %v16630_v42  ;;  %v8592_v5 = vmul.f32 0.020833334, %v8519_v25  ;;  %v8794_v25 = vsel %vm8411_vm2, %v8684_v45, 0.0 }
0x12d1   :  { %v16642_v22 = vsub.f32 %v16347_v55, %v8591_v11 }
0x12d2   :  { %v8510_v4 = vpop.xlane.xlu0 %8509  ;;  %v8788_v16 = vsel %vm8411_vm2, %v8682_v0, 0.0  ;;  %v16648_v62 = vsub.f32 %v16351_v49, %v8592_v5 }
0x12d3   :  { %v8589_v40 = vmul.f32 0.020833334, %v8510_v4  ;;  %v8513_v28 = vpop.xlane.xlu1 %8512  ;;  %8789 = vadd.xlane.f32.xlu1 %v8788_v16  ;;  %8792 = vadd.xlane.f32.xlu0 %v8791_v3  ;;  %v8687_v49 = vmul.f32 %v16642_v22, %v16642_v22 }
0x12d4   :  { %v8590_v38 = vmul.f32 0.020833334, %v8513_v28  ;;  %v8688_v3 = vmul.f32 %v16648_v62, %v16648_v62 }
0x12d5   :  { %v16645_v44 = vsub.f32 %v16356_v27, %v8589_v40 }
0x12d6   :  { %v16651_v20 = vsub.f32 %v16363_v29, %v8590_v38  ;;  %v8528_v32 = vpop.xlane.xlu0 %8527 }
0x12d7   :  { %v8531_v0 = vpop.xlane.xlu1 %8530  ;;  %8795 = vadd.xlane.f32.xlu1 %v8794_v25  ;;  %v8685_v4 = vmul.f32 %v16645_v44, %v16645_v44  ;;  %v8595_v11 = vmul.f32 0.020833334, %v8528_v32  ;;  %v8803_v25 = vsel %vm8411_vm2, %v8687_v49, 0.0 }
0x12d8   :  { %v8686_v55 = vmul.f32 %v16651_v20, %v16651_v20  ;;  %v8596_v5 = vmul.f32 0.020833334, %v8531_v0 }
0x12d9   :  { %v8797_v27 = vsel %vm8411_vm2, %v8685_v4, 0.0  ;;  %v16665_v38 = vsub.f32 %v16366_v46, %v8595_v11 }
0x12da   :  { %v8522_v29 = vpop.xlane.xlu0 %8521  ;;  %8798 = vadd.xlane.f32.xlu0 %v8797_v27  ;;  %v8800_v16 = vsel %vm8411_vm2, %v8686_v55, 0.0  ;;  %v16672_v0 = vsub.f32 %v16378_v47, %v8596_v5  ;;  %v8806_v27 = vsel %vm8411_vm2, %v8688_v3, 0.0 }
0x12db   :  { %v8593_v45 = vmul.f32 0.020833334, %v8522_v29  ;;  %v8525_v40 = vpop.xlane.xlu1 %8524  ;;  %8801 = vadd.xlane.f32.xlu1 %v8800_v16  ;;  %v8691_v47 = vmul.f32 %v16665_v38, %v16665_v38 }
0x12dc   :  { %v8594_v28 = vmul.f32 0.020833334, %v8525_v40  ;;  %v8692_v3 = vmul.f32 %v16672_v0, %v16672_v0 }
0x12dd   :  { %v16668_v32 = vsub.f32 %v16381_v21, %v8593_v45 }
0x12de   :  { %v16675_v4 = vsub.f32 %v16387_v18, %v8594_v28  ;;  %v8540_v55 = vpop.xlane.xlu0 %8539  ;;  %8804 = vadd.xlane.f32.xlu0 %v8803_v25 }
0x12df   :  { %v8543_v29 = vpop.xlane.xlu1 %8542  ;;  %8807 = vadd.xlane.f32.xlu1 %v8806_v27  ;;  %v8689_v46 = vmul.f32 %v16668_v32, %v16668_v32  ;;  %v8599_v11 = vmul.f32 0.020833334, %v8540_v55  ;;  %v8815_v27 = vsel %vm8411_vm2, %v8691_v47, 0.0 }
0x12e0   :  { %v8690_v21 = vmul.f32 %v16675_v4, %v16675_v4  ;;  %v8600_v18 = vmul.f32 0.020833334, %v8543_v29 }
0x12e1   :  { %v8809_v49 = vsel %vm8411_vm2, %v8689_v46, 0.0  ;;  %v16689_v25 = vsub.f32 %v16389_v34, %v8599_v11 }
0x12e2   :  { %v8534_v5 = vpop.xlane.xlu0 %8533  ;;  %8810 = vadd.xlane.f32.xlu0 %v8809_v49  ;;  %v8812_v16 = vsel %vm8411_vm2, %v8690_v21, 0.0  ;;  %v16696_v29 = vsub.f32 %v16391_v9, %v8600_v18  ;;  %v8818_v49 = vsel %vm8411_vm2, %v8692_v3, 0.0 }
0x12e3   :  { %v8597_v45 = vmul.f32 0.020833334, %v8534_v5  ;;  %v8537_v40 = vpop.xlane.xlu1 %8536  ;;  %8813 = vadd.xlane.f32.xlu1 %v8812_v16  ;;  %v8695_v47 = vmul.f32 %v16689_v25, %v16689_v25 }
0x12e4   :  { %v8598_v28 = vmul.f32 0.020833334, %v8537_v40 }
0x12e5   :  { %v16692_v55 = vsub.f32 %v16403_v2, %v8597_v45  ;;  %v8696_v45 = vmul.f32 %v16696_v29, %v16696_v29  ;;  %v8827_v40 = vsel %vm8411_vm2, %v8695_v47, 0.0 }
0x12e6   :  { %v16699_v46 = vsub.f32 %v16405_v57, %v8598_v28  ;;  %8816 = vadd.xlane.f32.xlu0 %v8815_v27  ;;  %v8546_v21 = vpop.xlane.xlu0 %8545 }
0x12e7   :  { %v8601_v5 = vmul.f32 0.020833334, %v8546_v21  ;;  %8819 = vadd.xlane.f32.xlu1 %v8818_v49  ;;  %v8549_v16 = vpop.xlane.xlu1 %8548  ;;  %v8693_v34 = vmul.f32 %v16692_v55, %v16692_v55  ;;  %v8830_v28 = vsel %vm8411_vm2, %v8696_v45, 0.0 }
0x12e8   :  { %v8602_v2 = vmul.f32 0.020833334, %v8549_v16  ;;  %v8694_v11 = vmul.f32 %v16699_v46, %v16699_v46 }
0x12e9   :  { %v16707_v9 = vsub.f32 %v16408_v23, %v8601_v5  ;;  %v8821_v57 = vsel %vm8411_vm2, %v8693_v34, 0.0 }
0x12ea   :  { %v16713_v18 = vsub.f32 %v16417_v12, %v8602_v2  ;;  %8822 = vadd.xlane.f32.xlu0 %v8821_v57  ;;  %v8824_v3 = vsel %vm8411_vm2, %v8694_v11, 0.0 }
0x12eb   :  { %18039 = vst [vmem:[#allocation24_spill] sm:$0xff] %v16707_v9  ;;  %8825 = vadd.xlane.f32.xlu1 %v8824_v3  ;;  %v8697_v23 = vmul.f32 %v16707_v9, %v16707_v9 }
0x12ec   :  { %18040 = vst [vmem:[#allocation11_spill] sm:$0xff] %v16713_v18  ;;  %v8698_v27 = vmul.f32 %v16713_v18, %v16713_v18 }
0x12ed   :  { %v8833_v12 = vsel %vm8411_vm2, %v8697_v23, 0.0 }
0x12ee   :  { %8828 = vadd.xlane.f32.xlu0 %v8827_v40  ;;  %v8836_v21 = vsel %vm8411_vm2, %v8698_v27, 0.0 }
0x12ef   :  { %8831 = vadd.xlane.f32.xlu1 %v8830_v28 }
0x12f2   :  { %8834 = vadd.xlane.f32.xlu0 %v8833_v12 }
0x12f3   :  { %8837 = vadd.xlane.f32.xlu1 %v8836_v21 }
0x1309   :  { %v8709_v49 = vpop.xlane.xlu0 %8708 }
0x130a   :  { %v8847_v5 = vmul.f32 0.020833334, %v8709_v49 }
0x130b   :  { %v8712_v16 = vpop.xlane.xlu1 %8711 }
0x130c   :  { %v8895_v34 = vadd.f32 1e-05, %v8847_v5  ;;  %v8848_v2 = vmul.f32 0.020833334, %v8712_v16 }
0x130d   :  { %v8703_v11 = vpop.xlane.xlu0 %8702 }
0x130e   :  { %v8896_v57 = vadd.f32 1e-05, %v8848_v2  ;;  %v8845_v47 = vmul.f32 0.020833334, %v8703_v11  ;;  %11665 = vrsqrt.f32 %v8895_v34 }
0x130f   :  { %v8706_v3 = vpop.xlane.xlu1 %8705 }
0x1310   :  { %11667 = vrsqrt.f32 %v8896_v57  ;;  %v8893_v45 = vadd.f32 1e-05, %v8845_v47  ;;  %v8846_v40 = vmul.f32 0.020833334, %v8706_v3 }
0x1311   :  { %v8721_v28 = vpop.xlane.xlu0 %8720 }
0x1312   :  { %11669 = vrsqrt.f32 %v8893_v45  ;;  %v8894_v23 = vadd.f32 1e-05, %v8846_v40  ;;  %v8851_v12 = vmul.f32 0.020833334, %v8721_v28 }
0x1313   :  { %v8724_v18 = vpop.xlane.xlu1 %8723 }
0x1314   :  { %11671 = vrsqrt.f32 %v8894_v23  ;;  %v8899_v27 = vadd.f32 1e-05, %v8851_v12  ;;  %v8852_v21 = vmul.f32 0.020833334, %v8724_v18 }
0x1315   :  { %v8715_v49 = vpop.xlane.xlu0 %8714 }
0x1316   :  { %v8900_v9 = vadd.f32 1e-05, %v8852_v21  ;;  %v8849_v5 = vmul.f32 0.020833334, %v8715_v49  ;;  %11673 = vrsqrt.f32 %v8899_v27 }
0x1317   :  { %v8718_v16 = vpop.xlane.xlu1 %8717 }
0x1318   :  { %11675 = vrsqrt.f32 %v8900_v9  ;;  %v8897_v2 = vadd.f32 1e-05, %v8849_v5  ;;  %v8850_v34 = vmul.f32 0.020833334, %v8718_v16  ;;  %v11666_v11 = vpop.eup %11665  ;;  %v16734_v9 = vld [vmem:[%s17121_s8] ss:$0 sm:$0xff] }
0x1319   :  { %v8552_v57 = vpop.xlane.xlu0 %8551  ;;  %v8991_v18 = vmul.f32 %v11666_v11, %v16433_v54 }
0x131a   :  { %v11668_v47 = vpop.eup %11667  ;;  %11677 = vrsqrt.f32 %v8897_v2  ;;  %v8898_v3 = vadd.f32 1e-05, %v8850_v34  ;;  %v8603_v45 = vmul.f32 0.020833334, %v8552_v57 }
0x131b   :  { %v8992_v40 = vmul.f32 %v11668_v47, %v16436_v48  ;;  %v8555_v28 = vpop.xlane.xlu1 %8554  ;;  %v9045_v16 = vmul.f32 %v16734_v9, %v8991_v18 }
0x131c   :  { %v11670_v23 = vpop.eup %11669  ;;  %11679 = vrsqrt.f32 %v8898_v3  ;;  %v16729_v12 = vsub.f32 %v16479_v35, %v8603_v45  ;;  %v8604_v27 = vmul.f32 0.020833334, %v8555_v28 }
0x131d   :  { %v8989_v21 = vmul.f32 %v11670_v23, %v16441_v60  ;;  %v9046_v5 = vmul.f32 %v16734_v9, %v8992_v40 }
0x131e   :  { %v11672_v49 = vpop.eup %11671  ;;  %v16739_v48 = vsub.f32 %v16483_v58, %v8604_v27  ;;  %v8699_v54 = vmul.f32 %v16729_v12, %v16729_v12  ;;  %v16752_v58 = vld [vmem:[%s17122_s9] ss:$0 sm:$0xff] }
0x131f   :  { %v8990_v35 = vmul.f32 %v11672_v49, %v16447_v50  ;;  %v9043_v60 = vmul.f32 %v16734_v9, %v8989_v21  ;;  %v9100_v50 = vadd.f32 %v16752_v58, %v9046_v5  ;;  %v9099_v23 = vadd.f32 %v16752_v58, %v9045_v16 }
0x1320   :  { %18041 = vst [vmem:[#allocation34_spill] sm:$0xff] %v16739_v48  ;;  %v8839_v2 = vsel %vm8411_vm2, %v8699_v54, 0.0  ;;  %v8700_v34 = vmul.f32 %v16739_v48, %v16739_v48  ;;  %v11674_v11 = vpop.eup %11673 }
0x1321   :  { %8840 = vadd.xlane.f32.xlu0 %v8839_v2  ;;  %v9044_v57 = vmul.f32 %v16734_v9, %v8990_v35  ;;  %v8727_v18 = vpop.xlane.xlu0 %8726  ;;  %v9097_v27 = vadd.f32 %v16752_v58, %v9043_v60  ;;  %v8995_v21 = vmul.f32 %v11674_v11, %v16453_v31  ;;  %v9146_v5 = vpack.c.bf16 %v9100_v50, %v9099_v23 }
0x1322   :  { %v11676_v47 = vpop.eup %11675  ;;  %v8842_v3 = vsel %vm8411_vm2, %v8700_v34, 0.0  ;;  %v8853_v54 = vmul.f32 0.020833334, %v8727_v18 }
0x1323   :  { %v8996_v45 = vmul.f32 %v11676_v47, %v16459_v63  ;;  %8843 = vadd.xlane.f32.xlu1 %v8842_v3  ;;  %v9098_v40 = vadd.f32 %v16752_v58, %v9044_v57  ;;  %v9049_v31 = vmul.f32 %v16734_v9, %v8995_v21 }
0x1324   :  { %v11678_v28 = vpop.eup %11677  ;;  %v8901_v47 = vadd.f32 1e-05, %v8853_v54  ;;  %v8730_v57 = vpop.xlane.xlu1 %8729 }
0x1325   :  { %v8993_v49 = vmul.f32 %v11678_v28, %v16465_v37  ;;  %v9145_v2 = vpack.c.bf16 %v9098_v40, %v9097_v27  ;;  %v9050_v34 = vmul.f32 %v16734_v9, %v8996_v45  ;;  %v8854_v16 = vmul.f32 0.020833334, %v8730_v57  ;;  %v8733_v48 = vpop.xlane.xlu0 %8732 }
0x1326   :  { %v11680_v35 = vpop.eup %11679  ;;  %11681 = vrsqrt.f32 %v8901_v47  ;;  %v8855_v37 = vmul.f32 0.020833334, %v8733_v48  ;;  %v9103_v18 = vadd.f32 %v16752_v58, %v9049_v31 }
0x1327   :  { %v8994_v63 = vmul.f32 %v11680_v35, %v16471_v53  ;;  %v9047_v3 = vmul.f32 %v16734_v9, %v8993_v49  ;;  %11081 = vmatprep.mubr.msk.bf16.mxu0 %vm8411_vm2, %v9145_v2  ;;  %v8902_v11 = vadd.f32 1e-05, %v8854_v16  ;;  %v9104_v50 = vadd.f32 %v16752_v58, %v9050_v34 }
0x1328   :  { %11082 = vmatmul.mubr.msk.bf16.vlgmr.msra.gmra.mrb[24].mxu0 %vm8411_vm2, %v9146_v5  ;;  %v8903_v53 = vadd.f32 1e-05, %v8855_v37  ;;  %v8736_v45 = vpop.xlane.xlu1 %8735 }
0x1329   :  { %v9048_v60 = vmul.f32 %v16734_v9, %v8994_v63  ;;  %v9101_v40 = vadd.f32 %v16752_v58, %v9047_v3  ;;  %11683 = vrsqrt.f32 %v8902_v11  ;;  %v8856_v23 = vmul.f32 0.020833334, %v8736_v45 }
0x132a   :  { %11685 = vrsqrt.f32 %v8903_v53  ;;  %v9148_v21 = vpack.c.bf16 %v9104_v50, %v9103_v18 }
0x132b   :  { %v9102_v28 = vadd.f32 %v16752_v58, %v9048_v60  ;;  %v8904_v48 = vadd.f32 1e-05, %v8856_v23 }
0x132c   :  { %v8739_v49 = vpop.xlane.xlu0 %8738 }
0x132d   :  { %v9147_v27 = vpack.c.bf16 %v9102_v28, %v9101_v40  ;;  %11687 = vrsqrt.f32 %v8904_v48  ;;  %v8857_v54 = vmul.f32 0.020833334, %v8739_v49 }
0x132f   :  { %11085 = vmatprep.mubr.msk.bf16.mxu0 %vm8411_vm2, %v9147_v27  ;;  %v8905_v35 = vadd.f32 1e-05, %v8857_v54  ;;  %v8742_v5 = vpop.xlane.xlu1 %8741 }
0x1330   :  { %11086 = vmatmul.mubr.msk.bf16.gmra.mrb[28].mxu0 %vm8411_vm2, %v9148_v21  ;;  %v11682_v2 = vpop.eup %11681  ;;  %v8858_v34 = vmul.f32 0.020833334, %v8742_v5  ;;  %v8745_v63 = vpop.xlane.xlu0 %8744 }
0x1331   :  { %v8997_v47 = vmul.f32 %v11682_v2, %v16493_v17  ;;  %11689 = vrsqrt.f32 %v8905_v35  ;;  %v8859_v57 = vmul.f32 0.020833334, %v8745_v63 }
0x1332   :  { %v8906_v3 = vadd.f32 1e-05, %v8858_v34 }
0x1333   :  { %v11684_v16 = vpop.eup %11683  ;;  %v8907_v31 = vadd.f32 1e-05, %v8859_v57  ;;  %v8748_v37 = vpop.xlane.xlu1 %8747  ;;  %v9051_v60 = vmul.f32 %v16734_v9, %v8997_v47 }
0x1334   :  { %v11686_v11 = vpop.eup %11685  ;;  %v8998_v50 = vmul.f32 %v11684_v16, %v16501_v56  ;;  %11691 = vrsqrt.f32 %v8906_v3  ;;  %v8860_v53 = vmul.f32 0.020833334, %v8748_v37 }
0x1335   :  { %v8999_v45 = vmul.f32 %v11686_v11, %v16490_v43  ;;  %11693 = vrsqrt.f32 %v8907_v31  ;;  %v9105_v23 = vadd.f32 %v16752_v58, %v9051_v60 }
0x1336   :  { %v8908_v40 = vadd.f32 1e-05, %v8860_v53  ;;  %v9052_v28 = vmul.f32 %v16734_v9, %v8998_v50 }
0x1337   :  { %v11688_v17 = vpop.eup %11687  ;;  %v9053_v18 = vmul.f32 %v16734_v9, %v8999_v45 }
0x1338   :  { %v9000_v27 = vmul.f32 %v11688_v17, %v16498_v51  ;;  %11695 = vrsqrt.f32 %v8908_v40  ;;  %v8751_v48 = vpop.xlane.xlu0 %8750  ;;  %v9106_v21 = vadd.f32 %v16752_v58, %v9052_v28 }
0x1339   :  { %v8861_v56 = vmul.f32 0.020833334, %v8751_v48  ;;  %v9107_v5 = vadd.f32 %v16752_v58, %v9053_v18 }
0x133a   :  { %v9054_v49 = vmul.f32 %v16734_v9, %v9000_v27  ;;  %v9149_v54 = vpack.c.bf16 %v9106_v21, %v9105_v23 }
0x133b   :  { %v11690_v43 = vpop.eup %11689  ;;  %v8909_v35 = vadd.f32 1e-05, %v8861_v56 }
0x133c   :  { %v9108_v2 = vadd.f32 %v16752_v58, %v9054_v49  ;;  %v9001_v34 = vmul.f32 %v11690_v43, %v16516_v7  ;;  %v8757_v63 = vpop.xlane.xlu0 %8756  ;;  %11089 = vmatprep.mubr.msk.bf16.mxu0 %vm8411_vm2, %v9149_v54 }
0x133d   :  { %11697 = vrsqrt.f32 %v8909_v35  ;;  %v8863_v51 = vmul.f32 0.020833334, %v8757_v63 }
0x133e   :  { %v11692_v47 = vpop.eup %11691  ;;  %v9150_v57 = vpack.c.bf16 %v9108_v2, %v9107_v5  ;;  %v8754_v3 = vpop.xlane.xlu1 %8753  ;;  %v9055_v16 = vmul.f32 %v16734_v9, %v9001_v34 }
0x133f   :  { %v11694_v31 = vpop.eup %11693  ;;  %v9002_v37 = vmul.f32 %v11692_v47, %v16525_v1  ;;  %v8862_v60 = vmul.f32 0.020833334, %v8754_v3  ;;  %v8911_v11 = vadd.f32 1e-05, %v8863_v51 }
0x1340   :  { %v9003_v50 = vmul.f32 %v11694_v31, %v16513_v59  ;;  %11090 = vmatmul.mubr.msk.bf16.gmra.mrb[32].mxu0 %vm8411_vm2, %v9150_v57  ;;  %v9109_v17 = vadd.f32 %v16752_v58, %v9055_v16 }
0x1341   :  { %v8910_v7 = vadd.f32 1e-05, %v8862_v60  ;;  %11699 = vrsqrt.f32 %v8911_v11  ;;  %v9056_v53 = vmul.f32 %v16734_v9, %v9002_v37 }
0x1342   :  { %v11696_v45 = vpop.eup %11695  ;;  %v9057_v40 = vmul.f32 %v16734_v9, %v9003_v50  ;;  %v8760_v28 = vpop.xlane.xlu1 %8759 }
0x1343   :  { %v9004_v23 = vmul.f32 %v11696_v45, %v16522_v52  ;;  %11701 = vrsqrt.f32 %v8910_v7  ;;  %v8864_v1 = vmul.f32 0.020833334, %v8760_v28  ;;  %v9110_v18 = vadd.f32 %v16752_v58, %v9056_v53 }
0x1344   :  { %v9111_v49 = vadd.f32 %v16752_v58, %v9057_v40 }
0x1345   :  { %v9058_v59 = vmul.f32 %v16734_v9, %v9004_v23  ;;  %v8912_v27 = vadd.f32 1e-05, %v8864_v1  ;;  %v9151_v48 = vpack.c.bf16 %v9110_v18, %v9109_v17 }
0x1346   :  { %v8763_v21 = vpop.xlane.xlu0 %8762 }
0x1347   :  { %v11698_v56 = vpop.eup %11697  ;;  %v9112_v54 = vadd.f32 %v16752_v58, %v9058_v59  ;;  %11703 = vrsqrt.f32 %v8912_v27  ;;  %v8865_v43 = vmul.f32 0.020833334, %v8763_v21  ;;  %11093 = vmatprep.mubr.msk.bf16.mxu0 %vm8411_vm2, %v9151_v48 }
0x1348   :  { %v9005_v52 = vmul.f32 %v11698_v56, %v16541_v39 }
0x1349   :  { %v9152_v35 = vpack.c.bf16 %v9112_v54, %v9111_v49  ;;  %v8913_v5 = vadd.f32 1e-05, %v8865_v43  ;;  %v8766_v2 = vpop.xlane.xlu1 %8765 }
0x134a   :  { %v8866_v34 = vmul.f32 0.020833334, %v8766_v2  ;;  %v8769_v63 = vpop.xlane.xlu0 %8768  ;;  %v9059_v60 = vmul.f32 %v16734_v9, %v9005_v52 }
0x134b   :  { %v11700_v51 = vpop.eup %11699  ;;  %11705 = vrsqrt.f32 %v8913_v5  ;;  %v8867_v47 = vmul.f32 0.020833334, %v8769_v63  ;;  %11094 = vmatmul.mubr.msk.bf16.gmra.mrb[36].mxu0 %vm8411_vm2, %v9152_v35 }
0x134c   :  { %v8914_v57 = vadd.f32 1e-05, %v8866_v34  ;;  %v9007_v16 = vmul.f32 %v11700_v51, %v16538_v30  ;;  %v9113_v28 = vadd.f32 %v16752_v58, %v9059_v60 }
0x134d   :  { %v11702_v3 = vpop.eup %11701  ;;  %v8915_v31 = vadd.f32 1e-05, %v8867_v47  ;;  %v8772_v37 = vpop.xlane.xlu1 %8771 }
0x134e   :  { %v9006_v11 = vmul.f32 %v11702_v3, %v16555_v33  ;;  %11707 = vrsqrt.f32 %v8914_v57  ;;  %v8868_v39 = vmul.f32 0.020833334, %v8772_v37  ;;  %v9061_v45 = vmul.f32 %v16734_v9, %v9007_v16 }
0x134f   :  { %11709 = vrsqrt.f32 %v8915_v31 }
0x1350   :  { %v8916_v50 = vadd.f32 1e-05, %v8868_v39  ;;  %v9060_v7 = vmul.f32 %v16734_v9, %v9006_v11  ;;  %v9115_v27 = vadd.f32 %v16752_v58, %v9061_v45 }
0x1351   :  { %v11704_v53 = vpop.eup %11703  ;;  %v8775_v40 = vpop.xlane.xlu0 %8774 }
0x1352   :  { %v9008_v30 = vmul.f32 %v11704_v53, %v16552_v13  ;;  %11711 = vrsqrt.f32 %v8916_v50  ;;  %v8869_v17 = vmul.f32 0.020833334, %v8775_v40  ;;  %v9114_v23 = vadd.f32 %v16752_v58, %v9060_v7 }
0x1354   :  { %v9062_v33 = vmul.f32 %v16734_v9, %v9008_v30  ;;  %v8917_v1 = vadd.f32 1e-05, %v8869_v17  ;;  %v9153_v18 = vpack.c.bf16 %v9114_v23, %v9113_v28 }
0x1355   :  { %v11706_v59 = vpop.eup %11705  ;;  %v8781_v48 = vpop.xlane.xlu0 %8780 }
0x1356   :  { %v9116_v21 = vadd.f32 %v16752_v58, %v9062_v33  ;;  %v9009_v56 = vmul.f32 %v11706_v59, %v16567_v36  ;;  %11713 = vrsqrt.f32 %v8917_v1  ;;  %v8778_v49 = vpop.xlane.xlu1 %8777  ;;  %v8871_v54 = vmul.f32 0.020833334, %v8781_v48  ;;  %11097 = vmatprep.mubr.msk.bf16.mxu0 %vm8411_vm2, %v9153_v18 }
0x1357   :  { %v8870_v13 = vmul.f32 0.020833334, %v8778_v49 }
0x1358   :  { %v11708_v43 = vpop.eup %11707  ;;  %v9154_v35 = vpack.c.bf16 %v9116_v21, %v9115_v27  ;;  %v8919_v52 = vadd.f32 1e-05, %v8871_v54  ;;  %v9063_v5 = vmul.f32 %v16734_v9, %v9009_v56 }
0x1359   :  { %v11710_v2 = vpop.eup %11709  ;;  %v9010_v34 = vmul.f32 %v11708_v43, %v16579_v15  ;;  %v8918_v63 = vadd.f32 1e-05, %v8870_v13 }
0x135a   :  { %v9011_v51 = vmul.f32 %v11710_v2, %v16564_v41  ;;  %11715 = vrsqrt.f32 %v8919_v52  ;;  %v8784_v47 = vpop.xlane.xlu1 %8783  ;;  %11098 = vmatmul.mubr.msk.bf16.gmra.mrb[40].mxu0 %vm8411_vm2, %v9154_v35  ;;  %v9117_v37 = vadd.f32 %v16752_v58, %v9063_v5 }
0x135b   :  { %11717 = vrsqrt.f32 %v8918_v63  ;;  %v8872_v36 = vmul.f32 0.020833334, %v8784_v47  ;;  %v9064_v57 = vmul.f32 %v16734_v9, %v9010_v34 }
0x135c   :  { %v11712_v3 = vpop.eup %11711  ;;  %v9065_v16 = vmul.f32 %v16734_v9, %v9011_v51  ;;  %v8787_v31 = vpop.xlane.xlu0 %8786 }
0x135d   :  { %v9012_v60 = vmul.f32 %v11712_v3, %v16576_v24  ;;  %v8920_v15 = vadd.f32 1e-05, %v8872_v36  ;;  %v8873_v11 = vmul.f32 0.020833334, %v8787_v31  ;;  %v9118_v41 = vadd.f32 %v16752_v58, %v9064_v57 }
0x135e   :  { %v9119_v28 = vadd.f32 %v16752_v58, %v9065_v16 }
0x135f   :  { %v9066_v39 = vmul.f32 %v16734_v9, %v9012_v60  ;;  %11719 = vrsqrt.f32 %v8920_v15  ;;  %v8921_v50 = vadd.f32 1e-05, %v8873_v11  ;;  %v9155_v7 = vpack.c.bf16 %v9118_v41, %v9117_v37 }
0x1360   :  { %v11714_v53 = vpop.eup %11713  ;;  %v8790_v45 = vpop.xlane.xlu1 %8789 }
0x1361   :  { %v8793_v40 = vpop.xlane.xlu0 %8792  ;;  %v9120_v30 = vadd.f32 %v16752_v58, %v9066_v39  ;;  %11721 = vrsqrt.f32 %v8921_v50  ;;  %v8874_v17 = vmul.f32 0.020833334, %v8790_v45  ;;  %11101 = vmatprep.mubr.msk.bf16.mxu0 %vm8411_vm2, %v9155_v7  ;;  %v9013_v33 = vmul.f32 %v11714_v53, %v16597_v10 }
0x1362   :  { %v8875_v24 = vmul.f32 0.020833334, %v8793_v40 }
0x1363   :  { %v9156_v23 = vpack.c.bf16 %v9120_v30, %v9119_v28  ;;  %v8922_v1 = vadd.f32 1e-05, %v8874_v17  ;;  %v9067_v43 = vmul.f32 %v16734_v9, %v9013_v33 }
0x1364   :  { %v11716_v18 = vpop.eup %11715  ;;  %v8923_v59 = vadd.f32 1e-05, %v8875_v24  ;;  %v8796_v27 = vpop.xlane.xlu1 %8795 }
0x1365   :  { %v11718_v48 = vpop.eup %11717  ;;  %11723 = vrsqrt.f32 %v8922_v1  ;;  %v8876_v21 = vmul.f32 0.020833334, %v8796_v27  ;;  %11102 = vmatmul.mubr.msk.bf16.gmra.mrb[44].mxu0 %vm8411_vm2, %v9156_v23  ;;  %v9015_v49 = vmul.f32 %v11716_v18, %v16594_v19  ;;  %v9121_v57 = vadd.f32 %v16752_v58, %v9067_v43 }
0x1366   :  { %v9014_v56 = vmul.f32 %v11718_v48, %v16609_v6  ;;  %11725 = vrsqrt.f32 %v8923_v59 }
0x1367   :  { %v8924_v54 = vadd.f32 1e-05, %v8876_v21  ;;  %v8799_v13 = vpop.xlane.xlu0 %8798  ;;  %v9069_v34 = vmul.f32 %v16734_v9, %v9015_v49 }
0x1368   :  { %v8877_v35 = vmul.f32 0.020833334, %v8799_v13  ;;  %v8802_v10 = vpop.xlane.xlu1 %8801  ;;  %v9068_v52 = vmul.f32 %v16734_v9, %v9014_v56 }
0x1369   :  { %v11720_v5 = vpop.eup %11719  ;;  %11727 = vrsqrt.f32 %v8924_v54  ;;  %v8878_v2 = vmul.f32 0.020833334, %v8802_v10 }
0x136a   :  { %v9016_v63 = vmul.f32 %v11720_v5, %v16606_v8  ;;  %v8925_v51 = vadd.f32 1e-05, %v8877_v35  ;;  %v9122_v6 = vadd.f32 %v16752_v58, %v9068_v52  ;;  %v9123_v8 = vadd.f32 %v16752_v58, %v9069_v34 }
0x136b   :  { %v11722_v19 = vpop.eup %11721  ;;  %v8926_v47 = vadd.f32 1e-05, %v8878_v2  ;;  %v8805_v36 = vpop.xlane.xlu0 %8804 }
0x136c   :  { %v9070_v3 = vmul.f32 %v16734_v9, %v9016_v63  ;;  %v9017_v16 = vmul.f32 %v11722_v19, %v16621_v26  ;;  %11729 = vrsqrt.f32 %v8925_v51  ;;  %v8879_v31 = vmul.f32 0.020833334, %v8805_v36  ;;  %v8808_v37 = vpop.xlane.xlu1 %8807 }
0x136d   :  { %11731 = vrsqrt.f32 %v8926_v47  ;;  %v8880_v60 = vmul.f32 0.020833334, %v8808_v37  ;;  %v9157_v15 = vpack.c.bf16 %v9122_v6, %v9121_v57 }
0x136e   :  { %v9124_v11 = vadd.f32 %v16752_v58, %v9070_v3  ;;  %v8927_v41 = vadd.f32 1e-05, %v8879_v31  ;;  %v9071_v53 = vmul.f32 %v16734_v9, %v9017_v16 }
0x136f   :  { %v11724_v39 = vpop.eup %11723  ;;  %v8928_v50 = vadd.f32 1e-05, %v8880_v60  ;;  %v8811_v7 = vpop.xlane.xlu0 %8810  ;;  %11105 = vmatprep.mubr.msk.bf16.mxu0 %vm8411_vm2, %v9157_v15 }
0x1370   :  { %v11726_v45 = vpop.eup %11725  ;;  %v9158_v26 = vpack.c.bf16 %v9124_v11, %v9123_v8  ;;  %v9018_v40 = vmul.f32 %v11724_v39, %v16630_v42  ;;  %11733 = vrsqrt.f32 %v8927_v41  ;;  %v8881_v28 = vmul.f32 0.020833334, %v8811_v7  ;;  %v8814_v30 = vpop.xlane.xlu1 %8813 }
0x1371   :  { %v9019_v17 = vmul.f32 %v11726_v45, %v16618_v61  ;;  %11735 = vrsqrt.f32 %v8928_v50  ;;  %v8882_v24 = vmul.f32 0.020833334, %v8814_v30  ;;  %v9125_v48 = vadd.f32 %v16752_v58, %v9071_v53 }
0x1372   :  { %v8929_v23 = vadd.f32 1e-05, %v8881_v28  ;;  %11106 = vmatmul.mubr.msk.bf16.gmra.mrb[48].mxu0 %vm8411_vm2, %v9158_v26  ;;  %v9072_v33 = vmul.f32 %v16734_v9, %v9018_v40 }
0x1373   :  { %v11728_v1 = vpop.eup %11727  ;;  %v9073_v18 = vmul.f32 %v16734_v9, %v9019_v17  ;;  %v8930_v59 = vadd.f32 1e-05, %v8882_v24  ;;  %v8817_v27 = vpop.xlane.xlu0 %8816 }
0x1374   :  { %v9020_v42 = vmul.f32 %v11728_v1, %v16627_v14  ;;  %11737 = vrsqrt.f32 %v8929_v23  ;;  %v8883_v21 = vmul.f32 0.020833334, %v8817_v27  ;;  %v8820_v56 = vpop.xlane.xlu1 %8819  ;;  %v9126_v61 = vadd.f32 %v16752_v58, %v9072_v33 }
0x1375   :  { %11739 = vrsqrt.f32 %v8930_v59  ;;  %v8884_v49 = vmul.f32 0.020833334, %v8820_v56  ;;  %v9127_v52 = vadd.f32 %v16752_v58, %v9073_v18 }
0x1376   :  { %v11730_v54 = vpop.eup %11729  ;;  %v9074_v13 = vmul.f32 %v16734_v9, %v9020_v42  ;;  %v8931_v43 = vadd.f32 1e-05, %v8883_v21  ;;  %v9159_v35 = vpack.c.bf16 %v9126_v61, %v9125_v48 }
0x1377   :  { %v11732_v10 = vpop.eup %11731  ;;  %v9021_v5 = vmul.f32 %v11730_v54, %v16645_v44  ;;  %v8932_v2 = vadd.f32 1e-05, %v8884_v49  ;;  %v8823_v34 = vpop.xlane.xlu0 %8822 }
0x1378   :  { %v9128_v14 = vadd.f32 %v16752_v58, %v9074_v13  ;;  %v9022_v63 = vmul.f32 %v11732_v10, %v16651_v20  ;;  %11741 = vrsqrt.f32 %v8931_v43  ;;  %v8885_v51 = vmul.f32 0.020833334, %v8823_v34  ;;  %11109 = vmatprep.mubr.msk.bf16.mxu0 %vm8411_vm2, %v9159_v35  ;;  %v8826_v6 = vpop.xlane.xlu1 %8825 }
0x1379   :  { %11743 = vrsqrt.f32 %v8932_v2  ;;  %v8886_v19 = vmul.f32 0.020833334, %v8826_v6  ;;  %v9075_v47 = vmul.f32 %v16734_v9, %v9021_v5 }
0x137a   :  { %v11734_v36 = vpop.eup %11733  ;;  %v9160_v57 = vpack.c.bf16 %v9128_v14, %v9127_v52  ;;  %v8933_v3 = vadd.f32 1e-05, %v8885_v51  ;;  %v9076_v44 = vmul.f32 %v16734_v9, %v9022_v63 }
0x137b   :  { %v11736_v16 = vpop.eup %11735  ;;  %v9023_v31 = vmul.f32 %v11734_v36, %v16642_v22  ;;  %v8934_v37 = vadd.f32 1e-05, %v8886_v19  ;;  %v8829_v60 = vpop.xlane.xlu0 %8828  ;;  %v9129_v20 = vadd.f32 %v16752_v58, %v9075_v47 }
0x137c   :  { %v9024_v15 = vmul.f32 %v11736_v16, %v16648_v62  ;;  %11745 = vrsqrt.f32 %v8933_v3  ;;  %v8887_v8 = vmul.f32 0.020833334, %v8829_v60  ;;  %11110 = vmatmul.mubr.msk.bf16.gmra.mrb[52].mxu0 %vm8411_vm2, %v9160_v57  ;;  %v8832_v11 = vpop.xlane.xlu1 %8831  ;;  %v9130_v41 = vadd.f32 %v16752_v58, %v9076_v44  ;;  %v18042_v16 = vld [vmem:[#allocation24_spill] sm:$0xff] }
0x137d   :  { %v9077_v39 = vmul.f32 %v16734_v9, %v9023_v31  ;;  %11747 = vrsqrt.f32 %v8934_v37  ;;  %v8888_v50 = vmul.f32 0.020833334, %v8832_v11 }
0x137e   :  { %v11738_v7 = vpop.eup %11737  ;;  %v9078_v22 = vmul.f32 %v16734_v9, %v9024_v15  ;;  %v8935_v53 = vadd.f32 1e-05, %v8887_v8  ;;  %v9161_v45 = vpack.c.bf16 %v9130_v41, %v9129_v20 }
0x137f   :  { %v11740_v26 = vpop.eup %11739  ;;  %v9131_v40 = vadd.f32 %v16752_v58, %v9077_v39  ;;  %v9025_v62 = vmul.f32 %v11738_v7, %v16668_v32  ;;  %v8936_v28 = vadd.f32 1e-05, %v8888_v50  ;;  %v8835_v30 = vpop.xlane.xlu0 %8834 }
0x1380   :  { %v9132_v17 = vadd.f32 %v16752_v58, %v9078_v22  ;;  %v9026_v24 = vmul.f32 %v11740_v26, %v16675_v4  ;;  %11749 = vrsqrt.f32 %v8935_v53  ;;  %v8889_v23 = vmul.f32 0.020833334, %v8835_v30  ;;  %11113 = vmatprep.mubr.msk.bf16.mxu0 %vm8411_vm2, %v9161_v45  ;;  %v8838_v33 = vpop.xlane.xlu1 %8837 }
0x1381   :  { %11751 = vrsqrt.f32 %v8936_v28  ;;  %v8890_v1 = vmul.f32 0.020833334, %v8838_v33  ;;  %v9079_v18 = vmul.f32 %v16734_v9, %v9025_v62 }
0x1382   :  { %v11742_v59 = vpop.eup %11741  ;;  %v9162_v27 = vpack.c.bf16 %v9132_v17, %v9131_v40  ;;  %v8937_v48 = vadd.f32 1e-05, %v8889_v23  ;;  %v9080_v32 = vmul.f32 %v16734_v9, %v9026_v24  ;;  %v18044_v17 = vld [vmem:[#allocation34_spill] sm:$0xff] }
0x1383   :  { %v11744_v42 = vpop.eup %11743  ;;  %v9027_v21 = vmul.f32 %v11742_v59, %v16665_v38  ;;  %v8938_v56 = vadd.f32 1e-05, %v8890_v1  ;;  %v9133_v61 = vadd.f32 %v16752_v58, %v9079_v18  ;;  %v16919_v59 = vld [vmem:[%s17124_s11] ss:$0 sm:$0xff] }
0x1384   :  { %v9028_v4 = vmul.f32 %v11744_v42, %v16672_v0  ;;  %11753 = vrsqrt.f32 %v8937_v48  ;;  %11114 = vmatmul.mubr.msk.bf16.gmra.mrb[56].mxu0 %vm8411_vm2, %v9162_v27  ;;  %v9134_v49 = vadd.f32 %v16752_v58, %v9080_v32 }
0x1385   :  { %v9081_v54 = vmul.f32 %v16734_v9, %v9027_v21  ;;  %11755 = vrsqrt.f32 %v8938_v56 }
0x1386   :  { %v11746_v13 = vpop.eup %11745  ;;  %v9082_v43 = vmul.f32 %v16734_v9, %v9028_v4  ;;  %v9163_v35 = vpack.c.bf16 %v9134_v49, %v9133_v61 }
0x1387   :  { %v11748_v10 = vpop.eup %11747  ;;  %v9029_v38 = vmul.f32 %v11746_v13, %v16692_v55  ;;  %v9135_v52 = vadd.f32 %v16752_v58, %v9081_v54 }
0x1388   :  { %v9136_v0 = vadd.f32 %v16752_v58, %v9082_v43  ;;  %v9030_v5 = vmul.f32 %v11748_v10, %v16699_v46  ;;  %11117 = vmatprep.mubr.msk.bf16.mxu0 %vm8411_vm2, %v9163_v35 }
0x1389   :  { %v9083_v2 = vmul.f32 %v16734_v9, %v9029_v38 }
0x138a   :  { %v11750_v34 = vpop.eup %11749  ;;  %v9164_v14 = vpack.c.bf16 %v9136_v0, %v9135_v52  ;;  %v9084_v63 = vmul.f32 %v16734_v9, %v9030_v5 }
0x138b   :  { %v11752_v51 = vpop.eup %11751  ;;  %v9031_v6 = vmul.f32 %v11750_v34, %v16689_v25  ;;  %v9137_v55 = vadd.f32 %v16752_v58, %v9083_v2 }
0x138c   :  { %v9032_v19 = vmul.f32 %v11752_v51, %v16696_v29  ;;  %11118 = vmatmul.mubr.msk.bf16.gmra.mrb[60].mxu0 %vm8411_vm2, %v9164_v14  ;;  %v9138_v47 = vadd.f32 %v16752_v58, %v9084_v63  ;;  %v18043_v29 = vld [vmem:[#allocation11_spill] sm:$0xff] }
0x138d   :  { %v9085_v46 = vmul.f32 %v16734_v9, %v9031_v6 }
0x138e   :  { %v11754_v36 = vpop.eup %11753  ;;  %v9086_v57 = vmul.f32 %v16734_v9, %v9032_v19  ;;  %v9165_v3 = vpack.c.bf16 %v9138_v47, %v9137_v55 }
0x138f   :  { %v11756_v44 = vpop.eup %11755  ;;  %v9033_v31 = vmul.f32 %v11754_v36, %v18042_v16  ;;  %v9139_v37 = vadd.f32 %v16752_v58, %v9085_v46 }
0x1390   :  { %v9140_v25 = vadd.f32 %v16752_v58, %v9086_v57  ;;  %v9034_v60 = vmul.f32 %v11756_v44, %v18043_v29  ;;  %11121 = vmatprep.mubr.msk.bf16.mxu0 %vm8411_vm2, %v9165_v3 }
0x1391   :  { %v9087_v20 = vmul.f32 %v16734_v9, %v9033_v31 }
0x1392   :  { %v9166_v15 = vpack.c.bf16 %v9140_v25, %v9139_v37  ;;  %v9088_v8 = vmul.f32 %v16734_v9, %v9034_v60 }
0x1393   :  { %v9141_v11 = vadd.f32 %v16752_v58, %v9087_v20 }
0x1394   :  { %11122 = vmatmul.mubr.msk.bf16.gmra.mrb[64].mxu0 %vm8411_vm2, %v9166_v15  ;;  %v9142_v41 = vadd.f32 %v16752_v58, %v9088_v8 }
0x1396   :  { %v9167_v39 = vpack.c.bf16 %v9142_v41, %v9141_v11 }
0x1398   :  { %11125 = vmatprep.mubr.msk.bf16.mxu0 %vm8411_vm2, %v9167_v39 }
0x13ae   :  { %v8841_v50 = vpop.xlane.xlu0 %8840 }
0x13af   :  { %v8891_v7 = vmul.f32 0.020833334, %v8841_v50 }
0x13b0   :  { %v8844_v22 = vpop.xlane.xlu1 %8843 }
0x13b1   :  { %v8939_v53 = vadd.f32 1e-05, %v8891_v7  ;;  %v8892_v45 = vmul.f32 0.020833334, %v8844_v22 }
0x13b3   :  { %11757 = vrsqrt.f32 %v8939_v53  ;;  %v8940_v26 = vadd.f32 1e-05, %v8892_v45 }
0x13b5   :  { %11759 = vrsqrt.f32 %v8940_v26 }
0x13bd   :  { %v11758_v40 = vpop.eup %11757 }
0x13be   :  { %v9035_v62 = vmul.f32 %v11758_v40, %v16729_v12 }
0x13bf   :  { %v11760_v28 = vpop.eup %11759 }
0x13c0   :  { %v9089_v30 = vmul.f32 %v16734_v9, %v9035_v62  ;;  %v9036_v24 = vmul.f32 %v11760_v28, %v18044_v17 }
0x13c2   :  { %v9090_v23 = vmul.f32 %v16734_v9, %v9036_v24  ;;  %v9143_v33 = vadd.f32 %v16752_v58, %v9089_v30 }
0x13c4   :  { %v9144_v1 = vadd.f32 %v16752_v58, %v9090_v23 }
0x13c6   :  { %v9168_v18 = vpack.c.bf16 %v9144_v1, %v9143_v33 }
0x13c8   :  { %11126 = vmatmul.mubr.msk.bf16.gmra.mrb[68].mxu0 %vm8411_vm2, %v9168_v18 }
0x13fb   :  { %v11083_v12 = vpop.f32.mrb[24].mxu0 }
0x13fc   :  { %v9315_v27 = vadd.f32 %v11083_v12, %v16919_v59  ;;  %v9306_v48 = vpop.f32.mrb[25].mxu0 }
0x13fd   :  { %v9307_v32 = vadd.f32 %v16919_v59, %v9306_v48  ;;  %v11084_v42 = vpop.f32.mrb[26].mxu0 }
0x13fe   :  { %9499 = vst [vmem:[%s17125_s12 + $0x10] sm:$0xff] %v9315_v27  ;;  %v9318_v9 = vadd.f32 %v11084_v42, %v16919_v59  ;;  %v9309_v58 = vpop.f32.mrb[27].mxu0 }
0x13ff   :  { %9497 = vst [vmem:[%s17125_s12] sm:$0xff] %v9307_v32  ;;  %v9310_v21 = vadd.f32 %v16919_v59, %v9309_v58 }
0x1400   :  { %9500 = vst [vmem:[%s17125_s12 + $0x18] sm:$0xff] %v9318_v9 }
0x1401   :  { %9498 = vst [vmem:[%s17125_s12 + $0x8] sm:$0xff] %v9310_v21 }
0x1403   :  { %v11087_v56 = vpop.f32.mrb[28].mxu0 }
0x1404   :  { %v9331_v4 = vadd.f32 %v11087_v56, %v16919_v59  ;;  %v9322_v61 = vpop.f32.mrb[29].mxu0 }
0x1405   :  { %v9323_v49 = vadd.f32 %v16919_v59, %v9322_v61  ;;  %v11088_v54 = vpop.f32.mrb[30].mxu0 }
0x1406   :  { %9503 = vst [vmem:[%s17125_s12 + $0x30] sm:$0xff] %v9331_v4  ;;  %v9334_v13 = vadd.f32 %v11088_v54, %v16919_v59  ;;  %v9325_v43 = vpop.f32.mrb[31].mxu0 }
0x1407   :  { %9501 = vst [vmem:[%s17125_s12 + $0x20] sm:$0xff] %v9323_v49  ;;  %v9326_v35 = vadd.f32 %v16919_v59, %v9325_v43 }
0x1408   :  { %9504 = vst [vmem:[%s17125_s12 + $0x38] sm:$0xff] %v9334_v13 }
0x1409   :  { %9502 = vst [vmem:[%s17125_s12 + $0x28] sm:$0xff] %v9326_v35 }
0x1413   :  { %v11091_v10 = vpop.f32.mrb[32].mxu0 }
0x1414   :  { %v9347_v38 = vadd.f32 %v11091_v10, %v16919_v59  ;;  %v9338_v52 = vpop.f32.mrb[33].mxu0 }
0x1415   :  { %v9339_v0 = vadd.f32 %v16919_v59, %v9338_v52  ;;  %v11092_v5 = vpop.f32.mrb[34].mxu0 }
0x1416   :  { %9507 = vst [vmem:[%s17125_s12 + $0x50] sm:$0xff] %v9347_v38  ;;  %v9350_v2 = vadd.f32 %v11092_v5, %v16919_v59  ;;  %v9341_v34 = vpop.f32.mrb[35].mxu0 }
0x1417   :  { %9505 = vst [vmem:[%s17125_s12 + $0x40] sm:$0xff] %v9339_v0  ;;  %v9342_v14 = vadd.f32 %v16919_v59, %v9341_v34 }
0x1418   :  { %9508 = vst [vmem:[%s17125_s12 + $0x58] sm:$0xff] %v9350_v2 }
0x1419   :  { %9506 = vst [vmem:[%s17125_s12 + $0x48] sm:$0xff] %v9342_v14 }
0x141e   :  { %v11095_v63 = vpop.f32.mrb[36].mxu0 }
0x141f   :  { %v9363_v51 = vadd.f32 %v11095_v63, %v16919_v59  ;;  %v9354_v6 = vpop.f32.mrb[37].mxu0 }
0x1420   :  { %v9355_v19 = vadd.f32 %v16919_v59, %v9354_v6  ;;  %v11096_v55 = vpop.f32.mrb[38].mxu0 }
0x1421   :  { %9511 = vst [vmem:[%s17125_s12 + $0x70] sm:$0xff] %v9363_v51  ;;  %v9366_v47 = vadd.f32 %v11096_v55, %v16919_v59  ;;  %v9357_v46 = vpop.f32.mrb[39].mxu0 }
0x1422   :  { %9509 = vst [vmem:[%s17125_s12 + $0x60] sm:$0xff] %v9355_v19  ;;  %v9358_v36 = vadd.f32 %v16919_v59, %v9357_v46 }
0x1423   :  { %9512 = vst [vmem:[%s17125_s12 + $0x78] sm:$0xff] %v9366_v47 }
0x1424   :  { %9510 = vst [vmem:[%s17125_s12 + $0x68] sm:$0xff] %v9358_v36 }
0x142d   :  { %v11099_v57 = vpop.f32.mrb[40].mxu0 }
0x142e   :  { %v9379_v3 = vadd.f32 %v11099_v57, %v16919_v59  ;;  %v9370_v44 = vpop.f32.mrb[41].mxu0 }
0x142f   :  { %v9371_v16 = vadd.f32 %v16919_v59, %v9370_v44  ;;  %v11100_v31 = vpop.f32.mrb[42].mxu0 }
0x1430   :  { %9515 = vst [vmem:[%s17125_s12 + $0x90] sm:$0xff] %v9379_v3  ;;  %v9382_v37 = vadd.f32 %v11100_v31, %v16919_v59  ;;  %v9373_v25 = vpop.f32.mrb[43].mxu0 }
0x1431   :  { %9513 = vst [vmem:[%s17125_s12 + $0x80] sm:$0xff] %v9371_v16  ;;  %v9374_v29 = vadd.f32 %v16919_v59, %v9373_v25 }
0x1432   :  { %9516 = vst [vmem:[%s17125_s12 + $0x98] sm:$0xff] %v9382_v37 }
0x1433   :  { %9514 = vst [vmem:[%s17125_s12 + $0x88] sm:$0xff] %v9374_v29 }
0x1438   :  { %v11103_v60 = vpop.f32.mrb[44].mxu0 }
0x1439   :  { %v9395_v20 = vadd.f32 %v11103_v60, %v16919_v59  ;;  %v9386_v15 = vpop.f32.mrb[45].mxu0 }
0x143a   :  { %v9387_v8 = vadd.f32 %v16919_v59, %v9386_v15  ;;  %v11104_v11 = vpop.f32.mrb[46].mxu0 }
0x143b   :  { %9519 = vst [vmem:[%s17125_s12 + $0xb0] sm:$0xff] %v9395_v20  ;;  %v9398_v41 = vadd.f32 %v11104_v11, %v16919_v59  ;;  %v9389_v39 = vpop.f32.mrb[47].mxu0 }
0x143c   :  { %9517 = vst [vmem:[%s17125_s12 + $0xa0] sm:$0xff] %v9387_v8  ;;  %v9390_v50 = vadd.f32 %v16919_v59, %v9389_v39 }
0x143d   :  { %9520 = vst [vmem:[%s17125_s12 + $0xb8] sm:$0xff] %v9398_v41 }
0x143e   :  { %9518 = vst [vmem:[%s17125_s12 + $0xa8] sm:$0xff] %v9390_v50 }
0x1445   :  { %v11107_v7 = vpop.f32.mrb[48].mxu0 }
0x1446   :  { %v9411_v22 = vadd.f32 %v11107_v7, %v16919_v59  ;;  %v9402_v53 = vpop.f32.mrb[49].mxu0 }
0x1447   :  { %v9403_v45 = vadd.f32 %v16919_v59, %v9402_v53  ;;  %v11108_v26 = vpop.f32.mrb[50].mxu0 }
0x1448   :  { %9523 = vst [vmem:[%s17125_s12 + $0xd0] sm:$0xff] %v9411_v22  ;;  %v9414_v40 = vadd.f32 %v11108_v26, %v16919_v59  ;;  %v9405_v62 = vpop.f32.mrb[51].mxu0 }
0x1449   :  { %9521 = vst [vmem:[%s17125_s12 + $0xc0] sm:$0xff] %v9403_v45  ;;  %v9406_v28 = vadd.f32 %v16919_v59, %v9405_v62 }
0x144a   :  { %9524 = vst [vmem:[%s17125_s12 + $0xd8] sm:$0xff] %v9414_v40 }
0x144b   :  { %9522 = vst [vmem:[%s17125_s12 + $0xc8] sm:$0xff] %v9406_v28 }
0x144f   :  { %v11111_v30 = vpop.f32.mrb[52].mxu0 }
0x1450   :  { %v9427_v17 = vadd.f32 %v11111_v30, %v16919_v59  ;;  %v9418_v24 = vpop.f32.mrb[53].mxu0 }
0x1451   :  { %v9419_v23 = vadd.f32 %v16919_v59, %v9418_v24  ;;  %v11112_v33 = vpop.f32.mrb[54].mxu0 }
0x1452   :  { %9527 = vst [vmem:[%s17125_s12 + $0xf0] sm:$0xff] %v9427_v17  ;;  %v9430_v1 = vadd.f32 %v11112_v33, %v16919_v59  ;;  %v9421_v18 = vpop.f32.mrb[55].mxu0 }
0x1453   :  { %9525 = vst [vmem:[%s17125_s12 + $0xe0] sm:$0xff] %v9419_v23  ;;  %v9422_v12 = vadd.f32 %v16919_v59, %v9421_v18 }
0x1454   :  { %9528 = vst [vmem:[%s17125_s12 + $0xf8] sm:$0xff] %v9430_v1 }
0x1455   :  { %9526 = vst [vmem:[%s17125_s12 + $0xe8] sm:$0xff] %v9422_v12 }
0x1457   :  { %v11115_v27 = vpop.f32.mrb[56].mxu0 }
0x1458   :  { %v9443_v48 = vadd.f32 %v11115_v27, %v16919_v59  ;;  %v9434_v32 = vpop.f32.mrb[57].mxu0 }
0x1459   :  { %v9435_v42 = vadd.f32 %v16919_v59, %v9434_v32  ;;  %v11116_v9 = vpop.f32.mrb[58].mxu0 }
0x145a   :  { %9531 = vst [vmem:[%s17125_s12 + $0x110] sm:$0xff] %v9443_v48  ;;  %v9446_v58 = vadd.f32 %v11116_v9, %v16919_v59  ;;  %v9437_v21 = vpop.f32.mrb[59].mxu0 }
0x145b   :  { %9529 = vst [vmem:[%s17125_s12 + $0x100] sm:$0xff] %v9435_v42  ;;  %v9438_v56 = vadd.f32 %v16919_v59, %v9437_v21 }
0x145c   :  { %9532 = vst [vmem:[%s17125_s12 + $0x118] sm:$0xff] %v9446_v58 }
0x145d   :  { %9530 = vst [vmem:[%s17125_s12 + $0x108] sm:$0xff] %v9438_v56 }
0x145f   :  { %v11119_v4 = vpop.f32.mrb[60].mxu0 }
0x1460   :  { %v9459_v61 = vadd.f32 %v11119_v4, %v16919_v59  ;;  %v9450_v49 = vpop.f32.mrb[61].mxu0 }
0x1461   :  { %v9451_v54 = vadd.f32 %v16919_v59, %v9450_v49  ;;  %v11120_v13 = vpop.f32.mrb[62].mxu0 }
0x1462   :  { %9535 = vst [vmem:[%s17125_s12 + $0x130] sm:$0xff] %v9459_v61  ;;  %v9462_v43 = vadd.f32 %v11120_v13, %v16919_v59  ;;  %v9453_v35 = vpop.f32.mrb[63].mxu0 }
0x1463   :  { %9533 = vst [vmem:[%s17125_s12 + $0x120] sm:$0xff] %v9451_v54  ;;  %v9454_v10 = vadd.f32 %v16919_v59, %v9453_v35 }
0x1464   :  { %9536 = vst [vmem:[%s17125_s12 + $0x138] sm:$0xff] %v9462_v43 }
0x1465   :  { %9534 = vst [vmem:[%s17125_s12 + $0x128] sm:$0xff] %v9454_v10 }
0x1467   :  { %v11123_v38 = vpop.f32.mrb[64].mxu0 }
0x1468   :  { %v9475_v52 = vadd.f32 %v11123_v38, %v16919_v59  ;;  %v9466_v0 = vpop.f32.mrb[65].mxu0 }
0x1469   :  { %v9467_v5 = vadd.f32 %v16919_v59, %v9466_v0  ;;  %v11124_v2 = vpop.f32.mrb[66].mxu0 }
0x146a   :  { %9539 = vst [vmem:[%s17125_s12 + $0x150] sm:$0xff] %v9475_v52  ;;  %v9478_v34 = vadd.f32 %v11124_v2, %v16919_v59  ;;  %v9469_v14 = vpop.f32.mrb[67].mxu0 }
0x146b   :  { %9537 = vst [vmem:[%s17125_s12 + $0x140] sm:$0xff] %v9467_v5  ;;  %v9470_v63 = vadd.f32 %v16919_v59, %v9469_v14 }
0x146c   :  { %9540 = vst [vmem:[%s17125_s12 + $0x158] sm:$0xff] %v9478_v34 }
0x146d   :  { %9538 = vst [vmem:[%s17125_s12 + $0x148] sm:$0xff] %v9470_v63 }
0x149b   :  { %v11127_v51 = vpop.f32.mrb[68].mxu0 }
0x149c   :  { %v9491_v6 = vadd.f32 %v11127_v51, %v16919_v59  ;;  %v9482_v19 = vpop.f32.mrb[69].mxu0 }
0x149d   :  { %v9483_v55 = vadd.f32 %v16919_v59, %v9482_v19  ;;  %v11128_v47 = vpop.f32.mrb[70].mxu0 }
0x149e   :  { %9543 = vst [vmem:[%s17125_s12 + $0x170] sm:$0xff] %v9491_v6  ;;  %v9494_v46 = vadd.f32 %v11128_v47, %v16919_v59  ;;  %v9485_v36 = vpop.f32.mrb[71].mxu0 }
0x149f   :  { %9541 = vst [vmem:[%s17125_s12 + $0x160] sm:$0xff] %v9483_v55  ;;  %v9486_v57 = vadd.f32 %v16919_v59, %v9485_v36 }
0x14a0   :  { %9544 = vst [vmem:[%s17125_s12 + $0x178] sm:$0xff] %v9494_v46 }
0x14a1   :  { %9542 = vst [vmem:[%s17125_s12 + $0x168] sm:$0xff] %v9486_v57 }
0x14a2   :  { %9549 = vsyncpa [#allocation3], 1 }

</bundles_post_ra>
